<compile_context>
chip_gen: v7x
topology: tpu7x:2x2x1
jax: 0.10.0
libtpu: 0.0.40
codegen_flags: <defaults>
</compile_context>

<pallas_src>
import functools

import numpy as np
import jax
import jax.numpy as jnp
from jax import lax
from jax.experimental import pallas as pl
from jax.experimental.pallas import tpu as pltpu

SIZES = (3, 5, 7)        # self.sizes
GROUP_MULT = (2, 1, 1)   # self.groups
NUM_GROUPS = 4           # self.num_groups
SUBLANE = 8              # f32 sublane tile


# --------------------------------------------------------------------------
# Fused kernel: high-pass filters + pools + dual attention + projection
# --------------------------------------------------------------------------
def _ds_attention_kernel(x_ref, y_ref, w1_ref, w2_ref, tapm_ref, poolm_ref,
                         wqv_ref, wkh_ref, wql_ref, wkl_ref, wvl_ref,
                         wa1_ref, wa2_ref, wproj_ref, tcol_ref, hbias_ref,
                         o_ref, hpx_ref, hpy_ref,
                         *, C, W, N, num_head, row_blocks):
    f32, bf16 = jnp.float32, jnp.bfloat16
    hd = C // num_head

    def mm(a, b):
        # MXU matmul: bf16 operands, f32 accumulation.
        return jnp.dot(a.astype(bf16), b.astype(bf16),
                       preferred_element_type=f32)

    tapm = tapm_ref[...]           # (K*K, N) per-tap spatial validity masks
    poolm = poolm_ref[...]         # (1, N)   even-(row, col) lane mask

    # ---- grouped depthwise high-pass filters (HighPassFilters1/2) ----------
    # row_blocks: static ((row0, row1, ((tap_idx, lane_shift), ...)), ...).
    # Rows of the k=3 group only see the 3x3 taps; the ring taps run only on
    # the sublane-aligned row range of the larger-kernel groups.
    # TODO(synk): at production C*N, DMA x/y into a zero-halo VMEM layout so
    # the per-tap validity mask (1 of the 3 VALU ops per tap) can be dropped.
    def hp_conv(slab, w, hp_ref):
        for r0, r1, taps in row_blocks:
            sub = slab[r0:r1, :]
            wsub = w[r0:r1, :]
            acc = None
            for t, sh in taps:
                rolled = sub if sh == 0 else pltpu.roll(sub, shift=sh, axis=1)
                term = rolled * tapm[t:t + 1, :] * wsub[:, t:t + 1]
                acc = term if acc is None else acc + term
            hp_ref[r0:r1, :] = acc

    x = x_ref[...]
    y = y_ref[...]
    hp_conv(x, w1_ref[...], hpx_ref)
    hp_conv(y, w2_ref[...], hpy_ref)

    # ---- high-frequency branch: global channel attention ---------------------
    qv_h = mm(wqv_ref[...], hpx_ref[...])        # (2C, N) = [q_h ; v_h], C-deep
    k_h = mm(wkh_ref[...], hpy_ref[...])         # (C, N),  C-deep (no zero block)
    q_h, v_h = qv_h[:C, :], qv_h[C:, :]
    pooled = jnp.sum(q_h * k_h, axis=1, keepdims=True) * (1.0 / N)   # (C, 1)
    hidden = jnp.maximum(mm(wa1_ref[...], pooled), 0.0)              # (C/4, 1)
    high_att = jnp.tanh(mm(wa2_ref[...], hidden))                    # (C, 1)
    out_h = high_att * v_h                                           # (C, N)

    # ---- low-frequency branch -------------------------------------------------
    # 2x2 average pool kept scattered at even (row, col) lane positions: the
    # downstream L2 norm and spatial contractions ignore the interleaved zeros.
    # TODO(synk): at N >= ~1-4K, compact the pooled slab to N/4 dense lanes
    # before the projections / Gram (4x MXU saving there).
    def pool2(a):
        s = (a + pltpu.roll(a, shift=N - 1, axis=1)
             + pltpu.roll(a, shift=N - W, axis=1)
             + pltpu.roll(a, shift=N - W - 1, axis=1))
        return (0.25 * s) * poolm

    q_l = mm(wql_ref[...], pool2(x))             # (C, N)
    k_l = mm(wkl_ref[...], pool2(y))             # (C, N)
    v_l = mm(wvl_ref[...], y)                    # (C, N) from raw y

    def l2norm(a):   # F.normalize along the spatial axis (torch dim=-1)
        ss = jnp.sum(a * a, axis=1, keepdims=True)
        return a * lax.rsqrt(jnp.maximum(ss, 1e-24))

    qn, kn = l2norm(q_l), l2norm(k_l)

    if hd % SUBLANE == 0:
        # Production path (hd >= one sublane tile): per-head batched attention,
        # no block-diagonal masking -> num_head-fold less MXU work.
        qh = qn.reshape(num_head, hd, N).astype(bf16)
        kh = kn.reshape(num_head, hd, N).astype(bf16)
        vh = v_l.reshape(num_head, hd, N).astype(bf16)
        att = lax.dot_general(qh, kh, (((2,), (2,)), ((0,), (0,))),
                              preferred_element_type=f32)            # (h, hd, hd)
        att = att * tcol_ref[...].reshape(num_head, hd, 1)
        att = jnp.exp(att - jnp.max(att, axis=2, keepdims=True))
        att = att * pl.reciprocal(jnp.sum(att, axis=2, keepdims=True), approx=True)
        out_l = lax.dot_general(att.astype(bf16), vh,
                                (((2,), (1,)), ((0,), (0,))),
                                preferred_element_type=f32).reshape(C, N)
    else:
        # hd below one sublane/MXU tile (this test): one Gram over all channels;
        # temperature + block-diagonal mask folded into a single FMA.
        att = lax.dot_general(qn.astype(bf16), kn.astype(bf16),
                              (((1,), (1,)), ((), ())),
                              preferred_element_type=f32)            # (C, C)
        att = att * tcol_ref[...] + hbias_ref[...]
        att = jnp.exp(att - jnp.max(att, axis=1, keepdims=True))
        att = att * pl.reciprocal(jnp.sum(att, axis=1, keepdims=True), approx=True)
        out_l = mm(att, v_l)                                         # (C, N)

    # ---- output projection -----------------------------------------------------
    o_ref[...] = mm(wproj_ref[...], out_h + out_l)


# --------------------------------------------------------------------------
# Wrapper helpers
# --------------------------------------------------------------------------
def _spatial_masks(H, W, K):
    N = H * W
    idx = np.arange(N)
    rr, cc = idx // W, idx % W
    p = K // 2
    tapm = np.zeros((K * K, N), np.float32)
    for dy in range(K):
        for dx in range(K):
            oy, ox = dy - p, dx - p
            valid = ((rr + oy >= 0) & (rr + oy < H) &
                     (cc + ox >= 0) & (cc + ox < W))
            tapm[dy * K + dx] = valid
    poolm = (((rr % 2) == 0) & ((cc % 2) == 0)).astype(np.float32)[None, :]
    return jnp.asarray(tapm), jnp.asarray(poolm)


def _unified_dw_weights(params, prefix, chans, C, K):
    # Zero-pad the 3/5/7 group kernels into one centered KxK weight per channel.
    w = jnp.zeros((C, K, K), jnp.float32)
    ch0 = 0
    for i, (cg, k) in enumerate(zip(chans, SIZES)):
        off = (K - k) // 2
        w = w.at[ch0:ch0 + cg, off:off + k, off:off + k].set(
            params[f'{prefix}_{i}'].astype(jnp.float32))
        ch0 += cg
    return w.reshape(C, K * K)


def _row_blocks(C, chans, K, H, W):
    # Static tap schedule: ring-r taps (max(|dy-p|,|dx-p|) == r) only apply from
    # the (sublane-aligned, rounded-down) start row of the channel groups whose
    # kernel covers that ring; the zero-padded unified weights make rounded-down
    # rows exact.  Channel groups are already contiguous & ordered 3 -> 5 -> 7.
    p = K // 2
    N = H * W
    ring_start = []
    for r in range(p + 1):
        s = sum(cg for cg, k in zip(chans, SIZES) if k // 2 < r)
        ring_start.append(min((s // SUBLANE) * SUBLANE, C))
    starts = sorted(set(ring_start))
    bounds = starts + [C]
    blocks = []
    for bi, b0 in enumerate(starts):
        b1 = bounds[bi + 1]
        if b0 >= b1:
            continue
        taps = []
        for dy in range(K):
            for dx in range(K):
                if ring_start[max(abs(dy - p), abs(dx - p))] <= b0:
                    shift = (-((dy - p) * W + (dx - p))) % N
                    taps.append((dy * K + dx, shift))
        blocks.append((b0, b1, tuple(taps)))
    return tuple(blocks)


# --------------------------------------------------------------------------
# Wrapper
# --------------------------------------------------------------------------
def ds_attention_pallas(x, y, params, *, num_head):
    B, C, H, W = x.shape
    N = H * W
    K = max(SIZES)
    g = C // NUM_GROUPS
    chans = tuple(g * n for n in GROUP_MULT)
    hd = C // num_head
    f32, bf16 = jnp.float32, jnp.bfloat16

    # NCHW -> channel-major pixel-on-lanes (B, C, H*W): free reshape, no transpose.
    x_pix = x.reshape(B, C, N).astype(f32)
    y_pix = y.reshape(B, C, N).astype(f32)

    w1 = _unified_dw_weights(params, 'dw1', chans, C, K)              # (C, K*K)
    w2 = _unified_dw_weights(params, 'dw2', chans, C, K)              # (C, K*K)
    tapm, poolm = _spatial_masks(H, W, K)                             # (K*K, N), (1, N)
    row_blocks = _row_blocks(C, chans, K, H, W)

    # Un-fused projection weights (no zero blocks -> C-deep MXU contractions).
    wqv = jnp.concatenate([params['wqh'], params['wvh']], axis=0).astype(bf16)
    wkh = params['wkh'].astype(bf16)
    wql = params['wql'].astype(bf16)
    wkl = params['wkl'].astype(bf16)
    wvl = params['wvl'].astype(bf16)
    wa1 = params['wa1'].astype(bf16)
    wa2 = params['wa2'].astype(bf16)
    wproj = params['wproj'].astype(bf16)

    # Per-channel temperature column + additive block-diagonal bias (0 / -1e30):
    # the masked softmax prologue becomes a single FMA in the fused path.
    tcol = jnp.repeat(params['temp'].reshape(num_head).astype(f32), hd,
                      total_repeat_length=C).reshape(C, 1)            # (C, 1)
    blockdiag = np.kron(np.eye(num_head, dtype=np.float32),
                        np.ones((hd, hd), np.float32))
    hbias = jnp.asarray((1.0 - blockdiag) * np.float32(-1e30))        # (C, C)

    consts = (w1, w2, tapm, poolm, wqv, wkh, wql, wkl, wvl,
              wa1, wa2, wproj, tcol, hbias)

    batch_spec = pl.BlockSpec((None, C, N), lambda i: (i, 0, 0))

    def const_spec(a):
        nd = a.ndim
        return pl.BlockSpec(a.shape, lambda i, _n=nd: (0,) * _n)

    # TODO(synk): remaining production-size work (net-negative at C=16/N=256):
    # (a) zero-halo VMEM layout to drop tapm; (b) pack several batch images or
    # spatial tiles along the lane axis per grid step to feed the 256-wide MXU
    # and amortize the ~0.35us/step overhead; (c) compact the pooled slab to
    # N/4 dense lanes; (d) bf16 tap math on v6e/v7x (kept f32 here for exact
    # parity with the reference conv); (e) re-derive the spatial tile and set
    # vmem_limit_bytes for v7x's 64 MiB VMEM, and add a second parallel grid
    # axis so both v7x TensorCores stay busy when B is 1 or odd.
    out_pix = pl.pallas_call(
        functools.partial(_ds_attention_kernel, C=C, W=W, N=N,
                          num_head=num_head, row_blocks=row_blocks),
        grid=(B,),
        in_specs=[batch_spec, batch_spec] + [const_spec(a) for a in consts],
        out_specs=batch_spec,
        out_shape=jax.ShapeDtypeStruct((B, C, N), f32),
        scratch_shapes=[pltpu.VMEM((C, N), f32), pltpu.VMEM((C, N), f32)],
        compiler_params=pltpu.CompilerParams(dimension_semantics=("parallel",)),
    )(x_pix, y_pix, *consts)

    return out_pix.reshape(B, C, H, W)


# --------------------------------------------------------------------------
# Pure-JAX reference (mirrors the PyTorch forward; matmuls use bf16 operands
# with f32 accumulation exactly like the kernel's MXU usage).
# --------------------------------------------------------------------------
def _dw_conv_ref(x, wt, k):
    return lax.conv_general_dilated(
        x, wt[:, None, :, :], window_strides=(1, 1),
        padding=[(k // 2, k // 2)] * 2,
        dimension_numbers=('NCHW', 'OIHW', 'NCHW'),
        feature_group_count=x.shape[1],
        precision=lax.Precision.HIGHEST)


def _c1(Wm, a):
    return jnp.einsum('oc,bchw->bohw',
                      Wm.astype(jnp.bfloat16), a.astype(jnp.bfloat16),
                      preferred_element_type=jnp.float32)


def ds_attention_ref(x, y, p, *, num_head):
    b, c, h, w = x.shape
    g = c // NUM_GROUPS
    chans = [g * n for n in GROUP_MULT]
    split_pts = np.cumsum(chans)[:-1].tolist()
    xs = jnp.split(x, split_pts, axis=1)
    ys = jnp.split(y, split_pts, axis=1)
    xh = jnp.concatenate([_dw_conv_ref(xs[i], p[f'dw1_{i}'], SIZES[i])
                          for i in range(len(SIZES))], axis=1)
    yh = jnp.concatenate([_dw_conv_ref(ys[i], p[f'dw2_{i}'], SIZES[i])
                          for i in range(len(SIZES))], axis=1)

    q_h, k_h, v_h = _c1(p['wqh'], xh), _c1(p['wkh'], yh), _c1(p['wvh'], xh)
    pooled = jnp.mean(q_h * k_h, axis=(2, 3), keepdims=True)
    high_att = jnp.tanh(_c1(p['wa2'], jax.nn.relu(_c1(p['wa1'], pooled))))
    out_h = high_att * v_h

    pool2 = lambda a: a.reshape(b, c, h // 2, 2, w // 2, 2).mean(axis=(3, 5))
    q_l, k_l, v_l = _c1(p['wql'], pool2(x)), _c1(p['wkl'], pool2(y)), _c1(p['wvl'], y)
    hd = c // num_head
    to_heads = lambda a: a.reshape(b, num_head, hd, a.shape[2] * a.shape[3])
    q_l, k_l, v_l = to_heads(q_l), to_heads(k_l), to_heads(v_l)
    l2n = lambda a: a / jnp.maximum(jnp.linalg.norm(a, axis=-1, keepdims=True), 1e-12)
    q_l, k_l = l2n(q_l), l2n(k_l)
    att = jnp.einsum('bncs,bnds->bncd',
                     q_l.astype(jnp.bfloat16), k_l.astype(jnp.bfloat16),
                     preferred_element_type=jnp.float32) * p['temp']
    att = jax.nn.softmax(att, axis=-1)
    out_l = jnp.einsum('bncd,bnds->bncs',
                       att.astype(jnp.bfloat16), v_l.astype(jnp.bfloat16),
                       preferred_element_type=jnp.float32).reshape(b, c, h, w)
    return _c1(p['wproj'], out_h + out_l)


# --------------------------------------------------------------------------
# Deterministic parameter init (shapes from DSAttention.__init__, bias=False)
# --------------------------------------------------------------------------
def init_params(key, dim, num_head):
    g = dim // NUM_GROUPS
    chans = [g * n for n in GROUP_MULT]
    keys = jax.random.split(key, 16)
    scale = 0.15
    p = {}
    for i, (cg, k) in enumerate(zip(chans, SIZES)):
        p[f'dw1_{i}'] = scale * jax.random.normal(keys[i], (cg, k, k), jnp.float32)
        p[f'dw2_{i}'] = scale * jax.random.normal(keys[3 + i], (cg, k, k), jnp.float32)
    for j, name in enumerate(('wqh', 'wkh', 'wvh', 'wql', 'wkl', 'wvl', 'wproj')):
        p[name] = scale * jax.random.normal(keys[6 + j], (dim, dim), jnp.float32)
    p['wa1'] = scale * jax.random.normal(keys[13], (dim // 4, dim), jnp.float32)
    p['wa2'] = scale * jax.random.normal(keys[14], (dim, dim // 4), jnp.float32)
    # torch.ones(num_head, 1, 1), slightly perturbed so the per-head
    # temperature broadcast is actually exercised.
    p['temp'] = (1.0 + 0.1 * jnp.arange(num_head, dtype=jnp.float32)
                 ).reshape(num_head, 1, 1)
    return p


if __name__ == "__main__":
    B, DIM, H, W = 2, 16, 16, 16
    NUM_HEAD = 4

    root = jax.random.PRNGKey(0)
    k_param, k_x, k_y = jax.random.split(root, 3)
    params = init_params(k_param, DIM, NUM_HEAD)
    x = jax.random.normal(k_x, (B, DIM, H, W), jnp.float32)
    y = jax.random.normal(k_y, (B, DIM, H, W), jnp.float32)

    out = jax.block_until_ready(ds_attention_pallas(x, y, params, num_head=NUM_HEAD))
    assert out.shape == (B, DIM, H, W), out.shape

    ref = jax.block_until_ready(ds_attention_ref(x, y, params, num_head=NUM_HEAD))
    max_err = float(jnp.max(jnp.abs(out - ref)))
    # Tolerance accounts for bf16 MXU operand rounding order differences and
    # the approx softmax reciprocal; real layout/semantic bugs give O(1) errors.
    if not bool(jnp.allclose(out, ref, rtol=2e-2, atol=2e-2)):
        raise AssertionError(f"Pallas kernel mismatch vs reference: max|err|={max_err}")
    print("KERNEL_OK")
</pallas_src>

<mosaic_0001>
module attributes {stable_mosaic.version = 11 : i64} {
  func.func @_ds_attention_kernel(%arg0: i32, %arg1: memref<1x16x256xf32, #tpu.memory_space<vmem>>, %arg2: memref<1x16x256xf32, #tpu.memory_space<vmem>>, %arg3: memref<16x49xf32, #tpu.memory_space<vmem>>, %arg4: memref<16x49xf32, #tpu.memory_space<vmem>>, %arg5: memref<49x256xf32, #tpu.memory_space<vmem>>, %arg6: memref<1x256xf32, #tpu.memory_space<vmem>>, %arg7: memref<32x16xbf16, #tpu.memory_space<vmem>>, %arg8: memref<16x16xbf16, #tpu.memory_space<vmem>>, %arg9: memref<16x16xbf16, #tpu.memory_space<vmem>>, %arg10: memref<16x16xbf16, #tpu.memory_space<vmem>>, %arg11: memref<16x16xbf16, #tpu.memory_space<vmem>>, %arg12: memref<4x16xbf16, #tpu.memory_space<vmem>>, %arg13: memref<16x4xbf16, #tpu.memory_space<vmem>>, %arg14: memref<16x16xbf16, #tpu.memory_space<vmem>>, %arg15: memref<16x1xf32, #tpu.memory_space<vmem>>, %arg16: memref<16x16xf32, #tpu.memory_space<vmem>>, %arg17: memref<1x16x256xf32, #tpu.memory_space<vmem>>, %arg18: memref<16x256xf32, #tpu.memory_space<vmem>>, %arg19: memref<16x256xf32, #tpu.memory_space<vmem>>) attributes {dimension_semantics = [#tpu.dimension_semantics<parallel>], iteration_bounds = array<i64: 2>, scalar_prefetch = 0 : i64, scratch_operands = 2 : i64, tpu.core_type = #tpu.core_type<tc>, window_params = [{transform_indices = @transform_0, window_bounds = array<i64: 1, 16, 256>}, {transform_indices = @transform_1, window_bounds = array<i64: 1, 16, 256>}, {pipeline_mode = #tpu.pipeline_mode<synchronous>, transform_indices = @transform_2, window_bounds = array<i64: 16, 49>}, {pipeline_mode = #tpu.pipeline_mode<synchronous>, transform_indices = @transform_3, window_bounds = array<i64: 16, 49>}, {pipeline_mode = #tpu.pipeline_mode<synchronous>, transform_indices = @transform_4, window_bounds = array<i64: 49, 256>}, {pipeline_mode = #tpu.pipeline_mode<synchronous>, transform_indices = @transform_5, window_bounds = array<i64: 1, 256>}, {pipeline_mode = #tpu.pipeline_mode<synchronous>, transform_indices = @transform_6, window_bounds = array<i64: 32, 16>}, {pipeline_mode = #tpu.pipeline_mode<synchronous>, transform_indices = @transform_7, window_bounds = array<i64: 16, 16>}, {pipeline_mode = #tpu.pipeline_mode<synchronous>, transform_indices = @transform_8, window_bounds = array<i64: 16, 16>}, {pipeline_mode = #tpu.pipeline_mode<synchronous>, transform_indices = @transform_9, window_bounds = array<i64: 16, 16>}, {pipeline_mode = #tpu.pipeline_mode<synchronous>, transform_indices = @transform_10, window_bounds = array<i64: 16, 16>}, {pipeline_mode = #tpu.pipeline_mode<synchronous>, transform_indices = @transform_11, window_bounds = array<i64: 4, 16>}, {pipeline_mode = #tpu.pipeline_mode<synchronous>, transform_indices = @transform_12, window_bounds = array<i64: 16, 4>}, {pipeline_mode = #tpu.pipeline_mode<synchronous>, transform_indices = @transform_13, window_bounds = array<i64: 16, 16>}, {pipeline_mode = #tpu.pipeline_mode<synchronous>, transform_indices = @transform_14, window_bounds = array<i64: 16, 1>}, {pipeline_mode = #tpu.pipeline_mode<synchronous>, transform_indices = @transform_15, window_bounds = array<i64: 16, 16>}, {transform_indices = @transform_16, window_bounds = array<i64: 1, 16, 256>}]} {
    %c0 = arith.constant 0 : index
    %c0_0 = arith.constant 0 : index
    %0 = vector.load %arg5[%c0, %c0_0] : memref<49x256xf32, #tpu.memory_space<vmem>>, vector<49x256xf32>
    %c0_1 = arith.constant 0 : index
    %c0_2 = arith.constant 0 : index
    %1 = vector.load %arg6[%c0_1, %c0_2] : memref<1x256xf32, #tpu.memory_space<vmem>>, vector<1x256xf32>
    %c0_3 = arith.constant 0 : index
    %c0_4 = arith.constant 0 : index
    %c0_5 = arith.constant 0 : index
    %2 = vector.load %arg1[%c0_3, %c0_4, %c0_5] : memref<1x16x256xf32, #tpu.memory_space<vmem>>, vector<1x16x256xf32>
    %3 = vector.shape_cast %2 : vector<1x16x256xf32> to vector<16x256xf32>
    %c0_6 = arith.constant 0 : index
    %c0_7 = arith.constant 0 : index
    %c0_8 = arith.constant 0 : index
    %4 = vector.load %arg2[%c0_6, %c0_7, %c0_8] : memref<1x16x256xf32, #tpu.memory_space<vmem>>, vector<1x16x256xf32>
    %5 = vector.shape_cast %4 : vector<1x16x256xf32> to vector<16x256xf32>
    %c0_9 = arith.constant 0 : index
    %c0_10 = arith.constant 0 : index
    %6 = vector.load %arg3[%c0_9, %c0_10] : memref<16x49xf32, #tpu.memory_space<vmem>>, vector<16x49xf32>
    %7 = vector.extract_strided_slice %3 {offsets = [0, 0], sizes = [8, 256], strides = [1, 1]} : vector<16x256xf32> to vector<8x256xf32>
    %8 = vector.extract_strided_slice %6 {offsets = [0, 0], sizes = [8, 49], strides = [1, 1]} : vector<16x49xf32> to vector<8x49xf32>
    %c17_i32 = arith.constant 17 : i32
    %9 = tpu.dynamic_rotate %7 by %c17_i32 dim 1 : vector<8x256xf32>, i32 -> vector<8x256xf32>
    %10 = vector.extract_strided_slice %0 {offsets = [16, 0], sizes = [1, 256], strides = [1, 1]} : vector<49x256xf32> to vector<1x256xf32>
    %11 = vector.broadcast %10 : vector<1x256xf32> to vector<8x256xf32>
    %12 = arith.mulf %9, %11 : vector<8x256xf32>
    %13 = vector.extract_strided_slice %8 {offsets = [0, 16], sizes = [8, 1], strides = [1, 1]} : vector<8x49xf32> to vector<8x1xf32>
    %14 = vector.broadcast %13 : vector<8x1xf32> to vector<8x256xf32>
    %15 = arith.mulf %12, %14 : vector<8x256xf32>
    %c16_i32 = arith.constant 16 : i32
    %16 = tpu.dynamic_rotate %7 by %c16_i32 dim 1 : vector<8x256xf32>, i32 -> vector<8x256xf32>
    %17 = vector.extract_strided_slice %0 {offsets = [17, 0], sizes = [1, 256], strides = [1, 1]} : vector<49x256xf32> to vector<1x256xf32>
    %18 = vector.broadcast %17 : vector<1x256xf32> to vector<8x256xf32>
    %19 = arith.mulf %16, %18 : vector<8x256xf32>
    %20 = vector.extract_strided_slice %8 {offsets = [0, 17], sizes = [8, 1], strides = [1, 1]} : vector<8x49xf32> to vector<8x1xf32>
    %21 = vector.broadcast %20 : vector<8x1xf32> to vector<8x256xf32>
    %22 = arith.mulf %19, %21 : vector<8x256xf32>
    %23 = arith.addf %15, %22 : vector<8x256xf32>
    %c15_i32 = arith.constant 15 : i32
    %24 = tpu.dynamic_rotate %7 by %c15_i32 dim 1 : vector<8x256xf32>, i32 -> vector<8x256xf32>
    %25 = vector.extract_strided_slice %0 {offsets = [18, 0], sizes = [1, 256], strides = [1, 1]} : vector<49x256xf32> to vector<1x256xf32>
    %26 = vector.broadcast %25 : vector<1x256xf32> to vector<8x256xf32>
    %27 = arith.mulf %24, %26 : vector<8x256xf32>
    %28 = vector.extract_strided_slice %8 {offsets = [0, 18], sizes = [8, 1], strides = [1, 1]} : vector<8x49xf32> to vector<8x1xf32>
    %29 = vector.broadcast %28 : vector<8x1xf32> to vector<8x256xf32>
    %30 = arith.mulf %27, %29 : vector<8x256xf32>
    %31 = arith.addf %23, %30 : vector<8x256xf32>
    %c1_i32 = arith.constant 1 : i32
    %32 = tpu.dynamic_rotate %7 by %c1_i32 dim 1 : vector<8x256xf32>, i32 -> vector<8x256xf32>
    %33 = vector.extract_strided_slice %0 {offsets = [23, 0], sizes = [1, 256], strides = [1, 1]} : vector<49x256xf32> to vector<1x256xf32>
    %34 = vector.broadcast %33 : vector<1x256xf32> to vector<8x256xf32>
    %35 = arith.mulf %32, %34 : vector<8x256xf32>
    %36 = vector.extract_strided_slice %8 {offsets = [0, 23], sizes = [8, 1], strides = [1, 1]} : vector<8x49xf32> to vector<8x1xf32>
    %37 = vector.broadcast %36 : vector<8x1xf32> to vector<8x256xf32>
    %38 = arith.mulf %35, %37 : vector<8x256xf32>
    %39 = arith.addf %31, %38 : vector<8x256xf32>
    %40 = vector.extract_strided_slice %0 {offsets = [24, 0], sizes = [1, 256], strides = [1, 1]} : vector<49x256xf32> to vector<1x256xf32>
    %41 = vector.broadcast %40 : vector<1x256xf32> to vector<8x256xf32>
    %42 = arith.mulf %7, %41 : vector<8x256xf32>
    %43 = vector.extract_strided_slice %8 {offsets = [0, 24], sizes = [8, 1], strides = [1, 1]} : vector<8x49xf32> to vector<8x1xf32>
    %44 = vector.broadcast %43 : vector<8x1xf32> to vector<8x256xf32>
    %45 = arith.mulf %42, %44 : vector<8x256xf32>
    %46 = arith.addf %39, %45 : vector<8x256xf32>
    %c255_i32 = arith.constant 255 : i32
    %47 = tpu.dynamic_rotate %7 by %c255_i32 dim 1 : vector<8x256xf32>, i32 -> vector<8x256xf32>
    %48 = vector.extract_strided_slice %0 {offsets = [25, 0], sizes = [1, 256], strides = [1, 1]} : vector<49x256xf32> to vector<1x256xf32>
    %49 = vector.broadcast %48 : vector<1x256xf32> to vector<8x256xf32>
    %50 = arith.mulf %47, %49 : vector<8x256xf32>
    %51 = vector.extract_strided_slice %8 {offsets = [0, 25], sizes = [8, 1], strides = [1, 1]} : vector<8x49xf32> to vector<8x1xf32>
    %52 = vector.broadcast %51 : vector<8x1xf32> to vector<8x256xf32>
    %53 = arith.mulf %50, %52 : vector<8x256xf32>
    %54 = arith.addf %46, %53 : vector<8x256xf32>
    %c241_i32 = arith.constant 241 : i32
    %55 = tpu.dynamic_rotate %7 by %c241_i32 dim 1 : vector<8x256xf32>, i32 -> vector<8x256xf32>
    %56 = vector.extract_strided_slice %0 {offsets = [30, 0], sizes = [1, 256], strides = [1, 1]} : vector<49x256xf32> to vector<1x256xf32>
    %57 = vector.broadcast %56 : vector<1x256xf32> to vector<8x256xf32>
    %58 = arith.mulf %55, %57 : vector<8x256xf32>
    %59 = vector.extract_strided_slice %8 {offsets = [0, 30], sizes = [8, 1], strides = [1, 1]} : vector<8x49xf32> to vector<8x1xf32>
    %60 = vector.broadcast %59 : vector<8x1xf32> to vector<8x256xf32>
    %61 = arith.mulf %58, %60 : vector<8x256xf32>
    %62 = arith.addf %54, %61 : vector<8x256xf32>
    %c240_i32 = arith.constant 240 : i32
    %63 = tpu.dynamic_rotate %7 by %c240_i32 dim 1 : vector<8x256xf32>, i32 -> vector<8x256xf32>
    %64 = vector.extract_strided_slice %0 {offsets = [31, 0], sizes = [1, 256], strides = [1, 1]} : vector<49x256xf32> to vector<1x256xf32>
    %65 = vector.broadcast %64 : vector<1x256xf32> to vector<8x256xf32>
    %66 = arith.mulf %63, %65 : vector<8x256xf32>
    %67 = vector.extract_strided_slice %8 {offsets = [0, 31], sizes = [8, 1], strides = [1, 1]} : vector<8x49xf32> to vector<8x1xf32>
    %68 = vector.broadcast %67 : vector<8x1xf32> to vector<8x256xf32>
    %69 = arith.mulf %66, %68 : vector<8x256xf32>
    %70 = arith.addf %62, %69 : vector<8x256xf32>
    %c239_i32 = arith.constant 239 : i32
    %71 = tpu.dynamic_rotate %7 by %c239_i32 dim 1 : vector<8x256xf32>, i32 -> vector<8x256xf32>
    %72 = vector.extract_strided_slice %0 {offsets = [32, 0], sizes = [1, 256], strides = [1, 1]} : vector<49x256xf32> to vector<1x256xf32>
    %73 = vector.broadcast %72 : vector<1x256xf32> to vector<8x256xf32>
    %74 = arith.mulf %71, %73 : vector<8x256xf32>
    %75 = vector.extract_strided_slice %8 {offsets = [0, 32], sizes = [8, 1], strides = [1, 1]} : vector<8x49xf32> to vector<8x1xf32>
    %76 = vector.broadcast %75 : vector<8x1xf32> to vector<8x256xf32>
    %77 = arith.mulf %74, %76 : vector<8x256xf32>
    %78 = arith.addf %70, %77 : vector<8x256xf32>
    %c0_11 = arith.constant 0 : index
    %c0_12 = arith.constant 0 : index
    %79 = vector.load %arg18[%c0_11, %c0_12] : memref<16x256xf32, #tpu.memory_space<vmem>>, vector<8x256xf32>
    tpu.vector_store %arg18[%c0_11, %c0_12], %78 {strides = array<i32>} : memref<16x256xf32, #tpu.memory_space<vmem>>, vector<8x256xf32>,
    %80 = vector.extract_strided_slice %3 {offsets = [8, 0], sizes = [8, 256], strides = [1, 1]} : vector<16x256xf32> to vector<8x256xf32>
    %81 = vector.extract_strided_slice %6 {offsets = [8, 0], sizes = [8, 49], strides = [1, 1]} : vector<16x49xf32> to vector<8x49xf32>
    %c51_i32 = arith.constant 51 : i32
    %82 = tpu.dynamic_rotate %80 by %c51_i32 dim 1 : vector<8x256xf32>, i32 -> vector<8x256xf32>
    %83 = vector.extract_strided_slice %0 {offsets = [0, 0], sizes = [1, 256], strides = [1, 1]} : vector<49x256xf32> to vector<1x256xf32>
    %84 = vector.broadcast %83 : vector<1x256xf32> to vector<8x256xf32>
    %85 = arith.mulf %82, %84 : vector<8x256xf32>
    %86 = vector.extract_strided_slice %81 {offsets = [0, 0], sizes = [8, 1], strides = [1, 1]} : vector<8x49xf32> to vector<8x1xf32>
    %87 = vector.broadcast %86 : vector<8x1xf32> to vector<8x256xf32>
    %88 = arith.mulf %85, %87 : vector<8x256xf32>
    %c50_i32 = arith.constant 50 : i32
    %89 = tpu.dynamic_rotate %80 by %c50_i32 dim 1 : vector<8x256xf32>, i32 -> vector<8x256xf32>
    %90 = vector.extract_strided_slice %0 {offsets = [1, 0], sizes = [1, 256], strides = [1, 1]} : vector<49x256xf32> to vector<1x256xf32>
    %91 = vector.broadcast %90 : vector<1x256xf32> to vector<8x256xf32>
    %92 = arith.mulf %89, %91 : vector<8x256xf32>
    %93 = vector.extract_strided_slice %81 {offsets = [0, 1], sizes = [8, 1], strides = [1, 1]} : vector<8x49xf32> to vector<8x1xf32>
    %94 = vector.broadcast %93 : vector<8x1xf32> to vector<8x256xf32>
    %95 = arith.mulf %92, %94 : vector<8x256xf32>
    %96 = arith.addf %88, %95 : vector<8x256xf32>
    %c49_i32 = arith.constant 49 : i32
    %97 = tpu.dynamic_rotate %80 by %c49_i32 dim 1 : vector<8x256xf32>, i32 -> vector<8x256xf32>
    %98 = vector.extract_strided_slice %0 {offsets = [2, 0], sizes = [1, 256], strides = [1, 1]} : vector<49x256xf32> to vector<1x256xf32>
    %99 = vector.broadcast %98 : vector<1x256xf32> to vector<8x256xf32>
    %100 = arith.mulf %97, %99 : vector<8x256xf32>
    %101 = vector.extract_strided_slice %81 {offsets = [0, 2], sizes = [8, 1], strides = [1, 1]} : vector<8x49xf32> to vector<8x1xf32>
    %102 = vector.broadcast %101 : vector<8x1xf32> to vector<8x256xf32>
    %103 = arith.mulf %100, %102 : vector<8x256xf32>
    %104 = arith.addf %96, %103 : vector<8x256xf32>
    %c48_i32 = arith.constant 48 : i32
    %105 = tpu.dynamic_rotate %80 by %c48_i32 dim 1 : vector<8x256xf32>, i32 -> vector<8x256xf32>
    %106 = vector.extract_strided_slice %0 {offsets = [3, 0], sizes = [1, 256], strides = [1, 1]} : vector<49x256xf32> to vector<1x256xf32>
    %107 = vector.broadcast %106 : vector<1x256xf32> to vector<8x256xf32>
    %108 = arith.mulf %105, %107 : vector<8x256xf32>
    %109 = vector.extract_strided_slice %81 {offsets = [0, 3], sizes = [8, 1], strides = [1, 1]} : vector<8x49xf32> to vector<8x1xf32>
    %110 = vector.broadcast %109 : vector<8x1xf32> to vector<8x256xf32>
    %111 = arith.mulf %108, %110 : vector<8x256xf32>
    %112 = arith.addf %104, %111 : vector<8x256xf32>
    %c47_i32 = arith.constant 47 : i32
    %113 = tpu.dynamic_rotate %80 by %c47_i32 dim 1 : vector<8x256xf32>, i32 -> vector<8x256xf32>
    %114 = vector.extract_strided_slice %0 {offsets = [4, 0], sizes = [1, 256], strides = [1, 1]} : vector<49x256xf32> to vector<1x256xf32>
    %115 = vector.broadcast %114 : vector<1x256xf32> to vector<8x256xf32>
    %116 = arith.mulf %113, %115 : vector<8x256xf32>
    %117 = vector.extract_strided_slice %81 {offsets = [0, 4], sizes = [8, 1], strides = [1, 1]} : vector<8x49xf32> to vector<8x1xf32>
    %118 = vector.broadcast %117 : vector<8x1xf32> to vector<8x256xf32>
    %119 = arith.mulf %116, %118 : vector<8x256xf32>
    %120 = arith.addf %112, %119 : vector<8x256xf32>
    %c46_i32 = arith.constant 46 : i32
    %121 = tpu.dynamic_rotate %80 by %c46_i32 dim 1 : vector<8x256xf32>, i32 -> vector<8x256xf32>
    %122 = vector.extract_strided_slice %0 {offsets = [5, 0], sizes = [1, 256], strides = [1, 1]} : vector<49x256xf32> to vector<1x256xf32>
    %123 = vector.broadcast %122 : vector<1x256xf32> to vector<8x256xf32>
    %124 = arith.mulf %121, %123 : vector<8x256xf32>
    %125 = vector.extract_strided_slice %81 {offsets = [0, 5], sizes = [8, 1], strides = [1, 1]} : vector<8x49xf32> to vector<8x1xf32>
    %126 = vector.broadcast %125 : vector<8x1xf32> to vector<8x256xf32>
    %127 = arith.mulf %124, %126 : vector<8x256xf32>
    %128 = arith.addf %120, %127 : vector<8x256xf32>
    %c45_i32 = arith.constant 45 : i32
    %129 = tpu.dynamic_rotate %80 by %c45_i32 dim 1 : vector<8x256xf32>, i32 -> vector<8x256xf32>
    %130 = vector.extract_strided_slice %0 {offsets = [6, 0], sizes = [1, 256], strides = [1, 1]} : vector<49x256xf32> to vector<1x256xf32>
    %131 = vector.broadcast %130 : vector<1x256xf32> to vector<8x256xf32>
    %132 = arith.mulf %129, %131 : vector<8x256xf32>
    %133 = vector.extract_strided_slice %81 {offsets = [0, 6], sizes = [8, 1], strides = [1, 1]} : vector<8x49xf32> to vector<8x1xf32>
    %134 = vector.broadcast %133 : vector<8x1xf32> to vector<8x256xf32>
    %135 = arith.mulf %132, %134 : vector<8x256xf32>
    %136 = arith.addf %128, %135 : vector<8x256xf32>
    %c35_i32 = arith.constant 35 : i32
    %137 = tpu.dynamic_rotate %80 by %c35_i32 dim 1 : vector<8x256xf32>, i32 -> vector<8x256xf32>
    %138 = vector.extract_strided_slice %0 {offsets = [7, 0], sizes = [1, 256], strides = [1, 1]} : vector<49x256xf32> to vector<1x256xf32>
    %139 = vector.broadcast %138 : vector<1x256xf32> to vector<8x256xf32>
    %140 = arith.mulf %137, %139 : vector<8x256xf32>
    %141 = vector.extract_strided_slice %81 {offsets = [0, 7], sizes = [8, 1], strides = [1, 1]} : vector<8x49xf32> to vector<8x1xf32>
    %142 = vector.broadcast %141 : vector<8x1xf32> to vector<8x256xf32>
    %143 = arith.mulf %140, %142 : vector<8x256xf32>
    %144 = arith.addf %136, %143 : vector<8x256xf32>
    %c34_i32 = arith.constant 34 : i32
    %145 = tpu.dynamic_rotate %80 by %c34_i32 dim 1 : vector<8x256xf32>, i32 -> vector<8x256xf32>
    %146 = vector.extract_strided_slice %0 {offsets = [8, 0], sizes = [1, 256], strides = [1, 1]} : vector<49x256xf32> to vector<1x256xf32>
    %147 = vector.broadcast %146 : vector<1x256xf32> to vector<8x256xf32>
    %148 = arith.mulf %145, %147 : vector<8x256xf32>
    %149 = vector.extract_strided_slice %81 {offsets = [0, 8], sizes = [8, 1], strides = [1, 1]} : vector<8x49xf32> to vector<8x1xf32>
    %150 = vector.broadcast %149 : vector<8x1xf32> to vector<8x256xf32>
    %151 = arith.mulf %148, %150 : vector<8x256xf32>
    %152 = arith.addf %144, %151 : vector<8x256xf32>
    %c33_i32 = arith.constant 33 : i32
    %153 = tpu.dynamic_rotate %80 by %c33_i32 dim 1 : vector<8x256xf32>, i32 -> vector<8x256xf32>
    %154 = vector.extract_strided_slice %0 {offsets = [9, 0], sizes = [1, 256], strides = [1, 1]} : vector<49x256xf32> to vector<1x256xf32>
    %155 = vector.broadcast %154 : vector<1x256xf32> to vector<8x256xf32>
    %156 = arith.mulf %153, %155 : vector<8x256xf32>
    %157 = vector.extract_strided_slice %81 {offsets = [0, 9], sizes = [8, 1], strides = [1, 1]} : vector<8x49xf32> to vector<8x1xf32>
    %158 = vector.broadcast %157 : vector<8x1xf32> to vector<8x256xf32>
    %159 = arith.mulf %156, %158 : vector<8x256xf32>
    %160 = arith.addf %152, %159 : vector<8x256xf32>
    %c32_i32 = arith.constant 32 : i32
    %161 = tpu.dynamic_rotate %80 by %c32_i32 dim 1 : vector<8x256xf32>, i32 -> vector<8x256xf32>
    %162 = vector.extract_strided_slice %0 {offsets = [10, 0], sizes = [1, 256], strides = [1, 1]} : vector<49x256xf32> to vector<1x256xf32>
    %163 = vector.broadcast %162 : vector<1x256xf32> to vector<8x256xf32>
    %164 = arith.mulf %161, %163 : vector<8x256xf32>
    %165 = vector.extract_strided_slice %81 {offsets = [0, 10], sizes = [8, 1], strides = [1, 1]} : vector<8x49xf32> to vector<8x1xf32>
    %166 = vector.broadcast %165 : vector<8x1xf32> to vector<8x256xf32>
    %167 = arith.mulf %164, %166 : vector<8x256xf32>
    %168 = arith.addf %160, %167 : vector<8x256xf32>
    %c31_i32 = arith.constant 31 : i32
    %169 = tpu.dynamic_rotate %80 by %c31_i32 dim 1 : vector<8x256xf32>, i32 -> vector<8x256xf32>
    %170 = vector.extract_strided_slice %0 {offsets = [11, 0], sizes = [1, 256], strides = [1, 1]} : vector<49x256xf32> to vector<1x256xf32>
    %171 = vector.broadcast %170 : vector<1x256xf32> to vector<8x256xf32>
    %172 = arith.mulf %169, %171 : vector<8x256xf32>
    %173 = vector.extract_strided_slice %81 {offsets = [0, 11], sizes = [8, 1], strides = [1, 1]} : vector<8x49xf32> to vector<8x1xf32>
    %174 = vector.broadcast %173 : vector<8x1xf32> to vector<8x256xf32>
    %175 = arith.mulf %172, %174 : vector<8x256xf32>
    %176 = arith.addf %168, %175 : vector<8x256xf32>
    %c30_i32 = arith.constant 30 : i32
    %177 = tpu.dynamic_rotate %80 by %c30_i32 dim 1 : vector<8x256xf32>, i32 -> vector<8x256xf32>
    %178 = vector.extract_strided_slice %0 {offsets = [12, 0], sizes = [1, 256], strides = [1, 1]} : vector<49x256xf32> to vector<1x256xf32>
    %179 = vector.broadcast %178 : vector<1x256xf32> to vector<8x256xf32>
    %180 = arith.mulf %177, %179 : vector<8x256xf32>
    %181 = vector.extract_strided_slice %81 {offsets = [0, 12], sizes = [8, 1], strides = [1, 1]} : vector<8x49xf32> to vector<8x1xf32>
    %182 = vector.broadcast %181 : vector<8x1xf32> to vector<8x256xf32>
    %183 = arith.mulf %180, %182 : vector<8x256xf32>
    %184 = arith.addf %176, %183 : vector<8x256xf32>
    %c29_i32 = arith.constant 29 : i32
    %185 = tpu.dynamic_rotate %80 by %c29_i32 dim 1 : vector<8x256xf32>, i32 -> vector<8x256xf32>
    %186 = vector.extract_strided_slice %0 {offsets = [13, 0], sizes = [1, 256], strides = [1, 1]} : vector<49x256xf32> to vector<1x256xf32>
    %187 = vector.broadcast %186 : vector<1x256xf32> to vector<8x256xf32>
    %188 = arith.mulf %185, %187 : vector<8x256xf32>
    %189 = vector.extract_strided_slice %81 {offsets = [0, 13], sizes = [8, 1], strides = [1, 1]} : vector<8x49xf32> to vector<8x1xf32>
    %190 = vector.broadcast %189 : vector<8x1xf32> to vector<8x256xf32>
    %191 = arith.mulf %188, %190 : vector<8x256xf32>
    %192 = arith.addf %184, %191 : vector<8x256xf32>
    %c19_i32 = arith.constant 19 : i32
    %193 = tpu.dynamic_rotate %80 by %c19_i32 dim 1 : vector<8x256xf32>, i32 -> vector<8x256xf32>
    %194 = vector.extract_strided_slice %0 {offsets = [14, 0], sizes = [1, 256], strides = [1, 1]} : vector<49x256xf32> to vector<1x256xf32>
    %195 = vector.broadcast %194 : vector<1x256xf32> to vector<8x256xf32>
    %196 = arith.mulf %193, %195 : vector<8x256xf32>
    %197 = vector.extract_strided_slice %81 {offsets = [0, 14], sizes = [8, 1], strides = [1, 1]} : vector<8x49xf32> to vector<8x1xf32>
    %198 = vector.broadcast %197 : vector<8x1xf32> to vector<8x256xf32>
    %199 = arith.mulf %196, %198 : vector<8x256xf32>
    %200 = arith.addf %192, %199 : vector<8x256xf32>
    %c18_i32 = arith.constant 18 : i32
    %201 = tpu.dynamic_rotate %80 by %c18_i32 dim 1 : vector<8x256xf32>, i32 -> vector<8x256xf32>
    %202 = vector.extract_strided_slice %0 {offsets = [15, 0], sizes = [1, 256], strides = [1, 1]} : vector<49x256xf32> to vector<1x256xf32>
    %203 = vector.broadcast %202 : vector<1x256xf32> to vector<8x256xf32>
    %204 = arith.mulf %201, %203 : vector<8x256xf32>
    %205 = vector.extract_strided_slice %81 {offsets = [0, 15], sizes = [8, 1], strides = [1, 1]} : vector<8x49xf32> to vector<8x1xf32>
    %206 = vector.broadcast %205 : vector<8x1xf32> to vector<8x256xf32>
    %207 = arith.mulf %204, %206 : vector<8x256xf32>
    %208 = arith.addf %200, %207 : vector<8x256xf32>
    %c17_i32_13 = arith.constant 17 : i32
    %209 = tpu.dynamic_rotate %80 by %c17_i32_13 dim 1 : vector<8x256xf32>, i32 -> vector<8x256xf32>
    %210 = vector.extract_strided_slice %0 {offsets = [16, 0], sizes = [1, 256], strides = [1, 1]} : vector<49x256xf32> to vector<1x256xf32>
    %211 = vector.broadcast %210 : vector<1x256xf32> to vector<8x256xf32>
    %212 = arith.mulf %209, %211 : vector<8x256xf32>
    %213 = vector.extract_strided_slice %81 {offsets = [0, 16], sizes = [8, 1], strides = [1, 1]} : vector<8x49xf32> to vector<8x1xf32>
    %214 = vector.broadcast %213 : vector<8x1xf32> to vector<8x256xf32>
    %215 = arith.mulf %212, %214 : vector<8x256xf32>
    %216 = arith.addf %208, %215 : vector<8x256xf32>
    %c16_i32_14 = arith.constant 16 : i32
    %217 = tpu.dynamic_rotate %80 by %c16_i32_14 dim 1 : vector<8x256xf32>, i32 -> vector<8x256xf32>
    %218 = vector.extract_strided_slice %0 {offsets = [17, 0], sizes = [1, 256], strides = [1, 1]} : vector<49x256xf32> to vector<1x256xf32>
    %219 = vector.broadcast %218 : vector<1x256xf32> to vector<8x256xf32>
    %220 = arith.mulf %217, %219 : vector<8x256xf32>
    %221 = vector.extract_strided_slice %81 {offsets = [0, 17], sizes = [8, 1], strides = [1, 1]} : vector<8x49xf32> to vector<8x1xf32>
    %222 = vector.broadcast %221 : vector<8x1xf32> to vector<8x256xf32>
    %223 = arith.mulf %220, %222 : vector<8x256xf32>
    %224 = arith.addf %216, %223 : vector<8x256xf32>
    %c15_i32_15 = arith.constant 15 : i32
    %225 = tpu.dynamic_rotate %80 by %c15_i32_15 dim 1 : vector<8x256xf32>, i32 -> vector<8x256xf32>
    %226 = vector.extract_strided_slice %0 {offsets = [18, 0], sizes = [1, 256], strides = [1, 1]} : vector<49x256xf32> to vector<1x256xf32>
    %227 = vector.broadcast %226 : vector<1x256xf32> to vector<8x256xf32>
    %228 = arith.mulf %225, %227 : vector<8x256xf32>
    %229 = vector.extract_strided_slice %81 {offsets = [0, 18], sizes = [8, 1], strides = [1, 1]} : vector<8x49xf32> to vector<8x1xf32>
    %230 = vector.broadcast %229 : vector<8x1xf32> to vector<8x256xf32>
    %231 = arith.mulf %228, %230 : vector<8x256xf32>
    %232 = arith.addf %224, %231 : vector<8x256xf32>
    %c14_i32 = arith.constant 14 : i32
    %233 = tpu.dynamic_rotate %80 by %c14_i32 dim 1 : vector<8x256xf32>, i32 -> vector<8x256xf32>
    %234 = vector.extract_strided_slice %0 {offsets = [19, 0], sizes = [1, 256], strides = [1, 1]} : vector<49x256xf32> to vector<1x256xf32>
    %235 = vector.broadcast %234 : vector<1x256xf32> to vector<8x256xf32>
    %236 = arith.mulf %233, %235 : vector<8x256xf32>
    %237 = vector.extract_strided_slice %81 {offsets = [0, 19], sizes = [8, 1], strides = [1, 1]} : vector<8x49xf32> to vector<8x1xf32>
    %238 = vector.broadcast %237 : vector<8x1xf32> to vector<8x256xf32>
    %239 = arith.mulf %236, %238 : vector<8x256xf32>
    %240 = arith.addf %232, %239 : vector<8x256xf32>
    %c13_i32 = arith.constant 13 : i32
    %241 = tpu.dynamic_rotate %80 by %c13_i32 dim 1 : vector<8x256xf32>, i32 -> vector<8x256xf32>
    %242 = vector.extract_strided_slice %0 {offsets = [20, 0], sizes = [1, 256], strides = [1, 1]} : vector<49x256xf32> to vector<1x256xf32>
    %243 = vector.broadcast %242 : vector<1x256xf32> to vector<8x256xf32>
    %244 = arith.mulf %241, %243 : vector<8x256xf32>
    %245 = vector.extract_strided_slice %81 {offsets = [0, 20], sizes = [8, 1], strides = [1, 1]} : vector<8x49xf32> to vector<8x1xf32>
    %246 = vector.broadcast %245 : vector<8x1xf32> to vector<8x256xf32>
    %247 = arith.mulf %244, %246 : vector<8x256xf32>
    %248 = arith.addf %240, %247 : vector<8x256xf32>
    %c3_i32 = arith.constant 3 : i32
    %249 = tpu.dynamic_rotate %80 by %c3_i32 dim 1 : vector<8x256xf32>, i32 -> vector<8x256xf32>
    %250 = vector.extract_strided_slice %0 {offsets = [21, 0], sizes = [1, 256], strides = [1, 1]} : vector<49x256xf32> to vector<1x256xf32>
    %251 = vector.broadcast %250 : vector<1x256xf32> to vector<8x256xf32>
    %252 = arith.mulf %249, %251 : vector<8x256xf32>
    %253 = vector.extract_strided_slice %81 {offsets = [0, 21], sizes = [8, 1], strides = [1, 1]} : vector<8x49xf32> to vector<8x1xf32>
    %254 = vector.broadcast %253 : vector<8x1xf32> to vector<8x256xf32>
    %255 = arith.mulf %252, %254 : vector<8x256xf32>
    %256 = arith.addf %248, %255 : vector<8x256xf32>
    %c2_i32 = arith.constant 2 : i32
    %257 = tpu.dynamic_rotate %80 by %c2_i32 dim 1 : vector<8x256xf32>, i32 -> vector<8x256xf32>
    %258 = vector.extract_strided_slice %0 {offsets = [22, 0], sizes = [1, 256], strides = [1, 1]} : vector<49x256xf32> to vector<1x256xf32>
    %259 = vector.broadcast %258 : vector<1x256xf32> to vector<8x256xf32>
    %260 = arith.mulf %257, %259 : vector<8x256xf32>
    %261 = vector.extract_strided_slice %81 {offsets = [0, 22], sizes = [8, 1], strides = [1, 1]} : vector<8x49xf32> to vector<8x1xf32>
    %262 = vector.broadcast %261 : vector<8x1xf32> to vector<8x256xf32>
    %263 = arith.mulf %260, %262 : vector<8x256xf32>
    %264 = arith.addf %256, %263 : vector<8x256xf32>
    %c1_i32_16 = arith.constant 1 : i32
    %265 = tpu.dynamic_rotate %80 by %c1_i32_16 dim 1 : vector<8x256xf32>, i32 -> vector<8x256xf32>
    %266 = vector.extract_strided_slice %0 {offsets = [23, 0], sizes = [1, 256], strides = [1, 1]} : vector<49x256xf32> to vector<1x256xf32>
    %267 = vector.broadcast %266 : vector<1x256xf32> to vector<8x256xf32>
    %268 = arith.mulf %265, %267 : vector<8x256xf32>
    %269 = vector.extract_strided_slice %81 {offsets = [0, 23], sizes = [8, 1], strides = [1, 1]} : vector<8x49xf32> to vector<8x1xf32>
    %270 = vector.broadcast %269 : vector<8x1xf32> to vector<8x256xf32>
    %271 = arith.mulf %268, %270 : vector<8x256xf32>
    %272 = arith.addf %264, %271 : vector<8x256xf32>
    %273 = vector.extract_strided_slice %0 {offsets = [24, 0], sizes = [1, 256], strides = [1, 1]} : vector<49x256xf32> to vector<1x256xf32>
    %274 = vector.broadcast %273 : vector<1x256xf32> to vector<8x256xf32>
    %275 = arith.mulf %80, %274 : vector<8x256xf32>
    %276 = vector.extract_strided_slice %81 {offsets = [0, 24], sizes = [8, 1], strides = [1, 1]} : vector<8x49xf32> to vector<8x1xf32>
    %277 = vector.broadcast %276 : vector<8x1xf32> to vector<8x256xf32>
    %278 = arith.mulf %275, %277 : vector<8x256xf32>
    %279 = arith.addf %272, %278 : vector<8x256xf32>
    %c255_i32_17 = arith.constant 255 : i32
    %280 = tpu.dynamic_rotate %80 by %c255_i32_17 dim 1 : vector<8x256xf32>, i32 -> vector<8x256xf32>
    %281 = vector.extract_strided_slice %0 {offsets = [25, 0], sizes = [1, 256], strides = [1, 1]} : vector<49x256xf32> to vector<1x256xf32>
    %282 = vector.broadcast %281 : vector<1x256xf32> to vector<8x256xf32>
    %283 = arith.mulf %280, %282 : vector<8x256xf32>
    %284 = vector.extract_strided_slice %81 {offsets = [0, 25], sizes = [8, 1], strides = [1, 1]} : vector<8x49xf32> to vector<8x1xf32>
    %285 = vector.broadcast %284 : vector<8x1xf32> to vector<8x256xf32>
    %286 = arith.mulf %283, %285 : vector<8x256xf32>
    %287 = arith.addf %279, %286 : vector<8x256xf32>
    %c254_i32 = arith.constant 254 : i32
    %288 = tpu.dynamic_rotate %80 by %c254_i32 dim 1 : vector<8x256xf32>, i32 -> vector<8x256xf32>
    %289 = vector.extract_strided_slice %0 {offsets = [26, 0], sizes = [1, 256], strides = [1, 1]} : vector<49x256xf32> to vector<1x256xf32>
    %290 = vector.broadcast %289 : vector<1x256xf32> to vector<8x256xf32>
    %291 = arith.mulf %288, %290 : vector<8x256xf32>
    %292 = vector.extract_strided_slice %81 {offsets = [0, 26], sizes = [8, 1], strides = [1, 1]} : vector<8x49xf32> to vector<8x1xf32>
    %293 = vector.broadcast %292 : vector<8x1xf32> to vector<8x256xf32>
    %294 = arith.mulf %291, %293 : vector<8x256xf32>
    %295 = arith.addf %287, %294 : vector<8x256xf32>
    %c253_i32 = arith.constant 253 : i32
    %296 = tpu.dynamic_rotate %80 by %c253_i32 dim 1 : vector<8x256xf32>, i32 -> vector<8x256xf32>
    %297 = vector.extract_strided_slice %0 {offsets = [27, 0], sizes = [1, 256], strides = [1, 1]} : vector<49x256xf32> to vector<1x256xf32>
    %298 = vector.broadcast %297 : vector<1x256xf32> to vector<8x256xf32>
    %299 = arith.mulf %296, %298 : vector<8x256xf32>
    %300 = vector.extract_strided_slice %81 {offsets = [0, 27], sizes = [8, 1], strides = [1, 1]} : vector<8x49xf32> to vector<8x1xf32>
    %301 = vector.broadcast %300 : vector<8x1xf32> to vector<8x256xf32>
    %302 = arith.mulf %299, %301 : vector<8x256xf32>
    %303 = arith.addf %295, %302 : vector<8x256xf32>
    %c243_i32 = arith.constant 243 : i32
    %304 = tpu.dynamic_rotate %80 by %c243_i32 dim 1 : vector<8x256xf32>, i32 -> vector<8x256xf32>
    %305 = vector.extract_strided_slice %0 {offsets = [28, 0], sizes = [1, 256], strides = [1, 1]} : vector<49x256xf32> to vector<1x256xf32>
    %306 = vector.broadcast %305 : vector<1x256xf32> to vector<8x256xf32>
    %307 = arith.mulf %304, %306 : vector<8x256xf32>
    %308 = vector.extract_strided_slice %81 {offsets = [0, 28], sizes = [8, 1], strides = [1, 1]} : vector<8x49xf32> to vector<8x1xf32>
    %309 = vector.broadcast %308 : vector<8x1xf32> to vector<8x256xf32>
    %310 = arith.mulf %307, %309 : vector<8x256xf32>
    %311 = arith.addf %303, %310 : vector<8x256xf32>
    %c242_i32 = arith.constant 242 : i32
    %312 = tpu.dynamic_rotate %80 by %c242_i32 dim 1 : vector<8x256xf32>, i32 -> vector<8x256xf32>
    %313 = vector.extract_strided_slice %0 {offsets = [29, 0], sizes = [1, 256], strides = [1, 1]} : vector<49x256xf32> to vector<1x256xf32>
    %314 = vector.broadcast %313 : vector<1x256xf32> to vector<8x256xf32>
    %315 = arith.mulf %312, %314 : vector<8x256xf32>
    %316 = vector.extract_strided_slice %81 {offsets = [0, 29], sizes = [8, 1], strides = [1, 1]} : vector<8x49xf32> to vector<8x1xf32>
    %317 = vector.broadcast %316 : vector<8x1xf32> to vector<8x256xf32>
    %318 = arith.mulf %315, %317 : vector<8x256xf32>
    %319 = arith.addf %311, %318 : vector<8x256xf32>
    %c241_i32_18 = arith.constant 241 : i32
    %320 = tpu.dynamic_rotate %80 by %c241_i32_18 dim 1 : vector<8x256xf32>, i32 -> vector<8x256xf32>
    %321 = vector.extract_strided_slice %0 {offsets = [30, 0], sizes = [1, 256], strides = [1, 1]} : vector<49x256xf32> to vector<1x256xf32>
    %322 = vector.broadcast %321 : vector<1x256xf32> to vector<8x256xf32>
    %323 = arith.mulf %320, %322 : vector<8x256xf32>
    %324 = vector.extract_strided_slice %81 {offsets = [0, 30], sizes = [8, 1], strides = [1, 1]} : vector<8x49xf32> to vector<8x1xf32>
    %325 = vector.broadcast %324 : vector<8x1xf32> to vector<8x256xf32>
    %326 = arith.mulf %323, %325 : vector<8x256xf32>
    %327 = arith.addf %319, %326 : vector<8x256xf32>
    %c240_i32_19 = arith.constant 240 : i32
    %328 = tpu.dynamic_rotate %80 by %c240_i32_19 dim 1 : vector<8x256xf32>, i32 -> vector<8x256xf32>
    %329 = vector.extract_strided_slice %0 {offsets = [31, 0], sizes = [1, 256], strides = [1, 1]} : vector<49x256xf32> to vector<1x256xf32>
    %330 = vector.broadcast %329 : vector<1x256xf32> to vector<8x256xf32>
    %331 = arith.mulf %328, %330 : vector<8x256xf32>
    %332 = vector.extract_strided_slice %81 {offsets = [0, 31], sizes = [8, 1], strides = [1, 1]} : vector<8x49xf32> to vector<8x1xf32>
    %333 = vector.broadcast %332 : vector<8x1xf32> to vector<8x256xf32>
    %334 = arith.mulf %331, %333 : vector<8x256xf32>
    %335 = arith.addf %327, %334 : vector<8x256xf32>
    %c239_i32_20 = arith.constant 239 : i32
    %336 = tpu.dynamic_rotate %80 by %c239_i32_20 dim 1 : vector<8x256xf32>, i32 -> vector<8x256xf32>
    %337 = vector.extract_strided_slice %0 {offsets = [32, 0], sizes = [1, 256], strides = [1, 1]} : vector<49x256xf32> to vector<1x256xf32>
    %338 = vector.broadcast %337 : vector<1x256xf32> to vector<8x256xf32>
    %339 = arith.mulf %336, %338 : vector<8x256xf32>
    %340 = vector.extract_strided_slice %81 {offsets = [0, 32], sizes = [8, 1], strides = [1, 1]} : vector<8x49xf32> to vector<8x1xf32>
    %341 = vector.broadcast %340 : vector<8x1xf32> to vector<8x256xf32>
    %342 = arith.mulf %339, %341 : vector<8x256xf32>
    %343 = arith.addf %335, %342 : vector<8x256xf32>
    %c238_i32 = arith.constant 238 : i32
    %344 = tpu.dynamic_rotate %80 by %c238_i32 dim 1 : vector<8x256xf32>, i32 -> vector<8x256xf32>
    %345 = vector.extract_strided_slice %0 {offsets = [33, 0], sizes = [1, 256], strides = [1, 1]} : vector<49x256xf32> to vector<1x256xf32>
    %346 = vector.broadcast %345 : vector<1x256xf32> to vector<8x256xf32>
    %347 = arith.mulf %344, %346 : vector<8x256xf32>
    %348 = vector.extract_strided_slice %81 {offsets = [0, 33], sizes = [8, 1], strides = [1, 1]} : vector<8x49xf32> to vector<8x1xf32>
    %349 = vector.broadcast %348 : vector<8x1xf32> to vector<8x256xf32>
    %350 = arith.mulf %347, %349 : vector<8x256xf32>
    %351 = arith.addf %343, %350 : vector<8x256xf32>
    %c237_i32 = arith.constant 237 : i32
    %352 = tpu.dynamic_rotate %80 by %c237_i32 dim 1 : vector<8x256xf32>, i32 -> vector<8x256xf32>
    %353 = vector.extract_strided_slice %0 {offsets = [34, 0], sizes = [1, 256], strides = [1, 1]} : vector<49x256xf32> to vector<1x256xf32>
    %354 = vector.broadcast %353 : vector<1x256xf32> to vector<8x256xf32>
    %355 = arith.mulf %352, %354 : vector<8x256xf32>
    %356 = vector.extract_strided_slice %81 {offsets = [0, 34], sizes = [8, 1], strides = [1, 1]} : vector<8x49xf32> to vector<8x1xf32>
    %357 = vector.broadcast %356 : vector<8x1xf32> to vector<8x256xf32>
    %358 = arith.mulf %355, %357 : vector<8x256xf32>
    %359 = arith.addf %351, %358 : vector<8x256xf32>
    %c227_i32 = arith.constant 227 : i32
    %360 = tpu.dynamic_rotate %80 by %c227_i32 dim 1 : vector<8x256xf32>, i32 -> vector<8x256xf32>
    %361 = vector.extract_strided_slice %0 {offsets = [35, 0], sizes = [1, 256], strides = [1, 1]} : vector<49x256xf32> to vector<1x256xf32>
    %362 = vector.broadcast %361 : vector<1x256xf32> to vector<8x256xf32>
    %363 = arith.mulf %360, %362 : vector<8x256xf32>
    %364 = vector.extract_strided_slice %81 {offsets = [0, 35], sizes = [8, 1], strides = [1, 1]} : vector<8x49xf32> to vector<8x1xf32>
    %365 = vector.broadcast %364 : vector<8x1xf32> to vector<8x256xf32>
    %366 = arith.mulf %363, %365 : vector<8x256xf32>
    %367 = arith.addf %359, %366 : vector<8x256xf32>
    %c226_i32 = arith.constant 226 : i32
    %368 = tpu.dynamic_rotate %80 by %c226_i32 dim 1 : vector<8x256xf32>, i32 -> vector<8x256xf32>
    %369 = vector.extract_strided_slice %0 {offsets = [36, 0], sizes = [1, 256], strides = [1, 1]} : vector<49x256xf32> to vector<1x256xf32>
    %370 = vector.broadcast %369 : vector<1x256xf32> to vector<8x256xf32>
    %371 = arith.mulf %368, %370 : vector<8x256xf32>
    %372 = vector.extract_strided_slice %81 {offsets = [0, 36], sizes = [8, 1], strides = [1, 1]} : vector<8x49xf32> to vector<8x1xf32>
    %373 = vector.broadcast %372 : vector<8x1xf32> to vector<8x256xf32>
    %374 = arith.mulf %371, %373 : vector<8x256xf32>
    %375 = arith.addf %367, %374 : vector<8x256xf32>
    %c225_i32 = arith.constant 225 : i32
    %376 = tpu.dynamic_rotate %80 by %c225_i32 dim 1 : vector<8x256xf32>, i32 -> vector<8x256xf32>
    %377 = vector.extract_strided_slice %0 {offsets = [37, 0], sizes = [1, 256], strides = [1, 1]} : vector<49x256xf32> to vector<1x256xf32>
    %378 = vector.broadcast %377 : vector<1x256xf32> to vector<8x256xf32>
    %379 = arith.mulf %376, %378 : vector<8x256xf32>
    %380 = vector.extract_strided_slice %81 {offsets = [0, 37], sizes = [8, 1], strides = [1, 1]} : vector<8x49xf32> to vector<8x1xf32>
    %381 = vector.broadcast %380 : vector<8x1xf32> to vector<8x256xf32>
    %382 = arith.mulf %379, %381 : vector<8x256xf32>
    %383 = arith.addf %375, %382 : vector<8x256xf32>
    %c224_i32 = arith.constant 224 : i32
    %384 = tpu.dynamic_rotate %80 by %c224_i32 dim 1 : vector<8x256xf32>, i32 -> vector<8x256xf32>
    %385 = vector.extract_strided_slice %0 {offsets = [38, 0], sizes = [1, 256], strides = [1, 1]} : vector<49x256xf32> to vector<1x256xf32>
    %386 = vector.broadcast %385 : vector<1x256xf32> to vector<8x256xf32>
    %387 = arith.mulf %384, %386 : vector<8x256xf32>
    %388 = vector.extract_strided_slice %81 {offsets = [0, 38], sizes = [8, 1], strides = [1, 1]} : vector<8x49xf32> to vector<8x1xf32>
    %389 = vector.broadcast %388 : vector<8x1xf32> to vector<8x256xf32>
    %390 = arith.mulf %387, %389 : vector<8x256xf32>
    %391 = arith.addf %383, %390 : vector<8x256xf32>
    %c223_i32 = arith.constant 223 : i32
    %392 = tpu.dynamic_rotate %80 by %c223_i32 dim 1 : vector<8x256xf32>, i32 -> vector<8x256xf32>
    %393 = vector.extract_strided_slice %0 {offsets = [39, 0], sizes = [1, 256], strides = [1, 1]} : vector<49x256xf32> to vector<1x256xf32>
    %394 = vector.broadcast %393 : vector<1x256xf32> to vector<8x256xf32>
    %395 = arith.mulf %392, %394 : vector<8x256xf32>
    %396 = vector.extract_strided_slice %81 {offsets = [0, 39], sizes = [8, 1], strides = [1, 1]} : vector<8x49xf32> to vector<8x1xf32>
    %397 = vector.broadcast %396 : vector<8x1xf32> to vector<8x256xf32>
    %398 = arith.mulf %395, %397 : vector<8x256xf32>
    %399 = arith.addf %391, %398 : vector<8x256xf32>
    %c222_i32 = arith.constant 222 : i32
    %400 = tpu.dynamic_rotate %80 by %c222_i32 dim 1 : vector<8x256xf32>, i32 -> vector<8x256xf32>
    %401 = vector.extract_strided_slice %0 {offsets = [40, 0], sizes = [1, 256], strides = [1, 1]} : vector<49x256xf32> to vector<1x256xf32>
    %402 = vector.broadcast %401 : vector<1x256xf32> to vector<8x256xf32>
    %403 = arith.mulf %400, %402 : vector<8x256xf32>
    %404 = vector.extract_strided_slice %81 {offsets = [0, 40], sizes = [8, 1], strides = [1, 1]} : vector<8x49xf32> to vector<8x1xf32>
    %405 = vector.broadcast %404 : vector<8x1xf32> to vector<8x256xf32>
    %406 = arith.mulf %403, %405 : vector<8x256xf32>
    %407 = arith.addf %399, %406 : vector<8x256xf32>
    %c221_i32 = arith.constant 221 : i32
    %408 = tpu.dynamic_rotate %80 by %c221_i32 dim 1 : vector<8x256xf32>, i32 -> vector<8x256xf32>
    %409 = vector.extract_strided_slice %0 {offsets = [41, 0], sizes = [1, 256], strides = [1, 1]} : vector<49x256xf32> to vector<1x256xf32>
    %410 = vector.broadcast %409 : vector<1x256xf32> to vector<8x256xf32>
    %411 = arith.mulf %408, %410 : vector<8x256xf32>
    %412 = vector.extract_strided_slice %81 {offsets = [0, 41], sizes = [8, 1], strides = [1, 1]} : vector<8x49xf32> to vector<8x1xf32>
    %413 = vector.broadcast %412 : vector<8x1xf32> to vector<8x256xf32>
    %414 = arith.mulf %411, %413 : vector<8x256xf32>
    %415 = arith.addf %407, %414 : vector<8x256xf32>
    %c211_i32 = arith.constant 211 : i32
    %416 = tpu.dynamic_rotate %80 by %c211_i32 dim 1 : vector<8x256xf32>, i32 -> vector<8x256xf32>
    %417 = vector.extract_strided_slice %0 {offsets = [42, 0], sizes = [1, 256], strides = [1, 1]} : vector<49x256xf32> to vector<1x256xf32>
    %418 = vector.broadcast %417 : vector<1x256xf32> to vector<8x256xf32>
    %419 = arith.mulf %416, %418 : vector<8x256xf32>
    %420 = vector.extract_strided_slice %81 {offsets = [0, 42], sizes = [8, 1], strides = [1, 1]} : vector<8x49xf32> to vector<8x1xf32>
    %421 = vector.broadcast %420 : vector<8x1xf32> to vector<8x256xf32>
    %422 = arith.mulf %419, %421 : vector<8x256xf32>
    %423 = arith.addf %415, %422 : vector<8x256xf32>
    %c210_i32 = arith.constant 210 : i32
    %424 = tpu.dynamic_rotate %80 by %c210_i32 dim 1 : vector<8x256xf32>, i32 -> vector<8x256xf32>
    %425 = vector.extract_strided_slice %0 {offsets = [43, 0], sizes = [1, 256], strides = [1, 1]} : vector<49x256xf32> to vector<1x256xf32>
    %426 = vector.broadcast %425 : vector<1x256xf32> to vector<8x256xf32>
    %427 = arith.mulf %424, %426 : vector<8x256xf32>
    %428 = vector.extract_strided_slice %81 {offsets = [0, 43], sizes = [8, 1], strides = [1, 1]} : vector<8x49xf32> to vector<8x1xf32>
    %429 = vector.broadcast %428 : vector<8x1xf32> to vector<8x256xf32>
    %430 = arith.mulf %427, %429 : vector<8x256xf32>
    %431 = arith.addf %423, %430 : vector<8x256xf32>
    %c209_i32 = arith.constant 209 : i32
    %432 = tpu.dynamic_rotate %80 by %c209_i32 dim 1 : vector<8x256xf32>, i32 -> vector<8x256xf32>
    %433 = vector.extract_strided_slice %0 {offsets = [44, 0], sizes = [1, 256], strides = [1, 1]} : vector<49x256xf32> to vector<1x256xf32>
    %434 = vector.broadcast %433 : vector<1x256xf32> to vector<8x256xf32>
    %435 = arith.mulf %432, %434 : vector<8x256xf32>
    %436 = vector.extract_strided_slice %81 {offsets = [0, 44], sizes = [8, 1], strides = [1, 1]} : vector<8x49xf32> to vector<8x1xf32>
    %437 = vector.broadcast %436 : vector<8x1xf32> to vector<8x256xf32>
    %438 = arith.mulf %435, %437 : vector<8x256xf32>
    %439 = arith.addf %431, %438 : vector<8x256xf32>
    %c208_i32 = arith.constant 208 : i32
    %440 = tpu.dynamic_rotate %80 by %c208_i32 dim 1 : vector<8x256xf32>, i32 -> vector<8x256xf32>
    %441 = vector.extract_strided_slice %0 {offsets = [45, 0], sizes = [1, 256], strides = [1, 1]} : vector<49x256xf32> to vector<1x256xf32>
    %442 = vector.broadcast %441 : vector<1x256xf32> to vector<8x256xf32>
    %443 = arith.mulf %440, %442 : vector<8x256xf32>
    %444 = vector.extract_strided_slice %81 {offsets = [0, 45], sizes = [8, 1], strides = [1, 1]} : vector<8x49xf32> to vector<8x1xf32>
    %445 = vector.broadcast %444 : vector<8x1xf32> to vector<8x256xf32>
    %446 = arith.mulf %443, %445 : vector<8x256xf32>
    %447 = arith.addf %439, %446 : vector<8x256xf32>
    %c207_i32 = arith.constant 207 : i32
    %448 = tpu.dynamic_rotate %80 by %c207_i32 dim 1 : vector<8x256xf32>, i32 -> vector<8x256xf32>
    %449 = vector.extract_strided_slice %0 {offsets = [46, 0], sizes = [1, 256], strides = [1, 1]} : vector<49x256xf32> to vector<1x256xf32>
    %450 = vector.broadcast %449 : vector<1x256xf32> to vector<8x256xf32>
    %451 = arith.mulf %448, %450 : vector<8x256xf32>
    %452 = vector.extract_strided_slice %81 {offsets = [0, 46], sizes = [8, 1], strides = [1, 1]} : vector<8x49xf32> to vector<8x1xf32>
    %453 = vector.broadcast %452 : vector<8x1xf32> to vector<8x256xf32>
    %454 = arith.mulf %451, %453 : vector<8x256xf32>
    %455 = arith.addf %447, %454 : vector<8x256xf32>
    %c206_i32 = arith.constant 206 : i32
    %456 = tpu.dynamic_rotate %80 by %c206_i32 dim 1 : vector<8x256xf32>, i32 -> vector<8x256xf32>
    %457 = vector.extract_strided_slice %0 {offsets = [47, 0], sizes = [1, 256], strides = [1, 1]} : vector<49x256xf32> to vector<1x256xf32>
    %458 = vector.broadcast %457 : vector<1x256xf32> to vector<8x256xf32>
    %459 = arith.mulf %456, %458 : vector<8x256xf32>
    %460 = vector.extract_strided_slice %81 {offsets = [0, 47], sizes = [8, 1], strides = [1, 1]} : vector<8x49xf32> to vector<8x1xf32>
    %461 = vector.broadcast %460 : vector<8x1xf32> to vector<8x256xf32>
    %462 = arith.mulf %459, %461 : vector<8x256xf32>
    %463 = arith.addf %455, %462 : vector<8x256xf32>
    %c205_i32 = arith.constant 205 : i32
    %464 = tpu.dynamic_rotate %80 by %c205_i32 dim 1 : vector<8x256xf32>, i32 -> vector<8x256xf32>
    %465 = vector.extract_strided_slice %0 {offsets = [48, 0], sizes = [1, 256], strides = [1, 1]} : vector<49x256xf32> to vector<1x256xf32>
    %466 = vector.broadcast %465 : vector<1x256xf32> to vector<8x256xf32>
    %467 = arith.mulf %464, %466 : vector<8x256xf32>
    %468 = vector.extract_strided_slice %81 {offsets = [0, 48], sizes = [8, 1], strides = [1, 1]} : vector<8x49xf32> to vector<8x1xf32>
    %469 = vector.broadcast %468 : vector<8x1xf32> to vector<8x256xf32>
    %470 = arith.mulf %467, %469 : vector<8x256xf32>
    %471 = arith.addf %463, %470 : vector<8x256xf32>
    %c8 = arith.constant 8 : index
    %c0_21 = arith.constant 0 : index
    %472 = vector.load %arg18[%c8, %c0_21] : memref<16x256xf32, #tpu.memory_space<vmem>>, vector<8x256xf32>
    tpu.vector_store %arg18[%c8, %c0_21], %471 {strides = array<i32>} : memref<16x256xf32, #tpu.memory_space<vmem>>, vector<8x256xf32>,
    %c0_22 = arith.constant 0 : index
    %c0_23 = arith.constant 0 : index
    %473 = vector.load %arg4[%c0_22, %c0_23] : memref<16x49xf32, #tpu.memory_space<vmem>>, vector<16x49xf32>
    %474 = vector.extract_strided_slice %5 {offsets = [0, 0], sizes = [8, 256], strides = [1, 1]} : vector<16x256xf32> to vector<8x256xf32>
    %475 = vector.extract_strided_slice %473 {offsets = [0, 0], sizes = [8, 49], strides = [1, 1]} : vector<16x49xf32> to vector<8x49xf32>
    %c17_i32_24 = arith.constant 17 : i32
    %476 = tpu.dynamic_rotate %474 by %c17_i32_24 dim 1 : vector<8x256xf32>, i32 -> vector<8x256xf32>
    %477 = vector.extract_strided_slice %0 {offsets = [16, 0], sizes = [1, 256], strides = [1, 1]} : vector<49x256xf32> to vector<1x256xf32>
    %478 = vector.broadcast %477 : vector<1x256xf32> to vector<8x256xf32>
    %479 = arith.mulf %476, %478 : vector<8x256xf32>
    %480 = vector.extract_strided_slice %475 {offsets = [0, 16], sizes = [8, 1], strides = [1, 1]} : vector<8x49xf32> to vector<8x1xf32>
    %481 = vector.broadcast %480 : vector<8x1xf32> to vector<8x256xf32>
    %482 = arith.mulf %479, %481 : vector<8x256xf32>
    %c16_i32_25 = arith.constant 16 : i32
    %483 = tpu.dynamic_rotate %474 by %c16_i32_25 dim 1 : vector<8x256xf32>, i32 -> vector<8x256xf32>
    %484 = vector.extract_strided_slice %0 {offsets = [17, 0], sizes = [1, 256], strides = [1, 1]} : vector<49x256xf32> to vector<1x256xf32>
    %485 = vector.broadcast %484 : vector<1x256xf32> to vector<8x256xf32>
    %486 = arith.mulf %483, %485 : vector<8x256xf32>
    %487 = vector.extract_strided_slice %475 {offsets = [0, 17], sizes = [8, 1], strides = [1, 1]} : vector<8x49xf32> to vector<8x1xf32>
    %488 = vector.broadcast %487 : vector<8x1xf32> to vector<8x256xf32>
    %489 = arith.mulf %486, %488 : vector<8x256xf32>
    %490 = arith.addf %482, %489 : vector<8x256xf32>
    %c15_i32_26 = arith.constant 15 : i32
    %491 = tpu.dynamic_rotate %474 by %c15_i32_26 dim 1 : vector<8x256xf32>, i32 -> vector<8x256xf32>
    %492 = vector.extract_strided_slice %0 {offsets = [18, 0], sizes = [1, 256], strides = [1, 1]} : vector<49x256xf32> to vector<1x256xf32>
    %493 = vector.broadcast %492 : vector<1x256xf32> to vector<8x256xf32>
    %494 = arith.mulf %491, %493 : vector<8x256xf32>
    %495 = vector.extract_strided_slice %475 {offsets = [0, 18], sizes = [8, 1], strides = [1, 1]} : vector<8x49xf32> to vector<8x1xf32>
    %496 = vector.broadcast %495 : vector<8x1xf32> to vector<8x256xf32>
    %497 = arith.mulf %494, %496 : vector<8x256xf32>
    %498 = arith.addf %490, %497 : vector<8x256xf32>
    %c1_i32_27 = arith.constant 1 : i32
    %499 = tpu.dynamic_rotate %474 by %c1_i32_27 dim 1 : vector<8x256xf32>, i32 -> vector<8x256xf32>
    %500 = vector.extract_strided_slice %0 {offsets = [23, 0], sizes = [1, 256], strides = [1, 1]} : vector<49x256xf32> to vector<1x256xf32>
    %501 = vector.broadcast %500 : vector<1x256xf32> to vector<8x256xf32>
    %502 = arith.mulf %499, %501 : vector<8x256xf32>
    %503 = vector.extract_strided_slice %475 {offsets = [0, 23], sizes = [8, 1], strides = [1, 1]} : vector<8x49xf32> to vector<8x1xf32>
    %504 = vector.broadcast %503 : vector<8x1xf32> to vector<8x256xf32>
    %505 = arith.mulf %502, %504 : vector<8x256xf32>
    %506 = arith.addf %498, %505 : vector<8x256xf32>
    %507 = vector.extract_strided_slice %0 {offsets = [24, 0], sizes = [1, 256], strides = [1, 1]} : vector<49x256xf32> to vector<1x256xf32>
    %508 = vector.broadcast %507 : vector<1x256xf32> to vector<8x256xf32>
    %509 = arith.mulf %474, %508 : vector<8x256xf32>
    %510 = vector.extract_strided_slice %475 {offsets = [0, 24], sizes = [8, 1], strides = [1, 1]} : vector<8x49xf32> to vector<8x1xf32>
    %511 = vector.broadcast %510 : vector<8x1xf32> to vector<8x256xf32>
    %512 = arith.mulf %509, %511 : vector<8x256xf32>
    %513 = arith.addf %506, %512 : vector<8x256xf32>
    %c255_i32_28 = arith.constant 255 : i32
    %514 = tpu.dynamic_rotate %474 by %c255_i32_28 dim 1 : vector<8x256xf32>, i32 -> vector<8x256xf32>
    %515 = vector.extract_strided_slice %0 {offsets = [25, 0], sizes = [1, 256], strides = [1, 1]} : vector<49x256xf32> to vector<1x256xf32>
    %516 = vector.broadcast %515 : vector<1x256xf32> to vector<8x256xf32>
    %517 = arith.mulf %514, %516 : vector<8x256xf32>
    %518 = vector.extract_strided_slice %475 {offsets = [0, 25], sizes = [8, 1], strides = [1, 1]} : vector<8x49xf32> to vector<8x1xf32>
    %519 = vector.broadcast %518 : vector<8x1xf32> to vector<8x256xf32>
    %520 = arith.mulf %517, %519 : vector<8x256xf32>
    %521 = arith.addf %513, %520 : vector<8x256xf32>
    %c241_i32_29 = arith.constant 241 : i32
    %522 = tpu.dynamic_rotate %474 by %c241_i32_29 dim 1 : vector<8x256xf32>, i32 -> vector<8x256xf32>
    %523 = vector.extract_strided_slice %0 {offsets = [30, 0], sizes = [1, 256], strides = [1, 1]} : vector<49x256xf32> to vector<1x256xf32>
    %524 = vector.broadcast %523 : vector<1x256xf32> to vector<8x256xf32>
    %525 = arith.mulf %522, %524 : vector<8x256xf32>
    %526 = vector.extract_strided_slice %475 {offsets = [0, 30], sizes = [8, 1], strides = [1, 1]} : vector<8x49xf32> to vector<8x1xf32>
    %527 = vector.broadcast %526 : vector<8x1xf32> to vector<8x256xf32>
    %528 = arith.mulf %525, %527 : vector<8x256xf32>
    %529 = arith.addf %521, %528 : vector<8x256xf32>
    %c240_i32_30 = arith.constant 240 : i32
    %530 = tpu.dynamic_rotate %474 by %c240_i32_30 dim 1 : vector<8x256xf32>, i32 -> vector<8x256xf32>
    %531 = vector.extract_strided_slice %0 {offsets = [31, 0], sizes = [1, 256], strides = [1, 1]} : vector<49x256xf32> to vector<1x256xf32>
    %532 = vector.broadcast %531 : vector<1x256xf32> to vector<8x256xf32>
    %533 = arith.mulf %530, %532 : vector<8x256xf32>
    %534 = vector.extract_strided_slice %475 {offsets = [0, 31], sizes = [8, 1], strides = [1, 1]} : vector<8x49xf32> to vector<8x1xf32>
    %535 = vector.broadcast %534 : vector<8x1xf32> to vector<8x256xf32>
    %536 = arith.mulf %533, %535 : vector<8x256xf32>
    %537 = arith.addf %529, %536 : vector<8x256xf32>
    %c239_i32_31 = arith.constant 239 : i32
    %538 = tpu.dynamic_rotate %474 by %c239_i32_31 dim 1 : vector<8x256xf32>, i32 -> vector<8x256xf32>
    %539 = vector.extract_strided_slice %0 {offsets = [32, 0], sizes = [1, 256], strides = [1, 1]} : vector<49x256xf32> to vector<1x256xf32>
    %540 = vector.broadcast %539 : vector<1x256xf32> to vector<8x256xf32>
    %541 = arith.mulf %538, %540 : vector<8x256xf32>
    %542 = vector.extract_strided_slice %475 {offsets = [0, 32], sizes = [8, 1], strides = [1, 1]} : vector<8x49xf32> to vector<8x1xf32>
    %543 = vector.broadcast %542 : vector<8x1xf32> to vector<8x256xf32>
    %544 = arith.mulf %541, %543 : vector<8x256xf32>
    %545 = arith.addf %537, %544 : vector<8x256xf32>
    %c0_32 = arith.constant 0 : index
    %c0_33 = arith.constant 0 : index
    %546 = vector.load %arg19[%c0_32, %c0_33] : memref<16x256xf32, #tpu.memory_space<vmem>>, vector<8x256xf32>
    tpu.vector_store %arg19[%c0_32, %c0_33], %545 {strides = array<i32>} : memref<16x256xf32, #tpu.memory_space<vmem>>, vector<8x256xf32>,
    %547 = vector.extract_strided_slice %5 {offsets = [8, 0], sizes = [8, 256], strides = [1, 1]} : vector<16x256xf32> to vector<8x256xf32>
    %548 = vector.extract_strided_slice %473 {offsets = [8, 0], sizes = [8, 49], strides = [1, 1]} : vector<16x49xf32> to vector<8x49xf32>
    %c51_i32_34 = arith.constant 51 : i32
    %549 = tpu.dynamic_rotate %547 by %c51_i32_34 dim 1 : vector<8x256xf32>, i32 -> vector<8x256xf32>
    %550 = vector.extract_strided_slice %0 {offsets = [0, 0], sizes = [1, 256], strides = [1, 1]} : vector<49x256xf32> to vector<1x256xf32>
    %551 = vector.broadcast %550 : vector<1x256xf32> to vector<8x256xf32>
    %552 = arith.mulf %549, %551 : vector<8x256xf32>
    %553 = vector.extract_strided_slice %548 {offsets = [0, 0], sizes = [8, 1], strides = [1, 1]} : vector<8x49xf32> to vector<8x1xf32>
    %554 = vector.broadcast %553 : vector<8x1xf32> to vector<8x256xf32>
    %555 = arith.mulf %552, %554 : vector<8x256xf32>
    %c50_i32_35 = arith.constant 50 : i32
    %556 = tpu.dynamic_rotate %547 by %c50_i32_35 dim 1 : vector<8x256xf32>, i32 -> vector<8x256xf32>
    %557 = vector.extract_strided_slice %0 {offsets = [1, 0], sizes = [1, 256], strides = [1, 1]} : vector<49x256xf32> to vector<1x256xf32>
    %558 = vector.broadcast %557 : vector<1x256xf32> to vector<8x256xf32>
    %559 = arith.mulf %556, %558 : vector<8x256xf32>
    %560 = vector.extract_strided_slice %548 {offsets = [0, 1], sizes = [8, 1], strides = [1, 1]} : vector<8x49xf32> to vector<8x1xf32>
    %561 = vector.broadcast %560 : vector<8x1xf32> to vector<8x256xf32>
    %562 = arith.mulf %559, %561 : vector<8x256xf32>
    %563 = arith.addf %555, %562 : vector<8x256xf32>
    %c49_i32_36 = arith.constant 49 : i32
    %564 = tpu.dynamic_rotate %547 by %c49_i32_36 dim 1 : vector<8x256xf32>, i32 -> vector<8x256xf32>
    %565 = vector.extract_strided_slice %0 {offsets = [2, 0], sizes = [1, 256], strides = [1, 1]} : vector<49x256xf32> to vector<1x256xf32>
    %566 = vector.broadcast %565 : vector<1x256xf32> to vector<8x256xf32>
    %567 = arith.mulf %564, %566 : vector<8x256xf32>
    %568 = vector.extract_strided_slice %548 {offsets = [0, 2], sizes = [8, 1], strides = [1, 1]} : vector<8x49xf32> to vector<8x1xf32>
    %569 = vector.broadcast %568 : vector<8x1xf32> to vector<8x256xf32>
    %570 = arith.mulf %567, %569 : vector<8x256xf32>
    %571 = arith.addf %563, %570 : vector<8x256xf32>
    %c48_i32_37 = arith.constant 48 : i32
    %572 = tpu.dynamic_rotate %547 by %c48_i32_37 dim 1 : vector<8x256xf32>, i32 -> vector<8x256xf32>
    %573 = vector.extract_strided_slice %0 {offsets = [3, 0], sizes = [1, 256], strides = [1, 1]} : vector<49x256xf32> to vector<1x256xf32>
    %574 = vector.broadcast %573 : vector<1x256xf32> to vector<8x256xf32>
    %575 = arith.mulf %572, %574 : vector<8x256xf32>
    %576 = vector.extract_strided_slice %548 {offsets = [0, 3], sizes = [8, 1], strides = [1, 1]} : vector<8x49xf32> to vector<8x1xf32>
    %577 = vector.broadcast %576 : vector<8x1xf32> to vector<8x256xf32>
    %578 = arith.mulf %575, %577 : vector<8x256xf32>
    %579 = arith.addf %571, %578 : vector<8x256xf32>
    %c47_i32_38 = arith.constant 47 : i32
    %580 = tpu.dynamic_rotate %547 by %c47_i32_38 dim 1 : vector<8x256xf32>, i32 -> vector<8x256xf32>
    %581 = vector.extract_strided_slice %0 {offsets = [4, 0], sizes = [1, 256], strides = [1, 1]} : vector<49x256xf32> to vector<1x256xf32>
    %582 = vector.broadcast %581 : vector<1x256xf32> to vector<8x256xf32>
    %583 = arith.mulf %580, %582 : vector<8x256xf32>
    %584 = vector.extract_strided_slice %548 {offsets = [0, 4], sizes = [8, 1], strides = [1, 1]} : vector<8x49xf32> to vector<8x1xf32>
    %585 = vector.broadcast %584 : vector<8x1xf32> to vector<8x256xf32>
    %586 = arith.mulf %583, %585 : vector<8x256xf32>
    %587 = arith.addf %579, %586 : vector<8x256xf32>
    %c46_i32_39 = arith.constant 46 : i32
    %588 = tpu.dynamic_rotate %547 by %c46_i32_39 dim 1 : vector<8x256xf32>, i32 -> vector<8x256xf32>
    %589 = vector.extract_strided_slice %0 {offsets = [5, 0], sizes = [1, 256], strides = [1, 1]} : vector<49x256xf32> to vector<1x256xf32>
    %590 = vector.broadcast %589 : vector<1x256xf32> to vector<8x256xf32>
    %591 = arith.mulf %588, %590 : vector<8x256xf32>
    %592 = vector.extract_strided_slice %548 {offsets = [0, 5], sizes = [8, 1], strides = [1, 1]} : vector<8x49xf32> to vector<8x1xf32>
    %593 = vector.broadcast %592 : vector<8x1xf32> to vector<8x256xf32>
    %594 = arith.mulf %591, %593 : vector<8x256xf32>
    %595 = arith.addf %587, %594 : vector<8x256xf32>
    %c45_i32_40 = arith.constant 45 : i32
    %596 = tpu.dynamic_rotate %547 by %c45_i32_40 dim 1 : vector<8x256xf32>, i32 -> vector<8x256xf32>
    %597 = vector.extract_strided_slice %0 {offsets = [6, 0], sizes = [1, 256], strides = [1, 1]} : vector<49x256xf32> to vector<1x256xf32>
    %598 = vector.broadcast %597 : vector<1x256xf32> to vector<8x256xf32>
    %599 = arith.mulf %596, %598 : vector<8x256xf32>
    %600 = vector.extract_strided_slice %548 {offsets = [0, 6], sizes = [8, 1], strides = [1, 1]} : vector<8x49xf32> to vector<8x1xf32>
    %601 = vector.broadcast %600 : vector<8x1xf32> to vector<8x256xf32>
    %602 = arith.mulf %599, %601 : vector<8x256xf32>
    %603 = arith.addf %595, %602 : vector<8x256xf32>
    %c35_i32_41 = arith.constant 35 : i32
    %604 = tpu.dynamic_rotate %547 by %c35_i32_41 dim 1 : vector<8x256xf32>, i32 -> vector<8x256xf32>
    %605 = vector.extract_strided_slice %0 {offsets = [7, 0], sizes = [1, 256], strides = [1, 1]} : vector<49x256xf32> to vector<1x256xf32>
    %606 = vector.broadcast %605 : vector<1x256xf32> to vector<8x256xf32>
    %607 = arith.mulf %604, %606 : vector<8x256xf32>
    %608 = vector.extract_strided_slice %548 {offsets = [0, 7], sizes = [8, 1], strides = [1, 1]} : vector<8x49xf32> to vector<8x1xf32>
    %609 = vector.broadcast %608 : vector<8x1xf32> to vector<8x256xf32>
    %610 = arith.mulf %607, %609 : vector<8x256xf32>
    %611 = arith.addf %603, %610 : vector<8x256xf32>
    %c34_i32_42 = arith.constant 34 : i32
    %612 = tpu.dynamic_rotate %547 by %c34_i32_42 dim 1 : vector<8x256xf32>, i32 -> vector<8x256xf32>
    %613 = vector.extract_strided_slice %0 {offsets = [8, 0], sizes = [1, 256], strides = [1, 1]} : vector<49x256xf32> to vector<1x256xf32>
    %614 = vector.broadcast %613 : vector<1x256xf32> to vector<8x256xf32>
    %615 = arith.mulf %612, %614 : vector<8x256xf32>
    %616 = vector.extract_strided_slice %548 {offsets = [0, 8], sizes = [8, 1], strides = [1, 1]} : vector<8x49xf32> to vector<8x1xf32>
    %617 = vector.broadcast %616 : vector<8x1xf32> to vector<8x256xf32>
    %618 = arith.mulf %615, %617 : vector<8x256xf32>
    %619 = arith.addf %611, %618 : vector<8x256xf32>
    %c33_i32_43 = arith.constant 33 : i32
    %620 = tpu.dynamic_rotate %547 by %c33_i32_43 dim 1 : vector<8x256xf32>, i32 -> vector<8x256xf32>
    %621 = vector.extract_strided_slice %0 {offsets = [9, 0], sizes = [1, 256], strides = [1, 1]} : vector<49x256xf32> to vector<1x256xf32>
    %622 = vector.broadcast %621 : vector<1x256xf32> to vector<8x256xf32>
    %623 = arith.mulf %620, %622 : vector<8x256xf32>
    %624 = vector.extract_strided_slice %548 {offsets = [0, 9], sizes = [8, 1], strides = [1, 1]} : vector<8x49xf32> to vector<8x1xf32>
    %625 = vector.broadcast %624 : vector<8x1xf32> to vector<8x256xf32>
    %626 = arith.mulf %623, %625 : vector<8x256xf32>
    %627 = arith.addf %619, %626 : vector<8x256xf32>
    %c32_i32_44 = arith.constant 32 : i32
    %628 = tpu.dynamic_rotate %547 by %c32_i32_44 dim 1 : vector<8x256xf32>, i32 -> vector<8x256xf32>
    %629 = vector.extract_strided_slice %0 {offsets = [10, 0], sizes = [1, 256], strides = [1, 1]} : vector<49x256xf32> to vector<1x256xf32>
    %630 = vector.broadcast %629 : vector<1x256xf32> to vector<8x256xf32>
    %631 = arith.mulf %628, %630 : vector<8x256xf32>
    %632 = vector.extract_strided_slice %548 {offsets = [0, 10], sizes = [8, 1], strides = [1, 1]} : vector<8x49xf32> to vector<8x1xf32>
    %633 = vector.broadcast %632 : vector<8x1xf32> to vector<8x256xf32>
    %634 = arith.mulf %631, %633 : vector<8x256xf32>
    %635 = arith.addf %627, %634 : vector<8x256xf32>
    %c31_i32_45 = arith.constant 31 : i32
    %636 = tpu.dynamic_rotate %547 by %c31_i32_45 dim 1 : vector<8x256xf32>, i32 -> vector<8x256xf32>
    %637 = vector.extract_strided_slice %0 {offsets = [11, 0], sizes = [1, 256], strides = [1, 1]} : vector<49x256xf32> to vector<1x256xf32>
    %638 = vector.broadcast %637 : vector<1x256xf32> to vector<8x256xf32>
    %639 = arith.mulf %636, %638 : vector<8x256xf32>
    %640 = vector.extract_strided_slice %548 {offsets = [0, 11], sizes = [8, 1], strides = [1, 1]} : vector<8x49xf32> to vector<8x1xf32>
    %641 = vector.broadcast %640 : vector<8x1xf32> to vector<8x256xf32>
    %642 = arith.mulf %639, %641 : vector<8x256xf32>
    %643 = arith.addf %635, %642 : vector<8x256xf32>
    %c30_i32_46 = arith.constant 30 : i32
    %644 = tpu.dynamic_rotate %547 by %c30_i32_46 dim 1 : vector<8x256xf32>, i32 -> vector<8x256xf32>
    %645 = vector.extract_strided_slice %0 {offsets = [12, 0], sizes = [1, 256], strides = [1, 1]} : vector<49x256xf32> to vector<1x256xf32>
    %646 = vector.broadcast %645 : vector<1x256xf32> to vector<8x256xf32>
    %647 = arith.mulf %644, %646 : vector<8x256xf32>
    %648 = vector.extract_strided_slice %548 {offsets = [0, 12], sizes = [8, 1], strides = [1, 1]} : vector<8x49xf32> to vector<8x1xf32>
    %649 = vector.broadcast %648 : vector<8x1xf32> to vector<8x256xf32>
    %650 = arith.mulf %647, %649 : vector<8x256xf32>
    %651 = arith.addf %643, %650 : vector<8x256xf32>
    %c29_i32_47 = arith.constant 29 : i32
    %652 = tpu.dynamic_rotate %547 by %c29_i32_47 dim 1 : vector<8x256xf32>, i32 -> vector<8x256xf32>
    %653 = vector.extract_strided_slice %0 {offsets = [13, 0], sizes = [1, 256], strides = [1, 1]} : vector<49x256xf32> to vector<1x256xf32>
    %654 = vector.broadcast %653 : vector<1x256xf32> to vector<8x256xf32>
    %655 = arith.mulf %652, %654 : vector<8x256xf32>
    %656 = vector.extract_strided_slice %548 {offsets = [0, 13], sizes = [8, 1], strides = [1, 1]} : vector<8x49xf32> to vector<8x1xf32>
    %657 = vector.broadcast %656 : vector<8x1xf32> to vector<8x256xf32>
    %658 = arith.mulf %655, %657 : vector<8x256xf32>
    %659 = arith.addf %651, %658 : vector<8x256xf32>
    %c19_i32_48 = arith.constant 19 : i32
    %660 = tpu.dynamic_rotate %547 by %c19_i32_48 dim 1 : vector<8x256xf32>, i32 -> vector<8x256xf32>
    %661 = vector.extract_strided_slice %0 {offsets = [14, 0], sizes = [1, 256], strides = [1, 1]} : vector<49x256xf32> to vector<1x256xf32>
    %662 = vector.broadcast %661 : vector<1x256xf32> to vector<8x256xf32>
    %663 = arith.mulf %660, %662 : vector<8x256xf32>
    %664 = vector.extract_strided_slice %548 {offsets = [0, 14], sizes = [8, 1], strides = [1, 1]} : vector<8x49xf32> to vector<8x1xf32>
    %665 = vector.broadcast %664 : vector<8x1xf32> to vector<8x256xf32>
    %666 = arith.mulf %663, %665 : vector<8x256xf32>
    %667 = arith.addf %659, %666 : vector<8x256xf32>
    %c18_i32_49 = arith.constant 18 : i32
    %668 = tpu.dynamic_rotate %547 by %c18_i32_49 dim 1 : vector<8x256xf32>, i32 -> vector<8x256xf32>
    %669 = vector.extract_strided_slice %0 {offsets = [15, 0], sizes = [1, 256], strides = [1, 1]} : vector<49x256xf32> to vector<1x256xf32>
    %670 = vector.broadcast %669 : vector<1x256xf32> to vector<8x256xf32>
    %671 = arith.mulf %668, %670 : vector<8x256xf32>
    %672 = vector.extract_strided_slice %548 {offsets = [0, 15], sizes = [8, 1], strides = [1, 1]} : vector<8x49xf32> to vector<8x1xf32>
    %673 = vector.broadcast %672 : vector<8x1xf32> to vector<8x256xf32>
    %674 = arith.mulf %671, %673 : vector<8x256xf32>
    %675 = arith.addf %667, %674 : vector<8x256xf32>
    %c17_i32_50 = arith.constant 17 : i32
    %676 = tpu.dynamic_rotate %547 by %c17_i32_50 dim 1 : vector<8x256xf32>, i32 -> vector<8x256xf32>
    %677 = vector.extract_strided_slice %0 {offsets = [16, 0], sizes = [1, 256], strides = [1, 1]} : vector<49x256xf32> to vector<1x256xf32>
    %678 = vector.broadcast %677 : vector<1x256xf32> to vector<8x256xf32>
    %679 = arith.mulf %676, %678 : vector<8x256xf32>
    %680 = vector.extract_strided_slice %548 {offsets = [0, 16], sizes = [8, 1], strides = [1, 1]} : vector<8x49xf32> to vector<8x1xf32>
    %681 = vector.broadcast %680 : vector<8x1xf32> to vector<8x256xf32>
    %682 = arith.mulf %679, %681 : vector<8x256xf32>
    %683 = arith.addf %675, %682 : vector<8x256xf32>
    %c16_i32_51 = arith.constant 16 : i32
    %684 = tpu.dynamic_rotate %547 by %c16_i32_51 dim 1 : vector<8x256xf32>, i32 -> vector<8x256xf32>
    %685 = vector.extract_strided_slice %0 {offsets = [17, 0], sizes = [1, 256], strides = [1, 1]} : vector<49x256xf32> to vector<1x256xf32>
    %686 = vector.broadcast %685 : vector<1x256xf32> to vector<8x256xf32>
    %687 = arith.mulf %684, %686 : vector<8x256xf32>
    %688 = vector.extract_strided_slice %548 {offsets = [0, 17], sizes = [8, 1], strides = [1, 1]} : vector<8x49xf32> to vector<8x1xf32>
    %689 = vector.broadcast %688 : vector<8x1xf32> to vector<8x256xf32>
    %690 = arith.mulf %687, %689 : vector<8x256xf32>
    %691 = arith.addf %683, %690 : vector<8x256xf32>
    %c15_i32_52 = arith.constant 15 : i32
    %692 = tpu.dynamic_rotate %547 by %c15_i32_52 dim 1 : vector<8x256xf32>, i32 -> vector<8x256xf32>
    %693 = vector.extract_strided_slice %0 {offsets = [18, 0], sizes = [1, 256], strides = [1, 1]} : vector<49x256xf32> to vector<1x256xf32>
    %694 = vector.broadcast %693 : vector<1x256xf32> to vector<8x256xf32>
    %695 = arith.mulf %692, %694 : vector<8x256xf32>
    %696 = vector.extract_strided_slice %548 {offsets = [0, 18], sizes = [8, 1], strides = [1, 1]} : vector<8x49xf32> to vector<8x1xf32>
    %697 = vector.broadcast %696 : vector<8x1xf32> to vector<8x256xf32>
    %698 = arith.mulf %695, %697 : vector<8x256xf32>
    %699 = arith.addf %691, %698 : vector<8x256xf32>
    %c14_i32_53 = arith.constant 14 : i32
    %700 = tpu.dynamic_rotate %547 by %c14_i32_53 dim 1 : vector<8x256xf32>, i32 -> vector<8x256xf32>
    %701 = vector.extract_strided_slice %0 {offsets = [19, 0], sizes = [1, 256], strides = [1, 1]} : vector<49x256xf32> to vector<1x256xf32>
    %702 = vector.broadcast %701 : vector<1x256xf32> to vector<8x256xf32>
    %703 = arith.mulf %700, %702 : vector<8x256xf32>
    %704 = vector.extract_strided_slice %548 {offsets = [0, 19], sizes = [8, 1], strides = [1, 1]} : vector<8x49xf32> to vector<8x1xf32>
    %705 = vector.broadcast %704 : vector<8x1xf32> to vector<8x256xf32>
    %706 = arith.mulf %703, %705 : vector<8x256xf32>
    %707 = arith.addf %699, %706 : vector<8x256xf32>
    %c13_i32_54 = arith.constant 13 : i32
    %708 = tpu.dynamic_rotate %547 by %c13_i32_54 dim 1 : vector<8x256xf32>, i32 -> vector<8x256xf32>
    %709 = vector.extract_strided_slice %0 {offsets = [20, 0], sizes = [1, 256], strides = [1, 1]} : vector<49x256xf32> to vector<1x256xf32>
    %710 = vector.broadcast %709 : vector<1x256xf32> to vector<8x256xf32>
    %711 = arith.mulf %708, %710 : vector<8x256xf32>
    %712 = vector.extract_strided_slice %548 {offsets = [0, 20], sizes = [8, 1], strides = [1, 1]} : vector<8x49xf32> to vector<8x1xf32>
    %713 = vector.broadcast %712 : vector<8x1xf32> to vector<8x256xf32>
    %714 = arith.mulf %711, %713 : vector<8x256xf32>
    %715 = arith.addf %707, %714 : vector<8x256xf32>
    %c3_i32_55 = arith.constant 3 : i32
    %716 = tpu.dynamic_rotate %547 by %c3_i32_55 dim 1 : vector<8x256xf32>, i32 -> vector<8x256xf32>
    %717 = vector.extract_strided_slice %0 {offsets = [21, 0], sizes = [1, 256], strides = [1, 1]} : vector<49x256xf32> to vector<1x256xf32>
    %718 = vector.broadcast %717 : vector<1x256xf32> to vector<8x256xf32>
    %719 = arith.mulf %716, %718 : vector<8x256xf32>
    %720 = vector.extract_strided_slice %548 {offsets = [0, 21], sizes = [8, 1], strides = [1, 1]} : vector<8x49xf32> to vector<8x1xf32>
    %721 = vector.broadcast %720 : vector<8x1xf32> to vector<8x256xf32>
    %722 = arith.mulf %719, %721 : vector<8x256xf32>
    %723 = arith.addf %715, %722 : vector<8x256xf32>
    %c2_i32_56 = arith.constant 2 : i32
    %724 = tpu.dynamic_rotate %547 by %c2_i32_56 dim 1 : vector<8x256xf32>, i32 -> vector<8x256xf32>
    %725 = vector.extract_strided_slice %0 {offsets = [22, 0], sizes = [1, 256], strides = [1, 1]} : vector<49x256xf32> to vector<1x256xf32>
    %726 = vector.broadcast %725 : vector<1x256xf32> to vector<8x256xf32>
    %727 = arith.mulf %724, %726 : vector<8x256xf32>
    %728 = vector.extract_strided_slice %548 {offsets = [0, 22], sizes = [8, 1], strides = [1, 1]} : vector<8x49xf32> to vector<8x1xf32>
    %729 = vector.broadcast %728 : vector<8x1xf32> to vector<8x256xf32>
    %730 = arith.mulf %727, %729 : vector<8x256xf32>
    %731 = arith.addf %723, %730 : vector<8x256xf32>
    %c1_i32_57 = arith.constant 1 : i32
    %732 = tpu.dynamic_rotate %547 by %c1_i32_57 dim 1 : vector<8x256xf32>, i32 -> vector<8x256xf32>
    %733 = vector.extract_strided_slice %0 {offsets = [23, 0], sizes = [1, 256], strides = [1, 1]} : vector<49x256xf32> to vector<1x256xf32>
    %734 = vector.broadcast %733 : vector<1x256xf32> to vector<8x256xf32>
    %735 = arith.mulf %732, %734 : vector<8x256xf32>
    %736 = vector.extract_strided_slice %548 {offsets = [0, 23], sizes = [8, 1], strides = [1, 1]} : vector<8x49xf32> to vector<8x1xf32>
    %737 = vector.broadcast %736 : vector<8x1xf32> to vector<8x256xf32>
    %738 = arith.mulf %735, %737 : vector<8x256xf32>
    %739 = arith.addf %731, %738 : vector<8x256xf32>
    %740 = vector.extract_strided_slice %0 {offsets = [24, 0], sizes = [1, 256], strides = [1, 1]} : vector<49x256xf32> to vector<1x256xf32>
    %741 = vector.broadcast %740 : vector<1x256xf32> to vector<8x256xf32>
    %742 = arith.mulf %547, %741 : vector<8x256xf32>
    %743 = vector.extract_strided_slice %548 {offsets = [0, 24], sizes = [8, 1], strides = [1, 1]} : vector<8x49xf32> to vector<8x1xf32>
    %744 = vector.broadcast %743 : vector<8x1xf32> to vector<8x256xf32>
    %745 = arith.mulf %742, %744 : vector<8x256xf32>
    %746 = arith.addf %739, %745 : vector<8x256xf32>
    %c255_i32_58 = arith.constant 255 : i32
    %747 = tpu.dynamic_rotate %547 by %c255_i32_58 dim 1 : vector<8x256xf32>, i32 -> vector<8x256xf32>
    %748 = vector.extract_strided_slice %0 {offsets = [25, 0], sizes = [1, 256], strides = [1, 1]} : vector<49x256xf32> to vector<1x256xf32>
    %749 = vector.broadcast %748 : vector<1x256xf32> to vector<8x256xf32>
    %750 = arith.mulf %747, %749 : vector<8x256xf32>
    %751 = vector.extract_strided_slice %548 {offsets = [0, 25], sizes = [8, 1], strides = [1, 1]} : vector<8x49xf32> to vector<8x1xf32>
    %752 = vector.broadcast %751 : vector<8x1xf32> to vector<8x256xf32>
    %753 = arith.mulf %750, %752 : vector<8x256xf32>
    %754 = arith.addf %746, %753 : vector<8x256xf32>
    %c254_i32_59 = arith.constant 254 : i32
    %755 = tpu.dynamic_rotate %547 by %c254_i32_59 dim 1 : vector<8x256xf32>, i32 -> vector<8x256xf32>
    %756 = vector.extract_strided_slice %0 {offsets = [26, 0], sizes = [1, 256], strides = [1, 1]} : vector<49x256xf32> to vector<1x256xf32>
    %757 = vector.broadcast %756 : vector<1x256xf32> to vector<8x256xf32>
    %758 = arith.mulf %755, %757 : vector<8x256xf32>
    %759 = vector.extract_strided_slice %548 {offsets = [0, 26], sizes = [8, 1], strides = [1, 1]} : vector<8x49xf32> to vector<8x1xf32>
    %760 = vector.broadcast %759 : vector<8x1xf32> to vector<8x256xf32>
    %761 = arith.mulf %758, %760 : vector<8x256xf32>
    %762 = arith.addf %754, %761 : vector<8x256xf32>
    %c253_i32_60 = arith.constant 253 : i32
    %763 = tpu.dynamic_rotate %547 by %c253_i32_60 dim 1 : vector<8x256xf32>, i32 -> vector<8x256xf32>
    %764 = vector.extract_strided_slice %0 {offsets = [27, 0], sizes = [1, 256], strides = [1, 1]} : vector<49x256xf32> to vector<1x256xf32>
    %765 = vector.broadcast %764 : vector<1x256xf32> to vector<8x256xf32>
    %766 = arith.mulf %763, %765 : vector<8x256xf32>
    %767 = vector.extract_strided_slice %548 {offsets = [0, 27], sizes = [8, 1], strides = [1, 1]} : vector<8x49xf32> to vector<8x1xf32>
    %768 = vector.broadcast %767 : vector<8x1xf32> to vector<8x256xf32>
    %769 = arith.mulf %766, %768 : vector<8x256xf32>
    %770 = arith.addf %762, %769 : vector<8x256xf32>
    %c243_i32_61 = arith.constant 243 : i32
    %771 = tpu.dynamic_rotate %547 by %c243_i32_61 dim 1 : vector<8x256xf32>, i32 -> vector<8x256xf32>
    %772 = vector.extract_strided_slice %0 {offsets = [28, 0], sizes = [1, 256], strides = [1, 1]} : vector<49x256xf32> to vector<1x256xf32>
    %773 = vector.broadcast %772 : vector<1x256xf32> to vector<8x256xf32>
    %774 = arith.mulf %771, %773 : vector<8x256xf32>
    %775 = vector.extract_strided_slice %548 {offsets = [0, 28], sizes = [8, 1], strides = [1, 1]} : vector<8x49xf32> to vector<8x1xf32>
    %776 = vector.broadcast %775 : vector<8x1xf32> to vector<8x256xf32>
    %777 = arith.mulf %774, %776 : vector<8x256xf32>
    %778 = arith.addf %770, %777 : vector<8x256xf32>
    %c242_i32_62 = arith.constant 242 : i32
    %779 = tpu.dynamic_rotate %547 by %c242_i32_62 dim 1 : vector<8x256xf32>, i32 -> vector<8x256xf32>
    %780 = vector.extract_strided_slice %0 {offsets = [29, 0], sizes = [1, 256], strides = [1, 1]} : vector<49x256xf32> to vector<1x256xf32>
    %781 = vector.broadcast %780 : vector<1x256xf32> to vector<8x256xf32>
    %782 = arith.mulf %779, %781 : vector<8x256xf32>
    %783 = vector.extract_strided_slice %548 {offsets = [0, 29], sizes = [8, 1], strides = [1, 1]} : vector<8x49xf32> to vector<8x1xf32>
    %784 = vector.broadcast %783 : vector<8x1xf32> to vector<8x256xf32>
    %785 = arith.mulf %782, %784 : vector<8x256xf32>
    %786 = arith.addf %778, %785 : vector<8x256xf32>
    %c241_i32_63 = arith.constant 241 : i32
    %787 = tpu.dynamic_rotate %547 by %c241_i32_63 dim 1 : vector<8x256xf32>, i32 -> vector<8x256xf32>
    %788 = vector.extract_strided_slice %0 {offsets = [30, 0], sizes = [1, 256], strides = [1, 1]} : vector<49x256xf32> to vector<1x256xf32>
    %789 = vector.broadcast %788 : vector<1x256xf32> to vector<8x256xf32>
    %790 = arith.mulf %787, %789 : vector<8x256xf32>
    %791 = vector.extract_strided_slice %548 {offsets = [0, 30], sizes = [8, 1], strides = [1, 1]} : vector<8x49xf32> to vector<8x1xf32>
    %792 = vector.broadcast %791 : vector<8x1xf32> to vector<8x256xf32>
    %793 = arith.mulf %790, %792 : vector<8x256xf32>
    %794 = arith.addf %786, %793 : vector<8x256xf32>
    %c240_i32_64 = arith.constant 240 : i32
    %795 = tpu.dynamic_rotate %547 by %c240_i32_64 dim 1 : vector<8x256xf32>, i32 -> vector<8x256xf32>
    %796 = vector.extract_strided_slice %0 {offsets = [31, 0], sizes = [1, 256], strides = [1, 1]} : vector<49x256xf32> to vector<1x256xf32>
    %797 = vector.broadcast %796 : vector<1x256xf32> to vector<8x256xf32>
    %798 = arith.mulf %795, %797 : vector<8x256xf32>
    %799 = vector.extract_strided_slice %548 {offsets = [0, 31], sizes = [8, 1], strides = [1, 1]} : vector<8x49xf32> to vector<8x1xf32>
    %800 = vector.broadcast %799 : vector<8x1xf32> to vector<8x256xf32>
    %801 = arith.mulf %798, %800 : vector<8x256xf32>
    %802 = arith.addf %794, %801 : vector<8x256xf32>
    %c239_i32_65 = arith.constant 239 : i32
    %803 = tpu.dynamic_rotate %547 by %c239_i32_65 dim 1 : vector<8x256xf32>, i32 -> vector<8x256xf32>
    %804 = vector.extract_strided_slice %0 {offsets = [32, 0], sizes = [1, 256], strides = [1, 1]} : vector<49x256xf32> to vector<1x256xf32>
    %805 = vector.broadcast %804 : vector<1x256xf32> to vector<8x256xf32>
    %806 = arith.mulf %803, %805 : vector<8x256xf32>
    %807 = vector.extract_strided_slice %548 {offsets = [0, 32], sizes = [8, 1], strides = [1, 1]} : vector<8x49xf32> to vector<8x1xf32>
    %808 = vector.broadcast %807 : vector<8x1xf32> to vector<8x256xf32>
    %809 = arith.mulf %806, %808 : vector<8x256xf32>
    %810 = arith.addf %802, %809 : vector<8x256xf32>
    %c238_i32_66 = arith.constant 238 : i32
    %811 = tpu.dynamic_rotate %547 by %c238_i32_66 dim 1 : vector<8x256xf32>, i32 -> vector<8x256xf32>
    %812 = vector.extract_strided_slice %0 {offsets = [33, 0], sizes = [1, 256], strides = [1, 1]} : vector<49x256xf32> to vector<1x256xf32>
    %813 = vector.broadcast %812 : vector<1x256xf32> to vector<8x256xf32>
    %814 = arith.mulf %811, %813 : vector<8x256xf32>
    %815 = vector.extract_strided_slice %548 {offsets = [0, 33], sizes = [8, 1], strides = [1, 1]} : vector<8x49xf32> to vector<8x1xf32>
    %816 = vector.broadcast %815 : vector<8x1xf32> to vector<8x256xf32>
    %817 = arith.mulf %814, %816 : vector<8x256xf32>
    %818 = arith.addf %810, %817 : vector<8x256xf32>
    %c237_i32_67 = arith.constant 237 : i32
    %819 = tpu.dynamic_rotate %547 by %c237_i32_67 dim 1 : vector<8x256xf32>, i32 -> vector<8x256xf32>
    %820 = vector.extract_strided_slice %0 {offsets = [34, 0], sizes = [1, 256], strides = [1, 1]} : vector<49x256xf32> to vector<1x256xf32>
    %821 = vector.broadcast %820 : vector<1x256xf32> to vector<8x256xf32>
    %822 = arith.mulf %819, %821 : vector<8x256xf32>
    %823 = vector.extract_strided_slice %548 {offsets = [0, 34], sizes = [8, 1], strides = [1, 1]} : vector<8x49xf32> to vector<8x1xf32>
    %824 = vector.broadcast %823 : vector<8x1xf32> to vector<8x256xf32>
    %825 = arith.mulf %822, %824 : vector<8x256xf32>
    %826 = arith.addf %818, %825 : vector<8x256xf32>
    %c227_i32_68 = arith.constant 227 : i32
    %827 = tpu.dynamic_rotate %547 by %c227_i32_68 dim 1 : vector<8x256xf32>, i32 -> vector<8x256xf32>
    %828 = vector.extract_strided_slice %0 {offsets = [35, 0], sizes = [1, 256], strides = [1, 1]} : vector<49x256xf32> to vector<1x256xf32>
    %829 = vector.broadcast %828 : vector<1x256xf32> to vector<8x256xf32>
    %830 = arith.mulf %827, %829 : vector<8x256xf32>
    %831 = vector.extract_strided_slice %548 {offsets = [0, 35], sizes = [8, 1], strides = [1, 1]} : vector<8x49xf32> to vector<8x1xf32>
    %832 = vector.broadcast %831 : vector<8x1xf32> to vector<8x256xf32>
    %833 = arith.mulf %830, %832 : vector<8x256xf32>
    %834 = arith.addf %826, %833 : vector<8x256xf32>
    %c226_i32_69 = arith.constant 226 : i32
    %835 = tpu.dynamic_rotate %547 by %c226_i32_69 dim 1 : vector<8x256xf32>, i32 -> vector<8x256xf32>
    %836 = vector.extract_strided_slice %0 {offsets = [36, 0], sizes = [1, 256], strides = [1, 1]} : vector<49x256xf32> to vector<1x256xf32>
    %837 = vector.broadcast %836 : vector<1x256xf32> to vector<8x256xf32>
    %838 = arith.mulf %835, %837 : vector<8x256xf32>
    %839 = vector.extract_strided_slice %548 {offsets = [0, 36], sizes = [8, 1], strides = [1, 1]} : vector<8x49xf32> to vector<8x1xf32>
    %840 = vector.broadcast %839 : vector<8x1xf32> to vector<8x256xf32>
    %841 = arith.mulf %838, %840 : vector<8x256xf32>
    %842 = arith.addf %834, %841 : vector<8x256xf32>
    %c225_i32_70 = arith.constant 225 : i32
    %843 = tpu.dynamic_rotate %547 by %c225_i32_70 dim 1 : vector<8x256xf32>, i32 -> vector<8x256xf32>
    %844 = vector.extract_strided_slice %0 {offsets = [37, 0], sizes = [1, 256], strides = [1, 1]} : vector<49x256xf32> to vector<1x256xf32>
    %845 = vector.broadcast %844 : vector<1x256xf32> to vector<8x256xf32>
    %846 = arith.mulf %843, %845 : vector<8x256xf32>
    %847 = vector.extract_strided_slice %548 {offsets = [0, 37], sizes = [8, 1], strides = [1, 1]} : vector<8x49xf32> to vector<8x1xf32>
    %848 = vector.broadcast %847 : vector<8x1xf32> to vector<8x256xf32>
    %849 = arith.mulf %846, %848 : vector<8x256xf32>
    %850 = arith.addf %842, %849 : vector<8x256xf32>
    %c224_i32_71 = arith.constant 224 : i32
    %851 = tpu.dynamic_rotate %547 by %c224_i32_71 dim 1 : vector<8x256xf32>, i32 -> vector<8x256xf32>
    %852 = vector.extract_strided_slice %0 {offsets = [38, 0], sizes = [1, 256], strides = [1, 1]} : vector<49x256xf32> to vector<1x256xf32>
    %853 = vector.broadcast %852 : vector<1x256xf32> to vector<8x256xf32>
    %854 = arith.mulf %851, %853 : vector<8x256xf32>
    %855 = vector.extract_strided_slice %548 {offsets = [0, 38], sizes = [8, 1], strides = [1, 1]} : vector<8x49xf32> to vector<8x1xf32>
    %856 = vector.broadcast %855 : vector<8x1xf32> to vector<8x256xf32>
    %857 = arith.mulf %854, %856 : vector<8x256xf32>
    %858 = arith.addf %850, %857 : vector<8x256xf32>
    %c223_i32_72 = arith.constant 223 : i32
    %859 = tpu.dynamic_rotate %547 by %c223_i32_72 dim 1 : vector<8x256xf32>, i32 -> vector<8x256xf32>
    %860 = vector.extract_strided_slice %0 {offsets = [39, 0], sizes = [1, 256], strides = [1, 1]} : vector<49x256xf32> to vector<1x256xf32>
    %861 = vector.broadcast %860 : vector<1x256xf32> to vector<8x256xf32>
    %862 = arith.mulf %859, %861 : vector<8x256xf32>
    %863 = vector.extract_strided_slice %548 {offsets = [0, 39], sizes = [8, 1], strides = [1, 1]} : vector<8x49xf32> to vector<8x1xf32>
    %864 = vector.broadcast %863 : vector<8x1xf32> to vector<8x256xf32>
    %865 = arith.mulf %862, %864 : vector<8x256xf32>
    %866 = arith.addf %858, %865 : vector<8x256xf32>
    %c222_i32_73 = arith.constant 222 : i32
    %867 = tpu.dynamic_rotate %547 by %c222_i32_73 dim 1 : vector<8x256xf32>, i32 -> vector<8x256xf32>
    %868 = vector.extract_strided_slice %0 {offsets = [40, 0], sizes = [1, 256], strides = [1, 1]} : vector<49x256xf32> to vector<1x256xf32>
    %869 = vector.broadcast %868 : vector<1x256xf32> to vector<8x256xf32>
    %870 = arith.mulf %867, %869 : vector<8x256xf32>
    %871 = vector.extract_strided_slice %548 {offsets = [0, 40], sizes = [8, 1], strides = [1, 1]} : vector<8x49xf32> to vector<8x1xf32>
    %872 = vector.broadcast %871 : vector<8x1xf32> to vector<8x256xf32>
    %873 = arith.mulf %870, %872 : vector<8x256xf32>
    %874 = arith.addf %866, %873 : vector<8x256xf32>
    %c221_i32_74 = arith.constant 221 : i32
    %875 = tpu.dynamic_rotate %547 by %c221_i32_74 dim 1 : vector<8x256xf32>, i32 -> vector<8x256xf32>
    %876 = vector.extract_strided_slice %0 {offsets = [41, 0], sizes = [1, 256], strides = [1, 1]} : vector<49x256xf32> to vector<1x256xf32>
    %877 = vector.broadcast %876 : vector<1x256xf32> to vector<8x256xf32>
    %878 = arith.mulf %875, %877 : vector<8x256xf32>
    %879 = vector.extract_strided_slice %548 {offsets = [0, 41], sizes = [8, 1], strides = [1, 1]} : vector<8x49xf32> to vector<8x1xf32>
    %880 = vector.broadcast %879 : vector<8x1xf32> to vector<8x256xf32>
    %881 = arith.mulf %878, %880 : vector<8x256xf32>
    %882 = arith.addf %874, %881 : vector<8x256xf32>
    %c211_i32_75 = arith.constant 211 : i32
    %883 = tpu.dynamic_rotate %547 by %c211_i32_75 dim 1 : vector<8x256xf32>, i32 -> vector<8x256xf32>
    %884 = vector.extract_strided_slice %0 {offsets = [42, 0], sizes = [1, 256], strides = [1, 1]} : vector<49x256xf32> to vector<1x256xf32>
    %885 = vector.broadcast %884 : vector<1x256xf32> to vector<8x256xf32>
    %886 = arith.mulf %883, %885 : vector<8x256xf32>
    %887 = vector.extract_strided_slice %548 {offsets = [0, 42], sizes = [8, 1], strides = [1, 1]} : vector<8x49xf32> to vector<8x1xf32>
    %888 = vector.broadcast %887 : vector<8x1xf32> to vector<8x256xf32>
    %889 = arith.mulf %886, %888 : vector<8x256xf32>
    %890 = arith.addf %882, %889 : vector<8x256xf32>
    %c210_i32_76 = arith.constant 210 : i32
    %891 = tpu.dynamic_rotate %547 by %c210_i32_76 dim 1 : vector<8x256xf32>, i32 -> vector<8x256xf32>
    %892 = vector.extract_strided_slice %0 {offsets = [43, 0], sizes = [1, 256], strides = [1, 1]} : vector<49x256xf32> to vector<1x256xf32>
    %893 = vector.broadcast %892 : vector<1x256xf32> to vector<8x256xf32>
    %894 = arith.mulf %891, %893 : vector<8x256xf32>
    %895 = vector.extract_strided_slice %548 {offsets = [0, 43], sizes = [8, 1], strides = [1, 1]} : vector<8x49xf32> to vector<8x1xf32>
    %896 = vector.broadcast %895 : vector<8x1xf32> to vector<8x256xf32>
    %897 = arith.mulf %894, %896 : vector<8x256xf32>
    %898 = arith.addf %890, %897 : vector<8x256xf32>
    %c209_i32_77 = arith.constant 209 : i32
    %899 = tpu.dynamic_rotate %547 by %c209_i32_77 dim 1 : vector<8x256xf32>, i32 -> vector<8x256xf32>
    %900 = vector.extract_strided_slice %0 {offsets = [44, 0], sizes = [1, 256], strides = [1, 1]} : vector<49x256xf32> to vector<1x256xf32>
    %901 = vector.broadcast %900 : vector<1x256xf32> to vector<8x256xf32>
    %902 = arith.mulf %899, %901 : vector<8x256xf32>
    %903 = vector.extract_strided_slice %548 {offsets = [0, 44], sizes = [8, 1], strides = [1, 1]} : vector<8x49xf32> to vector<8x1xf32>
    %904 = vector.broadcast %903 : vector<8x1xf32> to vector<8x256xf32>
    %905 = arith.mulf %902, %904 : vector<8x256xf32>
    %906 = arith.addf %898, %905 : vector<8x256xf32>
    %c208_i32_78 = arith.constant 208 : i32
    %907 = tpu.dynamic_rotate %547 by %c208_i32_78 dim 1 : vector<8x256xf32>, i32 -> vector<8x256xf32>
    %908 = vector.extract_strided_slice %0 {offsets = [45, 0], sizes = [1, 256], strides = [1, 1]} : vector<49x256xf32> to vector<1x256xf32>
    %909 = vector.broadcast %908 : vector<1x256xf32> to vector<8x256xf32>
    %910 = arith.mulf %907, %909 : vector<8x256xf32>
    %911 = vector.extract_strided_slice %548 {offsets = [0, 45], sizes = [8, 1], strides = [1, 1]} : vector<8x49xf32> to vector<8x1xf32>
    %912 = vector.broadcast %911 : vector<8x1xf32> to vector<8x256xf32>
    %913 = arith.mulf %910, %912 : vector<8x256xf32>
    %914 = arith.addf %906, %913 : vector<8x256xf32>
    %c207_i32_79 = arith.constant 207 : i32
    %915 = tpu.dynamic_rotate %547 by %c207_i32_79 dim 1 : vector<8x256xf32>, i32 -> vector<8x256xf32>
    %916 = vector.extract_strided_slice %0 {offsets = [46, 0], sizes = [1, 256], strides = [1, 1]} : vector<49x256xf32> to vector<1x256xf32>
    %917 = vector.broadcast %916 : vector<1x256xf32> to vector<8x256xf32>
    %918 = arith.mulf %915, %917 : vector<8x256xf32>
    %919 = vector.extract_strided_slice %548 {offsets = [0, 46], sizes = [8, 1], strides = [1, 1]} : vector<8x49xf32> to vector<8x1xf32>
    %920 = vector.broadcast %919 : vector<8x1xf32> to vector<8x256xf32>
    %921 = arith.mulf %918, %920 : vector<8x256xf32>
    %922 = arith.addf %914, %921 : vector<8x256xf32>
    %c206_i32_80 = arith.constant 206 : i32
    %923 = tpu.dynamic_rotate %547 by %c206_i32_80 dim 1 : vector<8x256xf32>, i32 -> vector<8x256xf32>
    %924 = vector.extract_strided_slice %0 {offsets = [47, 0], sizes = [1, 256], strides = [1, 1]} : vector<49x256xf32> to vector<1x256xf32>
    %925 = vector.broadcast %924 : vector<1x256xf32> to vector<8x256xf32>
    %926 = arith.mulf %923, %925 : vector<8x256xf32>
    %927 = vector.extract_strided_slice %548 {offsets = [0, 47], sizes = [8, 1], strides = [1, 1]} : vector<8x49xf32> to vector<8x1xf32>
    %928 = vector.broadcast %927 : vector<8x1xf32> to vector<8x256xf32>
    %929 = arith.mulf %926, %928 : vector<8x256xf32>
    %930 = arith.addf %922, %929 : vector<8x256xf32>
    %c205_i32_81 = arith.constant 205 : i32
    %931 = tpu.dynamic_rotate %547 by %c205_i32_81 dim 1 : vector<8x256xf32>, i32 -> vector<8x256xf32>
    %932 = vector.extract_strided_slice %0 {offsets = [48, 0], sizes = [1, 256], strides = [1, 1]} : vector<49x256xf32> to vector<1x256xf32>
    %933 = vector.broadcast %932 : vector<1x256xf32> to vector<8x256xf32>
    %934 = arith.mulf %931, %933 : vector<8x256xf32>
    %935 = vector.extract_strided_slice %548 {offsets = [0, 48], sizes = [8, 1], strides = [1, 1]} : vector<8x49xf32> to vector<8x1xf32>
    %936 = vector.broadcast %935 : vector<8x1xf32> to vector<8x256xf32>
    %937 = arith.mulf %934, %936 : vector<8x256xf32>
    %938 = arith.addf %930, %937 : vector<8x256xf32>
    %c8_82 = arith.constant 8 : index
    %c0_83 = arith.constant 0 : index
    %939 = vector.load %arg19[%c8_82, %c0_83] : memref<16x256xf32, #tpu.memory_space<vmem>>, vector<8x256xf32>
    tpu.vector_store %arg19[%c8_82, %c0_83], %938 {strides = array<i32>} : memref<16x256xf32, #tpu.memory_space<vmem>>, vector<8x256xf32>,
    %c0_84 = arith.constant 0 : index
    %c0_85 = arith.constant 0 : index
    %940 = vector.load %arg7[%c0_84, %c0_85] : memref<32x16xbf16, #tpu.memory_space<vmem>>, vector<32x16xbf16>
    %c0_86 = arith.constant 0 : index
    %c0_87 = arith.constant 0 : index
    %941 = vector.load %arg18[%c0_86, %c0_87] : memref<16x256xf32, #tpu.memory_space<vmem>>, vector<16x256xf32>
    %942 = arith.truncf %941 : vector<16x256xf32> to vector<16x256xbf16>
    %cst = arith.constant dense<0.000000e+00> : vector<32x256xf32>
    %943 = tpu.matmul %940, %942, %cst {dimension_numbers = #tpu.dot_dimension_numbers<[1], [0], [0], [1], [0, 0, 1, 1], [], []>} : vector<32x16xbf16>, vector<16x256xbf16>, vector<32x256xf32> -> vector<32x256xf32>
    %c0_88 = arith.constant 0 : index
    %c0_89 = arith.constant 0 : index
    %944 = vector.load %arg8[%c0_88, %c0_89] : memref<16x16xbf16, #tpu.memory_space<vmem>>, vector<16x16xbf16>
    %c0_90 = arith.constant 0 : index
    %c0_91 = arith.constant 0 : index
    %945 = vector.load %arg19[%c0_90, %c0_91] : memref<16x256xf32, #tpu.memory_space<vmem>>, vector<16x256xf32>
    %946 = arith.truncf %945 : vector<16x256xf32> to vector<16x256xbf16>
    %cst_92 = arith.constant dense<0.000000e+00> : vector<16x256xf32>
    %947 = tpu.matmul %944, %946, %cst_92 {dimension_numbers = #tpu.dot_dimension_numbers<[1], [0], [0], [1], [0, 0, 1, 1], [], []>} : vector<16x16xbf16>, vector<16x256xbf16>, vector<16x256xf32> -> vector<16x256xf32>
    %948 = vector.extract_strided_slice %943 {offsets = [0, 0], sizes = [16, 256], strides = [1, 1]} : vector<32x256xf32> to vector<16x256xf32>
    %949 = vector.extract_strided_slice %943 {offsets = [16, 0], sizes = [16, 256], strides = [1, 1]} : vector<32x256xf32> to vector<16x256xf32>
    %950 = arith.mulf %948, %947 : vector<16x256xf32>
    %cst_93 = arith.constant dense<0.000000e+00> : vector<16xf32>
    %951 = vector.multi_reduction <add>, %950, %cst_93 [1] : vector<16x256xf32> to vector<16xf32>
    %952 = vector.shape_cast %951 : vector<16xf32> to vector<16x1xf32>
    %cst_94 = arith.constant 3.906250e-03 : f32
    %953 = vector.broadcast %cst_94 : f32 to vector<16x1xf32>
    %954 = arith.mulf %952, %953 : vector<16x1xf32>
    %c0_95 = arith.constant 0 : index
    %c0_96 = arith.constant 0 : index
    %955 = vector.load %arg12[%c0_95, %c0_96] : memref<4x16xbf16, #tpu.memory_space<vmem>>, vector<4x16xbf16>
    %956 = arith.truncf %954 : vector<16x1xf32> to vector<16x1xbf16>
    %cst_97 = arith.constant dense<0.000000e+00> : vector<4x1xf32>
    %957 = tpu.matmul %955, %956, %cst_97 {dimension_numbers = #tpu.dot_dimension_numbers<[1], [0], [0], [1], [0, 0, 1, 1], [], []>} : vector<4x16xbf16>, vector<16x1xbf16>, vector<4x1xf32> -> vector<4x1xf32>
    %cst_98 = arith.constant 0.000000e+00 : f32
    %958 = vector.broadcast %cst_98 : f32 to vector<4x1xf32>
    %959 = arith.maximumf %957, %958 : vector<4x1xf32>
    %c0_99 = arith.constant 0 : index
    %c0_100 = arith.constant 0 : index
    %960 = vector.load %arg13[%c0_99, %c0_100] : memref<16x4xbf16, #tpu.memory_space<vmem>>, vector<16x4xbf16>
    %961 = arith.truncf %959 : vector<4x1xf32> to vector<4x1xbf16>
    %cst_101 = arith.constant dense<0.000000e+00> : vector<16x1xf32>
    %962 = tpu.matmul %960, %961, %cst_101 {dimension_numbers = #tpu.dot_dimension_numbers<[1], [0], [0], [1], [0, 0, 1, 1], [], []>} : vector<16x4xbf16>, vector<4x1xbf16>, vector<16x1xf32> -> vector<16x1xf32>
    %963 = math.tanh %962 : vector<16x1xf32>
    %964 = vector.broadcast %963 : vector<16x1xf32> to vector<16x256xf32>
    %965 = arith.mulf %964, %949 : vector<16x256xf32>
    %c0_102 = arith.constant 0 : index
    %c0_103 = arith.constant 0 : index
    %966 = vector.load %arg9[%c0_102, %c0_103] : memref<16x16xbf16, #tpu.memory_space<vmem>>, vector<16x16xbf16>
    %c255_i32_104 = arith.constant 255 : i32
    %967 = tpu.dynamic_rotate %3 by %c255_i32_104 dim 1 : vector<16x256xf32>, i32 -> vector<16x256xf32>
    %968 = arith.addf %3, %967 : vector<16x256xf32>
    %c240_i32_105 = arith.constant 240 : i32
    %969 = tpu.dynamic_rotate %3 by %c240_i32_105 dim 1 : vector<16x256xf32>, i32 -> vector<16x256xf32>
    %970 = arith.addf %968, %969 : vector<16x256xf32>
    %c239_i32_106 = arith.constant 239 : i32
    %971 = tpu.dynamic_rotate %3 by %c239_i32_106 dim 1 : vector<16x256xf32>, i32 -> vector<16x256xf32>
    %972 = arith.addf %970, %971 : vector<16x256xf32>
    %cst_107 = arith.constant 2.500000e-01 : f32
    %973 = vector.broadcast %cst_107 : f32 to vector<16x256xf32>
    %974 = arith.mulf %973, %972 : vector<16x256xf32>
    %975 = vector.broadcast %1 : vector<1x256xf32> to vector<16x256xf32>
    %976 = arith.mulf %974, %975 : vector<16x256xf32>
    %977 = arith.truncf %976 : vector<16x256xf32> to vector<16x256xbf16>
    %cst_108 = arith.constant dense<0.000000e+00> : vector<16x256xf32>
    %978 = tpu.matmul %966, %977, %cst_108 {dimension_numbers = #tpu.dot_dimension_numbers<[1], [0], [0], [1], [0, 0, 1, 1], [], []>} : vector<16x16xbf16>, vector<16x256xbf16>, vector<16x256xf32> -> vector<16x256xf32>
    %c0_109 = arith.constant 0 : index
    %c0_110 = arith.constant 0 : index
    %979 = vector.load %arg10[%c0_109, %c0_110] : memref<16x16xbf16, #tpu.memory_space<vmem>>, vector<16x16xbf16>
    %c255_i32_111 = arith.constant 255 : i32
    %980 = tpu.dynamic_rotate %5 by %c255_i32_111 dim 1 : vector<16x256xf32>, i32 -> vector<16x256xf32>
    %981 = arith.addf %5, %980 : vector<16x256xf32>
    %c240_i32_112 = arith.constant 240 : i32
    %982 = tpu.dynamic_rotate %5 by %c240_i32_112 dim 1 : vector<16x256xf32>, i32 -> vector<16x256xf32>
    %983 = arith.addf %981, %982 : vector<16x256xf32>
    %c239_i32_113 = arith.constant 239 : i32
    %984 = tpu.dynamic_rotate %5 by %c239_i32_113 dim 1 : vector<16x256xf32>, i32 -> vector<16x256xf32>
    %985 = arith.addf %983, %984 : vector<16x256xf32>
    %cst_114 = arith.constant 2.500000e-01 : f32
    %986 = vector.broadcast %cst_114 : f32 to vector<16x256xf32>
    %987 = arith.mulf %986, %985 : vector<16x256xf32>
    %988 = vector.broadcast %1 : vector<1x256xf32> to vector<16x256xf32>
    %989 = arith.mulf %987, %988 : vector<16x256xf32>
    %990 = arith.truncf %989 : vector<16x256xf32> to vector<16x256xbf16>
    %cst_115 = arith.constant dense<0.000000e+00> : vector<16x256xf32>
    %991 = tpu.matmul %979, %990, %cst_115 {dimension_numbers = #tpu.dot_dimension_numbers<[1], [0], [0], [1], [0, 0, 1, 1], [], []>} : vector<16x16xbf16>, vector<16x256xbf16>, vector<16x256xf32> -> vector<16x256xf32>
    %c0_116 = arith.constant 0 : index
    %c0_117 = arith.constant 0 : index
    %992 = vector.load %arg11[%c0_116, %c0_117] : memref<16x16xbf16, #tpu.memory_space<vmem>>, vector<16x16xbf16>
    %993 = arith.truncf %5 : vector<16x256xf32> to vector<16x256xbf16>
    %cst_118 = arith.constant dense<0.000000e+00> : vector<16x256xf32>
    %994 = tpu.matmul %992, %993, %cst_118 {dimension_numbers = #tpu.dot_dimension_numbers<[1], [0], [0], [1], [0, 0, 1, 1], [], []>} : vector<16x16xbf16>, vector<16x256xbf16>, vector<16x256xf32> -> vector<16x256xf32>
    %995 = arith.mulf %978, %978 : vector<16x256xf32>
    %cst_119 = arith.constant dense<0.000000e+00> : vector<16xf32>
    %996 = vector.multi_reduction <add>, %995, %cst_119 [1] : vector<16x256xf32> to vector<16xf32>
    %997 = vector.shape_cast %996 : vector<16xf32> to vector<16x1xf32>
    %cst_120 = arith.constant 1.000000e-24 : f32
    %998 = vector.broadcast %cst_120 : f32 to vector<16x1xf32>
    %999 = arith.maximumf %997, %998 : vector<16x1xf32>
    %1000 = math.rsqrt %999 : vector<16x1xf32>
    %1001 = vector.broadcast %1000 : vector<16x1xf32> to vector<16x256xf32>
    %1002 = arith.mulf %978, %1001 : vector<16x256xf32>
    %1003 = arith.mulf %991, %991 : vector<16x256xf32>
    %cst_121 = arith.constant dense<0.000000e+00> : vector<16xf32>
    %1004 = vector.multi_reduction <add>, %1003, %cst_121 [1] : vector<16x256xf32> to vector<16xf32>
    %1005 = vector.shape_cast %1004 : vector<16xf32> to vector<16x1xf32>
    %cst_122 = arith.constant 1.000000e-24 : f32
    %1006 = vector.broadcast %cst_122 : f32 to vector<16x1xf32>
    %1007 = arith.maximumf %1005, %1006 : vector<16x1xf32>
    %1008 = math.rsqrt %1007 : vector<16x1xf32>
    %1009 = vector.broadcast %1008 : vector<16x1xf32> to vector<16x256xf32>
    %1010 = arith.mulf %991, %1009 : vector<16x256xf32>
    %1011 = arith.truncf %1002 : vector<16x256xf32> to vector<16x256xbf16>
    %1012 = arith.truncf %1010 : vector<16x256xf32> to vector<16x256xbf16>
    %cst_123 = arith.constant dense<0.000000e+00> : vector<16x16xf32>
    %1013 = tpu.matmul %1011, %1012, %cst_123 {dimension_numbers = #tpu.dot_dimension_numbers<[1], [1], [0], [0], [0, 0, 1, 0], [], []>} : vector<16x256xbf16>, vector<16x256xbf16>, vector<16x16xf32> -> vector<16x16xf32>
    %c0_124 = arith.constant 0 : index
    %c0_125 = arith.constant 0 : index
    %1014 = vector.load %arg15[%c0_124, %c0_125] : memref<16x1xf32, #tpu.memory_space<vmem>>, vector<16x1xf32>
    %1015 = vector.broadcast %1014 : vector<16x1xf32> to vector<16x16xf32>
    %1016 = arith.mulf %1013, %1015 : vector<16x16xf32>
    %c0_126 = arith.constant 0 : index
    %c0_127 = arith.constant 0 : index
    %1017 = vector.load %arg16[%c0_126, %c0_127] : memref<16x16xf32, #tpu.memory_space<vmem>>, vector<16x16xf32>
    %1018 = arith.addf %1016, %1017 : vector<16x16xf32>
    %cst_128 = arith.constant dense<0xFF800000> : vector<16xf32>
    %1019 = vector.multi_reduction <maximumf>, %1018, %cst_128 [1] : vector<16x16xf32> to vector<16xf32>
    %1020 = vector.shape_cast %1019 : vector<16xf32> to vector<16x1xf32>
    %1021 = vector.broadcast %1020 : vector<16x1xf32> to vector<16x16xf32>
    %1022 = arith.subf %1018, %1021 : vector<16x16xf32>
    %1023 = math.exp %1022 : vector<16x16xf32>
    %cst_129 = arith.constant dense<0.000000e+00> : vector<16xf32>
    %1024 = vector.multi_reduction <add>, %1023, %cst_129 [1] : vector<16x16xf32> to vector<16xf32>
    %1025 = vector.shape_cast %1024 : vector<16xf32> to vector<16x1xf32>
    %1026 = tpu.reciprocal %1025 {approx = true} : vector<16x1xf32> -> vector<16x1xf32>
    %1027 = vector.broadcast %1026 : vector<16x1xf32> to vector<16x16xf32>
    %1028 = arith.mulf %1023, %1027 : vector<16x16xf32>
    %1029 = arith.truncf %1028 : vector<16x16xf32> to vector<16x16xbf16>
    %1030 = arith.truncf %994 : vector<16x256xf32> to vector<16x256xbf16>
    %cst_130 = arith.constant dense<0.000000e+00> : vector<16x256xf32>
    %1031 = tpu.matmul %1029, %1030, %cst_130 {dimension_numbers = #tpu.dot_dimension_numbers<[1], [0], [0], [1], [0, 0, 1, 1], [], []>} : vector<16x16xbf16>, vector<16x256xbf16>, vector<16x256xf32> -> vector<16x256xf32>
    %c0_131 = arith.constant 0 : index
    %c0_132 = arith.constant 0 : index
    %1032 = vector.load %arg14[%c0_131, %c0_132] : memref<16x16xbf16, #tpu.memory_space<vmem>>, vector<16x16xbf16>
    %1033 = arith.addf %965, %1031 : vector<16x256xf32>
    %1034 = arith.truncf %1033 : vector<16x256xf32> to vector<16x256xbf16>
    %cst_133 = arith.constant dense<0.000000e+00> : vector<16x256xf32>
    %1035 = tpu.matmul %1032, %1034, %cst_133 {dimension_numbers = #tpu.dot_dimension_numbers<[1], [0], [0], [1], [0, 0, 1, 1], [], []>} : vector<16x16xbf16>, vector<16x256xbf16>, vector<16x256xf32> -> vector<16x256xf32>
    %c0_134 = arith.constant 0 : index
    %c0_135 = arith.constant 0 : index
    %c0_136 = arith.constant 0 : index
    %1036 = vector.load %arg17[%c0_134, %c0_135, %c0_136] : memref<1x16x256xf32, #tpu.memory_space<vmem>>, vector<1x16x256xf32>
    %1037 = vector.shape_cast %1036 : vector<1x16x256xf32> to vector<16x256xf32>
    %1038 = vector.shape_cast %1035 : vector<16x256xf32> to vector<1x16x256xf32>
    tpu.vector_store %arg17[%c0_134, %c0_135, %c0_136], %1038 {strides = array<i32>} : memref<1x16x256xf32, #tpu.memory_space<vmem>>, vector<1x16x256xf32>,
    return
  }
  func.func @transform_0(%arg0: i32) -> (i32, i32, i32) {
    %c0_i32 = arith.constant 0 : i32
    %c0_i32_0 = arith.constant 0 : i32
    %c0_i32_1 = arith.constant 0 : i32
    return %arg0, %c0_i32, %c0_i32_0 : i32, i32, i32
  }
  func.func @transform_1(%arg0: i32) -> (i32, i32, i32) {
    %c0_i32 = arith.constant 0 : i32
    %c0_i32_0 = arith.constant 0 : i32
    %c0_i32_1 = arith.constant 0 : i32
    return %arg0, %c0_i32, %c0_i32_0 : i32, i32, i32
  }
  func.func @transform_2(%arg0: i32) -> (i32, i32) {
    %c0_i32 = arith.constant 0 : i32
    %c0_i32_0 = arith.constant 0 : i32
    %c0_i32_1 = arith.constant 0 : i32
    return %c0_i32, %c0_i32_0 : i32, i32
  }
  func.func @transform_3(%arg0: i32) -> (i32, i32) {
    %c0_i32 = arith.constant 0 : i32
    %c0_i32_0 = arith.constant 0 : i32
    %c0_i32_1 = arith.constant 0 : i32
    return %c0_i32, %c0_i32_0 : i32, i32
  }
  func.func @transform_4(%arg0: i32) -> (i32, i32) {
    %c0_i32 = arith.constant 0 : i32
    %c0_i32_0 = arith.constant 0 : i32
    %c0_i32_1 = arith.constant 0 : i32
    return %c0_i32, %c0_i32_0 : i32, i32
  }
  func.func @transform_5(%arg0: i32) -> (i32, i32) {
    %c0_i32 = arith.constant 0 : i32
    %c0_i32_0 = arith.constant 0 : i32
    %c0_i32_1 = arith.constant 0 : i32
    return %c0_i32, %c0_i32_0 : i32, i32
  }
  func.func @transform_6(%arg0: i32) -> (i32, i32) {
    %c0_i32 = arith.constant 0 : i32
    %c0_i32_0 = arith.constant 0 : i32
    %c0_i32_1 = arith.constant 0 : i32
    return %c0_i32, %c0_i32_0 : i32, i32
  }
  func.func @transform_7(%arg0: i32) -> (i32, i32) {
    %c0_i32 = arith.constant 0 : i32
    %c0_i32_0 = arith.constant 0 : i32
    %c0_i32_1 = arith.constant 0 : i32
    return %c0_i32, %c0_i32_0 : i32, i32
  }
  func.func @transform_8(%arg0: i32) -> (i32, i32) {
    %c0_i32 = arith.constant 0 : i32
    %c0_i32_0 = arith.constant 0 : i32
    %c0_i32_1 = arith.constant 0 : i32
    return %c0_i32, %c0_i32_0 : i32, i32
  }
  func.func @transform_9(%arg0: i32) -> (i32, i32) {
    %c0_i32 = arith.constant 0 : i32
    %c0_i32_0 = arith.constant 0 : i32
    %c0_i32_1 = arith.constant 0 : i32
    return %c0_i32, %c0_i32_0 : i32, i32
  }
  func.func @transform_10(%arg0: i32) -> (i32, i32) {
    %c0_i32 = arith.constant 0 : i32
    %c0_i32_0 = arith.constant 0 : i32
    %c0_i32_1 = arith.constant 0 : i32
    return %c0_i32, %c0_i32_0 : i32, i32
  }
  func.func @transform_11(%arg0: i32) -> (i32, i32) {
    %c0_i32 = arith.constant 0 : i32
    %c0_i32_0 = arith.constant 0 : i32
    %c0_i32_1 = arith.constant 0 : i32
    return %c0_i32, %c0_i32_0 : i32, i32
  }
  func.func @transform_12(%arg0: i32) -> (i32, i32) {
    %c0_i32 = arith.constant 0 : i32
    %c0_i32_0 = arith.constant 0 : i32
    %c0_i32_1 = arith.constant 0 : i32
    return %c0_i32, %c0_i32_0 : i32, i32
  }
  func.func @transform_13(%arg0: i32) -> (i32, i32) {
    %c0_i32 = arith.constant 0 : i32
    %c0_i32_0 = arith.constant 0 : i32
    %c0_i32_1 = arith.constant 0 : i32
    return %c0_i32, %c0_i32_0 : i32, i32
  }
  func.func @transform_14(%arg0: i32) -> (i32, i32) {
    %c0_i32 = arith.constant 0 : i32
    %c0_i32_0 = arith.constant 0 : i32
    %c0_i32_1 = arith.constant 0 : i32
    return %c0_i32, %c0_i32_0 : i32, i32
  }
  func.func @transform_15(%arg0: i32) -> (i32, i32) {
    %c0_i32 = arith.constant 0 : i32
    %c0_i32_0 = arith.constant 0 : i32
    %c0_i32_1 = arith.constant 0 : i32
    return %c0_i32, %c0_i32_0 : i32, i32
  }
  func.func @transform_16(%arg0: i32) -> (i32, i32, i32) {
    %c0_i32 = arith.constant 0 : i32
    %c0_i32_0 = arith.constant 0 : i32
    %c0_i32_1 = arith.constant 0 : i32
    return %arg0, %c0_i32, %c0_i32_0 : i32, i32, i32
  }
}

</mosaic_0001>

<bundles_post_ra>
// kernel: tpu_custom_call.1
= control target key start
LH: loop header
LB: loop body
LE: loop exit
PB: predicated region body
PF: predicated region fallthrough
CT: control target
= control target key end

     0   :  { %s8080_s0 = inlined_call_operand.hbm [shape: f32[2,16,256], index: 0, kind: input, shape index: {}]   ;;  %s8081_s1 = inlined_call_operand.hbm [shape: f32[2,16,256], index: 1, kind: input, shape index: {}]   ;;  %s8082_s2 = inlined_call_operand.vmem [shape: f32[16,49], index: 2, kind: input, shape index: {}]   ;;  %s8083_s3 = inlined_call_operand.vmem [shape: f32[16,49], index: 3, kind: input, shape index: {}]   ;;  %s8084_s4 = inlined_call_operand.hbm [shape: f32[49,256], index: 4, kind: input, shape index: {}]   ;;  %s8085_s5 = inlined_call_operand.hbm [shape: f32[1,256], index: 5, kind: input, shape index: {}]   ;;  %s8086_s6 = inlined_call_operand.vmem [shape: bf16[32,16], index: 6, kind: input, shape index: {}]   ;;  %s8087_s7 = inlined_call_operand.vmem [shape: bf16[16,16], index: 7, kind: input, shape index: {}]   ;;  %s8088_s8 = inlined_call_operand.vmem [shape: bf16[16,16], index: 8, kind: input, shape index: {}]   ;;  %s8089_s9 = inlined_call_operand.vmem [shape: bf16[16,16], index: 9, kind: input, shape index: {}]   ;;  %s8090_s10 = inlined_call_operand.vmem [shape: bf16[16,16], index: 10, kind: input, shape index: {}]   ;;  %s8091_s11 = inlined_call_operand.vmem [shape: bf16[4,16], index: 11, kind: input, shape index: {}]   ;;  %s8092_s12 = inlined_call_operand.vmem [shape: bf16[16,4], index: 12, kind: input, shape index: {}]   ;;  %s8093_s13 = inlined_call_operand.vmem [shape: bf16[16,16], index: 13, kind: input, shape index: {}]   ;;  %s8094_s14 = inlined_call_operand.vmem [shape: f32[16,1], index: 14, kind: input, shape index: {}]   ;;  %s8095_s15 = inlined_call_operand.vmem [shape: f32[16,16], index: 15, kind: input, shape index: {}]   ;;  %s8096_s16 = inlined_call_operand.hbm [shape: f32[2,16,256], index: 16, kind: output, shape index: {}]  }
   0x1   :  { %8502 = sst [smem:[#allocation235_spill]] %s8080_s0 }
   0x2   :  { %8503 = sst [smem:[#allocation236_spill]] %s8084_s4 }
   0x3   :  { %8504 = sst [smem:[#allocation237_spill]] %s8085_s5 }
   0x4   :  { %8505 = sst [smem:[#allocation238_spill]] %s8090_s10 }
   0x5   :  { %8506 = sst [smem:[#allocation239_spill]] %s8093_s13 }
   0x6   :  { %8507 = sst [smem:[#allocation240_spill]] %s8094_s14 }
   0x7   :  { %8508 = sst [smem:[#allocation241_spill]] %s8095_s15 }
   0x8   :  { %8509 = sst [smem:[#allocation242_spill]] %s8096_s16 }
   0x9   :  { %21 = vsyncpa [#allocation5], 0 }
   0xa   :  { %23 = vsyncpa [#allocation5 + $0x1], 0 }
   0xb   :  { %24 = vsyncpa [#allocation8], 0 }
   0xc   :  { %26 = vsyncpa [#allocation8 + $0x1], 0 }
   0xd   :  { %27 = vsyncpa [#allocation11], 0 }
   0xe   :  { %28 = vsyncpa [#allocation6], 0 }
   0xf   :  { %30 = vsyncpa [#allocation6 + $0x1], 0  ;;  %s4516_s21 = smov 0   ;;  %s4518_s22 = smov 0  }
  0x10   :  { %s4520_s23 = smov 0   ;;  %s4522_s24 = smov 0  }
  0x11 LB: > { %8510 = sst [smem:[#allocation18_spill]] %s4310_s21  ;;  %s4537_s25 = sadd.s32 4294967295, %s4322_s24   ;;  %s4322_s24 = sphi %s4522_s24, %s9252_s24   ;;  %s4318_s23 = sphi %s4520_s23, %s9254_s23   ;;  %s4314_s22 = sphi %s4518_s22, %s9256_s22   ;;  %s4310_s21 = sphi %s4516_s21, %s9255_s21  }
  0x12   : > { %8511 = sst [smem:[#allocation19_spill]] %s4318_s23  ;;  %s3761_s26 = sadd.s32 4294967294, %s4322_s24  }
  0x13   : > { %p56_p0 = scmp.ne.s32.totalorder %s4314_s22, %s4310_s21  ;;  %p8101_p1 = scmp.eq.s32.totalorder %s4537_s25, 0 }
  0x14   : > { %p406_p3 = scmp.eq.s32.totalorder %s3761_s26, 1  ;;  %p3762_p5 = scmp.ge.s32.totalorder %s4322_s24, 1 }
  0x15   : > { %p4546_p4 = por %p8101_p1, %p56_p0  ;;  %p413_p7 = scmp.lt.s32.totalorder %s4322_s24, 3 }
  0x16   : > { %p4551_p6 = por %p406_p3, %p56_p0  ;;  %s4324_s30 = smov [#allocation9]  }
  0x17   : > { %s8512_s27 = scalar_select %p4546_p4, 1, 0 }
  0x18   : > { %s8513_s28 = scalar_select %p4551_p6, 1, 0 }
  0x19   : > { %p4556_p8 = pnand %p3762_p5, %p413_p7  ;;  %s431_s0 = sshll.u32 %s4324_s30, 4  ;;  %s4560_s0 = int_to_ptr.vmem [resolvable:$true] %s431_s0 }
  0x1a   : > { %8514 = sst [smem:[#allocation20_spill]] %s8513_s28  ;;  %s4325_s18 = smov [#allocation10]  }
  0x1b   : > { %p3836_p9 = pneg %p4556_p8  ;;  %s445_s19 = sshll.u32 %s4325_s18, 4  ;;  %s4571_s19 = int_to_ptr.vmem [resolvable:$true] %s445_s19 }
  0x1c   : > { %s8517_s4 = sld [smem:[#allocation236_spill]] }
  0x1d   : > { %p4567_p11 = pnand %p3836_p9, %p8101_p1 }
  0x1f   : > { %p4130_p13 = pneg %p4567_p11 }
  0x22   : > { %s4128_s30 = scalar_lea.hbm %s8517_s4, 1792 }
  0x23   : > { %p4129_p12 = scmp.ne.s32.totalorder %s8517_s4, %s4128_s30  ;;  %p4135_p5 = scmp.lt.u32.totalorder %s4128_s30, %s8517_s4 }
  0x25   : > { %p4131_p0 = pnand %p4130_p13, %p4129_p12 }
  0x27   : > { %p4132_p3 = pneg %p4131_p0 }
  0x29   : > { %p4137_p7 = pnand %p4135_p5, %p4132_p3 }
  0x2b   : > { %4140 = shalt.err (!%p4137_p7)
}
  0x2c   : > { %s4141_s18 = scalar_lea.vmem %s4560_s0, 1792  ;;  %p4149_p2 = scmp.lt.s32.totalorder %s4560_s0, %s4560_s0 }
  0x2d   : > { %p4142_p9 = scmp.ne.s32.totalorder %s4560_s0, %s4141_s18  ;;  %p4150_p12 = scmp.lt.s32.totalorder %s4141_s18, %s4141_s18 }
  0x2f   : > { %p4144_p10 = pnand %p4142_p9, %p4130_p13  ;;  %p4151_p0 = por %p4150_p12, %p4149_p2 }
  0x31   : > { %p4145_p1 = pneg %p4144_p10 }
  0x33   : > { %p4152_p6 = pnand %p4151_p0, %p4145_p1 }
  0x35   : > { %4155 = shalt.err (!%p4152_p6)
}
  0x36   : > { %s8104_s13 = smov 256   ;;  %s8106_s16 = smov 16  }
  0x37   : > { %3839 = dma.hbm_to_vmem [thread:$0]  (!%p4567_p11), %s8517_s4, 1792, %s4560_s0, [#allocation8], %s8104_s13, %s8104_s13, %s8106_s16  }
  0x38   : > { %s8518_s5 = sld [smem:[#allocation237_spill]] }
  0x3e   : > { %s4156_s30 = scalar_lea.hbm %s8518_s5, 32 }
  0x3f   : > { %p4157_p1 = scmp.ne.s32.totalorder %s8518_s5, %s4156_s30  ;;  %p4163_p10 = scmp.lt.u32.totalorder %s4156_s30, %s8518_s5 }
  0x41   : > { %p4159_p2 = pnand %p4157_p1, %p4130_p13 }
  0x43   : > { %p4160_p6 = pneg %p4159_p2 }
  0x45   : > { %p4165_p3 = pnand %p4163_p10, %p4160_p6 }
  0x47   : > { %4168 = shalt.err (!%p4165_p3)
}
  0x48   : > { %s4169_s0 = scalar_lea.vmem %s4571_s19, 32  ;;  %p4177_p12 = scmp.lt.s32.totalorder %s4571_s19, %s4571_s19 }
  0x49   : > { %p4170_p5 = scmp.ne.s32.totalorder %s4571_s19, %s4169_s0  ;;  %p4178_p0 = scmp.lt.s32.totalorder %s4169_s0, %s4169_s0 }
  0x4b   : > { %p4172_p7 = pnand %p4170_p5, %p4130_p13  ;;  %p4179_p1 = por %p4178_p0, %p4177_p12 }
  0x4d   : > { %p4173_p9 = pneg %p4172_p7 }
  0x4f   : > { %p4180_p2 = pnand %p4179_p1, %p4173_p9 }
  0x51   : > { %4183 = shalt.err (!%p4180_p2)
}
  0x52   : > { %3842 = dma.hbm_to_vmem [thread:$0]  (!%p4567_p11), %s8518_s5, 32, %s4571_s19, [#allocation11]  }
  0x53   : > { %s4629_s15 = sadd.s32 1, %s4322_s24   ;;  %s43_s17 = sadd.s32 1, %s4318_s23 }
  0x54   : > { %8519 = sst [smem:[#allocation21_spill]] %s4629_s15  ;;  %s40_s21 = ssub.s32 %s4322_s24, %s4629_s15 }
  0x55   : > { %p50_p13 = scmp.ne.s32.totalorder %s4318_s23, %s4314_s22  ;;  %p41_p6 = scmp.eq.s32.totalorder %s40_s21, 0 }
  0x56   : > { %p51_p10 = scmp.eq.s32.totalorder %s4322_s24, 0  ;;  %p8520_p3 = scmp.eq.s32.totalorder %s4537_s25, 1 }
  0x57   : > { %p3856_p7 = scmp.lt.s32.totalorder %s4322_s24, 2  ;;  %s486_s26 = sand.u32 1, %s4318_s23  }
  0x58   : > { %p4639_p5 = por %p8520_p3, %p50_p13  ;;  %p52_p9 = por %p51_p10, %p50_p13 }
  0x59   : > { %s4645_s20 = scalar_select %p41_p6, %s4318_s23, %s43_s17  }
  0x5a   : > { %s8521_s28 = scalar_select %p4639_p5, 1, 0 }
  0x5b   : > { %8522 = sst [smem:[#allocation22_spill]] %s4645_s20  ;;  %s3766_s30 = sshll.u32 %s486_s26, 5 }
  0x5c   : > { %s3803_s19 = sshll.u32 %s4322_s24, 9  ;;  %s8523_s10 = sld [smem:[#allocation235_spill]] }
  0x5d   : > { %s490_s21 = scalar_lea.vmem [#allocation4], %s3766_s30  ;;  %p4656_p11 = pnand %p3856_p7, %p52_p9 }
  0x5e   : > { %s497_s13 = sshll.u32 %s490_s21, 4  ;;  %s4663_s18 = scalar_lea.hbm %s8081_s1, %s3803_s19  ;;  %s4654_s13 = int_to_ptr.vmem [resolvable:$true] %s497_s13 }
  0x5f   : > { %s511_s0 = scalar_lea.vmem [#allocation7], %s3766_s30  ;;  %s4667_s20 = scalar_lea.sflag [#allocation5], %s486_s26 }
  0x60   : > { %s4665_s5 = sshll.u32 %s511_s0, 4  ;;  %p4186_p0 = pneg %p4656_p11  ;;  %s4699_s5 = int_to_ptr.vmem [resolvable:$true] %s4665_s5 }
  0x62   : > { %s4652_s14 = scalar_lea.hbm %s8523_s10, %s3803_s19  ;;  %s4189_s4 = scalar_lea.hbm %s8523_s10, 1024 }
  0x63   : > { %s4184_s21 = scalar_lea.hbm %s4652_s14, 512  ;;  %p4190_p13 = scmp.lt.u32.totalorder %s4652_s14, %s8523_s10 }
  0x64   : > { %p4185_p12 = scmp.ne.s32.totalorder %s4652_s14, %s4184_s21  ;;  %p4191_p6 = scmp.lt.u32.totalorder %s4189_s4, %s4184_s21 }
  0x65   : > { %p4193_p3 = scmp.lt.u32.totalorder %s4184_s21, %s4652_s14 }
  0x66   : > { %p4187_p1 = pnand %p4186_p0, %p4185_p12  ;;  %p4192_p10 = por %p4191_p6, %p4190_p13 }
  0x68   : > { %p4188_p2 = pneg %p4187_p1  ;;  %p4194_p7 = por %p4193_p3, %p4192_p10 }
  0x6a   : > { %p4195_p9 = pnand %p4194_p7, %p4188_p2 }
  0x6c   : > { %4198 = shalt.err (!%p4195_p9)
}
  0x6d   : > { %s4199_s26 = scalar_lea.vmem %s4654_s13, 512  ;;  %s4328_s23 = smov [#allocation4]  }
  0x6e   : > { %p4200_p12 = scmp.ne.s32.totalorder %s4654_s13, %s4199_s26  ;;  %s4204_s15 = sshll.u32 %s4328_s23, 4  ;;  %s4205_s15 = int_to_ptr.vmem [resolvable:$false] %s4204_s15 }
  0x6f   : > { %s4206_s30 = scalar_lea.vmem %s4205_s15, 1024  ;;  %p4207_p4 = scmp.lt.s32.totalorder %s4654_s13, %s4205_s15 }
  0x70   : > { %p4202_p1 = pnand %p4200_p12, %p4186_p0  ;;  %p4208_p13 = scmp.lt.s32.totalorder %s4206_s30, %s4199_s26 }
  0x72   : > { %p4203_p5 = pneg %p4202_p1  ;;  %p4209_p6 = por %p4208_p13, %p4207_p4 }
  0x74   : > { %p4210_p10 = pnand %p4209_p6, %p4203_p5 }
  0x76   : > { %4213 = shalt.err (!%p4210_p10)
}
  0x77   : > { %s8525_s0 = smov 16   ;;  %s8526_s21 = smov 256  }
  0x78   : > { %3846 = dma.hbm_to_vmem [thread:$0]  (!%p4656_p11), %s4652_s14, 512, %s4654_s13, %s4667_s20, %s8526_s21, %s8526_s21, %s8525_s0  }
  0x79   : > { %s507_s4 = sand.u32 1, %s4322_s24   ;;  %s4214_s19 = scalar_lea.hbm %s4663_s18, 512 }
  0x7a   : > { %s4702_s16 = scalar_lea.sflag [#allocation8], %s507_s4  ;;  %p4215_p4 = scmp.ne.s32.totalorder %s4663_s18, %s4214_s19 }
  0x7b   : > { %s4219_s15 = scalar_lea.hbm %s8081_s1, 1024  ;;  %p4220_p3 = scmp.lt.u32.totalorder %s4663_s18, %s8081_s1 }
  0x7c   : > { %p4217_p5 = pnand %p4215_p4, %p4186_p0  ;;  %p4221_p7 = scmp.lt.u32.totalorder %s4219_s15, %s4214_s19 }
  0x7d   : > { %p4223_p12 = scmp.lt.u32.totalorder %s4214_s19, %s4663_s18 }
  0x7e   : > { %p4218_p2 = pneg %p4217_p5  ;;  %p4222_p9 = por %p4221_p7, %p4220_p3 }
  0x80   : > { %p4224_p1 = por %p4223_p12, %p4222_p9 }
  0x82   : > { %p4225_p13 = pnand %p4224_p1, %p4218_p2 }
  0x84   : > { %4228 = shalt.err (!%p4225_p13)
}
  0x85   : > { %s4229_s13 = scalar_lea.vmem %s4699_s5, 512  ;;  %s4329_s20 = smov [#allocation7]  }
  0x86   : > { %p4230_p6 = scmp.ne.s32.totalorder %s4699_s5, %s4229_s13  ;;  %s4234_s14 = sshll.u32 %s4329_s20, 4  ;;  %s4235_s14 = int_to_ptr.vmem [resolvable:$false] %s4234_s14 }
  0x87   : > { %s4236_s10 = scalar_lea.vmem %s4235_s14, 1024  ;;  %p4237_p5 = scmp.lt.s32.totalorder %s4699_s5, %s4235_s14 }
  0x88   : > { %p4232_p10 = pnand %p4230_p6, %p4186_p0  ;;  %p4238_p3 = scmp.lt.s32.totalorder %s4236_s10, %s4229_s13 }
  0x8a   : > { %p4233_p4 = pneg %p4232_p10  ;;  %p4239_p7 = por %p4238_p3, %p4237_p5 }
  0x8c   : > { %p4240_p9 = pnand %p4239_p7, %p4233_p4 }
  0x8e   : > { %4243 = shalt.err (!%p4240_p9)
}
  0x8f   : > { %3849 = dma.hbm_to_vmem [thread:$0]  (!%p4656_p11), %s4663_s18, 512, %s4699_s5, %s4702_s16, %s8526_s21, %s8526_s21, %s8525_s0  }
  0x90   : > { %530 = sbr.rel (%p4556_p8) target bundleno = 3091 (0xc13), region = 84 }
  0x97   : > { %s4734_s4 = sand.u32 1, %s4314_s22   ;;  %p8527_p0 = scmp.ne.s32.totalorder %s8512_s27, 0 }
  0x98   : > { %s4737_s19 = sshll.u32 %s4734_s4, 5  ;;  %s533_s17 = scalar_lea.sflag [#allocation5], %s4734_s4 }
  0x99   : > { %s4741_s26 = scalar_lea.vmem [#allocation4], %s4737_s19 }
  0x9a   : > { %4289 = dma.done.wait (%p8527_p0), %s533_s17, 512  }
  0x9b   : > { %4291 = vsyncadd (%p8527_p0), %s533_s17, 4294966784  ;;  %s541_s5 = sand.u32 1, %s4537_s25   ;;  %s4749_s18 = scalar_lea.vmem [#allocation7], %s4737_s19 }
  0x9c   : > { %s542_s29 = scalar_lea.sflag [#allocation8], %s541_s5 }
  0x9d   : > { %4293 = dma.done.wait (%p8527_p0), %s542_s29, 512  }
  0x9e   : > { %4295 = vsyncadd (%p8527_p0), %s542_s29, 4294966784  ;;  %p8528_p8 = scmp.eq.s32.totalorder %s4537_s25, 0 }
  0xa0   : > { %4297 = dma.done.wait (%p8528_p8), [#allocation8], 1792   ;;  %p8529_p11 = pmov %p8528_p8 }
  0xa1   : > { %p8530_p2 = pmov %p8528_p8 }
  0xa2   : > { %4299 = vsyncadd (%p8529_p11), [#allocation8], 4294965504 }
  0xa3   : > { %4301 = dma.done.wait (%p8530_p2), [#allocation11], 32   ;;  %p8531_p12 = pmov %p8530_p2 }
  0xa4   : > { %v8114_v0 = vmov 0   ;;  %v4770_v1 = vld [vmem:[%s8083_s3 + $0x8] sm:$0xff]  ;;  %v4331_v3 = vmov 1   ;;  %v4332_v4 = vmov 2   ;;  %v4784_v5 = vld [vmem:[%s4741_s26 + $0x10] sm:$0xff]  ;;  %s4333_s23 = smov 50  }
  0xa5   : > { %4303 = vsyncadd (%p8531_p12), [#allocation11], 4294967264  ;;  %3998 = vset.pattern.permute.xlu1 %v8114_v0  ;;  %3996 = vset.pattern.permute.xlu0 %v8114_v0  ;;  %v4775_v2 = vld [vmem:[%s8082_s2 + $0x8] sm:$0xff]  ;;  %s4334_s15 = smov 51   ;;  %v4335_v6 = vmov 3   ;;  %v4789_v7 = vld [vmem:[%s4741_s26 + $0x18] sm:$0xff] }
  0xa6   : > { %2972 = vmatprep.mubr.bf16.mxu0 %v8114_v0  ;;  %3041 = vmatprep.mubr.bf16.mxu1 %v8114_v0  ;;  %v4336_v8 = vmov 4   ;;  %v4794_v9 = vld [vmem:[%s4749_s18 + $0x10] sm:$0xff]  ;;  %v4801_v10 = vld [vmem:[%s4749_s18 + $0x18] sm:$0xff]  ;;  %s4337_s30 = smov 49   ;;  %v4338_v11 = vmov 5   ;;  %v4339_v12 = vmov 6  }
  0xa7   : > { %2144 = vperm.xlu1 %3998, %v4770_v1   ;;  %873 = vperm.xlu0 %3996, %v4775_v2   ;;  %s4340_s13 = smov 48   ;;  %s4341_s20 = smov 47   ;;  %v4342_v13 = vmov 7   ;;  %v4344_v14 = vmov 8   ;;  %v4346_v15 = vmov 9   ;;  %v4348_v16 = vmov 10  }
  0xa8   : > { %s4343_s14 = smov 45   ;;  %s4345_s10 = smov 46   ;;  %v4349_v17 = vmov 11   ;;  %v4352_v18 = vmov 12   ;;  %v4353_v19 = vmov 13   ;;  %v4356_v24 = vmov 14  }
  0xa9   : > { %s4347_s17 = smov 34   ;;  %s4350_s5 = smov 35   ;;  %v4357_v31 = vmov 15   ;;  %v8119_v37 = vmov 16   ;;  %v8117_v43 = vmov 17   ;;  %v8116_v49 = vmov 18  }
  0xaa   : > { %s4351_s29 = smov 32   ;;  %s4354_s27 = smov 33   ;;  %v4364_v55 = vmov 19   ;;  %v4367_v61 = vmov 20  }
  0xab   : > { %3999 = vset.pattern.permute.xlu1 %v4331_v3  ;;  %3997 = vset.pattern.permute.xlu0 %v4331_v3  ;;  %s4355_s0 = smov 30   ;;  %s4358_s21 = smov 19  }
  0xac   : > { %2158 = vperm.xlu1 %3999, %v4770_v1   ;;  %896 = vperm.xlu0 %3997, %v4775_v2   ;;  %s4360_s16 = smov 31   ;;  %p9247_p13 = scmp.ne.s32.totalorder %s8521_s28, 0 }
  0xb0   : > { %4000 = vset.pattern.permute.xlu1 %v4332_v4  ;;  %4001 = vset.pattern.permute.xlu0 %v4332_v4 }
  0xb1   : > { %921 = vperm.xlu1 %4000, %v4775_v2   ;;  %2174 = vperm.xlu0 %4001, %v4770_v1  }
  0xb5   : > { %878 = vrot.lane.b32.xlu0 %v4784_v5, %s4333_s23  ;;  %854 = vrot.lane.b32.xlu1 %v4784_v5, %s4334_s15 }
  0xb6   : > { %4002 = vset.pattern.permute.xlu0 %v4335_v6  ;;  %4003 = vset.pattern.permute.xlu1 %v4336_v8 }
  0xb9   : > { %946 = vperm.xlu0 %4002, %v4775_v2   ;;  %856 = vrot.lane.b32.xlu1 %v4789_v7, %s4334_s15 }
  0xbd   : > { %2149 = vrot.lane.b32.xlu0 %v4794_v9, %s4333_s23  ;;  %880 = vrot.lane.b32.xlu1 %v4789_v7, %s4333_s23 }
  0xc1   : > { %2190 = vperm.xlu0 %4002, %v4770_v1   ;;  %2134 = vrot.lane.b32.xlu1 %v4794_v9, %s4334_s15 }
  0xc5   : > { %905 = vrot.lane.b32.xlu0 %v4789_v7, %s4337_s30  ;;  %2136 = vrot.lane.b32.xlu1 %v4801_v10, %s4334_s15  ;;  %s4365_s15 = smov 29  }
  0xc6   : > { %4004 = vset.pattern.permute.xlu0 %v4336_v8 }
  0xc9   : > { %2165 = vrot.lane.b32.xlu0 %v4794_v9, %s4337_s30  ;;  %2151 = vrot.lane.b32.xlu1 %v4801_v10, %s4333_s23  ;;  %s4362_s23 = smov 17  }
  0xcd   : > { %2206 = vperm.xlu0 %4004, %v4770_v1   ;;  %903 = vrot.lane.b32.xlu1 %v4784_v5, %s4337_s30 }
  0xd1   : > { %4005 = vset.pattern.permute.xlu0 %v4338_v11  ;;  %971 = vperm.xlu1 %4003, %v4775_v2   ;;  %v4368_v11 = vmov 21  }
  0xd2   : > { %996 = vperm.xlu0 %4005, %v4775_v2  }
  0xd5   : > { %2167 = vrot.lane.b32.xlu1 %v4801_v10, %s4337_s30  ;;  %s8234_s30 = smov 15  }
  0xd6   : > { %2222 = vperm.xlu0 %4005, %v4770_v1   ;;  %4006 = vset.pattern.permute.xlu1 %v4339_v12 }
  0xd9   : > { %928 = vrot.lane.b32.xlu1 %v4784_v5, %s4340_s13 }
  0xda   : > { %955 = vrot.lane.b32.xlu0 %v4789_v7, %s4341_s20 }
  0xdb   : > { %4007 = vset.pattern.permute.xlu0 %v4339_v12 }
  0xdd   : > { %930 = vrot.lane.b32.xlu1 %v4789_v7, %s4340_s13 }
  0xde   : > { %2197 = vrot.lane.b32.xlu0 %v4794_v9, %s4341_s20 }
  0xe1   : > { %2181 = vrot.lane.b32.xlu1 %v4794_v9, %s4340_s13 }
  0xe2   : > { %2238 = vperm.xlu0 %4007, %v4770_v1  }
  0xe5   : > { %2183 = vrot.lane.b32.xlu1 %v4801_v10, %s4340_s13  ;;  %s4369_s13 = smov 18  }
  0xe6   : > { %4008 = vset.pattern.permute.xlu0 %v4342_v13 }
  0xe7   : > { %1046 = vperm.xlu0 %4008, %v4775_v2  }
  0xe9   : > { %953 = vrot.lane.b32.xlu1 %v4784_v5, %s4341_s20 }
  0xeb   : > { %2254 = vperm.xlu0 %4008, %v4770_v1  }
  0xed   : > { %1021 = vperm.xlu1 %4006, %v4775_v2  }
  0xef   : > { %1005 = vrot.lane.b32.xlu0 %v4789_v7, %s4343_s14 }
  0xf0   : > { %4010 = vset.pattern.permute.xlu0 %v4344_v14 }
  0xf1   : > { %2199 = vrot.lane.b32.xlu1 %v4801_v10, %s4341_s20  ;;  %s4370_s20 = smov 13  }
  0xf2   : > { %4009 = vset.pattern.permute.xlu1 %v4344_v14 }
  0xf3   : > { %2229 = vrot.lane.b32.xlu0 %v4794_v9, %s4343_s14 }
  0xf5   : > { %978 = vrot.lane.b32.xlu1 %v4784_v5, %s4345_s10 }
  0xf7   : > { %2270 = vperm.xlu0 %4010, %v4770_v1  }
  0xf9   : > { %980 = vrot.lane.b32.xlu1 %v4789_v7, %s4345_s10 }
  0xfb   : > { %4011 = vset.pattern.permute.xlu0 %v4346_v15 }
  0xfc   : > { %1096 = vperm.xlu0 %4011, %v4775_v2  }
  0xfd   : > { %2213 = vrot.lane.b32.xlu1 %v4794_v9, %s4345_s10 }
 0x100   : > { %2286 = vperm.xlu0 %4011, %v4770_v1  }
 0x101   : > { %2215 = vrot.lane.b32.xlu1 %v4801_v10, %s4345_s10  ;;  %s4375_s10 = smov 16  }
 0x104   : > { %1055 = vrot.lane.b32.xlu0 %v4789_v7, %s4347_s17 }
 0x105   : > { %1003 = vrot.lane.b32.xlu1 %v4784_v5, %s4343_s14  ;;  %4013 = vset.pattern.permute.xlu0 %v4348_v16 }
 0x108   : > { %2261 = vrot.lane.b32.xlu0 %v4794_v9, %s4347_s17 }
 0x109   : > { %1071 = vperm.xlu1 %4009, %v4775_v2  }
 0x10c   : > { %2302 = vperm.xlu0 %4013, %v4770_v1  }
 0x10d   : > { %2231 = vrot.lane.b32.xlu1 %v4801_v10, %s4343_s14  ;;  %s4372_s14 = smov 2  }
 0x10e   : > { %4012 = vset.pattern.permute.xlu1 %v4348_v16  ;;  %v8121_v16 = vmov 22  }
 0x110   : > { %4014 = vset.pattern.permute.xlu0 %v4349_v17 }
 0x111   : > { %1146 = vperm.xlu0 %4014, %v4775_v2   ;;  %1028 = vrot.lane.b32.xlu1 %v4784_v5, %s4350_s5 }
 0x115   : > { %2318 = vperm.xlu0 %4014, %v4770_v1   ;;  %1030 = vrot.lane.b32.xlu1 %v4789_v7, %s4350_s5 }
 0x119   : > { %1105 = vrot.lane.b32.xlu0 %v4789_v7, %s4351_s29  ;;  %2245 = vrot.lane.b32.xlu1 %v4794_v9, %s4350_s5 }
 0x11a   : > { %4016 = vset.pattern.permute.xlu0 %v4352_v18 }
 0x11d   : > { %2293 = vrot.lane.b32.xlu0 %v4794_v9, %s4351_s29  ;;  %2247 = vrot.lane.b32.xlu1 %v4801_v10, %s4350_s5  ;;  %s4379_s5 = smov 115  }
 0x121   : > { %2334 = vperm.xlu0 %4016, %v4770_v1   ;;  %1053 = vrot.lane.b32.xlu1 %v4784_v5, %s4347_s17 }
 0x125   : > { %4017 = vset.pattern.permute.xlu0 %v4353_v19  ;;  %1121 = vperm.xlu1 %4012, %v4775_v2  }
 0x126   : > { %v4856_v20 = vpop.permute.xlu1 %2144  ;;  %1196 = vperm.xlu0 %4017, %v4775_v2   ;;  %v4859_v21 = vpop.permute.xlu0 %873 }
 0x127   : > { %8532 = vst [vmem:[#allocation23_spill] sm:$0xff] %v4859_v21 }
 0x129   : > { %2263 = vrot.lane.b32.xlu1 %v4801_v10, %s4347_s17  ;;  %s4376_s17 = smov 126  }
 0x12a   : > { %2350 = vperm.xlu0 %4017, %v4770_v1   ;;  %4015 = vset.pattern.permute.xlu1 %v4352_v18 }
 0x12b   : > { %v4864_v22 = vpop.permute.xlu1 %2158  ;;  %v4866_v23 = vpop.permute.xlu0 %896 }
 0x12c   : > { %8533 = vst [vmem:[#allocation24_spill] sm:$0xff] %v4866_v23 }
 0x12d   : > { %1078 = vrot.lane.b32.xlu1 %v4784_v5, %s4354_s27 }
 0x12e   : > { %1155 = vrot.lane.b32.xlu0 %v4789_v7, %s4355_s0 }
 0x12f   : > { %4019 = vset.pattern.permute.xlu0 %v4356_v24 }
 0x130   : > { %v4871_v25 = vpop.permute.xlu1 %921  ;;  %v4873_v26 = vpop.permute.xlu0 %2174 }
 0x131   : > { %8534 = vst [vmem:[#allocation25_spill] sm:$0xff] %v4871_v25  ;;  %1080 = vrot.lane.b32.xlu1 %v4789_v7, %s4354_s27  ;;  %v8157_v25 = vmov 24  }
 0x132   : > { %2325 = vrot.lane.b32.xlu0 %v4794_v9, %s4355_s0 }
 0x134   : > { %v4878_v27 = vpop.permute.xlu1 %854  ;;  %v4880_v28 = vpop.permute.xlu0 %878 }
 0x135   : > { %8535 = vst [vmem:[#allocation26_spill] sm:$0xff] %v4878_v27  ;;  %8536 = vst [vmem:[#allocation27_spill] sm:$0xff] %v4880_v28  ;;  %2277 = vrot.lane.b32.xlu1 %v4794_v9, %s4354_s27 }
 0x136   : > { %2366 = vperm.xlu0 %4019, %v4770_v1  }
 0x138   : > { %v4884_v29 = vpop.permute.xlu1 %856  ;;  %v4886_v30 = vpop.permute.xlu0 %946 }
 0x139   : > { %8537 = vst [vmem:[#allocation28_spill] sm:$0xff] %v4884_v29  ;;  %8538 = vst [vmem:[#allocation29_spill] sm:$0xff] %v4886_v30  ;;  %2279 = vrot.lane.b32.xlu1 %v4801_v10, %s4354_s27  ;;  %s4382_s27 = smov 113   ;;  %v8179_v29 = vmov 38  }
 0x13a   : > { %4020 = vset.pattern.permute.xlu0 %v4357_v31 }
 0x13b   : > { %1246 = vperm.xlu0 %4020, %v4775_v2  }
 0x13c   : > { %v4890_v32 = vpop.permute.xlu1 %880  ;;  %v4892_v33 = vpop.permute.xlu0 %2149 }
 0x13d   : > { %8539 = vst [vmem:[#allocation30_spill] sm:$0xff] %v4890_v32  ;;  %1103 = vrot.lane.b32.xlu1 %v4784_v5, %s4351_s29 }
 0x13f   : > { %2382 = vperm.xlu0 %4020, %v4770_v1  }
 0x140   : > { %v4897_v34 = vpop.permute.xlu1 %2134  ;;  %v4899_v35 = vpop.permute.xlu0 %2190 }
 0x141   : > { %1171 = vperm.xlu1 %4015, %v4775_v2  }
 0x143   : > { %1205 = vrot.lane.b32.xlu0 %v4789_v7, %s4358_s21 }
 0x144   : > { %v4904_v36 = vpop.permute.xlu1 %2136  ;;  %4022 = vset.pattern.permute.xlu0 %v8119_v37  ;;  %v4907_v38 = vpop.permute.xlu0 %905 }
 0x145   : > { %8540 = vst [vmem:[#allocation31_spill] sm:$0xff] %v4907_v38  ;;  %2295 = vrot.lane.b32.xlu1 %v4801_v10, %s4351_s29  ;;  %s4380_s29 = smov 14   ;;  %v4390_v38 = vmov 37  }
 0x146   : > { %4018 = vset.pattern.permute.xlu1 %v4356_v24 }
 0x147   : > { %2357 = vrot.lane.b32.xlu0 %v4794_v9, %s4358_s21 }
 0x148   : > { %v4913_v39 = vpop.permute.xlu1 %2151  ;;  %v4915_v40 = vpop.permute.xlu0 %2165 }
 0x149   : > { %1128 = vrot.lane.b32.xlu1 %v4784_v5, %s4360_s16 }
 0x14b   : > { %2398 = vperm.xlu0 %4022, %v4770_v1  }
 0x14c   : > { %v4919_v41 = vpop.permute.xlu1 %903  ;;  %v4921_v42 = vpop.permute.xlu0 %2206 }
 0x14d   : > { %8541 = vst [vmem:[#allocation32_spill] sm:$0xff] %v4919_v41  ;;  %1130 = vrot.lane.b32.xlu1 %v4789_v7, %s4360_s16  ;;  %v8604_v41 = vmov 26  }
 0x14f   : > { %4023 = vset.pattern.permute.xlu0 %v8117_v43 }
 0x150   : > { %1278 = vperm.xlu0 %4023, %v4775_v2   ;;  %v4926_v44 = vpop.permute.xlu1 %971 }
 0x151   : > { %8542 = vst [vmem:[#allocation33_spill] sm:$0xff] %v4926_v44  ;;  %2309 = vrot.lane.b32.xlu1 %v4794_v9, %s4360_s16  ;;  %v4929_v45 = vpop.permute.xlu0 %996 }
 0x152   : > { %8543 = vst [vmem:[#allocation34_spill] sm:$0xff] %v4929_v45 }
 0x154   : > { %2414 = vperm.xlu0 %4023, %v4770_v1   ;;  %v4932_v46 = vpop.permute.xlu1 %2167 }
 0x155   : > { %2311 = vrot.lane.b32.xlu1 %v4801_v10, %s4360_s16  ;;  %v4935_v47 = vpop.permute.xlu0 %2222  ;;  %s4388_s16 = smov 109  }
 0x158   : > { %1255 = vrot.lane.b32.xlu0 %v4789_v7, %s4362_s23  ;;  %v4939_v48 = vpop.permute.xlu1 %928 }
 0x159   : > { %8544 = vst [vmem:[#allocation35_spill] sm:$0xff] %v4939_v48  ;;  %1153 = vrot.lane.b32.xlu1 %v4784_v5, %s4355_s0  ;;  %4025 = vset.pattern.permute.xlu0 %v8116_v49  ;;  %v4944_v50 = vpop.permute.xlu0 %955 }
 0x15a   : > { %8545 = vst [vmem:[#allocation36_spill] sm:$0xff] %v4944_v50 }
 0x15c   : > { %2389 = vrot.lane.b32.xlu0 %v4794_v9, %s4362_s23  ;;  %v4948_v51 = vpop.permute.xlu1 %930 }
 0x15d   : > { %8546 = vst [vmem:[#allocation37_spill] sm:$0xff] %v4948_v51  ;;  %1221 = vperm.xlu1 %4018, %v4775_v2   ;;  %v4951_v52 = vpop.permute.xlu0 %2197 }
 0x160   : > { %2430 = vperm.xlu0 %4025, %v4770_v1   ;;  %v4954_v53 = vpop.permute.xlu1 %2181 }
 0x161   : > { %2327 = vrot.lane.b32.xlu1 %v4801_v10, %s4355_s0  ;;  %v4958_v54 = vpop.permute.xlu0 %2238  ;;  %s4383_s0 = smov 111  }
 0x162   : > { %4021 = vset.pattern.permute.xlu1 %v8119_v37 }
 0x164   : > { %4026 = vset.pattern.permute.xlu0 %v4364_v55  ;;  %v4961_v56 = vpop.permute.xlu1 %2183 }
 0x165   : > { %1319 = vperm.xlu0 %4026, %v4775_v2   ;;  %1178 = vrot.lane.b32.xlu1 %v4784_v5, %s4365_s15 }
 0x166   : > { %v4965_v57 = vpop.permute.xlu0 %1046 }
 0x167   : > { %8547 = vst [vmem:[#allocation38_spill] sm:$0xff] %v4965_v57 }
 0x168   : > { %v4967_v58 = vpop.permute.xlu1 %953 }
 0x169   : > { %8548 = vst [vmem:[#allocation39_spill] sm:$0xff] %v4967_v58  ;;  %2446 = vperm.xlu0 %4026, %v4770_v1   ;;  %1180 = vrot.lane.b32.xlu1 %v4789_v7, %s4365_s15 }
 0x16a   : > { %v4971_v59 = vpop.permute.xlu0 %2254 }
 0x16b   : > { %8549 = vst [vmem:[#allocation40_spill] sm:$0xff] %v4971_v59  ;;  %v5641_v59 = vld [vmem:[#allocation9 + $0x10] sm:$0xff] }
 0x16c   : > { %v4973_v60 = vpop.permute.xlu1 %1021 }
 0x16d   : > { %8550 = vst [vmem:[#allocation41_spill] sm:$0xff] %v4973_v60  ;;  %1287 = vrot.lane.b32.xlu0 %v4789_v7, %s8234_s30  ;;  %2341 = vrot.lane.b32.xlu1 %v4794_v9, %s4365_s15 }
 0x16e   : > { %4028 = vset.pattern.permute.xlu0 %v4367_v61  ;;  %v4978_v62 = vpop.permute.xlu0 %1005 }
 0x16f   : > { %8551 = vst [vmem:[#allocation42_spill] sm:$0xff] %v4978_v62 }
 0x170   : > { %v4980_v63 = vpop.permute.xlu1 %2199 }
 0x171   : > { %2421 = vrot.lane.b32.xlu0 %v4794_v9, %s8234_s30  ;;  %2343 = vrot.lane.b32.xlu1 %v4801_v10, %s4365_s15  ;;  %s8232_s15 = smov 1  }
 0x172   : > { %v4985_v3 = vpop.permute.xlu0 %2229 }
 0x174   : > { %v4987_v4 = vpop.permute.xlu1 %978 }
 0x175   : > { %8552 = vst [vmem:[#allocation43_spill] sm:$0xff] %v4987_v4  ;;  %2462 = vperm.xlu0 %4028, %v4770_v1   ;;  %1203 = vrot.lane.b32.xlu1 %v4784_v5, %s4358_s21 }
 0x176   : > { %v4992_v6 = vpop.permute.xlu0 %2270 }
 0x177   : > { %8553 = vst [vmem:[#allocation44_spill] sm:$0xff] %v4992_v6 }
 0x178   : > { %v4994_v8 = vpop.permute.xlu1 %980 }
 0x179   : > { %8554 = vst [vmem:[#allocation45_spill] sm:$0xff] %v4994_v8  ;;  %4029 = vset.pattern.permute.xlu0 %v4368_v11  ;;  %1262 = vperm.xlu1 %4021, %v4775_v2   ;;  %v8122_v11 = vmov 26  }
 0x17a   : > { %1369 = vperm.xlu0 %4029, %v4775_v2  }
 0x17b   : > { %v4998_v12 = vpop.permute.xlu0 %1096 }
 0x17c   : > { %8555 = vst [vmem:[#allocation46_spill] sm:$0xff] %v4998_v12  ;;  %v5000_v13 = vpop.permute.xlu1 %2213 }
 0x17d   : > { %2359 = vrot.lane.b32.xlu1 %v4801_v10, %s4358_s21  ;;  %s4386_s21 = smov 3  }
 0x17e   : > { %2478 = vperm.xlu0 %4029, %v4770_v1   ;;  %4024 = vset.pattern.permute.xlu1 %v8116_v49 }
 0x17f   : > { %v5006_v14 = vpop.permute.xlu0 %2286 }
 0x180   : > { %8556 = vst [vmem:[#allocation47_spill] sm:$0xff] %v5006_v14  ;;  %v5008_v15 = vpop.permute.xlu1 %2215 }
 0x181   : > { %1228 = vrot.lane.b32.xlu1 %v4784_v5, %s4369_s13 }
 0x182   : > { %1328 = vrot.lane.b32.xlu0 %v4789_v7, %s4370_s20 }
 0x183   : > { %4031 = vset.pattern.permute.xlu0 %v8121_v16  ;;  %v5014_v17 = vpop.permute.xlu0 %1055 }
 0x184   : > { %8557 = vst [vmem:[#allocation48_spill] sm:$0xff] %v5014_v17  ;;  %v5016_v18 = vpop.permute.xlu1 %1003 }
 0x185   : > { %8558 = vst [vmem:[#allocation49_spill] sm:$0xff] %v5016_v18  ;;  %1230 = vrot.lane.b32.xlu1 %v4789_v7, %s4369_s13 }
 0x186   : > { %2453 = vrot.lane.b32.xlu0 %v4794_v9, %s4370_s20 }
 0x187   : > { %v5021_v19 = vpop.permute.xlu0 %2261 }
 0x188   : > { %v5023_v24 = vpop.permute.xlu1 %1071 }
 0x189   : > { %8559 = vst [vmem:[#allocation50_spill] sm:$0xff] %v5023_v24  ;;  %2373 = vrot.lane.b32.xlu1 %v4794_v9, %s4369_s13 }
 0x18a   : > { %2494 = vperm.xlu0 %4031, %v4770_v1  }
 0x18b   : > { %v5027_v31 = vpop.permute.xlu0 %2302 }
 0x18c   : > { %8560 = vst [vmem:[#allocation51_spill] sm:$0xff] %v5027_v31  ;;  %v5029_v55 = vpop.permute.xlu1 %2231 }
 0x18d   : > { %2375 = vrot.lane.b32.xlu1 %v4801_v10, %s4369_s13  ;;  %s4392_s13 = smov 98  }
 0x18e   : > { %1378 = vrot.lane.b32.xlu0 %v4789_v7, %s4372_s14 }
 0x18f   : > { %4034 = vset.pattern.permute.xlu0 %v8122_v11 }
 0x190   : > { %v5035_v0 = vpop.permute.xlu1 %1028  ;;  %v5037_v49 = vpop.permute.xlu0 %1146 }
 0x191   : > { %8561 = vst [vmem:[#allocation52_spill] sm:$0xff] %v5035_v0  ;;  %8562 = vst [vmem:[#allocation53_spill] sm:$0xff] %v5037_v49  ;;  %1253 = vrot.lane.b32.xlu1 %v4784_v5, %s4362_s23  ;;  %v4374_v49 = vmov 27  }
 0x192   : > { %2485 = vrot.lane.b32.xlu0 %v4794_v9, %s4372_s14 }
 0x194   : > { %v5043_v43 = vpop.permute.xlu1 %1030  ;;  %v5045_v37 = vpop.permute.xlu0 %2318 }
 0x195   : > { %8563 = vst [vmem:[#allocation54_spill] sm:$0xff] %v5043_v43  ;;  %8564 = vst [vmem:[#allocation55_spill] sm:$0xff] %v5045_v37  ;;  %1294 = vperm.xlu1 %4024, %v4775_v2  }
 0x196   : > { %2552 = vperm.xlu0 %4034, %v4770_v1  }
 0x198   : > { %v5049_v16 = vpop.permute.xlu1 %2245  ;;  %v5051_v11 = vpop.permute.xlu0 %1105 }
 0x199   : > { %8565 = vst [vmem:[#allocation56_spill] sm:$0xff] %v5051_v11  ;;  %2391 = vrot.lane.b32.xlu1 %v4801_v10, %s4362_s23 }
 0x19a   : > { %4035 = vset.pattern.permute.xlu0 %v4374_v49  ;;  %4027 = vset.pattern.permute.xlu1 %v4367_v61  ;;  %v8132_v61 = vmov 28  }
 0x19b   : > { %1486 = vperm.xlu0 %4035, %v4775_v2  }
 0x19c   : > { %v5056_v12 = vpop.permute.xlu1 %2247  ;;  %v5058_v24 = vpop.permute.xlu0 %2293 }
 0x19d   : > { %8566 = vst [vmem:[#allocation57_spill] sm:$0xff] %v5058_v24  ;;  %1269 = vrot.lane.b32.xlu1 %v4784_v5, %s4375_s10 }
 0x19f   : > { %2568 = vperm.xlu0 %4035, %v4770_v1  }
 0x1a0   : > { %v5063_v57 = vpop.permute.xlu1 %1053  ;;  %v5065_v11 = vpop.permute.xlu0 %2334 }
 0x1a1   : > { %8567 = vst [vmem:[#allocation58_spill] sm:$0xff] %v5063_v57  ;;  %8568 = vst [vmem:[#allocation59_spill] sm:$0xff] %v5065_v11  ;;  %1271 = vrot.lane.b32.xlu1 %v4789_v7, %s4375_s10 }
 0x1a3   : > { %1445 = vrot.lane.b32.xlu0 %v4789_v7, %s4376_s17 }
 0x1a4   : > { %v5071_v49 = vpop.permute.xlu1 %1121  ;;  %4037 = vset.pattern.permute.xlu0 %v8132_v61 }
 0x1a5   : > { %8569 = vst [vmem:[#allocation60_spill] sm:$0xff] %v5071_v49  ;;  %2405 = vrot.lane.b32.xlu1 %v4794_v9, %s4375_s10  ;;  %v5076_v60 = vpop.permute.xlu0 %1196 }
 0x1a6   : > { %8570 = vst [vmem:[#allocation61_spill] sm:$0xff] %v5076_v60  ;;  %v4378_v60 = vmov 29  }
 0x1a7   : > { %2543 = vrot.lane.b32.xlu0 %v4794_v9, %s4376_s17 }
 0x1a8   : > { %v5080_v57 = vpop.permute.xlu1 %2263 }
 0x1a9   : > { %2407 = vrot.lane.b32.xlu1 %v4801_v10, %s4375_s10  ;;  %v5084_v17 = vpop.permute.xlu0 %2350 }
 0x1aa   : > { %8571 = vst [vmem:[#allocation62_spill] sm:$0xff] %v5084_v17 }
 0x1ab   : > { %2584 = vperm.xlu0 %4037, %v4770_v1  }
 0x1ac   : > { %v5087_v49 = vpop.permute.xlu1 %1078 }
 0x1ad   : > { %8572 = vst [vmem:[#allocation63_spill] sm:$0xff] %v5087_v49  ;;  %1285 = vrot.lane.b32.xlu1 %v4784_v5, %s8234_s30  ;;  %v5091_v61 = vpop.permute.xlu0 %1155 }
 0x1ae   : > { %8573 = vst [vmem:[#allocation64_spill] sm:$0xff] %v5091_v61  ;;  %v8577_v61 = vmov 22  }
 0x1af   : > { %4038 = vset.pattern.permute.xlu0 %v4378_v60 }
 0x1b0   : > { %1536 = vperm.xlu0 %4038, %v4775_v2   ;;  %v5094_v45 = vpop.permute.xlu1 %1080 }
 0x1b1   : > { %8574 = vst [vmem:[#allocation65_spill] sm:$0xff] %v5094_v45  ;;  %1344 = vperm.xlu1 %4027, %v4775_v2   ;;  %v5097_v0 = vpop.permute.xlu0 %2325  ;;  %v4381_v45 = vmov 33  }
 0x1b2   : > { %8575 = vst [vmem:[#allocation66_spill] sm:$0xff] %v5097_v0 }
 0x1b4   : > { %2600 = vperm.xlu0 %4038, %v4770_v1   ;;  %v5100_v43 = vpop.permute.xlu1 %2277 }
 0x1b5   : > { %2423 = vrot.lane.b32.xlu1 %v4801_v10, %s8234_s30  ;;  %v5104_v49 = vpop.permute.xlu0 %2366  ;;  %s4411_s30 = smov 110  }
 0x1b6   : > { %8576 = vst [vmem:[#allocation67_spill] sm:$0xff] %v5104_v49  ;;  %4030 = vset.pattern.permute.xlu1 %v8577_v61 }
 0x1b8   : > { %1495 = vrot.lane.b32.xlu0 %v4789_v7, %s4379_s5  ;;  %v5109_v60 = vpop.permute.xlu1 %2279 }
 0x1b9   : > { %1301 = vrot.lane.b32.xlu1 %v4784_v5, %s4380_s29  ;;  %4041 = vset.pattern.permute.xlu0 %v4381_v45 }
 0x1ba   : > { %v5112_v44 = vpop.permute.xlu0 %1246 }
 0x1bb   : > { %8578 = vst [vmem:[#allocation68_spill] sm:$0xff] %v5112_v44 }
 0x1bc   : > { %2575 = vrot.lane.b32.xlu0 %v4794_v9, %s4379_s5  ;;  %v5116_v18 = vpop.permute.xlu1 %1103 }
 0x1bd   : > { %8579 = vst [vmem:[#allocation69_spill] sm:$0xff] %v5116_v18  ;;  %1303 = vrot.lane.b32.xlu1 %v4789_v7, %s4380_s29 }
 0x1be   : > { %v5119_v61 = vpop.permute.xlu0 %2382 }
 0x1bf   : > { %8580 = vst [vmem:[#allocation70_spill] sm:$0xff] %v5119_v61  ;;  %v5403_v61 = vld [vmem:[%s8082_s2 + $0x8] sm:$0xff] }
 0x1c0   : > { %1545 = vrot.lane.b32.xlu0 %v4789_v7, %s4382_s27  ;;  %v5123_v62 = vpop.permute.xlu1 %1171 }
 0x1c1   : > { %8581 = vst [vmem:[#allocation71_spill] sm:$0xff] %v5123_v62  ;;  %2437 = vrot.lane.b32.xlu1 %v4794_v9, %s4380_s29 }
 0x1c2   : > { %v5126_v45 = vpop.permute.xlu0 %1205 }
 0x1c3   : > { %8582 = vst [vmem:[#allocation72_spill] sm:$0xff] %v5126_v45 }
 0x1c4   : > { %2607 = vrot.lane.b32.xlu0 %v4794_v9, %s4382_s27  ;;  %v5130_v44 = vpop.permute.xlu1 %2295 }
 0x1c5   : > { %8583 = vst [vmem:[#allocation73_spill] sm:$0xff] %v5130_v44  ;;  %2439 = vrot.lane.b32.xlu1 %v4801_v10, %s4380_s29  ;;  %s4398_s29 = smov 95  }
 0x1c6   : > { %v5133_v18 = vpop.permute.xlu0 %2357 }
 0x1c7   : > { %8584 = vst [vmem:[#allocation74_spill] sm:$0xff] %v5133_v18 }
 0x1c8   : > { %1609 = vperm.xlu0 %4041, %v4775_v2   ;;  %v5136_v30 = vpop.permute.xlu1 %1128 }
 0x1c9   : > { %8585 = vst [vmem:[#allocation75_spill] sm:$0xff] %v5136_v30  ;;  %1326 = vrot.lane.b32.xlu1 %v4784_v5, %s4370_s20  ;;  %v8156_v30 = vmov 34  }
 0x1ca   : > { %v5140_v62 = vpop.permute.xlu0 %2398 }
 0x1cb   : > { %8586 = vst [vmem:[#allocation76_spill] sm:$0xff] %v5140_v62 }
 0x1cc   : > { %2664 = vperm.xlu0 %4041, %v4770_v1   ;;  %v5143_v45 = vpop.permute.xlu1 %1130 }
 0x1cd   : > { %8587 = vst [vmem:[#allocation77_spill] sm:$0xff] %v5143_v45  ;;  %1394 = vperm.xlu1 %4030, %v4775_v2  }
 0x1cf   : > { %v5146_v4 = vpop.permute.xlu0 %1278 }
 0x1d0   : > { %8588 = vst [vmem:[#allocation78_spill] sm:$0xff] %v5146_v4  ;;  %1577 = vrot.lane.b32.xlu0 %v4789_v7, %s4383_s0  ;;  %v5150_v8 = vpop.permute.xlu1 %2309 }
 0x1d1   : > { %8589 = vst [vmem:[#allocation79_spill] sm:$0xff] %v5150_v8  ;;  %2455 = vrot.lane.b32.xlu1 %v4801_v10, %s4370_s20  ;;  %4043 = vset.pattern.permute.xlu0 %v8156_v30  ;;  %s8216_s20 = smov 127  }
 0x1d2   : > { %4032 = vset.pattern.permute.xlu1 %v8157_v25  ;;  %v4387_v25 = vmov 35  }
 0x1d3   : > { %v5156_v45 = vpop.permute.xlu0 %2414 }
 0x1d4   : > { %8590 = vst [vmem:[#allocation80_spill] sm:$0xff] %v5156_v45  ;;  %2639 = vrot.lane.b32.xlu0 %v4794_v9, %s4383_s0  ;;  %v5160_v4 = vpop.permute.xlu1 %2311 }
 0x1d5   : > { %8591 = vst [vmem:[#allocation81_spill] sm:$0xff] %v5160_v4  ;;  %1351 = vrot.lane.b32.xlu1 %v4784_v5, %s4386_s21 }
 0x1d7   : > { %v5163_v21 = vpop.permute.xlu0 %1255 }
 0x1d8   : > { %8592 = vst [vmem:[#allocation82_spill] sm:$0xff] %v5163_v21  ;;  %2680 = vperm.xlu0 %4043, %v4770_v1   ;;  %v5166_v58 = vpop.permute.xlu1 %1153 }
 0x1d9   : > { %8593 = vst [vmem:[#allocation83_spill] sm:$0xff] %v5166_v58  ;;  %1353 = vrot.lane.b32.xlu1 %v4789_v7, %s4386_s21 }
 0x1db   : > { %v5169_v30 = vpop.permute.xlu0 %2389 }
 0x1dc   : > { %8594 = vst [vmem:[#allocation84_spill] sm:$0xff] %v5169_v30  ;;  %4044 = vset.pattern.permute.xlu0 %v4387_v25  ;;  %v5171_v50 = vpop.permute.xlu1 %1221  ;;  %v8168_v25 = vmov 36   ;;  %v608_v30 = vld [vmem:[#allocation9] sm:$0xff] }
 0x1dd   : > { %8595 = vst [vmem:[#allocation85_spill] sm:$0xff] %v5171_v50  ;;  %1659 = vperm.xlu0 %4044, %v4775_v2   ;;  %2469 = vrot.lane.b32.xlu1 %v4794_v9, %s4386_s21 }
 0x1df   : > { %v5175_v23 = vpop.permute.xlu0 %2430 }
 0x1e0   : > { %8596 = vst [vmem:[#allocation86_spill] sm:$0xff] %v5175_v23  ;;  %v5177_v48 = vpop.permute.xlu1 %2327 }
 0x1e1   : > { %8597 = vst [vmem:[#allocation87_spill] sm:$0xff] %v5177_v48  ;;  %2696 = vperm.xlu0 %4044, %v4770_v1   ;;  %2471 = vrot.lane.b32.xlu1 %v4801_v10, %s4386_s21  ;;  %s4401_s21 = smov 125  }
 0x1e4   : > { %v5181_v21 = vpop.permute.xlu1 %1178  ;;  %v5183_v58 = vpop.permute.xlu0 %1319 }
 0x1e5   : > { %8598 = vst [vmem:[#allocation88_spill] sm:$0xff] %v5181_v21  ;;  %8599 = vst [vmem:[#allocation89_spill] sm:$0xff] %v5183_v58  ;;  %1618 = vrot.lane.b32.xlu0 %v4789_v7, %s4388_s16  ;;  %1376 = vrot.lane.b32.xlu1 %v4784_v5, %s4372_s14 }
 0x1e6   : > { %4046 = vset.pattern.permute.xlu0 %v8168_v25 }
 0x1e8   : > { %v5190_v50 = vpop.permute.xlu1 %1180  ;;  %v5192_v51 = vpop.permute.xlu0 %2446 }
 0x1e9   : > { %8600 = vst [vmem:[#allocation90_spill] sm:$0xff] %v5190_v50  ;;  %8601 = vst [vmem:[#allocation91_spill] sm:$0xff] %v5192_v51  ;;  %2671 = vrot.lane.b32.xlu0 %v4794_v9, %s4388_s16  ;;  %1420 = vperm.xlu1 %4032, %v4775_v2  }
 0x1ec   : > { %v5197_v58 = vpop.permute.xlu1 %2341  ;;  %v5199_v21 = vpop.permute.xlu0 %1287 }
 0x1ed   : > { %8602 = vst [vmem:[#allocation92_spill] sm:$0xff] %v5197_v58  ;;  %8603 = vst [vmem:[#allocation93_spill] sm:$0xff] %v5199_v21  ;;  %2712 = vperm.xlu0 %4046, %v4770_v1   ;;  %2487 = vrot.lane.b32.xlu1 %v4801_v10, %s4372_s14  ;;  %s4396_s14 = smov 96  }
 0x1ee   : > { %4033 = vset.pattern.permute.xlu1 %v8604_v41 }
 0x1f0   : > { %v5205_v25 = vpop.permute.xlu1 %2343  ;;  %v5207_v50 = vpop.permute.xlu0 %2421 }
 0x1f1   : > { %8605 = vst [vmem:[#allocation94_spill] sm:$0xff] %v5205_v25  ;;  %8606 = vst [vmem:[#allocation95_spill] sm:$0xff] %v5207_v50  ;;  %4047 = vset.pattern.permute.xlu0 %v4390_v38  ;;  %1401 = vrot.lane.b32.xlu1 %v4784_v5, %s8232_s15  ;;  %v8291_v25 = vmov 46  }
 0x1f2   : > { %1709 = vperm.xlu0 %4047, %v4775_v2  }
 0x1f4   : > { %v5212_v21 = vpop.permute.xlu1 %1203  ;;  %v5214_v27 = vpop.permute.xlu0 %2462 }
 0x1f5   : > { %8607 = vst [vmem:[#allocation96_spill] sm:$0xff] %v5212_v21  ;;  %8608 = vst [vmem:[#allocation97_spill] sm:$0xff] %v5214_v27  ;;  %1403 = vrot.lane.b32.xlu1 %v4789_v7, %s8232_s15  ;;  %v8617_v27 = vmov 28  }
 0x1f6   : > { %2728 = vperm.xlu0 %4047, %v4770_v1  }
 0x1f8   : > { %v5219_v41 = vpop.permute.xlu1 %1262 }
 0x1f9   : > { %8609 = vst [vmem:[#allocation98_spill] sm:$0xff] %v5219_v41  ;;  %2501 = vrot.lane.b32.xlu1 %v4794_v9, %s8232_s15  ;;  %v5223_v38 = vpop.permute.xlu0 %1369 }
 0x1fa   : > { %8610 = vst [vmem:[#allocation99_spill] sm:$0xff] %v5223_v38  ;;  %1668 = vrot.lane.b32.xlu0 %v4789_v7, %s4392_s13 }
 0x1fb   : > { %4049 = vset.pattern.permute.xlu0 %v8179_v29 }
 0x1fc   : > { %v5228_v21 = vpop.permute.xlu1 %2359 }
 0x1fd   : > { %8611 = vst [vmem:[#allocation100_spill] sm:$0xff] %v5228_v21  ;;  %2503 = vrot.lane.b32.xlu1 %v4801_v10, %s8232_s15  ;;  %v5232_v28 = vpop.permute.xlu0 %2478  ;;  %s4413_s15 = smov 99  }
 0x1fe   : > { %8612 = vst [vmem:[#allocation101_spill] sm:$0xff] %v5232_v28  ;;  %2703 = vrot.lane.b32.xlu0 %v4794_v9, %s4392_s13  ;;  %v4395_v28 = vmov 39  }
 0x200   : > { %v5236_v41 = vpop.permute.xlu1 %1228 }
 0x201   : > { %8613 = vst [vmem:[#allocation102_spill] sm:$0xff] %v5236_v41  ;;  %1461 = vperm.xlu1 %4033, %v4775_v2   ;;  %v5239_v38 = vpop.permute.xlu0 %1328 }
 0x202   : > { %8614 = vst [vmem:[#allocation103_spill] sm:$0xff] %v5239_v38  ;;  %2744 = vperm.xlu0 %4049, %v4770_v1  }
 0x204   : > { %v5242_v32 = vpop.permute.xlu1 %1230 }
 0x205   : > { %8615 = vst [vmem:[#allocation104_spill] sm:$0xff] %v5242_v32  ;;  %1427 = vrot.lane.b32.xlu1 %v4784_v5, %s8216_s20  ;;  %v5246_v29 = vpop.permute.xlu0 %2453 }
 0x206   : > { %8616 = vst [vmem:[#allocation105_spill] sm:$0xff] %v5246_v29  ;;  %4050 = vset.pattern.permute.xlu0 %v4395_v28  ;;  %4036 = vset.pattern.permute.xlu1 %v8617_v27  ;;  %v8190_v28 = vmov 40   ;;  %v8198_v29 = vmov 30  }
 0x207   : > { %1759 = vperm.xlu0 %4050, %v4775_v2  }
 0x208   : > { %v5250_v41 = vpop.permute.xlu1 %2373 }
 0x209   : > { %8618 = vst [vmem:[#allocation106_spill] sm:$0xff] %v5250_v41  ;;  %1429 = vrot.lane.b32.xlu1 %v4789_v7, %s8216_s20  ;;  %v5254_v38 = vpop.permute.xlu0 %2494 }
 0x20a   : > { %8619 = vst [vmem:[#allocation107_spill] sm:$0xff] %v5254_v38 }
 0x20b   : > { %2760 = vperm.xlu0 %4050, %v4770_v1  }
 0x20c   : > { %v5257_v32 = vpop.permute.xlu1 %2375 }
 0x20d   : > { %8620 = vst [vmem:[#allocation108_spill] sm:$0xff] %v5257_v32  ;;  %2527 = vrot.lane.b32.xlu1 %v4794_v9, %s8216_s20  ;;  %v5261_v51 = vpop.permute.xlu0 %1378 }
 0x20e   : > { %8621 = vst [vmem:[#allocation109_spill] sm:$0xff] %v5261_v51 }
 0x20f   : > { %1718 = vrot.lane.b32.xlu0 %v4789_v7, %s4396_s14 }
 0x210   : > { %v5265_v27 = vpop.permute.xlu1 %1253  ;;  %4052 = vset.pattern.permute.xlu0 %v8190_v28 }
 0x211   : > { %8622 = vst [vmem:[#allocation110_spill] sm:$0xff] %v5265_v27  ;;  %2529 = vrot.lane.b32.xlu1 %v4801_v10, %s8216_s20  ;;  %v5270_v38 = vpop.permute.xlu0 %2485  ;;  %s4426_s20 = smov 79  }
 0x212   : > { %8623 = vst [vmem:[#allocation111_spill] sm:$0xff] %v5270_v38 }
 0x213   : > { %2735 = vrot.lane.b32.xlu0 %v4794_v9, %s4396_s14 }
 0x214   : > { %v5274_v23 = vpop.permute.xlu1 %1294 }
 0x215   : > { %8624 = vst [vmem:[#allocation112_spill] sm:$0xff] %v5274_v23  ;;  %1443 = vrot.lane.b32.xlu1 %v4784_v5, %s4376_s17  ;;  %v5278_v51 = vpop.permute.xlu0 %2552  ;;  %v4399_v23 = vmov 41  }
 0x216   : > { %8625 = vst [vmem:[#allocation113_spill] sm:$0xff] %v5278_v51 }
 0x217   : > { %2776 = vperm.xlu0 %4052, %v4770_v1  }
 0x218   : > { %v5281_v27 = vpop.permute.xlu1 %2391 }
 0x219   : > { %8626 = vst [vmem:[#allocation114_spill] sm:$0xff] %v5281_v27  ;;  %1511 = vperm.xlu1 %4036, %v4775_v2  }
 0x21a   : > { %v5284_v28 = vpop.permute.xlu0 %1486 }
 0x21b   : > { %8627 = vst [vmem:[#allocation115_spill] sm:$0xff] %v5284_v28  ;;  %1741 = vrot.lane.b32.xlu0 %v4784_v5, %s4398_s29 }
 0x21c   : > { %v5288_v38 = vpop.permute.xlu1 %1269  ;;  %4055 = vset.pattern.permute.xlu0 %v4399_v23 }
 0x21d   : > { %8628 = vst [vmem:[#allocation116_spill] sm:$0xff] %v5288_v38  ;;  %2545 = vrot.lane.b32.xlu1 %v4801_v10, %s4376_s17  ;;  %s4402_s17 = smov 94  }
 0x21e   : > { %v5292_v51 = vpop.permute.xlu0 %2568  ;;  %4039 = vset.pattern.permute.xlu1 %v8198_v29 }
 0x21f   : > { %8629 = vst [vmem:[#allocation117_spill] sm:$0xff] %v5292_v51  ;;  %1809 = vperm.xlu0 %4055, %v4775_v2  }
 0x220   : > { %v5296_v45 = vpop.permute.xlu1 %1271 }
 0x221   : > { %8630 = vst [vmem:[#allocation118_spill] sm:$0xff] %v5296_v45  ;;  %1468 = vrot.lane.b32.xlu1 %v4784_v5, %s4401_s21  ;;  %v8208_v45 = vmov 42  }
 0x222   : > { %v5299_v28 = vpop.permute.xlu0 %1445 }
 0x223   : > { %8631 = vst [vmem:[#allocation119_spill] sm:$0xff] %v5299_v28  ;;  %2751 = vrot.lane.b32.xlu0 %v4794_v9, %s4398_s29 }
 0x224   : > { %v5303_v23 = vpop.permute.xlu1 %2405 }
 0x225   : > { %8632 = vst [vmem:[#allocation120_spill] sm:$0xff] %v5303_v23  ;;  %1470 = vrot.lane.b32.xlu1 %v4789_v7, %s4401_s21 }
 0x226   : > { %v5306_v51 = vpop.permute.xlu0 %2543 }
 0x227   : > { %8633 = vst [vmem:[#allocation121_spill] sm:$0xff] %v5306_v51  ;;  %2792 = vperm.xlu0 %4055, %v4770_v1  }
 0x228   : > { %v5309_v29 = vpop.permute.xlu1 %2407 }
 0x229   : > { %8634 = vst [vmem:[#allocation122_spill] sm:$0xff] %v5309_v29  ;;  %2559 = vrot.lane.b32.xlu1 %v4794_v9, %s4401_s21 }
 0x22a   : > { %v5312_v38 = vpop.permute.xlu0 %2584 }
 0x22b   : > { %8635 = vst [vmem:[#allocation123_spill] sm:$0xff] %v5312_v38  ;;  %1766 = vrot.lane.b32.xlu0 %v4784_v5, %s4402_s17  ;;  %v4404_v38 = vmov 23  }
 0x22c   : > { %v5316_v28 = vpop.permute.xlu1 %1285  ;;  %4059 = vset.pattern.permute.xlu0 %v8208_v45 }
 0x22d   : > { %8636 = vst [vmem:[#allocation124_spill] sm:$0xff] %v5316_v28  ;;  %2561 = vrot.lane.b32.xlu1 %v4801_v10, %s4401_s21  ;;  %s4406_s21 = smov 114  }
 0x22f   : > { %1834 = vperm.xlu0 %4059, %v4775_v2   ;;  %v5321_v51 = vpop.permute.xlu0 %1536 }
 0x230   : > { %8637 = vst [vmem:[#allocation125_spill] sm:$0xff] %v5321_v51  ;;  %v5323_v62 = vpop.permute.xlu1 %1344 }
 0x231   : > { %8638 = vst [vmem:[#allocation126_spill] sm:$0xff] %v5323_v62  ;;  %1493 = vrot.lane.b32.xlu1 %v4784_v5, %s4379_s5  ;;  %v8214_v62 = vmov 32  }
 0x233   : > { %4060 = vset.pattern.permute.xlu0 %v4404_v38  ;;  %v5327_v50 = vpop.permute.xlu0 %2600 }
 0x234   : > { %8639 = vst [vmem:[#allocation127_spill] sm:$0xff] %v5327_v50  ;;  %1410 = vperm.xlu0 %4060, %v4775_v2   ;;  %v5330_v28 = vpop.permute.xlu1 %2423 }
 0x235   : > { %8640 = vst [vmem:[#allocation128_spill] sm:$0xff] %v5330_v28  ;;  %1552 = vperm.xlu1 %4039, %v4775_v2  }
 0x237   : > { %v5333_v45 = vpop.permute.xlu0 %1495 }
 0x238   : > { %8641 = vst [vmem:[#allocation129_spill] sm:$0xff] %v5333_v45  ;;  %2510 = vperm.xlu0 %4060, %v4770_v1   ;;  %v5336_v51 = vpop.permute.xlu1 %1301  ;;  %v623_v1 = vld [vmem:[%s4741_s26] sm:$0xff] }
 0x239   : > { %8642 = vst [vmem:[#allocation130_spill] sm:$0xff] %v5336_v51  ;;  %2577 = vrot.lane.b32.xlu1 %v4801_v10, %s4379_s5  ;;  %s4408_s5 = smov 112  }
 0x23a   : > { %4040 = vset.pattern.permute.xlu1 %v8214_v62 }
 0x23b   : > { %v5341_v38 = vpop.permute.xlu0 %2575 }
 0x23c   : > { %8643 = vst [vmem:[#allocation131_spill] sm:$0xff] %v5341_v38  ;;  %2769 = vrot.lane.b32.xlu0 %v4801_v10, %s4402_s17  ;;  %v5345_v50 = vpop.permute.xlu1 %1303 }
 0x23d   : > { %8644 = vst [vmem:[#allocation132_spill] sm:$0xff] %v5345_v50  ;;  %1518 = vrot.lane.b32.xlu1 %v4784_v5, %s4406_s21  ;;  %v5364_v50 = vld [vmem:[%s8082_s2] sm:$0xff] }
 0x23f   : > { %v5349_v45 = vpop.permute.xlu0 %1545 }
 0x240   : > { %8645 = vst [vmem:[#allocation133_spill] sm:$0xff] %v5349_v45  ;;  %v5351_v51 = vpop.permute.xlu1 %2437  ;;  %633 = vrot.lane.b32.xlu0 %v623_v1, %s4362_s23 }
 0x241   : > { %8646 = vst [vmem:[#allocation134_spill] sm:$0xff] %v5351_v51  ;;  %1520 = vrot.lane.b32.xlu1 %v4789_v7, %s4406_s21 }
 0x243   : > { %v5355_v62 = vpop.permute.xlu0 %2607 }
 0x244   : > { %8647 = vst [vmem:[#allocation135_spill] sm:$0xff] %v5355_v62  ;;  %v5357_v38 = vpop.permute.xlu1 %2439  ;;  %659 = vrot.lane.b32.xlu0 %v623_v1, %s4375_s10  ;;  %v5373_v62 = vld [vmem:[%s4749_s18] sm:$0xff] }
 0x245   : > { %8648 = vst [vmem:[#allocation136_spill] sm:$0xff] %v5357_v38  ;;  %2591 = vrot.lane.b32.xlu1 %v4794_v9, %s4406_s21  ;;  %8651 = vst [vmem:[#allocation139_spill] sm:$0xff] %v5373_v62 }
 0x247   : > { %v5366_v45 = vpop.permute.xlu0 %1609 }
 0x248   : > { %8649 = vst [vmem:[#allocation137_spill] sm:$0xff] %v5366_v45  ;;  %v5368_v51 = vpop.permute.xlu1 %1326  ;;  %727 = vperm.xlu0 %4060, %v5364_v50   ;;  %v5386_v45 = vld [vmem:[%s8083_s3] sm:$0xff] }
 0x249   : > { %8650 = vst [vmem:[#allocation138_spill] sm:$0xff] %v5368_v51  ;;  %2593 = vrot.lane.b32.xlu1 %v4801_v10, %s4406_s21  ;;  %s4414_s21 = smov 81  }
 0x24b   : > { %v5375_v38 = vpop.permute.xlu0 %2664 }
 0x24c   : > { %8652 = vst [vmem:[#allocation140_spill] sm:$0xff] %v5375_v38  ;;  %v5377_v1 = vpop.permute.xlu1 %1394  ;;  %2010 = vrot.lane.b32.xlu0 %v5373_v62, %s4375_s10  ;;  %v4407_v62 = vmov 43  }
 0x24d   : > { %8653 = vst [vmem:[#allocation141_spill] sm:$0xff] %v5377_v1  ;;  %1543 = vrot.lane.b32.xlu1 %v4784_v5, %s4382_s27 }
 0x24f   : > { %v5388_v51 = vpop.permute.xlu0 %1577 }
 0x250   : > { %8654 = vst [vmem:[#allocation142_spill] sm:$0xff] %v5388_v51  ;;  %v5390_v28 = vpop.permute.xlu1 %2455  ;;  %2051 = vperm.xlu0 %4060, %v5386_v45   ;;  %v8658_v51 = vmov 34  }
 0x251   : > { %8655 = vst [vmem:[#allocation143_spill] sm:$0xff] %v5390_v28  ;;  %1584 = vperm.xlu1 %4040, %v4775_v2  }
 0x253   : > { %v5394_v38 = vpop.permute.xlu0 %2639 }
 0x254   : > { %8656 = vst [vmem:[#allocation144_spill] sm:$0xff] %v5394_v38  ;;  %v5396_v1 = vpop.permute.xlu1 %1351  ;;  %4062 = vset.pattern.permute.xlu0 %v4407_v62  ;;  %v5416_v62 = vld [vmem:[%s8083_s3 + $0x8] sm:$0xff] }
 0x255   : > { %8657 = vst [vmem:[#allocation145_spill] sm:$0xff] %v5396_v1  ;;  %2609 = vrot.lane.b32.xlu1 %v4801_v10, %s4382_s27  ;;  %1859 = vperm.xlu0 %4062, %v5403_v61  }
 0x256   : > { %4042 = vset.pattern.permute.xlu1 %v8658_v51  ;;  %v8663_v51 = vmov 24  }
 0x257   : > { %v5407_v28 = vpop.permute.xlu0 %2680 }
 0x258   : > { %8659 = vst [vmem:[#allocation146_spill] sm:$0xff] %v5407_v28  ;;  %v5409_v2 = vpop.permute.xlu1 %1353 }
 0x259   : > { %8660 = vst [vmem:[#allocation147_spill] sm:$0xff] %v5409_v2  ;;  %1559 = vrot.lane.b32.xlu1 %v4784_v5, %s4408_s5  ;;  %2824 = vperm.xlu0 %4062, %v5416_v62  }
 0x25c   : > { %v5419_v1 = vpop.permute.xlu1 %2469  ;;  %v5421_v38 = vpop.permute.xlu0 %1659 }
 0x25d   : > { %8661 = vst [vmem:[#allocation148_spill] sm:$0xff] %v5419_v1  ;;  %8662 = vst [vmem:[#allocation149_spill] sm:$0xff] %v5421_v38  ;;  %1561 = vrot.lane.b32.xlu1 %v4789_v7, %s4408_s5  ;;  %4063 = vset.pattern.permute.xlu0 %v8663_v51 }
 0x25e   : > { %2520 = vperm.xlu0 %4063, %v5416_v62  }
 0x260   : > { %v5427_v28 = vpop.permute.xlu1 %2471  ;;  %v5429_v2 = vpop.permute.xlu0 %2696 }
 0x261   : > { %8664 = vst [vmem:[#allocation150_spill] sm:$0xff] %v5427_v28  ;;  %8665 = vst [vmem:[#allocation151_spill] sm:$0xff] %v5429_v2  ;;  %2623 = vrot.lane.b32.xlu1 %v4794_v9, %s4408_s5  ;;  %v4409_v9 = vmov 44  }
 0x262   : > { %745 = vperm.xlu0 %4063, %v5364_v50  }
 0x264   : > { %v5434_v23 = vpop.permute.xlu1 %1376  ;;  %v5436_v1 = vpop.permute.xlu0 %1618 }
 0x265   : > { %8666 = vst [vmem:[#allocation152_spill] sm:$0xff] %v5434_v23  ;;  %8667 = vst [vmem:[#allocation153_spill] sm:$0xff] %v5436_v1  ;;  %2625 = vrot.lane.b32.xlu1 %v4801_v10, %s4408_s5 }
 0x266   : > { %2061 = vperm.xlu0 %4063, %v5386_v45  }
 0x268   : > { %v5441_v7 = vpop.permute.xlu1 %1420  ;;  %v5443_v51 = vpop.permute.xlu0 %2671 }
 0x269   : > { %8668 = vst [vmem:[#allocation154_spill] sm:$0xff] %v5441_v7  ;;  %8669 = vst [vmem:[#allocation155_spill] sm:$0xff] %v5443_v51  ;;  %1575 = vrot.lane.b32.xlu1 %v4784_v5, %s4383_s0  ;;  %v8674_v51 = vmov 36  }
 0x26a   : > { %4064 = vset.pattern.permute.xlu0 %v4409_v9  ;;  %v4410_v9 = vmov 25  }
 0x26b   : > { %1884 = vperm.xlu0 %4064, %v5403_v61  }
 0x26c   : > { %v5448_v38 = vpop.permute.xlu1 %2487  ;;  %v5450_v2 = vpop.permute.xlu0 %2712 }
 0x26d   : > { %8670 = vst [vmem:[#allocation156_spill] sm:$0xff] %v5448_v38  ;;  %8671 = vst [vmem:[#allocation157_spill] sm:$0xff] %v5450_v2  ;;  %1634 = vperm.xlu1 %4042, %v5403_v61   ;;  %v5465_v2 = vld [vmem:[%s4741_s26 + $0x10] sm:$0xff] }
 0x26f   : > { %2840 = vperm.xlu0 %4064, %v5416_v62  }
 0x270   : > { %v5454_v1 = vpop.permute.xlu1 %1401 }
 0x271   : > { %8672 = vst [vmem:[#allocation158_spill] sm:$0xff] %v5454_v1  ;;  %2641 = vrot.lane.b32.xlu1 %v4801_v10, %s4383_s0  ;;  %v5458_v5 = vpop.permute.xlu0 %1709 }
 0x272   : > { %8673 = vst [vmem:[#allocation159_spill] sm:$0xff] %v5458_v5  ;;  %4045 = vset.pattern.permute.xlu1 %v8674_v51  ;;  %v5474_v51 = vld [vmem:[%s4741_s26 + $0x18] sm:$0xff] }
 0x273   : > { %4065 = vset.pattern.permute.xlu0 %v4410_v9  ;;  %8678 = vst [vmem:[#allocation163_spill] sm:$0xff] %v5474_v51 }
 0x274   : > { %v5461_v7 = vpop.permute.xlu1 %1403  ;;  %1436 = vperm.xlu0 %4065, %v5403_v61  }
 0x275   : > { %8675 = vst [vmem:[#allocation160_spill] sm:$0xff] %v5461_v7  ;;  %1591 = vrot.lane.b32.xlu1 %v5465_v2, %s4411_s30  ;;  %v5468_v1 = vpop.permute.xlu0 %2728  ;;  %v5483_v7 = vld [vmem:[%s4749_s18 + $0x10] sm:$0xff] }
 0x276   : > { %8676 = vst [vmem:[#allocation161_spill] sm:$0xff] %v5468_v1  ;;  %8681 = vst [vmem:[#allocation166_spill] sm:$0xff] %v5483_v7 }
 0x278   : > { %v5470_v10 = vpop.permute.xlu1 %2501  ;;  %2536 = vperm.xlu0 %4065, %v5416_v62  }
 0x279   : > { %8677 = vst [vmem:[#allocation162_spill] sm:$0xff] %v5470_v10  ;;  %1593 = vrot.lane.b32.xlu1 %v5474_v51, %s4411_s30  ;;  %v5477_v9 = vpop.permute.xlu0 %1668  ;;  %v5492_v10 = vld [vmem:[%s4749_s18 + $0x18] sm:$0xff] }
 0x27a   : > { %8679 = vst [vmem:[#allocation164_spill] sm:$0xff] %v5477_v9 }
 0x27c   : > { %v5479_v5 = vpop.permute.xlu1 %2503  ;;  %770 = vperm.xlu0 %4065, %v5364_v50  }
 0x27d   : > { %8680 = vst [vmem:[#allocation165_spill] sm:$0xff] %v5479_v5  ;;  %2655 = vrot.lane.b32.xlu1 %v5483_v7, %s4411_s30  ;;  %v5486_v23 = vpop.permute.xlu0 %2703  ;;  %v4412_v5 = vmov 45  }
 0x27e   : > { %8682 = vst [vmem:[#allocation167_spill] sm:$0xff] %v5486_v23 }
 0x280   : > { %v5488_v1 = vpop.permute.xlu1 %1461  ;;  %2077 = vperm.xlu0 %4065, %v5386_v45  }
 0x281   : > { %8683 = vst [vmem:[#allocation168_spill] sm:$0xff] %v5488_v1  ;;  %2657 = vrot.lane.b32.xlu1 %v5492_v10, %s4411_s30  ;;  %v5495_v38 = vpop.permute.xlu0 %2744  ;;  %s3805_s30 = sshll.u32 %s4537_s25, 9 }
 0x282   : > { %8684 = vst [vmem:[#allocation169_spill] sm:$0xff] %v5495_v38  ;;  %v637_v38 = vlaneseq }
 0x284   : > { %v5497_v9 = vpop.permute.xlu1 %1427  ;;  %4066 = vset.pattern.permute.xlu0 %v4412_v5  ;;  %v8690_v5 = vmov 30  }
 0x285   : > { %8685 = vst [vmem:[#allocation170_spill] sm:$0xff] %v5497_v9  ;;  %1616 = vrot.lane.b32.xlu1 %v5465_v2, %s4388_s16  ;;  %1909 = vperm.xlu0 %4066, %v5403_v61  }
 0x286   : > { %v5502_v23 = vpop.permute.xlu0 %1759 }
 0x287   : > { %8686 = vst [vmem:[#allocation171_spill] sm:$0xff] %v5502_v23  ;;  %v8692_v23 = vmov 38  }
 0x288   : > { %v5504_v1 = vpop.permute.xlu1 %1429 }
 0x289   : > { %8687 = vst [vmem:[#allocation172_spill] sm:$0xff] %v5504_v1  ;;  %1684 = vperm.xlu1 %4045, %v5403_v61   ;;  %2856 = vperm.xlu0 %4066, %v5416_v62   ;;  %v643_v1 = vshrl.u32 %v637_v38, 7 }
 0x28a   : > { %v5508_v28 = vpop.permute.xlu0 %2760 }
 0x28b   : > { %8688 = vst [vmem:[#allocation173_spill] sm:$0xff] %v5508_v28  ;;  %v5535_v27 = vsub.s32 2, %v643_v1  ;;  %v5539_v17 = vsub.s32 3, %v643_v1  ;;  %v5566_v21 = vsub.s32 5, %v643_v1  ;;  %v5590_v14 = vsub.s32 6, %v643_v1 }
 0x28c   : > { %v5510_v29 = vpop.permute.xlu1 %2527 }
 0x28d   : > { %8689 = vst [vmem:[#allocation174_spill] sm:$0xff] %v5510_v29  ;;  %2673 = vrot.lane.b32.xlu1 %v5492_v10, %s4388_s16  ;;  %4067 = vset.pattern.permute.xlu0 %v8690_v5  ;;  %v5527_v5 = vand.u32 127, %v637_v38  ;;  %v5529_v29 = vsub.s32 0, %v643_v1  ;;  %8698 = vst [vmem:[#allocation181_spill] sm:$0xff] %v5535_v27  ;;  %v5545_v38 = vsub.s32 4, %v643_v1  ;;  %v5636_v44 = vrot.slane %v608_v30, %v5590_v14  ;;  %s4417_s16 = smov 97  }
 0x28e   : > { %2616 = vperm.xlu0 %4067, %v5416_v62   ;;  %v5516_v9 = vpop.permute.xlu0 %1718  ;;  %4048 = vset.pattern.permute.xlu1 %v8692_v23  ;;  %8699 = vst [vmem:[#allocation182_spill] sm:$0xff] %v5539_v17  ;;  %8707 = vst [vmem:[#allocation190_spill] sm:$0xff] %v5566_v21 }
 0x28f   : > { %8691 = vst [vmem:[#allocation175_spill] sm:$0xff] %v5516_v9  ;;  %8695 = vst [vmem:[#allocation178_spill] sm:$0xff] %v5529_v29  ;;  %v5531_v9 = vsub.s32 1, %v643_v1  ;;  %vm858_vm0 = vcmp.lt.s32.totalorder %v5527_v5, 51  ;;  %v5548_v41 = vrot.slane %v608_v30, %v5529_v29  ;;  %vm882_vm1 = vcmp.lt.s32.totalorder %v5527_v5, 50 }
 0x290   : > { %v5519_v49 = vpop.permute.xlu1 %2529  ;;  %8701 = vst [vmem:[#allocation184_spill] sm:$0xff] %v5545_v38  ;;  %vm907_vm2 = vcmp.lt.s32.totalorder %v5527_v5, 49  ;;  %vm932_vm3 = vcmp.lt.s32.totalorder %v5527_v5, 48  ;;  %vm957_vm4 = vcmp.lt.s32.totalorder %v5527_v5, 47  ;;  %v5585_v0 = vrot.slane %v608_v30, %v5545_v38  ;;  %8710 = vst [vmem:[#allocation193_spill] sm:$0xff] %v5590_v14 }
 0x291   : > { %8693 = vst [vmem:[#allocation176_spill] sm:$0xff] %v5519_v49  ;;  %1641 = vrot.lane.b32.xlu1 %v5465_v2, %s4413_s15  ;;  %8696 = vst [vmem:[#allocation179_spill] sm:$0xff] %v5531_v9  ;;  %v609_v49 = vld [vmem:[#allocation9 + $0x8] sm:$0xff]  ;;  %v5555_v32 = vrot.slane %v608_v30, %v5531_v9  ;;  %v2138_v4 = vsel %vm858_vm0, %v4897_v34, %v4904_v36  ;;  %v2139_v6 = vsel %vm858_vm0, %v4904_v36, %v4897_v34 }
 0x292   : > { %1868 = vrot.lane.b32.xlu0 %v5474_v51, %s4414_s21  ;;  %v5525_v28 = vpop.permute.xlu0 %2735  ;;  %v5560_v18 = vrot.slane %v609_v49, %v5531_v9  ;;  %v5571_v37 = vrot.slane %v609_v49, %v5535_v27  ;;  %v5578_v58 = vrot.slane %v609_v49, %v5539_v17  ;;  %v5588_v48 = vrot.slane %v609_v49, %v5545_v38 }
 0x293   : > { %8694 = vst [vmem:[#allocation177_spill] sm:$0xff] %v5525_v28  ;;  %8703 = vst [vmem:[#allocation186_spill] sm:$0xff] %v5555_v32  ;;  %vm982_vm5 = vcmp.lt.s32.totalorder %v5527_v5, 46  ;;  %v5628_v34 = vrot.slane %v609_v49, %v5566_v21  ;;  %vm1007_vm6 = vcmp.lt.s32.totalorder %v5527_v5, 45  ;;  %v5639_v24 = vrot.slane %v609_v49, %v5590_v14 }
 0x294   : > { %v5533_v23 = vpop.permute.xlu1 %1443  ;;  %8705 = vst [vmem:[#allocation188_spill] sm:$0xff] %v5560_v18  ;;  %8708 = vst [vmem:[#allocation191_spill] sm:$0xff] %v5571_v37  ;;  %vm1032_vm7 = vcmp.lt.s32.totalorder %v5527_v5, 35  ;;  %vm1057_vm8 = vcmp.lt.s32.totalorder %v5527_v5, 34  ;;  %vm1082_vm9 = vcmp.lt.s32.totalorder %v5527_v5, 33  ;;  %vm1107_vm10 = vcmp.lt.s32.totalorder %v5527_v5, 32 }
 0x295   : > { %8697 = vst [vmem:[#allocation180_spill] sm:$0xff] %v5533_v23  ;;  %1643 = vrot.lane.b32.xlu1 %v5474_v51, %s4413_s15  ;;  %v5551_v23 = vrot.slane %v609_v49, %v5529_v29  ;;  %v5615_v51 = vrot.slane %v608_v30, %v5566_v21  ;;  %v2140_v21 = vmul.f32 %v2139_v6, %v5548_v41  ;;  %vm1132_vm11 = vcmp.lt.s32.totalorder %v5527_v5, 31 }
 0x296   : > { %2093 = vperm.xlu0 %4067, %v5386_v45   ;;  %v5542_v28 = vpop.permute.xlu0 %2776  ;;  %v2185_v6 = vsel %vm932_vm3, %v4954_v53, %v4961_v56  ;;  %vm8328_vm12 = vcmp.lt.s32.totalorder %v5527_v5, 30  ;;  %vm8333_vm13 = vcmp.lt.s32.totalorder %v5527_v5, 29  ;;  %vm8335_vm14 = vcmp.lt.s32.totalorder %v5527_v5, 19 }
 0x297   : > { %8700 = vst [vmem:[#allocation183_spill] sm:$0xff] %v5542_v28  ;;  %8702 = vst [vmem:[#allocation185_spill] sm:$0xff] %v5551_v23  ;;  %v5564_v28 = vrot.slane %v608_v30, %v5535_v27  ;;  %vm1232_vm15 = vcmp.lt.s32.totalorder %v5527_v5, 18 }
 0x298   : > { %v5557_v11 = vpop.permute.xlu1 %1511 }
 0x299   : > { %8704 = vst [vmem:[#allocation187_spill] sm:$0xff] %v5557_v11  ;;  %8706 = vst [vmem:[#allocation189_spill] sm:$0xff] %v5564_v28  ;;  %2687 = vrot.lane.b32.xlu1 %v5483_v7, %s4413_s15  ;;  %v5575_v11 = vrot.slane %v608_v30, %v5539_v17  ;;  %v2153_v7 = vsel %vm882_vm1, %v4892_v33, %v4913_v39 }
 0x29a   : > { %4070 = vset.pattern.permute.xlu0 %v8291_v25  ;;  %v5581_v31 = vpop.permute.xlu0 %1741  ;;  %v2154_v25 = vsel %vm882_vm1, %v4913_v39, %v4892_v33  ;;  %v2169_v33 = vsel %vm907_vm2, %v4915_v40, %v4932_v46  ;;  %v2170_v39 = vsel %vm907_vm2, %v4932_v46, %v4915_v40  ;;  %v5643_v40 = vld [vmem:[#allocation9 + $0x18] sm:$0xff]  ;;  %v4416_v46 = vmov 31  }
 0x29b   : > { %8709 = vst [vmem:[#allocation192_spill] sm:$0xff] %v5581_v31  ;;  %2872 = vperm.xlu0 %4070, %v5416_v62   ;;  %v5601_v31 = vsub.s32 7, %v643_v1  ;;  %v2155_v1 = vmul.f32 %v2154_v25, %v5555_v32  ;;  %v2171_v32 = vmul.f32 %v2170_v39, %v5564_v28  ;;  %v2172_v14 = vmul.f32 %v2169_v33, %v5571_v37 }
 0x29c   : > { %v5603_v8 = vpop.permute.xlu1 %2545  ;;  %v5679_v33 = vrot.slane %v5641_v59, %v5531_v9  ;;  %v2202_v37 = vsel %vm957_vm4, %v4980_v63, %v4951_v52  ;;  %v2147_v28 = vmul.f32 %v4856_v20, %v2140_v21  ;;  %v2218_v21 = vsel %vm982_vm5, %v5008_v15, %v5000_v13 }
 0x29d   : > { %8711 = vst [vmem:[#allocation194_spill] sm:$0xff] %v5601_v31  ;;  %8712 = vst [vmem:[#allocation195_spill] sm:$0xff] %v5603_v8  ;;  %2689 = vrot.lane.b32.xlu1 %v5492_v10, %s4413_s15  ;;  %v2156_v8 = vmul.f32 %v2153_v7, %v5560_v18  ;;  %v5648_v25 = vrot.slane %v608_v30, %v5601_v31  ;;  %v5651_v7 = vrot.slane %v609_v49, %v5601_v31  ;;  %s8872_s15 = smov 1  }
 0x29e   : > { %v5631_v36 = vpop.permute.xlu0 %1809  ;;  %v2186_v30 = vsel %vm932_vm3, %v4961_v56, %v4954_v53  ;;  %v5675_v49 = vrot.slane %v5643_v40, %v5529_v29  ;;  %8715 = vst [vmem:[#allocation198_spill] sm:$0xff] %v5679_v33  ;;  %v5683_v53 = vrot.slane %v5643_v40, %v5531_v9  ;;  %v2161_v39 = vmul.f32 %v4864_v22, %v2155_v1 }
 0x29f   : > { %8713 = vst [vmem:[#allocation196_spill] sm:$0xff] %v5631_v36  ;;  %4071 = vset.pattern.permute.xlu0 %v4416_v46  ;;  %v2141_v36 = vmul.f32 %v2138_v4, %v5551_v23  ;;  %v5671_v4 = vrot.slane %v5641_v59, %v5529_v29  ;;  %v2162_v46 = vmul.f32 %v4864_v22, %v2156_v8 }
 0x2a0   : > { %v5653_v18 = vpop.permute.xlu1 %1468  ;;  %1568 = vperm.xlu0 %4071, %v5403_v61   ;;  %8716 = vst [vmem:[#allocation199_spill] sm:$0xff] %v5683_v53  ;;  %v2188_v1 = vmul.f32 %v2185_v6, %v5578_v58  ;;  %v5703_v22 = vrot.slane %v5641_v59, %v5535_v27  ;;  %v2203_v6 = vmul.f32 %v2202_v37, %v5585_v0 }
 0x2a1   : > { %8714 = vst [vmem:[#allocation197_spill] sm:$0xff] %v5653_v18  ;;  %1666 = vrot.lane.b32.xlu1 %v5465_v2, %s4392_s13  ;;  %v2201_v18 = vsel %vm957_vm4, %v4951_v52, %v4980_v63  ;;  %v2148_v23 = vmul.f32 %v4856_v20, %v2141_v36  ;;  %v2177_v52 = vmul.f32 %v4873_v26, %v2171_v32 }
 0x2a2   : > { %v5685_v56 = vpop.permute.xlu0 %2751  ;;  %8718 = vst [vmem:[#allocation201_spill] sm:$0xff] %v5703_v22  ;;  %v2178_v63 = vmul.f32 %v4873_v26, %v2172_v14  ;;  %v2217_v20 = vsel %vm982_vm5, %v5000_v13, %v5008_v15  ;;  %v5725_v26 = vrot.slane %v5643_v40, %v5535_v27  ;;  %v2163_v14 = vadd.f32 %v2161_v39, %v2147_v28 }
 0x2a3   : > { %8717 = vst [vmem:[#allocation200_spill] sm:$0xff] %v5685_v56  ;;  %v2187_v56 = vmul.f32 %v2186_v30, %v5575_v11  ;;  %v2204_v30 = vmul.f32 %v2201_v18, %v5588_v48  ;;  %v2164_v36 = vadd.f32 %v2162_v46, %v2148_v23  ;;  %v2234_v37 = vsel %vm1007_vm6, %v5029_v55, %v4985_v3 }
 0x2a4   : > { %v5705_v8 = vpop.permute.xlu1 %1470  ;;  %2632 = vperm.xlu0 %4071, %v5416_v62   ;;  %8720 = vst [vmem:[#allocation203_spill] sm:$0xff] %v5725_v26  ;;  %v5735_v18 = vrot.slane %v5641_v59, %v5539_v17  ;;  %v2194_v15 = vmul.f32 %v4899_v35, %v2188_v1  ;;  %v2233_v28 = vsel %vm1007_vm6, %v4985_v3, %v5029_v55 }
 0x2a5   : > { %8719 = vst [vmem:[#allocation202_spill] sm:$0xff] %v5705_v8  ;;  %1734 = vperm.xlu1 %4048, %v5403_v61   ;;  %v2193_v13 = vmul.f32 %v4899_v35, %v2187_v56  ;;  %v2219_v8 = vmul.f32 %v2218_v21, %v5615_v51  ;;  %v2179_v39 = vadd.f32 %v2177_v52, %v2163_v14 }
 0x2a6   : > { %v5727_v32 = vpop.permute.xlu0 %2792  ;;  %8722 = vst [vmem:[#allocation205_spill] sm:$0xff] %v5735_v18  ;;  %v2180_v46 = vadd.f32 %v2178_v63, %v2164_v36  ;;  %v5751_v35 = vrot.slane %v5643_v40, %v5539_v17  ;;  %v2209_v56 = vmul.f32 %v4921_v42, %v2203_v6  ;;  %v2210_v3 = vmul.f32 %v4921_v42, %v2204_v30 }
 0x2a7   : > { %8721 = vst [vmem:[#allocation204_spill] sm:$0xff] %v5727_v32  ;;  %v2220_v32 = vmul.f32 %v2217_v20, %v5628_v34  ;;  %v2235_v55 = vmul.f32 %v2234_v37, %v5636_v44  ;;  %v2250_v1 = vsel %vm1032_vm7, %v5056_v12, %v5049_v16  ;;  %v8726_v63 = vmov 40  }
 0x2a8   : > { %v5745_v23 = vpop.permute.xlu1 %2559  ;;  %820 = vperm.xlu0 %4071, %v5364_v50   ;;  %8724 = vst [vmem:[#allocation207_spill] sm:$0xff] %v5751_v35  ;;  %v2236_v21 = vmul.f32 %v2233_v28, %v5639_v24  ;;  %v2249_v6 = vsel %vm1032_vm7, %v5049_v16, %v5056_v12  ;;  %v5773_v42 = vrot.slane %v5641_v59, %v5545_v38 }
 0x2a9   : > { %8723 = vst [vmem:[#allocation206_spill] sm:$0xff] %v5745_v23  ;;  %2705 = vrot.lane.b32.xlu1 %v5492_v10, %s4392_s13  ;;  %v5777_v30 = vrot.slane %v5643_v40, %v5545_v38  ;;  %v2195_v20 = vadd.f32 %v2193_v13, %v2179_v39  ;;  %v2196_v14 = vadd.f32 %v2194_v15, %v2180_v46  ;;  %v8738_v23 = vld [vmem:[#allocation193_spill] sm:$0xff]  ;;  %s4419_s13 = smov 93  }
 0x2aa   : > { %v5762_v52 = vpop.permute.xlu0 %1766  ;;  %4051 = vset.pattern.permute.xlu1 %v8726_v63  ;;  %8727 = vst [vmem:[#allocation209_spill] sm:$0xff] %v5773_v42  ;;  %v2225_v36 = vmul.f32 %v4935_v47, %v2219_v8  ;;  %v2266_v37 = vsel %vm1057_vm8, %v5080_v57, %v5021_v19  ;;  %v2226_v16 = vmul.f32 %v4935_v47, %v2220_v32 }
 0x2ab   : > { %8725 = vst [vmem:[#allocation208_spill] sm:$0xff] %v5762_v52  ;;  %8728 = vst [vmem:[#allocation210_spill] sm:$0xff] %v5777_v30  ;;  %v2251_v28 = vmul.f32 %v2250_v1, %v5648_v25  ;;  %v2265_v13 = vsel %vm1057_vm8, %v5021_v19, %v5080_v57  ;;  %v2211_v8 = vadd.f32 %v2209_v56, %v2195_v20  ;;  %v8737_v52 = vld [vmem:[#allocation44_spill] sm:$0xff] }
 0x2ac   : > { %v5784_v12 = vpop.permute.xlu1 %2561  ;;  %2109 = vperm.xlu0 %4071, %v5386_v45   ;;  %v2212_v15 = vadd.f32 %v2210_v3, %v2196_v14  ;;  %v2241_v39 = vmul.f32 %v4958_v54, %v2235_v55  ;;  %v2252_v46 = vmul.f32 %v2249_v6, %v5651_v7  ;;  %v2242_v32 = vmul.f32 %v4958_v54, %v2236_v21  ;;  %v8731_v55 = vld [vmem:[#allocation190_spill] sm:$0xff]  ;;  %v8733_v14 = vld [vmem:[#allocation40_spill] sm:$0xff] }
 0x2ad   : > { %8729 = vst [vmem:[#allocation211_spill] sm:$0xff] %v5784_v12  ;;  %1691 = vrot.lane.b32.xlu1 %v5465_v2, %s4417_s16  ;;  %v2267_v1 = vmul.f32 %v2266_v37, %v5671_v4  ;;  %v2281_v57 = vsel %vm1082_vm9, %v5100_v43, %v5109_v60  ;;  %v2282_v19 = vsel %vm1082_vm9, %v5109_v60, %v5100_v43  ;;  %v4418_v6 = vmov 47   ;;  %v8735_v43 = vld [vmem:[#allocation73_spill] sm:$0xff] }
 0x2ae   : > { %v5798_v47 = vpop.permute.xlu0 %1834  ;;  %v2227_v56 = vadd.f32 %v2225_v36, %v2211_v8  ;;  %v2268_v3 = vmul.f32 %v2265_v13, %v5675_v49  ;;  %v5813_v63 = vrot.slane %v5641_v59, %v8731_v55  ;;  %v5817_v54 = vrot.slane %v5643_v40, %v8731_v55  ;;  %v8736_v36 = vld [vmem:[#allocation163_spill] sm:$0xff] }
 0x2af   : > { %8730 = vst [vmem:[#allocation212_spill] sm:$0xff] %v5798_v47  ;;  %v2228_v20 = vadd.f32 %v2226_v16, %v2212_v15  ;;  %v2257_v37 = vmul.f32 %v8733_v14, %v2251_v28  ;;  %v8734_v47 = vld [vmem:[#allocation57_spill] sm:$0xff]  ;;  %v2258_v13 = vmul.f32 %v8733_v14, %v2252_v46  ;;  %v2283_v8 = vmul.f32 %v2282_v19, %v5679_v33 }
 0x2b0   : > { %v5819_v21 = vpop.permute.xlu1 %1493  ;;  %4072 = vset.pattern.permute.xlu0 %v4418_v6  ;;  %v2298_v60 = vsel %vm1107_vm10, %v8735_v43, %v8734_v47  ;;  %v2284_v16 = vmul.f32 %v2281_v57, %v5683_v53  ;;  %v2297_v28 = vsel %vm1107_vm10, %v8734_v47, %v8735_v43  ;;  %v2243_v15 = vadd.f32 %v2241_v39, %v2227_v56  ;;  %v8741_v14 = vld [vmem:[#allocation81_spill] sm:$0xff]  ;;  %v8742_v53 = vld [vmem:[#allocation79_spill] sm:$0xff] }
 0x2b1   : > { %8732 = vst [vmem:[#allocation213_spill] sm:$0xff] %v5819_v21  ;;  %1693 = vrot.lane.b32.xlu1 %v8736_v36, %s4417_s16  ;;  %1959 = vperm.xlu0 %4072, %v5403_v61   ;;  %v2244_v6 = vadd.f32 %v2242_v32, %v2228_v20  ;;  %v2273_v21 = vmul.f32 %v8737_v52, %v2267_v1  ;;  %v8746_v43 = vld [vmem:[#allocation47_spill] sm:$0xff] }
 0x2b2   : > { %v5841_v12 = vrot.slane %v5641_v59, %v8738_v23  ;;  %v2274_v19 = vmul.f32 %v8737_v52, %v2268_v3  ;;  %v2299_v57 = vmul.f32 %v2298_v60, %v5703_v22  ;;  %v2313_v39 = vsel %vm1132_vm11, %v8742_v53, %v8741_v14  ;;  %v8745_v3 = vld [vmem:[#allocation166_spill] sm:$0xff] }
 0x2b3   : > { %v5843_v46 = vpop.permute.xlu0 %1410  ;;  %v2314_v47 = vsel %vm1132_vm11, %v8741_v14, %v8742_v53  ;;  %v2300_v1 = vmul.f32 %v2297_v28, %v5725_v26  ;;  %v5860_v56 = vrot.slane %v5643_v40, %v8738_v23  ;;  %v5865_v52 = vrot.slane %v5641_v59, %v5601_v31  ;;  %v8748_v26 = vld [vmem:[#allocation66_spill] sm:$0xff] }
 0x2b4   : > { %8739 = vst [vmem:[#allocation40_spill] sm:$0xff] %v5841_v12  ;;  %8740 = vst [vmem:[#allocation57_spill] sm:$0xff] %v5843_v46  ;;  %v5855_v32 = vpop.permute.xlu1 %1552  ;;  %v2259_v53 = vadd.f32 %v2257_v37, %v2243_v15  ;;  %v2260_v20 = vadd.f32 %v2258_v13, %v2244_v6  ;;  %v2289_v60 = vmul.f32 %v8746_v43, %v2283_v8  ;;  %v8747_v46 = vld [vmem:[#allocation87_spill] sm:$0xff]  ;;  %v5882_v37 = vld [vmem:[#allocation9 + $0x20] sm:$0xff] }
 0x2b5   : > { %8743 = vst [vmem:[#allocation73_spill] sm:$0xff] %v5855_v32  ;;  %8744 = vst [vmem:[#allocation163_spill] sm:$0xff] %v5860_v56  ;;  %2719 = vrot.lane.b32.xlu1 %v8745_v3, %s4417_s16  ;;  %2888 = vperm.xlu0 %4072, %v5416_v62   ;;  %v2290_v28 = vmul.f32 %v8746_v43, %v2284_v16  ;;  %v2315_v14 = vmul.f32 %v2314_v47, %v5735_v18  ;;  %v5884_v13 = vld [vmem:[#allocation9 + $0x28] sm:$0xff]  ;;  %v8749_v6 = vld [vmem:[#allocation51_spill] sm:$0xff] }
 0x2b6   : > { %v2316_v32 = vmul.f32 %v2313_v39, %v5751_v35  ;;  %v2329_v59 = vsel %vm8328_vm12, %v8748_v26, %v8747_v46  ;;  %v2330_v22 = vsel %vm8328_vm12, %v8747_v46, %v8748_v26  ;;  %v2275_v16 = vadd.f32 %v2273_v21, %v2259_v53  ;;  %v8751_v18 = vld [vmem:[#allocation94_spill] sm:$0xff]  ;;  %v8752_v26 = vld [vmem:[#allocation92_spill] sm:$0xff] }
 0x2b7   : > { %v5886_v8 = vpop.permute.xlu0 %2510  ;;  %v2276_v15 = vadd.f32 %v2274_v19, %v2260_v20  ;;  %v2305_v39 = vmul.f32 %v8749_v6, %v2299_v57  ;;  %v5891_v47 = vrot.slane %v5643_v40, %v5601_v31  ;;  %v2306_v35 = vmul.f32 %v8749_v6, %v2300_v1  ;;  %v8756_v6 = vld [vmem:[#allocation55_spill] sm:$0xff] }
 0x2b8   : > { %v5893_v43 = vpop.permute.xlu1 %2577  ;;  %v2345_v46 = vsel %vm8333_vm13, %v8752_v26, %v8751_v18  ;;  %v2346_v21 = vsel %vm8333_vm13, %v8751_v18, %v8752_v26  ;;  %vm8341_vm12 = vcmp.lt.s32.totalorder %v5527_v5, 17  ;;  %v8753_v40 = vmov 32  }
 0x2b9   : > { %8750 = vst [vmem:[#allocation44_spill] sm:$0xff] %v5893_v43  ;;  %2721 = vrot.lane.b32.xlu1 %v5492_v10, %s4417_s16  ;;  %4073 = vset.pattern.permute.xlu0 %v8753_v40  ;;  %v2331_v19 = vmul.f32 %v2330_v22, %v5773_v42  ;;  %v2332_v57 = vmul.f32 %v2329_v59, %v5777_v30  ;;  %v8758_v30 = vld [vmem:[#allocation100_spill] sm:$0xff]  ;;  %v8759_v42 = vld [vmem:[#allocation74_spill] sm:$0xff]  ;;  %vm8347_vm13 = vcmp.lt.s32.totalorder %v5527_v5, 16  ;;  %s4422_s16 = smov 82  }
 0x2ba   : > { %v5912_v1 = vrot.slane %v5882_v37, %v5529_v29  ;;  %v5916_v53 = vrot.slane %v5884_v13, %v5529_v29  ;;  %2648 = vperm.xlu0 %4073, %v5416_v62   ;;  %v2291_v18 = vadd.f32 %v2289_v60, %v2275_v16  ;;  %v2292_v20 = vadd.f32 %v2290_v28, %v2276_v15  ;;  %v8762_v15 = vld [vmem:[#allocation59_spill] sm:$0xff] }
 0x2bb   : > { %v2321_v26 = vmul.f32 %v8756_v6, %v2315_v14  ;;  %v2322_v40 = vmul.f32 %v8756_v6, %v2316_v32  ;;  %v5921_v43 = vpop.permute.xlu0 %2769  ;;  %v2347_v22 = vmul.f32 %v2346_v21, %v5813_v63  ;;  %v2348_v59 = vmul.f32 %v2345_v46, %v5817_v54  ;;  %v8763_v6 = vld [vmem:[#allocation108_spill] sm:$0xff] }
 0x2bc   : > { %8754 = vst [vmem:[#allocation81_spill] sm:$0xff] %v5912_v1  ;;  %8755 = vst [vmem:[#allocation79_spill] sm:$0xff] %v5916_v53  ;;  %v2361_v33 = vsel %vm8335_vm14, %v8759_v42, %v8758_v30  ;;  %v2362_v60 = vsel %vm8335_vm14, %v8758_v30, %v8759_v42  ;;  %v5933_v28 = vpop.permute.xlu1 %1518  ;;  %v2307_v14 = vadd.f32 %v2305_v39, %v2291_v18  ;;  %vm688_vm14 = vcmp.lt.s32.totalorder %v5527_v5, 15 }
 0x2bd   : > { %8757 = vst [vmem:[#allocation166_spill] sm:$0xff] %v5921_v43  ;;  %8760 = vst [vmem:[#allocation47_spill] sm:$0xff] %v5933_v28  ;;  %v2308_v32 = vadd.f32 %v2306_v35, %v2292_v20  ;;  %v5938_v16 = vrot.slane %v5882_v37, %v5531_v9  ;;  %1716 = vrot.lane.b32.xlu1 %v5465_v2, %s4396_s14  ;;  %v2337_v46 = vmul.f32 %v8762_v15, %v2331_v19  ;;  %v8764_v43 = vld [vmem:[#allocation106_spill] sm:$0xff] }
 0x2be   : > { %v2338_v21 = vmul.f32 %v8762_v15, %v2332_v57  ;;  %v2377_v42 = vsel %vm1232_vm15, %v8764_v43, %v8763_v6  ;;  %v2378_v35 = vsel %vm1232_vm15, %v8763_v6, %v8764_v43  ;;  %845 = vperm.xlu0 %4073, %v5364_v50   ;;  %v2363_v30 = vmul.f32 %v2362_v60, %v5841_v12  ;;  %v8767_v15 = vld [vmem:[#allocation62_spill] sm:$0xff]  ;;  %v8770_v12 = vld [vmem:[#allocation84_spill] sm:$0xff] }
 0x2bf   : > { %8761 = vst [vmem:[#allocation87_spill] sm:$0xff] %v5938_v16  ;;  %v2364_v39 = vmul.f32 %v2361_v33, %v5860_v56  ;;  %v5957_v19 = vrot.slane %v5884_v13, %v5531_v9  ;;  %v5960_v57 = vpop.permute.xlu0 %633  ;;  %v2323_v18 = vadd.f32 %v2321_v26, %v2307_v14  ;;  %v2324_v20 = vadd.f32 %v2322_v40, %v2308_v32  ;;  %v8769_v56 = vld [vmem:[#allocation114_spill] sm:$0xff]  ;;  %v8773_v32 = vld [vmem:[#allocation67_spill] sm:$0xff] }
 0x2c0   : > { %8766 = vst [vmem:[#allocation51_spill] sm:$0xff] %v5960_v57  ;;  %v2353_v28 = vmul.f32 %v8767_v15, %v2347_v22  ;;  %v2354_v43 = vmul.f32 %v8767_v15, %v2348_v59  ;;  %v5964_v6 = vpop.permute.xlu1 %1520  ;;  %v2379_v60 = vmul.f32 %v2378_v35, %v5865_v52  ;;  %v2380_v33 = vmul.f32 %v2377_v42, %v5891_v47  ;;  %v8774_v15 = vld [vmem:[#allocation122_spill] sm:$0xff] }
 0x2c1   : > { %8765 = vst [vmem:[#allocation66_spill] sm:$0xff] %v5957_v19  ;;  %8768 = vst [vmem:[#allocation94_spill] sm:$0xff] %v5964_v6  ;;  %v2393_v9 = vsel %vm8341_vm12, %v8770_v12, %v8769_v56  ;;  %v2394_v26 = vsel %vm8341_vm12, %v8769_v56, %v8770_v12  ;;  %1784 = vperm.xlu1 %4051, %v5403_v61   ;;  %v2339_v40 = vadd.f32 %v2337_v46, %v2323_v18  ;;  %v8775_v12 = vld [vmem:[#allocation120_spill] sm:$0xff]  ;;  %v8778_v57 = vld [vmem:[#allocation70_spill] sm:$0xff] }
 0x2c2   : > { %v2340_v22 = vadd.f32 %v2338_v21, %v2324_v20  ;;  %v5979_v59 = vrot.slane %v5882_v37, %v5535_v27  ;;  %v5983_v14 = vrot.slane %v5884_v13, %v5535_v27  ;;  %2125 = vperm.xlu0 %4073, %v5386_v45   ;;  %v2369_v42 = vmul.f32 %v8773_v32, %v2363_v30 }
 0x2c3   : > { %v2370_v35 = vmul.f32 %v8773_v32, %v2364_v39  ;;  %v2409_v61 = vsel %vm8347_vm13, %v8775_v12, %v8774_v15  ;;  %v2410_v56 = vsel %vm8347_vm13, %v8774_v15, %v8775_v12  ;;  %v5996_v46 = vpop.permute.xlu0 %659  ;;  %v2395_v21 = vmul.f32 %v2394_v26, %v5912_v1  ;;  %v8779_v12 = vld [vmem:[#allocation128_spill] sm:$0xff] }
 0x2c4   : > { %8771 = vst [vmem:[#allocation92_spill] sm:$0xff] %v5979_v59  ;;  %8772 = vst [vmem:[#allocation55_spill] sm:$0xff] %v5983_v14  ;;  %v2396_v18 = vmul.f32 %v2393_v9, %v5916_v53  ;;  %vm8359_vm12 = vcmp.lt.s32.totalorder %v5527_v5, 14  ;;  %v6003_v30 = vrot.slane %v5882_v37, %v5539_v17  ;;  %v6005_v39 = vpop.permute.xlu1 %2591  ;;  %v2355_v20 = vadd.f32 %v2353_v28, %v2339_v40 }
 0x2c5   : > { %8776 = vst [vmem:[#allocation100_spill] sm:$0xff] %v5996_v46  ;;  %8777 = vst [vmem:[#allocation74_spill] sm:$0xff] %v6005_v39  ;;  %v2356_v32 = vadd.f32 %v2354_v43, %v2340_v22  ;;  %v2385_v6 = vmul.f32 %v8778_v57, %v2379_v60  ;;  %v2386_v15 = vmul.f32 %v8778_v57, %v2380_v33  ;;  %2737 = vrot.lane.b32.xlu1 %v5492_v10, %s4396_s14  ;;  %v8780_v46 = vld [vmem:[#allocation95_spill] sm:$0xff]  ;;  %v8781_v43 = vmov 16   ;;  %v8784_v22 = vld [vmem:[#allocation76_spill] sm:$0xff]  ;;  %s8854_s14 = smov 15  }
 0x2c6   : > { %v2411_v26 = vmul.f32 %v2410_v56, %v5938_v16  ;;  %v2412_v9 = vmul.f32 %v2409_v61, %v5957_v19  ;;  %v2425_v27 = vsel %vm688_vm14, %v8780_v46, %v8779_v12  ;;  %v2426_v28 = vsel %vm688_vm14, %v8779_v12, %v8780_v46  ;;  %4053 = vset.pattern.permute.xlu1 %v8781_v43  ;;  %v8785_v39 = vld [vmem:[#allocation136_spill] sm:$0xff]  ;;  %v8786_v19 = vld [vmem:[#allocation134_spill] sm:$0xff] }
 0x2c7   : > { %v2371_v57 = vadd.f32 %v2369_v42, %v2355_v20  ;;  %v2372_v60 = vadd.f32 %v2370_v35, %v2356_v32  ;;  %v6024_v33 = vrot.slane %v5884_v13, %v5539_v17  ;;  %vm8361_vm13 = vcmp.lt.s32.totalorder %v5527_v5, 13  ;;  %v6027_v40 = vpop.permute.xlu0 %727  ;;  %v8791_v17 = vld [vmem:[#allocation105_spill] sm:$0xff] }
 0x2c8   : > { %8783 = vst [vmem:[#allocation108_spill] sm:$0xff] %v6027_v40  ;;  %v2401_v61 = vmul.f32 %v8784_v22, %v2395_v21  ;;  %v2402_v56 = vmul.f32 %v8784_v22, %v2396_v18  ;;  %v2441_v46 = vsel %vm8359_vm12, %v8786_v19, %v8785_v39  ;;  %v2442_v42 = vsel %vm8359_vm12, %v8785_v39, %v8786_v19  ;;  %v6039_v35 = vpop.permute.xlu1 %2593  ;;  %v8789_v40 = vld [vmem:[#allocation80_spill] sm:$0xff] }
 0x2c9   : > { %8782 = vst [vmem:[#allocation59_spill] sm:$0xff] %v6024_v33  ;;  %8787 = vst [vmem:[#allocation106_spill] sm:$0xff] %v6039_v35  ;;  %v2427_v20 = vmul.f32 %v2426_v28, %v5979_v59  ;;  %v2428_v32 = vmul.f32 %v2425_v27, %v5983_v14  ;;  %v6045_v21 = vrot.slane %v5882_v37, %v5545_v38  ;;  %654 = vperm.xlu1 %4053, %v5364_v50   ;;  %v8790_v35 = vld [vmem:[#allocation143_spill] sm:$0xff] }
 0x2ca   : > { %v6049_v18 = vrot.slane %v5884_v13, %v5545_v38  ;;  %v2387_v12 = vadd.f32 %v2385_v6, %v2371_v57  ;;  %v2388_v22 = vadd.f32 %v2386_v15, %v2372_v60  ;;  %v2417_v19 = vmul.f32 %v8789_v40, %v2411_v26  ;;  %v8794_v60 = vld [vmem:[#allocation86_spill] sm:$0xff] }
 0x2cb   : > { %v2418_v39 = vmul.f32 %v8789_v40, %v2412_v9  ;;  %v2443_v28 = vmul.f32 %v2442_v42, %v6003_v30  ;;  %v2444_v27 = vmul.f32 %v2441_v46, %v6024_v33  ;;  %v2457_v14 = vsel %vm8361_vm13, %v8791_v17, %v8790_v35  ;;  %v6064_v6 = vpop.permute.xlu0 %2010  ;;  %v8795_v42 = vld [vmem:[#allocation150_spill] sm:$0xff]  ;;  %v8796_v33 = vld [vmem:[#allocation148_spill] sm:$0xff] }
 0x2cc   : > { %8788 = vst [vmem:[#allocation62_spill] sm:$0xff] %v6049_v18  ;;  %v2458_v38 = vsel %vm8361_vm13, %v8790_v35, %v8791_v17  ;;  %8792 = vst [vmem:[#allocation114_spill] sm:$0xff] %v6064_v6  ;;  %v2403_v15 = vadd.f32 %v2401_v61, %v2387_v12  ;;  %v2404_v26 = vadd.f32 %v2402_v56, %v2388_v22  ;;  %vm8366_vm12 = vcmp.lt.s32.totalorder %v5527_v5, 3  ;;  %v6071_v57 = vpop.permute.xlu1 %1543 }
 0x2cd   : > { %v6069_v9 = vrot.slane %v5882_v37, %v8731_v55  ;;  %8793 = vst [vmem:[#allocation84_spill] sm:$0xff] %v6071_v57  ;;  %v2433_v40 = vmul.f32 %v8794_v60, %v2427_v20  ;;  %v2434_v46 = vmul.f32 %v8794_v60, %v2428_v32  ;;  %v2473_v17 = vsel %vm8366_vm12, %v8796_v33, %v8795_v42  ;;  %v8798_v60 = vld [vmem:[#allocation91_spill] sm:$0xff]  ;;  %v8800_v57 = vld [vmem:[#allocation156_spill] sm:$0xff] }
 0x2ce   : > { %v2474_v61 = vsel %vm8366_vm12, %v8795_v42, %v8796_v33  ;;  %v8797_v56 = vmov 17   ;;  %v2459_v35 = vmul.f32 %v2458_v38, %v6045_v21  ;;  %v2460_v12 = vmul.f32 %v2457_v14, %v6049_v18  ;;  %v8801_v18 = vld [vmem:[#allocation111_spill] sm:$0xff] }
 0x2cf   : > { %4054 = vset.pattern.permute.xlu1 %v8797_v56  ;;  %v6088_v20 = vrot.slane %v5884_v13, %v8731_v55  ;;  %vm8372_vm13 = vcmp.lt.s32.totalorder %v5527_v5, 2  ;;  %v2419_v32 = vadd.f32 %v2417_v19, %v2403_v15  ;;  %v2420_v22 = vadd.f32 %v2418_v39, %v2404_v26  ;;  %v6094_v42 = vpop.permute.xlu0 %2051 }
 0x2d0   : > { %677 = vperm.xlu1 %4054, %v5364_v50   ;;  %v2449_v6 = vmul.f32 %v8798_v60, %v2443_v28  ;;  %v2450_v33 = vmul.f32 %v8798_v60, %v2444_v27  ;;  %8799 = vst [vmem:[#allocation67_spill] sm:$0xff] %v6094_v42  ;;  %v2475_v38 = vmul.f32 %v2474_v61, %v6069_v9  ;;  %v6106_v39 = vpop.permute.xlu1 %1584  ;;  %vm8369_vm12 = vcmp.lt.s32.totalorder %v5527_v5, 1 }
 0x2d1   : > { %v2476_v14 = vmul.f32 %v2473_v17, %v6088_v20  ;;  %v2489_v55 = vsel %vm8372_vm13, %v8801_v18, %v8800_v57  ;;  %v2490_v19 = vsel %vm8372_vm13, %v8800_v57, %v8801_v18  ;;  %8802 = vst [vmem:[#allocation122_spill] sm:$0xff] %v6106_v39  ;;  %v2435_v28 = vadd.f32 %v2433_v40, %v2419_v32  ;;  %v8803_v17 = vld [vmem:[#allocation97_spill] sm:$0xff]  ;;  %v8806_v39 = vld [vmem:[#allocation162_spill] sm:$0xff] }
 0x2d2   : > { %v2436_v27 = vadd.f32 %v2434_v46, %v2420_v22  ;;  %v6110_v15 = vrot.slane %v5882_v37, %v8738_v23  ;;  %v6114_v26 = vrot.slane %v5884_v13, %v8738_v23  ;;  %v2465_v61 = vmul.f32 %v8803_v17, %v2459_v35  ;;  %v8804_v32 = vld [vmem:[#allocation101_spill] sm:$0xff] }
 0x2d3   : > { %v2466_v60 = vmul.f32 %v8803_v17, %v2460_v12  ;;  %v2451_v18 = vadd.f32 %v2449_v6, %v2435_v28  ;;  %v2481_v22 = vmul.f32 %v8804_v32, %v2475_v38  ;;  %v2482_v42 = vmul.f32 %v8804_v32, %v2476_v14  ;;  %v8805_v35 = vld [vmem:[#allocation165_spill] sm:$0xff] }
 0x2d4   : > { %1743 = vrot.lane.b32.xlu1 %v8736_v36, %s4398_s29  ;;  %v2452_v57 = vadd.f32 %v2450_v33, %v2436_v27  ;;  %v2491_v40 = vmul.f32 %v2490_v19, %v6110_v15  ;;  %v2492_v46 = vmul.f32 %v2489_v55, %v6114_v26  ;;  %v2505_v12 = vsel %vm8369_vm12, %v8806_v39, %v8805_v35  ;;  %v6134_v33 = vpop.permute.xlu1 %2609  ;;  %v6136_v19 = vpop.permute.xlu0 %1859  ;;  %v6138_v55 = vld [vmem:[#allocation9 + $0x30] sm:$0xff] }
 0x2d5   : > { %4056 = vset.pattern.permute.xlu1 %v8781_v43  ;;  %v2506_v6 = vsel %vm8369_vm12, %v8805_v35, %v8806_v39  ;;  %8807 = vst [vmem:[#allocation120_spill] sm:$0xff] %v6134_v33  ;;  %8808 = vst [vmem:[#allocation70_spill] sm:$0xff] %v6136_v19  ;;  %v6140_v43 = vld [vmem:[#allocation9 + $0x38] sm:$0xff]  ;;  %v6144_v38 = vrot.slane %v5882_v37, %v5601_v31  ;;  %v6148_v14 = vrot.slane %v5884_v13, %v5601_v31  ;;  %v8815_v33 = vld [vmem:[#allocation170_spill] sm:$0xff] }
 0x2d6   : > { %v2467_v28 = vadd.f32 %v2465_v61, %v2451_v18  ;;  %v2468_v27 = vadd.f32 %v2466_v60, %v2452_v57  ;;  %vm8376_vm12 = vcmp.lt.s32.totalorder %v5527_v5, 127  ;;  %v8811_v39 = vld [vmem:[#allocation107_spill] sm:$0xff]  ;;  %v6158_v37 = vrot.slane %v6138_v55, %v5529_v29 }
 0x2d7   : > { %8809 = vst [vmem:[#allocation128_spill] sm:$0xff] %v6144_v38  ;;  %8810 = vst [vmem:[#allocation95_spill] sm:$0xff] %v6148_v14  ;;  %v2497_v17 = vmul.f32 %v8811_v39, %v2491_v40  ;;  %v2498_v32 = vmul.f32 %v8811_v39, %v2492_v46  ;;  %v2507_v35 = vmul.f32 %v2506_v6, %v6144_v38  ;;  %v8814_v40 = vld [vmem:[#allocation172_spill] sm:$0xff]  ;;  %vm806_vm13 = vcmp.lt.s32.totalorder %v5527_v5, 112 }
 0x2d8   : > { %2005 = vperm.xlu1 %4056, %v5386_v45   ;;  %v2508_v19 = vmul.f32 %v2505_v12, %v6148_v14  ;;  %v6162_v13 = vrot.slane %v6140_v43, %v5529_v29  ;;  %v2483_v61 = vadd.f32 %v2481_v22, %v2467_v28  ;;  %v2484_v60 = vadd.f32 %v2482_v42, %v2468_v27  ;;  %v1560_v18 = vpop.permute.xlu1 %1559  ;;  %v6164_v57 = vpop.permute.xlu0 %2824  ;;  %v8889_v14 = vld [vmem:[#allocation39_spill] sm:$0xff] }
 0x2d9   : > { %8813 = vst [vmem:[#allocation136_spill] sm:$0xff] %v6164_v57  ;;  %v6170_v46 = vsel %vm8376_vm12, %v8815_v33, %v8814_v40  ;;  %v6176_v12 = vsel %vm8376_vm12, %v8814_v40, %v8815_v33  ;;  %v2513_v6 = vmul.f32 %v5886_v8, %v2507_v35  ;;  %v2517_v42 = vmul.f32 %v8745_v3, %v6158_v37 }
 0x2da   : > { %8812 = vst [vmem:[#allocation76_spill] sm:$0xff] %v6162_v13  ;;  %8816 = vst [vmem:[#allocation134_spill] sm:$0xff] %v6170_v46  ;;  %v2514_v22 = vmul.f32 %v5886_v8, %v2508_v19  ;;  %v2518_v28 = vmul.f32 %v5492_v10, %v6162_v13  ;;  %v2499_v27 = vadd.f32 %v2497_v17, %v2483_v61 }
 0x2db   : > { %8817 = vst [vmem:[#allocation80_spill] sm:$0xff] %v6176_v12  ;;  %v2500_v39 = vadd.f32 %v2498_v32, %v2484_v60  ;;  %v3187_v33 = vadd.f32 %v5465_v2, %v6170_v46  ;;  %v3188_v8 = vadd.f32 %v8736_v36, %v6176_v12  ;;  %v8823_v12 = vld [vmem:[#allocation176_spill] sm:$0xff] }
 0x2dc   : > { %4057 = vset.pattern.permute.xlu1 %v8797_v56  ;;  %v1562_v19 = vpop.permute.xlu1 %1561  ;;  %v2515_v56 = vadd.f32 %v2513_v6, %v2499_v27 }
 0x2dd   : > { %2019 = vperm.xlu1 %4057, %v5386_v45   ;;  %v2516_v35 = vadd.f32 %v2514_v22, %v2500_v39  ;;  %v6193_v40 = vsel %vm806_vm13, %v1560_v18, %v1562_v19  ;;  %v6197_v57 = vsel %vm806_vm13, %v1562_v19, %v1560_v18  ;;  %v2521_v17 = vpop.permute.xlu0 %2520  ;;  %v8822_v39 = vmov 18   ;;  %v8824_v18 = vld [vmem:[#allocation174_spill] sm:$0xff] }
 0x2de   : > { %8818 = vst [vmem:[#allocation143_spill] sm:$0xff] %v6193_v40  ;;  %8819 = vst [vmem:[#allocation105_spill] sm:$0xff] %v6197_v57  ;;  %v3191_v32 = vadd.f32 %v3187_v33, %v6193_v40  ;;  %v3192_v61 = vadd.f32 %v3188_v8, %v6197_v57  ;;  %v2523_v60 = vmul.f32 %v2521_v17, %v2517_v42  ;;  %v8836_v57 = vld [vmem:[#allocation144_spill] sm:$0xff]  ;;  %v8876_v40 = vld [vmem:[#allocation186_spill] sm:$0xff] }
 0x2df   : > { %v2524_v46 = vmul.f32 %v2521_v17, %v2518_v28  ;;  %v6212_v19 = vsel %vm8376_vm12, %v8824_v18, %v8823_v12  ;;  %v6218_v42 = vsel %vm8376_vm12, %v8823_v12, %v8824_v18  ;;  %vm831_vm12 = vcmp.lt.s32.totalorder %v5527_v5, 111  ;;  %v8829_v17 = vld [vmem:[#allocation142_spill] sm:$0xff] }
 0x2e0   : > { %v6203_v6 = vadd.f32 %v2523_v60, %v2515_v56  ;;  %v2624_v27 = vpop.permute.xlu1 %2623  ;;  %8825 = vst [vmem:[#allocation148_spill] sm:$0xff] %v6212_v19  ;;  %8826 = vst [vmem:[#allocation91_spill] sm:$0xff] %v6218_v42  ;;  %v3274_v28 = vadd.f32 %v5492_v10, %v6218_v42 }
 0x2e1   : > { %2753 = vrot.lane.b32.xlu1 %v5492_v10, %s4398_s29  ;;  %v6205_v22 = vadd.f32 %v2524_v46, %v2516_v35  ;;  %v3273_v46 = vadd.f32 %v8745_v3, %v6212_v19  ;;  %v8888_v19 = vld [vmem:[#allocation36_spill] sm:$0xff]  ;;  %s9244_s29 = sld [smem:[#allocation241_spill]] }
 0x2e2   : > { %8820 = vst [vmem:[#allocation86_spill] sm:$0xff] %v6203_v6  ;;  %4058 = vset.pattern.permute.xlu1 %v8822_v39 }
 0x2e3   : > { %8821 = vst [vmem:[#allocation150_spill] sm:$0xff] %v6205_v22 }
 0x2e4   : > { %v2626_v33 = vpop.permute.xlu1 %2625 }
 0x2e5   : > { %702 = vperm.xlu1 %4058, %v5364_v50   ;;  %v6227_v8 = vsel %vm806_vm13, %v2624_v27, %v2626_v33  ;;  %v6231_v56 = vsel %vm806_vm13, %v2626_v33, %v2624_v27  ;;  %v8835_v33 = vmov 42  }
 0x2e6   : > { %8827 = vst [vmem:[#allocation156_spill] sm:$0xff] %v6227_v8  ;;  %8828 = vst [vmem:[#allocation111_spill] sm:$0xff] %v6231_v56  ;;  %v3277_v12 = vadd.f32 %v3273_v46, %v6227_v8  ;;  %v3278_v35 = vadd.f32 %v3274_v28, %v6231_v56 }
 0x2e8   : > { %v1576_v50 = vpop.permute.xlu1 %1575 }
 0x2e9   : > { %1768 = vrot.lane.b32.xlu1 %v8736_v36, %s4402_s17  ;;  %v6241_v60 = vsel %vm831_vm12, %v1576_v50, %v8829_v17  ;;  %v6246_v27 = vsel %vm831_vm12, %v8829_v17, %v1576_v50  ;;  %v6278_v17 = vld [vmem:[%s4741_s26 + $0x8] sm:$0xff] }
 0x2ea   : > { %8830 = vst [vmem:[#allocation97_spill] sm:$0xff] %v6241_v60  ;;  %8831 = vst [vmem:[#allocation101_spill] sm:$0xff] %v6246_v27  ;;  %v6249_v39 = vadd.f32 %v3191_v32, %v6241_v60  ;;  %v6252_v18 = vadd.f32 %v3192_v61, %v6246_v27  ;;  %v6329_v27 = vpop.permute.xlu0 %745 }
 0x2eb   : > { %8857 = vst [vmem:[#allocation224_spill] sm:$0xff] %v6329_v27  ;;  %v8869_v27 = vld [vmem:[#allocation30_spill] sm:$0xff] }
 0x2ec   : > { %8832 = vst [vmem:[#allocation165_spill] sm:$0xff] %v6249_v39  ;;  %8833 = vst [vmem:[#allocation162_spill] sm:$0xff] %v6252_v18  ;;  %v6255_v46 = vpop.permute.xlu1 %1634 }
 0x2ed   : > { %2035 = vperm.xlu1 %4058, %v5386_v45   ;;  %8834 = vst [vmem:[#allocation107_spill] sm:$0xff] %v6255_v46 }
 0x2ee   : > { %v6337_v60 = vpop.permute.xlu0 %2061 }
 0x2ef   : > { %8860 = vst [vmem:[#allocation227_spill] sm:$0xff] %v6337_v60  ;;  %v4114_v60 = vld [vmem:[%s8083_s3 + $0x8] sm:$0xff] }
 0x2f0   : > { %v2642_v28 = vpop.permute.xlu1 %2641 }
 0x2f1   : > { %2767 = vrot.lane.b32.xlu1 %v8745_v3, %s4402_s17  ;;  %v6263_v50 = vsel %vm831_vm12, %v8836_v57, %v2642_v28  ;;  %v6268_v32 = vsel %vm831_vm12, %v2642_v28, %v8836_v57  ;;  %v8843_v57 = vmov 30   ;;  %v8847_v28 = vld [vmem:[#allocation139_spill] sm:$0xff]  ;;  %s4425_s17 = smov 80  }
 0x2f2   : > { %4061 = vset.pattern.permute.xlu1 %v8835_v33  ;;  %8837 = vst [vmem:[#allocation172_spill] sm:$0xff] %v6263_v50  ;;  %8838 = vst [vmem:[#allocation170_spill] sm:$0xff] %v6268_v32  ;;  %v6271_v45 = vadd.f32 %v3277_v12, %v6263_v50  ;;  %v6274_v61 = vadd.f32 %v3278_v35, %v6268_v32  ;;  %v8878_v50 = vld [vmem:[#allocation31_spill] sm:$0xff] }
 0x2f4   : > { %8839 = vst [vmem:[#allocation176_spill] sm:$0xff] %v6271_v45  ;;  %8840 = vst [vmem:[#allocation174_spill] sm:$0xff] %v6274_v61  ;;  %v6280_v33 = vpop.permute.xlu1 %1591  ;;  %v6300_v61 = vld [vmem:[%s4749_s18 + $0x8] sm:$0xff] }
 0x2f5   : > { %2808 = vperm.xlu1 %4061, %v5416_v62   ;;  %8841 = vst [vmem:[#allocation142_spill] sm:$0xff] %v6280_v33  ;;  %8848 = vst [vmem:[#allocation139_spill] sm:$0xff] %v6300_v61  ;;  %v8870_v33 = vld [vmem:[#allocation27_spill] sm:$0xff] }
 0x2f8   : > { %v6284_v18 = vpop.permute.xlu1 %1593 }
 0x2f9   : > { %635 = vrot.lane.b32.xlu1 %v6278_v17, %s4362_s23  ;;  %8842 = vst [vmem:[#allocation144_spill] sm:$0xff] %v6284_v18 }
 0x2fa   : > { %4068 = vset.pattern.permute.xlu1 %v8843_v57 }
 0x2fc   : > { %v6289_v12 = vpop.permute.xlu1 %2655 }
 0x2fd   : > { %661 = vrot.lane.b32.xlu1 %v6278_v17, %s4375_s10  ;;  %8844 = vst [vmem:[#allocation214_spill] sm:$0xff] %v6289_v12  ;;  %v8879_v12 = vld [vmem:[#allocation32_spill] sm:$0xff] }
 0x300   : > { %v6292_v62 = vpop.permute.xlu1 %2657 }
 0x301   : > { %1791 = vrot.lane.b32.xlu1 %v5465_v2, %s4419_s13  ;;  %8845 = vst [vmem:[#allocation215_spill] sm:$0xff] %v6292_v62  ;;  %v908_v62 = vsel %vm907_vm2, %v8879_v12, %v8878_v50 }
 0x304   : > { %v6295_v35 = vpop.permute.xlu1 %1616 }
 0x305   : > { %1793 = vrot.lane.b32.xlu1 %v8736_v36, %s4419_s13  ;;  %8846 = vst [vmem:[#allocation216_spill] sm:$0xff] %v6295_v35 }
 0x308   : > { %v6302_v57 = vpop.permute.xlu1 %1684 }
 0x309   : > { %1995 = vrot.lane.b32.xlu1 %v8847_v28, %s4362_s23  ;;  %8849 = vst [vmem:[#allocation217_spill] sm:$0xff] %v6302_v57  ;;  %v6319_v57 = vld [vmem:[%s4741_s26] sm:$0xff] }
 0x30c   : > { %v6306_v45 = vpop.permute.xlu1 %2673 }
 0x30d   : > { %1997 = vrot.lane.b32.xlu1 %v6300_v61, %s4362_s23  ;;  %8850 = vst [vmem:[#allocation218_spill] sm:$0xff] %v6306_v45  ;;  %s4420_s23 = smov 83   ;;  %v6340_v45 = vld [vmem:[%s4749_s18] sm:$0xff] }
 0x30e   : > { %8861 = vst [vmem:[#allocation228_spill] sm:$0xff] %v6340_v45 }
 0x310   : > { %v6310_v39 = vpop.permute.xlu1 %1641 }
 0x311   : > { %2012 = vrot.lane.b32.xlu1 %v6300_v61, %s4375_s10  ;;  %8851 = vst [vmem:[#allocation219_spill] sm:$0xff] %v6310_v39 }
 0x314   : > { %v6313_v46 = vpop.permute.xlu1 %1643 }
 0x315   : > { %2783 = vrot.lane.b32.xlu1 %v8745_v3, %s4419_s13  ;;  %8852 = vst [vmem:[#allocation220_spill] sm:$0xff] %v6313_v46 }
 0x318   : > { %v6316_v28 = vpop.permute.xlu1 %2687 }
 0x319   : > { %2785 = vrot.lane.b32.xlu1 %v5492_v10, %s4419_s13  ;;  %8853 = vst [vmem:[#allocation221_spill] sm:$0xff] %v6316_v28  ;;  %s4423_s13 = smov 78  }
 0x31c   : > { %v6323_v35 = vpop.permute.xlu1 %2689 }
 0x31d   : > { %684 = vrot.lane.b32.xlu1 %v6319_v57, %s8854_s14  ;;  %8855 = vst [vmem:[#allocation222_spill] sm:$0xff] %v6323_v35 }
 0x320   : > { %v6327_v39 = vpop.permute.xlu1 %1666 }
 0x321   : > { %686 = vrot.lane.b32.xlu1 %v6278_v17, %s8854_s14  ;;  %8856 = vst [vmem:[#allocation223_spill] sm:$0xff] %v6327_v39  ;;  %v4421_v39 = vmov 48  }
 0x322   : > { %4074 = vset.pattern.permute.xlu0 %v4421_v39 }
 0x324   : > { %v6332_v46 = vpop.permute.xlu1 %1734 }
 0x325   : > { %1816 = vrot.lane.b32.xlu1 %v5465_v2, %s4420_s23  ;;  %8858 = vst [vmem:[#allocation225_spill] sm:$0xff] %v6332_v46  ;;  %v6349_v2 = vld [vmem:[%s8082_s2 + $0x8] sm:$0xff] }
 0x326   : > { %1984 = vperm.xlu0 %4074, %v6349_v2  }
 0x328   : > { %v6335_v28 = vpop.permute.xlu1 %2705 }
 0x329   : > { %1818 = vrot.lane.b32.xlu1 %v8736_v36, %s4420_s23  ;;  %8859 = vst [vmem:[#allocation226_spill] sm:$0xff] %v6335_v28  ;;  %v6352_v36 = vpop.permute.xlu0 %1884  ;;  %v8867_v28 = vmov 0  }
 0x32a   : > { %8863 = vst [vmem:[#allocation230_spill] sm:$0xff] %v6352_v36  ;;  %2904 = vperm.xlu0 %4074, %v4114_v60  }
 0x32c   : > { %v6344_v35 = vpop.permute.xlu1 %1691 }
 0x32d   : > { %2026 = vrot.lane.b32.xlu1 %v6340_v45, %s8854_s14  ;;  %8862 = vst [vmem:[#allocation229_spill] sm:$0xff] %v6344_v35  ;;  %v6364_v35 = vpop.permute.xlu0 %2840 }
 0x32e   : > { %8866 = vst [vmem:[#allocation233_spill] sm:$0xff] %v6364_v35  ;;  %4076 = vset.pattern.permute.xlu0 %v8867_v28 }
 0x330   : > { %v6356_v46 = vpop.permute.xlu1 %1693 }
 0x331   : > { %2028 = vrot.lane.b32.xlu1 %v6300_v61, %s8854_s14  ;;  %8864 = vst [vmem:[#allocation231_spill] sm:$0xff] %v6356_v46  ;;  %v883_v46 = vsel %vm882_vm1, %v8870_v33, %v8869_v27  ;;  %v6378_v60 = vpop.permute.xlu0 %1436  ;;  %s4424_s14 = smov 77  }
 0x332   : > { %8871 = vst [vmem:[#allocation30_spill] sm:$0xff] %v6378_v60  ;;  %v8885_v60 = vld [vmem:[#allocation191_spill] sm:$0xff] }
 0x333   : > { %v919_v22 = vmul.f32 %v8885_v60, %v908_v62  ;;  %v959_v62 = vsel %vm957_vm4, %v8888_v19, %v8889_v14  ;;  %v8892_v60 = vld [vmem:[#allocation25_spill] sm:$0xff] }
 0x334   : > { %v6362_v39 = vpop.permute.xlu1 %2719 }
 0x335   : > { %2799 = vrot.lane.b32.xlu1 %v8745_v3, %s4420_s23  ;;  %8865 = vst [vmem:[#allocation232_spill] sm:$0xff] %v6362_v39  ;;  %v884_v3 = vsel %vm882_vm1, %v8869_v27, %v8870_v33  ;;  %v8875_v39 = vld [vmem:[#allocation26_spill] sm:$0xff]  ;;  %v8877_v27 = vld [vmem:[#allocation188_spill] sm:$0xff]  ;;  %v6418_v6 = vpop.permute.xlu0 %2536 }
 0x336   : > { %v893_v32 = vmul.f32 %v8876_v40, %v884_v3  ;;  %v894_v33 = vmul.f32 %v8877_v27, %v883_v46  ;;  %v8881_v3 = vld [vmem:[#allocation37_spill] sm:$0xff]  ;;  %v8882_v46 = vld [vmem:[#allocation35_spill] sm:$0xff]  ;;  %8886 = vst [vmem:[#allocation26_spill] sm:$0xff] %v6418_v6 }
 0x337   : > { %v933_v27 = vsel %vm932_vm3, %v8882_v46, %v8881_v3  ;;  %v934_v56 = vsel %vm932_vm3, %v8881_v3, %v8882_v46  ;;  %v958_v3 = vsel %vm957_vm4, %v8889_v14, %v8888_v19  ;;  %v925_v46 = vmul.f32 %v8892_v60, %v919_v22  ;;  %v8898_v6 = vld [vmem:[#allocation49_spill] sm:$0xff] }
 0x338   : > { %v6368_v36 = vpop.permute.xlu1 %2721  ;;  %v944_v42 = vmul.f32 %v5578_v58, %v933_v27  ;;  %v8893_v27 = vld [vmem:[#allocation45_spill] sm:$0xff]  ;;  %v969_v22 = vmul.f32 %v5588_v48, %v958_v3  ;;  %v8901_v3 = vld [vmem:[#allocation54_spill] sm:$0xff]  ;;  %vm8944_vm4 = vcmp.lt.s32.totalorder %v5527_v5, 19 }
 0x339   : > { %2801 = vrot.lane.b32.xlu1 %v5492_v10, %s4420_s23  ;;  %8868 = vst [vmem:[#allocation234_spill] sm:$0xff] %v6368_v36  ;;  %v8874_v10 = vld [vmem:[#allocation28_spill] sm:$0xff]  ;;  %s4429_s23 = smov [#allocation12]  }
 0x33a   : > { %v859_v36 = vsel %vm858_vm0, %v8875_v39, %v8874_v10  ;;  %v860_v18 = vsel %vm858_vm0, %v8874_v10, %v8875_v39  ;;  %v8880_v10 = vld [vmem:[#allocation185_spill] sm:$0xff]  ;;  %vm8930_vm0 = vcmp.lt.s32.totalorder %v5527_v5, 30 }
 0x33b   : > { %v869_v39 = vmul.f32 %v5548_v41, %v860_v18  ;;  %v870_v40 = vmul.f32 %v8880_v10, %v859_v36  ;;  %v8887_v41 = vld [vmem:[#allocation24_spill] sm:$0xff]  ;;  %v943_v10 = vmul.f32 %v5575_v11, %v934_v56  ;;  %vm8931_vm1 = vmmov %vm8930_vm0 }
 0x33c   : > { %v6382_v35 = vpop.permute.xlu1 %1716  ;;  %v899_v18 = vmul.f32 %v8887_v41, %v893_v32  ;;  %v900_v36 = vmul.f32 %v8887_v41, %v894_v33  ;;  %v8890_v32 = vld [vmem:[#allocation23_spill] sm:$0xff] }
 0x33d   : > { %709 = vrot.lane.b32.xlu1 %v6319_v57, %s8872_s15  ;;  %8873 = vst [vmem:[#allocation27_spill] sm:$0xff] %v6382_v35  ;;  %v909_v35 = vsel %vm907_vm2, %v8878_v50, %v8879_v12  ;;  %v8884_v50 = vld [vmem:[#allocation189_spill] sm:$0xff]  ;;  %v876_v11 = vmul.f32 %v8890_v32, %v869_v39  ;;  %v877_v58 = vmul.f32 %v8890_v32, %v870_v40  ;;  %v6451_v39 = vpop.permute.xlu0 %770  ;;  %vm8936_vm2 = vcmp.lt.s32.totalorder %v5527_v5, 29 }
 0x33e   : > { %v918_v12 = vmul.f32 %v8884_v50, %v909_v35  ;;  %v6433_v35 = vld [vmem:[%s4741_s26 + $0x10] sm:$0xff]  ;;  %8895 = vst [vmem:[#allocation188_spill] sm:$0xff] %v6451_v39  ;;  %v968_v40 = vmul.f32 %v5585_v0, %v959_v62  ;;  %v8896_v32 = vld [vmem:[#allocation29_spill] sm:$0xff]  ;;  %v8902_v62 = vld [vmem:[#allocation52_spill] sm:$0xff] }
 0x33f   : > { %v8894_v50 = vld [vmem:[#allocation43_spill] sm:$0xff]  ;;  %1941 = vrot.lane.b32.xlu0 %v6433_v35, %s4423_s13  ;;  %v902_v41 = vadd.f32 %v900_v36, %v877_v58  ;;  %v8897_v39 = vld [vmem:[#allocation42_spill] sm:$0xff]  ;;  %vm8937_vm3 = vmmov %vm8936_vm2 }
 0x340   : > { %v6414_v8 = vpop.permute.xlu1 %1784  ;;  %v924_v33 = vmul.f32 %v8892_v60, %v918_v12  ;;  %v983_v14 = vsel %vm982_vm5, %v8894_v50, %v8893_v27  ;;  %v984_v19 = vsel %vm982_vm5, %v8893_v27, %v8894_v50  ;;  %v901_v12 = vadd.f32 %v899_v18, %v876_v11  ;;  %vm8945_vm5 = vmmov %vm8944_vm4 }
 0x341   : > { %711 = vrot.lane.b32.xlu1 %v6278_v17, %s8872_s15  ;;  %8883 = vst [vmem:[#allocation28_spill] sm:$0xff] %v6414_v8  ;;  %v949_v60 = vmul.f32 %v8896_v32, %v943_v10  ;;  %v950_v8 = vmul.f32 %v8896_v32, %v944_v42  ;;  %v993_v27 = vmul.f32 %v5615_v51, %v984_v19  ;;  %v8900_v51 = vld [vmem:[#allocation33_spill] sm:$0xff]  ;;  %v8905_v32 = vld [vmem:[#allocation48_spill] sm:$0xff] }
 0x342   : > { %v994_v50 = vmul.f32 %v5628_v34, %v983_v14  ;;  %v1008_v0 = vsel %vm1007_vm6, %v8898_v6, %v8897_v39  ;;  %v1009_v48 = vsel %vm1007_vm6, %v8897_v39, %v8898_v6  ;;  %v926_v18 = vadd.f32 %v924_v33, %v901_v12  ;;  %v8904_v39 = vld [vmem:[#allocation34_spill] sm:$0xff] }
 0x343   : > { %v927_v36 = vadd.f32 %v925_v46, %v902_v41  ;;  %2100 = vrot.lane.b32.xlu0 %v6340_v45, %s4408_s5  ;;  %v974_v10 = vmul.f32 %v8900_v51, %v968_v40  ;;  %v975_v34 = vmul.f32 %v8900_v51, %v969_v22  ;;  %v1033_v11 = vsel %vm1032_vm7, %v8902_v62, %v8901_v3  ;;  %v6490_v46 = vpop.permute.xlu0 %2077  ;;  %v8906_v51 = vld [vmem:[#allocation58_spill] sm:$0xff] }
 0x344   : > { %v6439_v56 = vpop.permute.xlu1 %2737  ;;  %v1034_v6 = vsel %vm1032_vm7, %v8901_v3, %v8902_v62  ;;  %v1018_v58 = vmul.f32 %v5636_v44, %v1009_v48  ;;  %v1019_v33 = vmul.f32 %v5639_v24, %v1008_v0  ;;  %8903 = vst [vmem:[#allocation32_spill] sm:$0xff] %v6490_v46  ;;  %v951_v14 = vadd.f32 %v949_v60, %v926_v18  ;;  %v8910_v48 = vld [vmem:[#allocation65_spill] sm:$0xff]  ;;  %v8911_v18 = vld [vmem:[#allocation63_spill] sm:$0xff] }
 0x345   : > { %1841 = vrot.lane.b32.xlu1 %v6433_v35, %s4422_s16  ;;  %8891 = vst [vmem:[#allocation186_spill] sm:$0xff] %v6439_v56  ;;  %v6460_v56 = vld [vmem:[%s4741_s26 + $0x18] sm:$0xff]  ;;  %v952_v19 = vadd.f32 %v950_v8, %v927_v36  ;;  %v999_v40 = vmul.f32 %v8904_v39, %v993_v27  ;;  %v1000_v22 = vmul.f32 %v8904_v39, %v994_v50  ;;  %v6509_v8 = vld [vmem:[%s4749_s18 + $0x10] sm:$0xff]  ;;  %vm8957_vm6 = vcmp.lt.s32.totalorder %v5527_v5, 17 }
 0x346   : > { %v1043_v12 = vmul.f32 %v5648_v25, %v1034_v6  ;;  %v1044_v41 = vmul.f32 %v5651_v7, %v1033_v11  ;;  %v1058_v44 = vsel %vm1057_vm8, %v8906_v51, %v8905_v32  ;;  %v1059_v24 = vsel %vm1057_vm8, %v8905_v32, %v8906_v51  ;;  %8908 = vst [vmem:[#allocation37_spill] sm:$0xff] %v6509_v8  ;;  %v8909_v7 = vld [vmem:[#allocation41_spill] sm:$0xff]  ;;  %v8912_v6 = vld [vmem:[#allocation38_spill] sm:$0xff]  ;;  %v8916_v51 = vld [vmem:[#allocation199_spill] sm:$0xff] }
 0x347   : > { %2879 = vrot.lane.b32.xlu0 %v6509_v8, %s4423_s13  ;;  %v976_v25 = vadd.f32 %v974_v10, %v951_v14  ;;  %v977_v27 = vadd.f32 %v975_v34, %v952_v19  ;;  %v1024_v50 = vmul.f32 %v8909_v7, %v1018_v58  ;;  %v1025_v0 = vmul.f32 %v8909_v7, %v1019_v33  ;;  %v6529_v14 = vpop.permute.xlu0 %1909  ;;  %v8915_v39 = vld [vmem:[#allocation198_spill] sm:$0xff]  ;;  %vm8958_vm7 = vmmov %vm8957_vm6 }
 0x348   : > { %v6474_v42 = vpop.permute.xlu1 %654  ;;  %v1083_v36 = vsel %vm1082_vm9, %v8911_v18, %v8910_v48  ;;  %v1084_v3 = vsel %vm1082_vm9, %v8910_v48, %v8911_v18  ;;  %v1068_v10 = vmul.f32 %v5671_v4, %v1059_v24  ;;  %v1069_v34 = vmul.f32 %v5675_v49, %v1058_v44  ;;  %8913 = vst [vmem:[#allocation35_spill] sm:$0xff] %v6529_v14  ;;  %v8917_v4 = vld [vmem:[#allocation56_spill] sm:$0xff]  ;;  %v8918_v24 = vld [vmem:[#allocation69_spill] sm:$0xff]  ;;  %v8921_v48 = vld [vmem:[#allocation75_spill] sm:$0xff] }
 0x349   : > { %1843 = vrot.lane.b32.xlu1 %v6460_v56, %s4422_s16  ;;  %8899 = vst [vmem:[#allocation31_spill] sm:$0xff] %v6474_v42  ;;  %v1001_v62 = vadd.f32 %v999_v40, %v976_v25  ;;  %v1002_v11 = vadd.f32 %v1000_v22, %v977_v27  ;;  %v1049_v58 = vmul.f32 %v8912_v6, %v1043_v12  ;;  %v8920_v27 = vld [vmem:[#allocation77_spill] sm:$0xff]  ;;  %vm8963_vm8 = vcmp.lt.s32.totalorder %v5527_v5, 16 }
 0x34a   : > { %v1050_v33 = vmul.f32 %v8912_v6, %v1044_v41  ;;  %v1093_v32 = vmul.f32 %v8915_v39, %v1084_v3  ;;  %v1094_v7 = vmul.f32 %v8916_v51, %v1083_v36  ;;  %v1108_v49 = vsel %vm1107_vm10, %v8918_v24, %v8917_v4  ;;  %v8919_v41 = vld [vmem:[#allocation50_spill] sm:$0xff]  ;;  %v8923_v3 = vld [vmem:[#allocation203_spill] sm:$0xff]  ;;  %vm8964_vm9 = vmmov %vm8963_vm8 }
 0x34b   : > { %827 = vrot.lane.b32.xlu0 %v6319_v57, %s4383_s0  ;;  %v1109_v40 = vsel %vm1107_vm10, %v8917_v4, %v8918_v24  ;;  %v1026_v22 = vadd.f32 %v1024_v50, %v1001_v62  ;;  %v1027_v12 = vadd.f32 %v1025_v0, %v1002_v11  ;;  %v1074_v44 = vmul.f32 %v8919_v41, %v1068_v10  ;;  %v8922_v50 = vld [vmem:[#allocation201_spill] sm:$0xff]  ;;  %v8925_v6 = vld [vmem:[#allocation46_spill] sm:$0xff] }
 0x34c   : > { %v1075_v25 = vmul.f32 %v8919_v41, %v1069_v34  ;;  %v1133_v18 = vsel %vm1132_vm11, %v8921_v48, %v8920_v27  ;;  %v1134_v36 = vsel %vm1132_vm11, %v8920_v27, %v8921_v48  ;;  %v1118_v0 = vmul.f32 %v8922_v50, %v1109_v40  ;;  %v8926_v4 = vld [vmem:[#allocation205_spill] sm:$0xff]  ;;  %v8927_v41 = vld [vmem:[#allocation207_spill] sm:$0xff]  ;;  %v8928_v48 = vld [vmem:[#allocation64_spill] sm:$0xff] }
 0x34d   : > { %2042 = vrot.lane.b32.xlu1 %v6340_v45, %s8872_s15  ;;  %v1119_v62 = vmul.f32 %v8923_v3, %v1108_v49  ;;  %v1051_v10 = vadd.f32 %v1049_v58, %v1026_v22  ;;  %v1052_v34 = vadd.f32 %v1050_v33, %v1027_v12  ;;  %v1099_v39 = vmul.f32 %v8925_v6, %v1093_v32  ;;  %v8929_v40 = vld [vmem:[#allocation83_spill] sm:$0xff]  ;;  %v6575_v58 = vpop.permute.xlu0 %2856  ;;  %v8933_v22 = vld [vmem:[#allocation60_spill] sm:$0xff] }
 0x34e   : > { %v1100_v51 = vmul.f32 %v8925_v6, %v1094_v7  ;;  %v1143_v24 = vmul.f32 %v8926_v4, %v1134_v36  ;;  %v1144_v27 = vmul.f32 %v8927_v41, %v1133_v18  ;;  %v1158_v49 = vsel %vm8930_vm0, %v8929_v40, %v8928_v48  ;;  %8932 = vst [vmem:[#allocation24_spill] sm:$0xff] %v6575_v58  ;;  %v6578_v33 = vld [vmem:[%s4749_s18 + $0x18] sm:$0xff]  ;;  %v8934_v36 = vld [vmem:[#allocation90_spill] sm:$0xff]  ;;  %v8938_v41 = vld [vmem:[#allocation209_spill] sm:$0xff] }
 0x34f   : > { %v6506_v60 = vpop.permute.xlu1 %677  ;;  %1966 = vrot.lane.b32.xlu0 %v6433_v35, %s4424_s14  ;;  %v1159_v50 = vsel %vm8931_vm1, %v8928_v48, %v8929_v40  ;;  %v1076_v32 = vadd.f32 %v1074_v44, %v1051_v10  ;;  %v1077_v7 = vadd.f32 %v1075_v25, %v1052_v34  ;;  %v1124_v12 = vmul.f32 %v8933_v22, %v1118_v0  ;;  %v8935_v3 = vld [vmem:[#allocation88_spill] sm:$0xff]  ;;  %v8939_v25 = vld [vmem:[#allocation210_spill] sm:$0xff]  ;;  %v8941_v48 = vld [vmem:[#allocation53_spill] sm:$0xff] }
 0x350   : > { %8907 = vst [vmem:[#allocation185_spill] sm:$0xff] %v6506_v60  ;;  %v1125_v18 = vmul.f32 %v8933_v22, %v1119_v62  ;;  %v1183_v6 = vsel %vm8936_vm2, %v8935_v3, %v8934_v36  ;;  %v1184_v4 = vsel %vm8937_vm3, %v8934_v36, %v8935_v3  ;;  %v1168_v44 = vmul.f32 %v8938_v41, %v1159_v50  ;;  %v4119_v58 = vld [vmem:[%s8082_s2] sm:$0xff] }
 0x351   : > { %2044 = vrot.lane.b32.xlu1 %v6300_v61, %s8872_s15  ;;  %v1169_v10 = vmul.f32 %v8939_v25, %v1158_v49  ;;  %v1101_v62 = vadd.f32 %v1099_v39, %v1076_v32  ;;  %v1102_v34 = vadd.f32 %v1100_v51, %v1077_v7  ;;  %v1149_v40 = vmul.f32 %v8941_v48, %v1143_v24  ;;  %v8942_v50 = vld [vmem:[#allocation72_spill] sm:$0xff]  ;;  %v8948_v7 = vld [vmem:[#allocation102_spill] sm:$0xff] }
 0x352   : > { %v1150_v22 = vmul.f32 %v8941_v48, %v1144_v27  ;;  %v1193_v36 = vmul.f32 %v5813_v63, %v1184_v4  ;;  %v1194_v3 = vmul.f32 %v5817_v54, %v1183_v6  ;;  %v8943_v41 = vld [vmem:[#allocation96_spill] sm:$0xff]  ;;  %v6613_v27 = vpop.permute.xlu0 %2616  ;;  %v8946_v63 = vld [vmem:[#allocation71_spill] sm:$0xff]  ;;  %v8952_v48 = vld [vmem:[#allocation61_spill] sm:$0xff]  ;;  %vm8973_vm10 = vcmp.lt.s32.totalorder %v5527_v5, 14 }
 0x353   : > { %v6531_v19 = vpop.permute.xlu1 %1743  ;;  %2116 = vrot.lane.b32.xlu0 %v6340_v45, %s4383_s0  ;;  %v1208_v49 = vsel %vm8944_vm4, %v8943_v41, %v8942_v50  ;;  %v1209_v39 = vsel %vm8945_vm5, %v8942_v50, %v8943_v41  ;;  %v1126_v51 = vadd.f32 %v1124_v12, %v1101_v62  ;;  %v1127_v24 = vadd.f32 %v1125_v18, %v1102_v34  ;;  %v8947_v32 = vld [vmem:[#allocation104_spill] sm:$0xff]  ;;  %v8951_v62 = vld [vmem:[#allocation163_spill] sm:$0xff]  ;;  %vm8974_vm11 = vmmov %vm8973_vm10 }
 0x354   : > { %8914 = vst [vmem:[#allocation189_spill] sm:$0xff] %v6531_v19  ;;  %v1175_v54 = vmul.f32 %v8946_v63, %v1169_v10  ;;  %v1233_v6 = vsel %vm1232_vm15, %v8948_v7, %v8947_v32  ;;  %v1234_v12 = vsel %vm1232_vm15, %v8947_v32, %v8948_v7  ;;  %v8950_v4 = vld [vmem:[#allocation40_spill] sm:$0xff]  ;;  %v1219_v34 = vmul.f32 %v8951_v62, %v1208_v49  ;;  %v8955_v49 = vld [vmem:[#allocation82_spill] sm:$0xff] }
 0x355   : > { %2815 = vrot.lane.b32.xlu1 %v6509_v8, %s4422_s16  ;;  %v1218_v25 = vmul.f32 %v8950_v4, %v1209_v39  ;;  %v1152_v10 = vadd.f32 %v1150_v22, %v1127_v24  ;;  %v1199_v50 = vmul.f32 %v8952_v48, %v1193_v36  ;;  %v1200_v41 = vmul.f32 %v8952_v48, %v1194_v3  ;;  %v8956_v62 = vld [vmem:[#allocation110_spill] sm:$0xff]  ;;  %v8960_v3 = vld [vmem:[#allocation85_spill] sm:$0xff]  ;;  %v8962_v24 = vld [vmem:[#allocation116_spill] sm:$0xff] }
 0x356   : > { %v1243_v46 = vmul.f32 %v5865_v52, %v1234_v12  ;;  %v1244_v32 = vmul.f32 %v5891_v47, %v1233_v6  ;;  %v6638_v7 = vpop.permute.xlu0 %1868  ;;  %v1258_v22 = vsel %vm8958_vm7, %v8955_v49, %v8956_v62  ;;  %v1225_v47 = vmul.f32 %v8960_v3, %v1219_v34  ;;  %v6818_v19 = vld [vmem:[#allocation9 + $0x48] sm:$0xff] }
 0x357   : > { %v6559_v11 = vpop.permute.xlu1 %2005  ;;  %2895 = vrot.lane.b32.xlu0 %v6509_v8, %s4424_s14  ;;  %8954 = vst [vmem:[#allocation23_spill] sm:$0xff] %v6638_v7  ;;  %v1177_v4 = vadd.f32 %v1175_v54, %v1152_v10  ;;  %v1224_v52 = vmul.f32 %v8960_v3, %v1218_v25  ;;  %v1259_v34 = vmul.f32 %v1258_v22, %v5912_v1  ;;  %vm8982_vm15 = vcmp.lt.s32.totalorder %v5527_v5, 13  ;;  %v9032_v1 = vld [vmem:[#allocation197_spill] sm:$0xff] }
 0x358   : > { %8924 = vst [vmem:[#allocation191_spill] sm:$0xff] %v6559_v11  ;;  %vm8983_vm0 = vmmov %vm8982_vm15  ;;  %vm8986_vm1 = vcmp.lt.s32.totalorder %v5527_v5, 3  ;;  %vm8996_vm3 = vcmp.lt.s32.totalorder %v5527_v5, 2  ;;  %vm1447_vm5 = vcmp.lt.s32.totalorder %v5527_v5, 126  ;;  %vm9017_vm7 = vcmp.lt.s32.totalorder %v5527_v5, 1 }
 0x359   : > { %2817 = vrot.lane.b32.xlu1 %v6578_v33, %s4422_s16  ;;  %v1202_v12 = vadd.f32 %v1200_v41, %v1177_v4  ;;  %vm8987_vm2 = vmmov %vm8986_vm1 }
 0x35a   : > { %v6677_v41 = vpop.permute.xlu0 %2093  ;;  %vm8997_vm4 = vmmov %vm8996_vm3 }
 0x35b   : > { %8970 = vst [vmem:[#allocation43_spill] sm:$0xff] %v6677_v41 }
 0x35c   : > { %v6596_v0 = vpop.permute.xlu1 %2019 }
 0x35d   : > { %8940 = vst [vmem:[#allocation36_spill] sm:$0xff] %v6596_v0  ;;  %795 = vperm.xlu1 %4068, %v4119_v58   ;;  %v1174_v58 = vmul.f32 %v8946_v63, %v1168_v44  ;;  %v1151_v44 = vadd.f32 %v1149_v40, %v1126_v51  ;;  %v8953_v63 = vmov 46   ;;  %v1257_v40 = vsel %vm8957_vm6, %v8956_v62, %v8955_v49  ;;  %v8961_v51 = vld [vmem:[#allocation118_spill] sm:$0xff] }
 0x35e   : > { %v1274_v54 = vsel %vm8964_vm9, %v8961_v51, %v8962_v24  ;;  %v1260_v48 = vmul.f32 %v1257_v40, %v5916_v53  ;;  %v8966_v49 = vld [vmem:[#allocation66_spill] sm:$0xff]  ;;  %vm1472_vm6 = vcmp.lt.s32.totalorder %v5527_v5, 125  ;;  %v6808_v0 = vrot.slane %v6138_v55, %v8738_v23 }
 0x35f   : > { %v1176_v39 = vadd.f32 %v1174_v58, %v1151_v44  ;;  %v1273_v58 = vsel %vm8963_vm8, %v8962_v24, %v8961_v51  ;;  %v8965_v44 = vld [vmem:[#allocation68_spill] sm:$0xff]  ;;  %v1227_v51 = vadd.f32 %v1225_v47, %v1202_v12  ;;  %v8968_v24 = vld [vmem:[#allocation93_spill] sm:$0xff]  ;;  %v8975_v47 = vld [vmem:[#allocation98_spill] sm:$0xff]  ;;  %vm1497_vm9 = vcmp.lt.s32.totalorder %v5527_v5, 115 }
 0x360   : > { %v6627_v18 = vpop.permute.xlu1 %2753  ;;  %v1249_v10 = vmul.f32 %v8965_v44, %v1243_v46  ;;  %v1250_v25 = vmul.f32 %v8965_v44, %v1244_v32  ;;  %v1276_v62 = vmul.f32 %v1273_v58, %v8966_v49  ;;  %v8971_v32 = vld [vmem:[#allocation132_spill] sm:$0xff]  ;;  %v1265_v58 = vmul.f32 %v8975_v47, %v1259_v34  ;;  %9011 = vst [vmem:[#allocation58_spill] sm:$0xff] %v6808_v0  ;;  %vm9018_vm8 = vmmov %vm9017_vm7 }
 0x361   : > { %8949 = vst [vmem:[#allocation39_spill] sm:$0xff] %v6627_v18  ;;  %1866 = vrot.lane.b32.xlu1 %v6433_v35, %s4414_s21  ;;  %v1201_v6 = vadd.f32 %v1199_v50, %v1176_v39  ;;  %v8972_v39 = vld [vmem:[#allocation130_spill] sm:$0xff] }
 0x362   : > { %4069 = vset.pattern.permute.xlu1 %v8953_v63  ;;  %v1275_v63 = vmul.f32 %v1274_v54, %v5938_v16  ;;  %v1306_v4 = vsel %vm8973_vm10, %v8972_v39, %v8971_v32  ;;  %v1307_v40 = vsel %vm8974_vm11, %v8971_v32, %v8972_v39  ;;  %v1266_v54 = vmul.f32 %v8975_v47, %v1260_v48  ;;  %v8979_v39 = vld [vmem:[#allocation59_spill] sm:$0xff]  ;;  %v8989_v47 = vld [vmem:[#allocation112_spill] sm:$0xff] }
 0x363   : > { %v1226_v14 = vadd.f32 %v1224_v52, %v1201_v6  ;;  %v1252_v52 = vadd.f32 %v1250_v25, %v1227_v51  ;;  %v8976_v6 = vld [vmem:[#allocation78_spill] sm:$0xff]  ;;  %v1316_v32 = vmul.f32 %v6003_v30, %v1307_v40  ;;  %v6712_v48 = vmul.f32 %v6433_v35, %v6158_v37  ;;  %v8984_v51 = vld [vmem:[#allocation147_spill] sm:$0xff]  ;;  %v6726_v40 = vpop.permute.xlu0 %2872 }
 0x364   : > { %v6648_v36 = vpop.permute.xlu1 %702  ;;  %v1281_v12 = vmul.f32 %v8976_v6, %v1275_v63  ;;  %v1282_v44 = vmul.f32 %v8976_v6, %v1276_v62  ;;  %v6716_v30 = vmul.f32 %v6460_v56, %v6162_v13  ;;  %8988 = vst [vmem:[#allocation42_spill] sm:$0xff] %v6726_v40  ;;  %vm1522_vm10 = vcmp.lt.s32.totalorder %v5527_v5, 114 }
 0x365   : > { %8959 = vst [vmem:[#allocation25_spill] sm:$0xff] %v6648_v36  ;;  %1934 = vperm.xlu1 %4069, %v6349_v2   ;;  %v8969_v2 = vld [vmem:[#allocation124_spill] sm:$0xff]  ;;  %v1251_v22 = vadd.f32 %v1249_v10, %v1226_v14  ;;  %v8980_v14 = vld [vmem:[#allocation103_spill] sm:$0xff]  ;;  %v8981_v10 = vld [vmem:[#allocation138_spill] sm:$0xff]  ;;  %v1268_v62 = vadd.f32 %v1266_v54, %v1252_v52  ;;  %vm781_vm11 = vcmp.lt.s32.totalorder %v5527_v5, 113 }
 0x366   : > { %v1289_v50 = vsel %vm688_vm14, %v8969_v2, %v8968_v24  ;;  %v1290_v46 = vsel %vm688_vm14, %v8968_v24, %v8969_v2  ;;  %v8977_v2 = vld [vmem:[#allocation55_spill] sm:$0xff]  ;;  %v1331_v25 = vsel %vm8982_vm15, %v8981_v10, %v8980_v14  ;;  %v1332_v34 = vsel %vm8983_vm0, %v8980_v14, %v8981_v10  ;;  %v9016_v36 = vld [vmem:[#allocation158_spill] sm:$0xff] }
 0x367   : > { %v1291_v24 = vmul.f32 %v1290_v46, %v5979_v59  ;;  %v1292_v41 = vmul.f32 %v1289_v50, %v8977_v2  ;;  %v1267_v63 = vadd.f32 %v1265_v58, %v1251_v22  ;;  %v8985_v50 = vld [vmem:[#allocation145_spill] sm:$0xff]  ;;  %v1341_v14 = vmul.f32 %v6045_v21, %v1332_v34  ;;  %v8990_v22 = vld [vmem:[#allocation62_spill] sm:$0xff] }
 0x368   : > { %v6667_v3 = vpop.permute.xlu1 %1768  ;;  %v1356_v46 = vsel %vm8986_vm1, %v8985_v50, %v8984_v51  ;;  %v1342_v52 = vmul.f32 %v8990_v22, %v1331_v25  ;;  %v1284_v10 = vadd.f32 %v1282_v44, %v1268_v62  ;;  %v8999_v44 = vld [vmem:[#allocation179_spill] sm:$0xff]  ;;  %v9002_v34 = vld [vmem:[#allocation126_spill] sm:$0xff]  ;;  %vm1595_vm15 = vcmp.lt.s32.totalorder %v5527_v5, 110 }
 0x369   : > { %8967 = vst [vmem:[#allocation45_spill] sm:$0xff] %v6667_v3  ;;  %2831 = vrot.lane.b32.xlu1 %v6509_v8, %s4414_s21  ;;  %v1297_v6 = vmul.f32 %v8989_v47, %v1291_v24  ;;  %v1283_v54 = vadd.f32 %v1281_v12, %v1267_v63  ;;  %v8992_v3 = vld [vmem:[#allocation89_spill] sm:$0xff]  ;;  %v1367_v24 = vmul.f32 %v6088_v20, %v1356_v46  ;;  %vm1620_vm0 = vcmp.lt.s32.totalorder %v5527_v5, 109 }
 0x36a   : > { %4075 = vset.pattern.permute.xlu1 %v8867_v28  ;;  %v1317_v28 = vmul.f32 %v8979_v39, %v1306_v4  ;;  %v1357_v4 = vsel %vm8987_vm2, %v8984_v51, %v8985_v50  ;;  %v1298_v39 = vmul.f32 %v8989_v47, %v1292_v41  ;;  %v8994_v41 = vld [vmem:[#allocation109_spill] sm:$0xff]  ;;  %v8995_v50 = vld [vmem:[#allocation152_spill] sm:$0xff]  ;;  %v6759_v20 = vrot.slane %v6140_v43, %v8999_v44 }
 0x36b   : > { %v1366_v51 = vmul.f32 %v6069_v9, %v1357_v4  ;;  %v1381_v21 = vsel %vm8996_vm3, %v8995_v50, %v8994_v41  ;;  %v1382_v12 = vsel %vm8997_vm4, %v8994_v41, %v8995_v50  ;;  %v6755_v9 = vrot.slane %v6138_v55, %v8999_v44  ;;  %v6772_v41 = vpop.permute.xlu0 %1568  ;;  %v9007_v50 = vld [vmem:[#allocation184_spill] sm:$0xff] }
 0x36c   : > { %v6696_v7 = vpop.permute.xlu1 %2035  ;;  %v1323_v11 = vmul.f32 %v8992_v3, %v1317_v28  ;;  %v8998_v28 = vld [vmem:[#allocation181_spill] sm:$0xff]  ;;  %9001 = vst [vmem:[#allocation54_spill] sm:$0xff] %v6759_v20  ;;  %v1300_v25 = vadd.f32 %v1298_v39, %v1284_v10  ;;  %v1347_v63 = vmul.f32 %v9002_v34, %v1341_v14  ;;  %v1348_v62 = vmul.f32 %v9002_v34, %v1342_v52  ;;  %v9005_v14 = vld [vmem:[#allocation99_spill] sm:$0xff] }
 0x36d   : > { %8978 = vst [vmem:[#allocation29_spill] sm:$0xff] %v6696_v7  ;;  %2833 = vrot.lane.b32.xlu1 %v6578_v33, %s4414_s21  ;;  %v1322_v7 = vmul.f32 %v8992_v3, %v1316_v32  ;;  %s8993_s21 = smov 127   ;;  %v6751_v3 = vrot.slane %v6138_v55, %v8998_v28  ;;  %9000 = vst [vmem:[#allocation33_spill] sm:$0xff] %v6755_v9  ;;  %v1299_v32 = vadd.f32 %v1297_v6, %v1283_v54  ;;  %v9010_v34 = vld [vmem:[#allocation141_spill] sm:$0xff] }
 0x36e   : > { %v1391_v4 = vmul.f32 %v6110_v15, %v1382_v12  ;;  %v1392_v47 = vmul.f32 %v6114_v26, %v1381_v21  ;;  %v6769_v22 = vrot.slane %v6140_v43, %v8998_v28  ;;  %9004 = vst [vmem:[#allocation34_spill] sm:$0xff] %v6772_v41  ;;  %v1325_v39 = vadd.f32 %v1323_v11, %v1300_v25  ;;  %v9006_v15 = vld [vmem:[#allocation182_spill] sm:$0xff] }
 0x36f   : > { %v1324_v6 = vadd.f32 %v1322_v7, %v1299_v32  ;;  %v1372_v52 = vmul.f32 %v9005_v14, %v1366_v51  ;;  %v1373_v54 = vmul.f32 %v9005_v14, %v1367_v24  ;;  %v6780_v26 = vrot.slane %v6138_v55, %v9006_v15  ;;  %v9008_v12 = vld [vmem:[#allocation190_spill] sm:$0xff] }
 0x370   : > { %v6732_v58 = vpop.permute.xlu1 %2767  ;;  %v6784_v10 = vrot.slane %v6140_v43, %v9006_v15  ;;  %v6788_v21 = vrot.slane %v6138_v55, %v9007_v50  ;;  %v6792_v7 = vrot.slane %v6140_v43, %v9007_v50  ;;  %v1350_v51 = vadd.f32 %v1348_v62, %v1325_v39  ;;  %v6814_v62 = vld [vmem:[#allocation9 + $0x40] sm:$0xff]  ;;  %v9037_v41 = vld [vmem:[#allocation206_spill] sm:$0xff] }
 0x371   : > { %8991 = vst [vmem:[#allocation49_spill] sm:$0xff] %v6732_v58  ;;  %752 = vrot.lane.b32.xlu1 %v6319_v57, %s8993_s21  ;;  %v1349_v11 = vadd.f32 %v1347_v63, %v1324_v6  ;;  %v6796_v24 = vrot.slane %v6138_v55, %v9008_v12  ;;  %v6800_v32 = vrot.slane %v6140_v43, %v9008_v12  ;;  %v9035_v58 = vld [vmem:[#allocation148_spill] sm:$0xff]  ;;  %vm1645_vm1 = vcmp.lt.s32.totalorder %v5527_v5, 99 }
 0x372   : > { %v1397_v14 = vmul.f32 %v9010_v34, %v1391_v4  ;;  %v1398_v40 = vmul.f32 %v9010_v34, %v1392_v47  ;;  %v6812_v63 = vrot.slane %v6140_v43, %v8738_v23  ;;  %v1375_v39 = vadd.f32 %v1373_v54, %v1350_v51  ;;  %v9015_v34 = vld [vmem:[#allocation160_spill] sm:$0xff]  ;;  %v6845_v54 = vpop.permute.xlu0 %2632 }
 0x373   : > { %v1374_v6 = vadd.f32 %v1372_v52, %v1349_v11  ;;  %v6822_v4 = vrot.slane %v6138_v55, %v5601_v31  ;;  %v6826_v47 = vrot.slane %v6140_v43, %v5601_v31  ;;  %v1405_v42 = vsel %vm9017_vm7, %v9016_v36, %v9015_v34  ;;  %v9020_v11 = vld [vmem:[#allocation154_spill] sm:$0xff] }
 0x374   : > { %v6763_v46 = vpop.permute.xlu1 %2808  ;;  %9012 = vst [vmem:[#allocation41_spill] sm:$0xff] %v6812_v63  ;;  %v1406_v52 = vsel %vm9018_vm8, %v9015_v34, %v9016_v36  ;;  %v6839_v55 = vmul.f32 %v6319_v57, %v6158_v37  ;;  %v6843_v43 = vmul.f32 %v6162_v13, %v6278_v17  ;;  %v6849_v51 = vmul.f32 %v9020_v11, %v6712_v48 }
 0x375   : > { %9003 = vst [vmem:[#allocation52_spill] sm:$0xff] %v6763_v46  ;;  %754 = vrot.lane.b32.xlu1 %v6278_v17, %s8993_s21  ;;  %9013 = vst [vmem:[#allocation65_spill] sm:$0xff] %v6822_v4  ;;  %v6853_v60 = vmul.f32 %v9020_v11, %v6716_v30  ;;  %v6857_v36 = vmul.f32 %v6340_v45, %v6158_v37  ;;  %v6861_v34 = vrot.slane %v6814_v62, %v5529_v29  ;;  %v9025_v46 = vld [vmem:[#allocation180_spill] sm:$0xff]  ;;  %v9027_v11 = vld [vmem:[#allocation95_spill] sm:$0xff] }
 0x376   : > { %9014 = vst [vmem:[#allocation63_spill] sm:$0xff] %v6826_v47  ;;  %9019 = vst [vmem:[#allocation38_spill] sm:$0xff] %v6843_v43  ;;  %v9024_v43 = vld [vmem:[#allocation119_spill] sm:$0xff]  ;;  %v6869_v2 = vadd.f32 %v1397_v14, %v1374_v6  ;;  %v6871_v59 = vadd.f32 %v1398_v40, %v1375_v39  ;;  %v6875_v30 = vrot.slane %v6818_v19, %v5529_v29  ;;  %v9029_v6 = vld [vmem:[#allocation121_spill] sm:$0xff]  ;;  %vm1670_vm2 = vcmp.lt.s32.totalorder %v5527_v5, 98 }
 0x377   : > { %9021 = vst [vmem:[#allocation198_spill] sm:$0xff] %v6857_v36  ;;  %9022 = vst [vmem:[#allocation199_spill] sm:$0xff] %v6861_v34  ;;  %v1448_v48 = vsel %vm1447_vm5, %v9025_v46, %v9024_v43  ;;  %v1407_v37 = vmul.f32 %v1406_v52, %v6144_v38  ;;  %v1408_v36 = vmul.f32 %v1405_v42, %v9027_v11  ;;  %v9028_v14 = vld [vmem:[#allocation195_spill] sm:$0xff]  ;;  %v9031_v38 = vld [vmem:[#allocation202_spill] sm:$0xff]  ;;  %vm1695_vm3 = vcmp.lt.s32.totalorder %v5527_v5, 97 }
 0x378   : > { %v6802_v25 = vpop.permute.xlu1 %635  ;;  %9026 = vst [vmem:[#allocation69_spill] sm:$0xff] %v6875_v30  ;;  %v1449_v53 = vsel %vm1447_vm5, %v9024_v43, %v9025_v46  ;;  %v2547_v40 = vsel %vm1447_vm5, %v9029_v6, %v9028_v14  ;;  %v2548_v39 = vsel %vm1447_vm5, %v9028_v14, %v9029_v6  ;;  %v6895_v52 = vrot.slane %v6814_v62, %v8999_v44  ;;  %v6905_v43 = vpop.permute.xlu0 %820  ;;  %v9033_v6 = vld [vmem:[#allocation134_spill] sm:$0xff] }
 0x379   : > { %9009 = vst [vmem:[#allocation48_spill] sm:$0xff] %v6802_v25  ;;  %1891 = vrot.lane.b32.xlu1 %v6433_v35, %s4425_s17  ;;  %v6899_v42 = vrot.slane %v6818_v19, %v8999_v44  ;;  %v6903_v46 = vrot.slane %v6814_v62, %v8998_v28  ;;  %9030 = vst [vmem:[#allocation50_spill] sm:$0xff] %v6905_v43  ;;  %v1458_v11 = vmul.f32 %v6751_v3, %v1448_v48  ;;  %v9043_v44 = vld [vmem:[#allocation26_spill] sm:$0xff] }
 0x37a   : > { %v1473_v14 = vsel %vm1472_vm6, %v9032_v1, %v9031_v38  ;;  %v6915_v49 = vmul.f32 %v9033_v6, %v6755_v9  ;;  %v6919_v16 = vrot.slane %v6818_v19, %v8998_v28  ;;  %v1459_v43 = vmul.f32 %v6769_v22, %v1449_v53  ;;  %v9036_v28 = vld [vmem:[#allocation211_spill] sm:$0xff] }
 0x37b   : > { %v2549_v48 = vmul.f32 %v2547_v40, %v6751_v3  ;;  %v2533_v18 = vmul.f32 %v9035_v58, %v6755_v9  ;;  %v2550_v6 = vmul.f32 %v2548_v39, %v6769_v22  ;;  %v2563_v53 = vsel %vm1472_vm6, %v9037_v41, %v9036_v28  ;;  %v9039_v40 = vld [vmem:[#allocation80_spill] sm:$0xff] }
 0x37c   : > { %v6863_v13 = vpop.permute.xlu1 %661  ;;  %v2564_v3 = vsel %vm1472_vm6, %v9036_v28, %v9037_v41  ;;  %v1483_v58 = vmul.f32 %v6780_v26, %v1473_v14  ;;  %v1434_v22 = vmul.f32 %v9039_v40, %v6759_v20  ;;  %v6950_v39 = vrot.slane %v6814_v62, %v9006_v15 }
 0x37d   : > { %9023 = vst [vmem:[#allocation56_spill] sm:$0xff] %v6863_v13  ;;  %1893 = vrot.lane.b32.xlu1 %v6460_v56, %s4425_s17  ;;  %v1474_v13 = vsel %vm1472_vm6, %v9031_v38, %v9032_v1  ;;  %v9038_v1 = vld [vmem:[#allocation91_spill] sm:$0xff]  ;;  %v6954_v9 = vrot.slane %v6818_v19, %v9006_v15  ;;  %v2566_v15 = vmul.f32 %v2564_v3, %v6784_v10  ;;  %vm1720_vm4 = vcmp.lt.s32.totalorder %v5527_v5, 96 }
 0x37e   : > { %v2534_v38 = vmul.f32 %v9038_v1, %v6759_v20  ;;  %9040 = vst [vmem:[#allocation75_spill] sm:$0xff] %v6950_v39  ;;  %v1484_v41 = vmul.f32 %v6784_v10, %v1474_v13  ;;  %v2539_v1 = vmul.f32 %v9043_v44, %v2533_v18  ;;  %v9045_v20 = vld [vmem:[#allocation113_spill] sm:$0xff]  ;;  %vm1745_vm5 = vcmp.lt.s32.totalorder %v5527_v5, 95 }
 0x37f   : > { %9041 = vst [vmem:[#allocation201_spill] sm:$0xff] %v6954_v9  ;;  %v2555_v39 = vmul.f32 %v9045_v20, %v2549_v48  ;;  %v6970_v9 = vpop.permute.xlu0 %2109  ;;  %v2556_v13 = vmul.f32 %v9045_v20, %v2550_v6  ;;  %v9047_v18 = vld [vmem:[#allocation129_spill] sm:$0xff]  ;;  %v6990_v20 = vrot.slane %v6814_v62, %v9007_v50  ;;  %v6994_v6 = vrot.slane %v6818_v19, %v9007_v50 }
 0x380   : > { %v6921_v25 = vpop.permute.xlu1 %1791  ;;  %v2540_v14 = vmul.f32 %v9043_v44, %v2534_v38  ;;  %9046 = vst [vmem:[#allocation46_spill] sm:$0xff] %v6970_v9  ;;  %v9048_v44 = vld [vmem:[#allocation213_spill] sm:$0xff]  ;;  %v9050_v38 = vld [vmem:[#allocation115_spill] sm:$0xff]  ;;  %v9055_v9 = vld [vmem:[#allocation150_spill] sm:$0xff]  ;;  %vm1770_vm6 = vcmp.lt.s32.totalorder %v5527_v5, 94  ;;  %vm1795_vm7 = vcmp.lt.s32.totalorder %v5527_v5, 93 }
 0x381   : > { %9034 = vst [vmem:[#allocation77_spill] sm:$0xff] %v6921_v25  ;;  %2068 = vrot.lane.b32.xlu1 %v6340_v45, %s8993_s21  ;;  %v9042_v25 = vld [vmem:[#allocation168_spill] sm:$0xff]  ;;  %v2565_v45 = vmul.f32 %v2563_v53, %v6780_v26  ;;  %v6982_v26 = vmul.f32 %v9050_v38, %v1483_v58  ;;  %v1499_v10 = vsel %vm1497_vm9, %v9047_v18, %v9048_v44  ;;  %9051 = vst [vmem:[#allocation205_spill] sm:$0xff] %v6990_v20  ;;  %v9053_v53 = vld [vmem:[#allocation131_spill] sm:$0xff] }
 0x382   : > { %v6957_v28 = vmul.f32 %v9042_v25, %v1458_v11  ;;  %v6965_v40 = vmul.f32 %v9042_v25, %v1459_v43  ;;  %v1498_v11 = vsel %vm1497_vm9, %v9048_v44, %v9047_v18  ;;  %v9049_v25 = vld [vmem:[#allocation57_spill] sm:$0xff]  ;;  %v9054_v58 = vld [vmem:[#allocation86_spill] sm:$0xff]  ;;  %v2542_v18 = vadd.f32 %v2540_v14, %v9055_v9 }
 0x383   : > { %v1413_v43 = vmul.f32 %v9049_v25, %v1407_v37  ;;  %v1414_v48 = vmul.f32 %v9049_v25, %v1408_v36  ;;  %v6997_v37 = vmul.f32 %v9050_v38, %v1484_v41  ;;  %v9052_v36 = vld [vmem:[#allocation44_spill] sm:$0xff]  ;;  %v2541_v25 = vadd.f32 %v2539_v1, %v9054_v58  ;;  %v9060_v14 = vld [vmem:[#allocation94_spill] sm:$0xff] }
 0x384   : > { %v6962_v29 = vpop.permute.xlu1 %1793  ;;  %v2579_v3 = vsel %vm1497_vm9, %v9053_v53, %v9052_v36  ;;  %v1508_v50 = vmul.f32 %v6788_v21, %v1498_v11  ;;  %v7012_v41 = vrot.slane %v6814_v62, %v9008_v12  ;;  %v1509_v38 = vmul.f32 %v6792_v7, %v1499_v10  ;;  %v9061_v11 = vld [vmem:[#allocation47_spill] sm:$0xff] }
 0x385   : > { %9044 = vst [vmem:[#allocation203_spill] sm:$0xff] %v6962_v29  ;;  %2070 = vrot.lane.b32.xlu1 %v6300_v61, %s8993_s21  ;;  %v9057_v29 = vld [vmem:[#allocation117_spill] sm:$0xff]  ;;  %v1415_v1 = vadd.f32 %v1413_v43, %v6869_v2  ;;  %v1416_v9 = vadd.f32 %v1414_v48, %v6871_v59  ;;  %v1523_v10 = vsel %vm1522_vm10, %v9061_v11, %v9060_v14  ;;  %v7036_v2 = vpop.permute.xlu0 %1959  ;;  %v9063_v43 = vld [vmem:[#allocation106_spill] sm:$0xff]  ;;  %vm1820_vm8 = vcmp.lt.s32.totalorder %v5527_v5, 83 }
 0x386   : > { %v2571_v20 = vmul.f32 %v9057_v29, %v2565_v45  ;;  %v2572_v61 = vmul.f32 %v9057_v29, %v2566_v15  ;;  %9058 = vst [vmem:[#allocation64_spill] sm:$0xff] %v7012_v41  ;;  %v7021_v45 = vrot.slane %v6818_v19, %v9008_v12  ;;  %v2580_v29 = vsel %vm1497_vm9, %v9052_v36, %v9053_v53  ;;  %v9064_v48 = vld [vmem:[#allocation74_spill] sm:$0xff]  ;;  %v9065_v12 = vld [vmem:[#allocation187_spill] sm:$0xff] }
 0x387   : > { %v2581_v15 = vmul.f32 %v2579_v3, %v6788_v21  ;;  %v1524_v59 = vsel %vm1522_vm10, %v9060_v14, %v9061_v11  ;;  %9062 = vst [vmem:[#allocation60_spill] sm:$0xff] %v7036_v2  ;;  %v2595_v58 = vsel %vm1522_vm10, %v9064_v48, %v9063_v43  ;;  %v2596_v21 = vsel %vm1522_vm10, %v9063_v43, %v9064_v48  ;;  %v9066_v14 = vld [vmem:[#allocation133_spill] sm:$0xff]  ;;  %v9067_v11 = vld [vmem:[#allocation84_spill] sm:$0xff]  ;;  %v9069_v43 = vld [vmem:[#allocation123_spill] sm:$0xff] }
 0x388   : > { %v7005_v44 = vpop.permute.xlu1 %1995  ;;  %9059 = vst [vmem:[#allocation83_spill] sm:$0xff] %v7021_v45  ;;  %v2557_v36 = vadd.f32 %v2555_v39, %v2541_v25  ;;  %v2558_v53 = vadd.f32 %v2556_v13, %v2542_v18  ;;  %v1547_v2 = vsel %vm781_vm11, %v9067_v11, %v9066_v14  ;;  %v9068_v45 = vld [vmem:[#allocation30_spill] sm:$0xff]  ;;  %v7061_v39 = vmul.f32 %v9065_v12, %v1509_v38 }
 0x389   : > { %9056 = vst [vmem:[#allocation207_spill] sm:$0xff] %v7005_v44  ;;  %2847 = vrot.lane.b32.xlu1 %v6509_v8, %s4425_s17  ;;  %v7049_v44 = vmul.f32 %v9065_v12, %v1508_v50  ;;  %v1439_v41 = vmul.f32 %v9068_v45, %v6915_v49  ;;  %v1440_v8 = vmul.f32 %v9068_v45, %v1434_v22  ;;  %vm9140_vm9 = vcmp.lt.s32.totalorder %v5527_v5, 16 }
 0x38a   : > { %v2582_v13 = vmul.f32 %v2580_v29, %v6792_v7  ;;  %v1425_v50 = vadd.f32 %v6849_v51, %v1415_v1  ;;  %v1426_v25 = vadd.f32 %v6853_v60, %v1416_v9  ;;  %v1533_v18 = vmul.f32 %v6796_v24, %v1523_v10  ;;  %v9070_v51 = vld [vmem:[#allocation120_spill] sm:$0xff]  ;;  %v9071_v60 = vld [vmem:[#allocation135_spill] sm:$0xff]  ;;  %v7083_v10 = vpop.permute.xlu0 %2888  ;;  %vm9141_vm10 = vmmov %vm9140_vm9 }
 0x38b   : > { %v1534_v49 = vmul.f32 %v6800_v32, %v1524_v59  ;;  %v2597_v22 = vmul.f32 %v2595_v58, %v6796_v24  ;;  %v2598_v45 = vmul.f32 %v2596_v21, %v6800_v32  ;;  %v2587_v48 = vmul.f32 %v9069_v43, %v2581_v15  ;;  %9072 = vst [vmem:[#allocation90_spill] sm:$0xff] %v7083_v10 }
 0x38c   : > { %v7046_v3 = vpop.permute.xlu1 %1997  ;;  %v1549_v12 = vmul.f32 %v1547_v2, %v6808_v0  ;;  %v2573_v38 = vadd.f32 %v2571_v20, %v2557_v36  ;;  %v2574_v7 = vadd.f32 %v2572_v61, %v2558_v53  ;;  %v2611_v1 = vsel %vm781_vm11, %v9071_v60, %v9070_v51  ;;  %v9074_v2 = vld [vmem:[#allocation127_spill] sm:$0xff] }
 0x38d   : > { %2849 = vrot.lane.b32.xlu1 %v6578_v33, %s4425_s17  ;;  %v2612_v24 = vsel %vm781_vm11, %v9070_v51, %v9071_v60  ;;  %v1441_v9 = vadd.f32 %v1439_v41, %v1425_v50  ;;  %v1442_v32 = vadd.f32 %v1440_v8, %v1426_v25  ;;  %v2588_v61 = vmul.f32 %v9069_v43, %v2582_v13  ;;  %v9073_v8 = vld [vmem:[#allocation125_spill] sm:$0xff]  ;;  %v9078_v60 = vld [vmem:[#allocation215_spill] sm:$0xff] }
 0x38e   : > { %v1548_v20 = vsel %vm781_vm11, %v9066_v14, %v9067_v11  ;;  %v7094_v15 = vrot.slane %v6814_v62, %v8738_v23  ;;  %v7098_v41 = vrot.slane %v6818_v19, %v8738_v23  ;;  %v7101_v59 = vmul.f32 %v9073_v8, %v1533_v18  ;;  %v9075_v25 = vld [vmem:[#allocation73_spill] sm:$0xff] }
 0x38f   : > { %v2603_v58 = vmul.f32 %v9074_v2, %v2597_v22  ;;  %v2604_v21 = vmul.f32 %v9074_v2, %v2598_v45  ;;  %v2589_v36 = vadd.f32 %v2587_v48, %v2573_v38  ;;  %v2590_v53 = vadd.f32 %v2588_v61, %v2574_v7  ;;  %v9076_v48 = vld [vmem:[#allocation156_spill] sm:$0xff]  ;;  %v9077_v7 = vld [vmem:[#allocation111_spill] sm:$0xff] }
 0x390   : > { %v7073_v29 = vpop.permute.xlu1 %2012  ;;  %v2613_v14 = vmul.f32 %v2611_v1, %v6808_v0  ;;  %v2614_v11 = vmul.f32 %v2612_v24, %v6812_v63  ;;  %v1550_v50 = vmul.f32 %v1548_v20, %v6812_v63  ;;  %v7115_v18 = vmul.f32 %v9075_v25, %v1549_v12  ;;  %v9079_v12 = vld [vmem:[#allocation214_spill] sm:$0xff]  ;;  %v9129_v0 = vld [vmem:[#allocation49_spill] sm:$0xff] }
 0x391   : > { %777 = vrot.lane.b32.xlu1 %v6319_v57, %s4382_s27  ;;  %v7104_v57 = vmul.f32 %v9073_v8, %v1534_v49  ;;  %v1466_v49 = vadd.f32 %v6957_v28, %v1441_v9  ;;  %v1467_v22 = vadd.f32 %v6965_v40, %v1442_v32  ;;  %v2629_v38 = vmul.f32 %v9076_v48, %v6822_v4  ;;  %v2649_v40 = vpop.permute.xlu0 %2648  ;;  %v9081_v24 = vld [vmem:[#allocation170_spill] sm:$0xff] }
 0x392   : > { %v2619_v45 = vmul.f32 %v6613_v27, %v2613_v14  ;;  %v2620_v43 = vmul.f32 %v6613_v27, %v2614_v11  ;;  %v2630_v51 = vmul.f32 %v9077_v7, %v6826_v47  ;;  %v2659_v28 = vsel %vm1595_vm15, %v9079_v12, %v9078_v60  ;;  %v9080_v27 = vld [vmem:[#allocation172_spill] sm:$0xff]  ;;  %v9128_v63 = vld [vmem:[#allocation166_spill] sm:$0xff] }
 0x393   : > { %v2645_v1 = vmul.f32 %v9080_v27, %v6861_v34  ;;  %v2646_v9 = vmul.f32 %v9081_v24, %v6875_v30  ;;  %v2605_v32 = vadd.f32 %v2603_v58, %v2589_v36  ;;  %v2606_v61 = vadd.f32 %v2604_v21, %v2590_v53 }
 0x394   : > { %v7111_v13 = vpop.permute.xlu1 %2783  ;;  %v2635_v20 = vmul.f32 %v6845_v54, %v2629_v38  ;;  %v2636_v8 = vmul.f32 %v6845_v54, %v2630_v51  ;;  %v7145_v14 = vmul.f32 %v9075_v25, %v1550_v50  ;;  %v1491_v11 = vadd.f32 %v6982_v26, %v1466_v49  ;;  %v9082_v26 = vld [vmem:[#allocation143_spill] sm:$0xff]  ;;  %v9084_v49 = vld [vmem:[#allocation142_spill] sm:$0xff] }
 0x395   : > { %779 = vrot.lane.b32.xlu1 %v6278_v17, %s4382_s27  ;;  %v2660_v17 = vsel %vm1595_vm15, %v9078_v60, %v9079_v12  ;;  %v1492_v48 = vadd.f32 %v6997_v37, %v1467_v22  ;;  %v7151_v7 = vrot.slane %v6814_v62, %v5601_v31  ;;  %v2621_v58 = vadd.f32 %v2619_v45, %v2605_v32  ;;  %v9083_v37 = vld [vmem:[#allocation144_spill] sm:$0xff]  ;;  %v9085_v51 = vld [vmem:[#allocation218_spill] sm:$0xff]  ;;  %v9086_v60 = vld [vmem:[#allocation155_spill] sm:$0xff] }
 0x396   : > { %v2622_v21 = vadd.f32 %v2620_v43, %v2606_v61  ;;  %v2651_v54 = vmul.f32 %v2649_v40, %v2645_v1  ;;  %v2652_v36 = vmul.f32 %v2649_v40, %v2646_v9  ;;  %v2661_v53 = vmul.f32 %v2659_v28, %v6895_v52  ;;  %v9087_v40 = vld [vmem:[#allocation97_spill] sm:$0xff] }
 0x397   : > { %v2662_v50 = vmul.f32 %v2660_v17, %v6899_v42  ;;  %v7159_v25 = vmul.f32 %v9082_v26, %v6822_v4  ;;  %v7163_v62 = vrot.slane %v6818_v19, %v5601_v31  ;;  %v1597_v22 = vsel %vm1595_vm15, %v9083_v37, %v9084_v49  ;;  %v9088_v1 = vld [vmem:[#allocation101_spill] sm:$0xff] }
 0x398   : > { %v7142_v2 = vpop.permute.xlu1 %2785  ;;  %v2637_v45 = vadd.f32 %v2635_v20, %v2621_v58  ;;  %v2638_v43 = vadd.f32 %v2636_v8, %v2622_v21  ;;  %v2675_v19 = vsel %vm1620_vm0, %v9086_v60, %v9085_v51  ;;  %v2676_v12 = vsel %vm1620_vm0, %v9085_v51, %v9086_v60  ;;  %v9092_v21 = vld [vmem:[#allocation222_spill] sm:$0xff] }
 0x399   : > { %1916 = vrot.lane.b32.xlu1 %v6433_v35, %s4426_s20  ;;  %v1596_v35 = vsel %vm1595_vm15, %v9084_v49, %v9083_v37  ;;  %v1516_v28 = vadd.f32 %v7049_v44, %v1491_v11  ;;  %v1517_v17 = vadd.f32 %v7061_v39, %v1492_v48  ;;  %v1581_v27 = vmul.f32 %v9087_v40, %v6861_v34  ;;  %v9089_v44 = vld [vmem:[#allocation140_spill] sm:$0xff]  ;;  %v9095_v49 = vld [vmem:[#allocation105_spill] sm:$0xff]  ;;  %v9097_v51 = vld [vmem:[#allocation178_spill] sm:$0xff] }
 0x39a   : > { %v1582_v24 = vmul.f32 %v9088_v1, %v6875_v30  ;;  %v2653_v9 = vadd.f32 %v2651_v54, %v2637_v45  ;;  %v2654_v32 = vadd.f32 %v2652_v36, %v2638_v43  ;;  %v1606_v61 = vmul.f32 %v6895_v52, %v1596_v35  ;;  %v7200_v11 = vld [vmem:[#allocation9 + $0x58] sm:$0xff]  ;;  %v9093_v54 = vld [vmem:[#allocation221_spill] sm:$0xff] }
 0x39b   : > { %v1607_v20 = vmul.f32 %v6899_v42, %v1597_v22  ;;  %v2667_v8 = vmul.f32 %v9089_v44, %v2661_v53  ;;  %v2668_v39 = vmul.f32 %v9089_v44, %v2662_v50  ;;  %9091 = vst [vmem:[#allocation209_spill] sm:$0xff] %v7200_v11  ;;  %v2677_v48 = vmul.f32 %v2675_v19, %v6903_v46  ;;  %v9094_v53 = vld [vmem:[#allocation224_spill] sm:$0xff]  ;;  %v9101_v1 = vld [vmem:[#allocation137_spill] sm:$0xff]  ;;  %v9102_v44 = vld [vmem:[#allocation146_spill] sm:$0xff] }
 0x39c   : > { %v7174_v38 = vpop.permute.xlu1 %684  ;;  %v2678_v58 = vmul.f32 %v2676_v12, %v6919_v16  ;;  %v2691_v52 = vsel %vm1645_vm1, %v9093_v54, %v9092_v21  ;;  %v2692_v42 = vsel %vm1645_vm1, %v9092_v21, %v9093_v54  ;;  %v7216_v50 = vmul.f32 %v9094_v53, %v6839_v55  ;;  %v9096_v22 = vld [vmem:[#allocation228_spill] sm:$0xff]  ;;  %v9099_v12 = vld [vmem:[#allocation75_spill] sm:$0xff]  ;;  %v9104_v54 = vld [vmem:[#allocation226_spill] sm:$0xff] }
 0x39d   : > { %1918 = vrot.lane.b32.xlu1 %v6460_v56, %s4426_s20  ;;  %v7198_v56 = vld [vmem:[#allocation9 + $0x50] sm:$0xff]  ;;  %v1541_v26 = vadd.f32 %v7101_v59, %v1516_v28  ;;  %v1542_v37 = vadd.f32 %v7104_v57, %v1517_v17  ;;  %v1566_v35 = vmul.f32 %v9095_v49, %v6826_v47  ;;  %v2669_v45 = vadd.f32 %v2667_v8, %v2653_v9  ;;  %v9100_v17 = vld [vmem:[#allocation201_spill] sm:$0xff] }
 0x39e   : > { %9090 = vst [vmem:[#allocation88_spill] sm:$0xff] %v7198_v56  ;;  %v2670_v43 = vadd.f32 %v2668_v39, %v2654_v32  ;;  %v7227_v60 = vrot.slane %v7198_v56, %v9097_v51  ;;  %v7231_v55 = vrot.slane %v7200_v11, %v9097_v51  ;;  %v9098_v59 = vld [vmem:[#allocation122_spill] sm:$0xff]  ;;  %v2693_v28 = vmul.f32 %v2691_v52, %v9099_v12  ;;  %v9105_v52 = vld [vmem:[#allocation167_spill] sm:$0xff]  ;;  %v9120_v34 = vld [vmem:[#allocation37_spill] sm:$0xff] }
 0x39f   : > { %v7234_v57 = vmul.f32 %v9098_v59, %v1581_v27  ;;  %v7237_v19 = vmul.f32 %v9098_v59, %v1582_v24  ;;  %v2694_v40 = vmul.f32 %v2692_v42, %v9100_v17  ;;  %v7242_v9 = vmul.f32 %v9101_v1, %v1606_v61  ;;  %v9108_v42 = vld [vmem:[#allocation216_spill] sm:$0xff]  ;;  %v9122_v47 = vld [vmem:[#allocation83_spill] sm:$0xff] }
 0x3a0   : > { %v7212_v36 = vpop.permute.xlu1 %686  ;;  %v7245_v32 = vmul.f32 %v9101_v1, %v1607_v20  ;;  %v2683_v8 = vmul.f32 %v9102_v44, %v2677_v48  ;;  %v2684_v39 = vmul.f32 %v9102_v44, %v2678_v58  ;;  %v1557_v24 = vadd.f32 %v7115_v18, %v1541_v26  ;;  %v9106_v48 = vld [vmem:[#allocation139_spill] sm:$0xff]  ;;  %v9107_v58 = vld [vmem:[#allocation153_spill] sm:$0xff]  ;;  %v9112_v44 = vld [vmem:[#allocation234_spill] sm:$0xff] }
 0x3a1   : > { %2084 = vrot.lane.b32.xlu1 %v9096_v22, %s4382_s27  ;;  %v1558_v21 = vadd.f32 %v7145_v14, %v1542_v37  ;;  %v2707_v61 = vsel %vm1670_vm2, %v9105_v52, %v9104_v54  ;;  %v2708_v20 = vsel %vm1670_vm2, %v9104_v54, %v9105_v52  ;;  %v1621_v18 = vsel %vm1620_vm0, %v9108_v42, %v9107_v58  ;;  %v9109_v37 = vld [vmem:[#allocation179_spill] sm:$0xff]  ;;  %v9113_v54 = vld [vmem:[#allocation232_spill] sm:$0xff] }
 0x3a2   : > { %v2685_v26 = vadd.f32 %v2683_v8, %v2669_v45  ;;  %v2686_v14 = vadd.f32 %v2684_v39, %v2670_v43  ;;  %v7270_v49 = vrot.slane %v7198_v56, %v9109_v37  ;;  %v9111_v22 = vld [vmem:[#allocation151_spill] sm:$0xff]  ;;  %v2723_v52 = vsel %vm1695_vm3, %v9113_v54, %v9112_v44  ;;  %v9114_v45 = vld [vmem:[#allocation205_spill] sm:$0xff]  ;;  %v9115_v39 = vld [vmem:[#allocation186_spill] sm:$0xff] }
 0x3a3   : > { %v2699_v59 = vmul.f32 %v9111_v22, %v2693_v28  ;;  %v2700_v1 = vmul.f32 %v9111_v22, %v2694_v40  ;;  %v2709_v43 = vmul.f32 %v2707_v61, %v9114_v45  ;;  %v2710_v8 = vmul.f32 %v2708_v20, %v6994_v6  ;;  %v9116_v28 = vld [vmem:[#allocation177_spill] sm:$0xff]  ;;  %v9118_v20 = vld [vmem:[#allocation34_spill] sm:$0xff] }
 0x3a4   : > { %v7250_v27 = vpop.permute.xlu1 %1816  ;;  %9110 = vst [vmem:[#allocation53_spill] sm:$0xff] %v7270_v49  ;;  %v2739_v40 = vsel %vm1720_vm4, %v9116_v28, %v9115_v39  ;;  %v2740_v22 = vsel %vm1720_vm4, %v9115_v39, %v9116_v28  ;;  %v7300_v61 = vmul.f32 %v6903_v46, %v1621_v18  ;;  %v7306_v30 = vrot.slane %v7200_v11, %v9109_v37  ;;  %v9121_v39 = vld [vmem:[#allocation64_spill] sm:$0xff] }
 0x3a5   : > { %9103 = vst [vmem:[#allocation210_spill] sm:$0xff] %v7250_v27  ;;  %2086 = vrot.lane.b32.xlu1 %v9106_v48, %s4382_s27  ;;  %v2724_v48 = vsel %vm1695_vm3, %v9112_v44, %v9113_v54  ;;  %v1622_v44 = vsel %vm1620_vm0, %v9107_v58, %v9108_v42  ;;  %v1571_v54 = vmul.f32 %v9118_v20, %v7159_v25  ;;  %v9123_v42 = vld [vmem:[#allocation39_spill] sm:$0xff]  ;;  %v9124_v18 = vld [vmem:[#allocation200_spill] sm:$0xff]  ;;  %vm9145_vm15 = vcmp.lt.s32.totalorder %v5527_v5, 17  ;;  %s606_s27 = scalar_lea.vmem [#allocation12], %s4737_s19  ;;  %s3633_s19 = scalar_lea.sflag [#allocation6], %s4734_s4 }
 0x3a6   : > { %9119 = vst [vmem:[#allocation96_spill] sm:$0xff] %v7306_v30  ;;  %v2725_v28 = vmul.f32 %v2723_v52, %v9121_v39  ;;  %v2726_v4 = vmul.f32 %v2724_v48, %v9122_v47  ;;  %v2701_v31 = vadd.f32 %v2699_v59, %v2685_v26  ;;  %v2702_v51 = vadd.f32 %v2700_v1, %v2686_v14  ;;  %v9125_v48 = vld [vmem:[#allocation220_spill] sm:$0xff]  ;;  %v9126_v26 = vld [vmem:[#allocation219_spill] sm:$0xff]  ;;  %v9127_v59 = vld [vmem:[#allocation157_spill] sm:$0xff] }
 0x3a7   : > { %v2741_v58 = vmul.f32 %v2739_v40, %v7094_v15  ;;  %v2742_v46 = vmul.f32 %v2740_v22, %v7098_v41  ;;  %v2755_v25 = vsel %vm1745_vm5, %v9124_v18, %v9123_v42  ;;  %v7323_v52 = vmul.f32 %v6919_v16, %v1622_v44  ;;  %vm9146_vm0 = vmmov %vm9145_vm15 }
 0x3a8   : > { %v7293_v10 = vpop.permute.xlu1 %1818  ;;  %v1646_v14 = vsel %vm1645_vm1, %v9126_v26, %v9125_v48  ;;  %v2715_v1 = vmul.f32 %v9127_v59, %v2709_v43  ;;  %v2716_v40 = vmul.f32 %v9127_v59, %v2710_v8  ;;  %v1572_v37 = vmul.f32 %v9118_v20, %v1566_v35 }
 0x3a9   : > { %9117 = vst [vmem:[#allocation72_spill] sm:$0xff] %v7293_v10  ;;  %2863 = vrot.lane.b32.xlu1 %v9120_v34, %s4426_s20  ;;  %v2756_v34 = vsel %vm1745_vm5, %v9123_v42, %v9124_v18  ;;  %v1573_v23 = vadd.f32 %v1571_v54, %v1557_v24  ;;  %v2771_v42 = vsel %vm1770_vm6, %v9129_v0, %v9128_v63  ;;  %v9130_v24 = vld [vmem:[#allocation161_spill] sm:$0xff] }
 0x3aa   : > { %v2772_v16 = vsel %vm1770_vm6, %v9128_v63, %v9129_v0  ;;  %v2717_v43 = vadd.f32 %v2715_v1, %v2701_v31  ;;  %v2718_v44 = vadd.f32 %v2716_v40, %v2702_v51  ;;  %v2757_v8 = vmul.f32 %v2755_v25, %v7151_v7  ;;  %v9131_v18 = vld [vmem:[#allocation169_spill] sm:$0xff] }
 0x3ab   : > { %v2758_v35 = vmul.f32 %v2756_v34, %v7163_v62  ;;  %v2731_v20 = vmul.f32 %v9130_v24, %v2725_v28  ;;  %v2732_v54 = vmul.f32 %v9130_v24, %v2726_v4  ;;  %v2747_v59 = vmul.f32 %v9131_v18, %v2741_v58  ;;  %v7368_v34 = vld [vmem:[%s4741_s26] sm:$0xff] }
 0x3ac   : > { %v2027_v22 = vpop.permute.xlu1 %2026  ;;  %v2748_v27 = vmul.f32 %v9131_v18, %v2742_v46  ;;  %v2773_v0 = vmul.f32 %v2771_v42, %v7227_v60  ;;  %v2774_v63 = vmul.f32 %v2772_v16, %v7231_v55  ;;  %v2787_v31 = vsel %vm1795_vm7, %v7111_v13, %v7142_v2  ;;  %9132 = vst [vmem:[#allocation71_spill] sm:$0xff] %v7368_v34  ;;  %v9136_v18 = vld [vmem:[#allocation223_spill] sm:$0xff] }
 0x3ad   : > { %2865 = vrot.lane.b32.xlu1 %v6578_v33, %s4426_s20  ;;  %v2788_v51 = vsel %vm1795_vm7, %v7142_v2, %v7111_v13  ;;  %v1574_v4 = vadd.f32 %v1572_v37, %v1558_v21  ;;  %v1589_v58 = vadd.f32 %v7234_v57, %v1573_v23  ;;  %v2733_v1 = vadd.f32 %v2731_v20, %v2717_v43  ;;  %v9133_v13 = vld [vmem:[#allocation173_spill] sm:$0xff]  ;;  %v9134_v43 = vld [vmem:[#allocation183_spill] sm:$0xff] }
 0x3ae   : > { %v2734_v40 = vadd.f32 %v2732_v54, %v2718_v44  ;;  %v2763_v2 = vmul.f32 %v9133_v13, %v2757_v8  ;;  %v2764_v23 = vmul.f32 %v9133_v13, %v2758_v35  ;;  %v1647_v57 = vsel %vm1645_vm1, %v9125_v48, %v9126_v26  ;;  %v9135_v54 = vld [vmem:[#allocation164_spill] sm:$0xff]  ;;  %v7391_v48 = vld [vmem:[%s4741_s26 + $0x8] sm:$0xff]  ;;  %v9144_v13 = vld [vmem:[#allocation51_spill] sm:$0xff] }
 0x3af   : > { %v1656_v21 = vmul.f32 %v9099_v12, %v1646_v14  ;;  %v2789_v37 = vmul.f32 %v2787_v31, %v7270_v49  ;;  %v2749_v42 = vadd.f32 %v2747_v59, %v2733_v1  ;;  %v2779_v44 = vmul.f32 %v9134_v43, %v2773_v0  ;;  %v9137_v14 = vld [vmem:[#allocation181_spill] sm:$0xff]  ;;  %v9138_v59 = vld [vmem:[#allocation56_spill] sm:$0xff] }
 0x3b0   : > { %v2029_v28 = vpop.permute.xlu1 %2028  ;;  %v2750_v16 = vadd.f32 %v2748_v27, %v2734_v40  ;;  %v2780_v24 = vmul.f32 %v9134_v43, %v2774_v63  ;;  %v1590_v35 = vadd.f32 %v7237_v19, %v1574_v4  ;;  %v1614_v20 = vadd.f32 %v7242_v9, %v1589_v58  ;;  %v9139_v0 = vld [vmem:[#allocation100_spill] sm:$0xff] }
 0x3b1   : > { %v7361_v46 = vsel %vm688_vm14, %v2027_v22, %v2029_v28  ;;  %v7365_v25 = vsel %vm688_vm14, %v2029_v28, %v2027_v22  ;;  %802 = vrot.lane.b32.xlu1 %v7368_v34, %s4408_s5  ;;  %v2790_v22 = vmul.f32 %v2788_v51, %v7306_v30  ;;  %v1671_v12 = vsel %vm1670_vm2, %v9136_v18, %v9135_v54  ;;  %v9142_v51 = vld [vmem:[#allocation204_spill] sm:$0xff] }
 0x3b2   : > { %v2765_v27 = vadd.f32 %v2763_v2, %v2749_v42  ;;  %v2766_v26 = vadd.f32 %v2764_v23, %v2750_v16  ;;  %v7397_v19 = vrot.slane %v7198_v56, %v9137_v14  ;;  %v7401_v9 = vrot.slane %v7200_v11, %v9137_v14  ;;  %v9143_v40 = vld [vmem:[#allocation48_spill] sm:$0xff]  ;;  %v9152_v11 = vld [vmem:[#allocation55_spill] sm:$0xff] }
 0x3b3   : > { %v664_v63 = vsel %vm9140_vm9, %v9139_v0, %v9138_v59  ;;  %v665_v31 = vsel %vm9141_vm10, %v9138_v59, %v9139_v0  ;;  %v2795_v28 = vmul.f32 %v9142_v51, %v2789_v37  ;;  %v2796_v4 = vmul.f32 %v9142_v51, %v2790_v22  ;;  %v9150_v51 = vld [vmem:[#allocation79_spill] sm:$0xff]  ;;  %v9153_v30 = vld [vmem:[#allocation52_spill] sm:$0xff]  ;;  %vm9170_vm10 = vmmov %vm9140_vm9 }
 0x3b4   : > { %v2800_v8 = vpop.permute.xlu1 %2799  ;;  %v2781_v58 = vadd.f32 %v2779_v44, %v2765_v27  ;;  %v2782_v1 = vadd.f32 %v2780_v24, %v2766_v26  ;;  %v640_v2 = vsel %vm9145_vm15, %v9144_v13, %v9143_v40  ;;  %v641_v23 = vsel %vm9146_vm0, %v9143_v40, %v9144_v13  ;;  %v7434_v44 = vld [vmem:[%s4741_s26 + $0x18] sm:$0xff]  ;;  %v9148_v26 = vld [vmem:[#allocation66_spill] sm:$0xff]  ;;  %vm9175_vm15 = vmmov %vm9146_vm0  ;;  %s9245_s26 = sld [smem:[#allocation239_spill]] }
 0x3b5   : > { %804 = vrot.lane.b32.xlu1 %v7391_v48, %s4408_s5  ;;  %v689_v37 = vsel %vm688_vm14, %v7174_v38, %v7212_v36  ;;  %v690_v22 = vsel %vm688_vm14, %v7212_v36, %v7174_v38  ;;  %v9147_v24 = vld [vmem:[#allocation87_spill] sm:$0xff]  ;;  %v675_v14 = vmul.f32 %v9148_v26, %v664_v63  ;;  %v9149_v36 = vld [vmem:[#allocation81_spill] sm:$0xff]  ;;  %v651_v40 = vmul.f32 %v9150_v51, %v640_v2 }
 0x3b6   : > { %v674_v27 = vmul.f32 %v9147_v24, %v665_v31  ;;  %v650_v0 = vmul.f32 %v9149_v36, %v641_v23  ;;  %v2797_v13 = vadd.f32 %v2795_v28, %v2781_v58  ;;  %v700_v10 = vmul.f32 %v9152_v11, %v689_v37  ;;  %v9154_v56 = vld [vmem:[#allocation107_spill] sm:$0xff] }
 0x3b7   : > { %v1615_v23 = vadd.f32 %v7245_v32, %v1590_v35  ;;  %v1672_v28 = vsel %vm1670_vm2, %v9135_v54, %v9136_v18  ;;  %v9156_v32 = vld [vmem:[#allocation149_spill] sm:$0xff]  ;;  %v1681_v54 = vmul.f32 %v9114_v45, %v1671_v12  ;;  %v9157_v18 = vld [vmem:[#allocation31_spill] sm:$0xff]  ;;  %vm9159_vm14 = vcmp.lt.s32.totalorder %v5527_v5, 1 }
 0x3b8   : > { %v2802_v42 = vpop.permute.xlu1 %2801  ;;  %v657_v37 = vmul.f32 %v9157_v18, %v650_v0  ;;  %vm9160_vm1 = vmmov %vm9159_vm14  ;;  %vm1845_vm2 = vcmp.lt.s32.totalorder %v5527_v5, 82 }
 0x3b9   : > { %v2803_v16 = vsel %vm1820_vm8, %v2800_v8, %v2802_v42  ;;  %v2804_v43 = vsel %vm1820_vm8, %v2802_v42, %v2800_v8  ;;  %1943 = vrot.lane.b32.xlu1 %v7434_v44, %s4423_s13  ;;  %v2798_v8 = vadd.f32 %v2796_v4, %v2782_v1  ;;  %v9151_v42 = vld [vmem:[#allocation92_spill] sm:$0xff]  ;;  %v7458_v4 = vld [vmem:[%s4749_s18 + $0x8] sm:$0xff] }
 0x3ba   : > { %v2805_v59 = vmul.f32 %v2803_v16, %v7397_v19  ;;  %v2806_v38 = vmul.f32 %v2804_v43, %v7401_v9  ;;  %v699_v34 = vmul.f32 %v9151_v42, %v690_v22  ;;  %v1637_v16 = vmul.f32 %v9154_v56, %v7300_v61 }
 0x3bb   : > { %v1638_v43 = vmul.f32 %v9154_v56, %v7323_v52  ;;  %v1657_v56 = vmul.f32 %v9100_v17, %v1647_v57  ;;  %v1662_v52 = vmul.f32 %v9156_v32, %v1656_v21  ;;  %v658_v22 = vmul.f32 %v9157_v18, %v651_v40 }
 0x3bc   : > { %v2811_v49 = vmul.f32 %v9153_v30, %v2805_v59  ;;  %v2812_v31 = vmul.f32 %v9153_v30, %v2806_v38  ;;  %v710_v63 = vpop.permute.xlu1 %709  ;;  %v9155_v30 = vld [vmem:[#allocation185_spill] sm:$0xff]  ;;  %v1639_v35 = vadd.f32 %v1637_v16, %v1614_v20  ;;  %v9161_v20 = vld [vmem:[#allocation128_spill] sm:$0xff] }
 0x3bd   : > { %2102 = vrot.lane.b32.xlu1 %v7458_v4, %s4408_s5  ;;  %v680_v58 = vmul.f32 %v9155_v30, %v674_v27  ;;  %v681_v1 = vmul.f32 %v9155_v30, %v675_v14  ;;  %v9158_v59 = vld [vmem:[#allocation25_spill] sm:$0xff]  ;;  %s3646_s5 = sshll.u32 %s606_s27, 4  ;;  %s8030_s5 = int_to_ptr.vmem [resolvable:$true] %s3646_s5 }
 0x3be   : > { %v7464_v61 = vadd.f32 %v2811_v49, %v2797_v13  ;;  %v7466_v2 = vadd.f32 %v2812_v31, %v2798_v8  ;;  %v705_v38 = vmul.f32 %v9158_v59, %v699_v34  ;;  %v706_v27 = vmul.f32 %v9158_v59, %v700_v10  ;;  %v9162_v34 = vld [vmem:[#allocation95_spill] sm:$0xff]  ;;  %v9163_v10 = vld [vmem:[#allocation38_spill] sm:$0xff]  ;;  %v9165_v16 = vld [vmem:[#allocation229_spill] sm:$0xff]  ;;  %s4244_s25 = scalar_lea.vmem %s8030_s5, 512 }
 0x3bf   : > { %v1640_v49 = vadd.f32 %v1638_v43, %v1615_v23  ;;  %v1682_v13 = vmul.f32 %v6994_v6, %v1672_v28  ;;  %v682_v45 = vadd.f32 %v680_v58, %v657_v37  ;;  %v683_v21 = vadd.f32 %v681_v1, %v658_v22  ;;  %v9164_v31 = vld [vmem:[#allocation231_spill] sm:$0xff]  ;;  %v9167_v1 = vld [vmem:[#allocation76_spill] sm:$0xff]  ;;  %p4245_p1 = scmp.ne.s32.totalorder %s8030_s5, %s4244_s25 }
 0x3c0   : > { %v712_v14 = vpop.permute.xlu1 %711  ;;  %v749_v40 = vmul.f32 %v9094_v53, %v9163_v10  ;;  %v1663_v6 = vmul.f32 %v9156_v32, %v1657_v56  ;;  %v1664_v8 = vadd.f32 %v1662_v52, %v1639_v35  ;;  %v2059_v18 = vmul.f32 %v7458_v4, %v9167_v1  ;;  %v9168_v53 = vld [vmem:[#allocation217_spill] sm:$0xff] }
 0x3c1   : > { %v714_v17 = vsel %vm9159_vm14, %v710_v63, %v712_v14  ;;  %v715_v57 = vsel %vm9160_vm1, %v712_v14, %v710_v63  ;;  %2881 = vrot.lane.b32.xlu1 %v6578_v33, %s4423_s13  ;;  %v1696_v63 = vsel %vm1695_vm3, %v9165_v16, %v9164_v31  ;;  %v707_v43 = vadd.f32 %v705_v38, %v682_v45  ;;  %v9166_v33 = vld [vmem:[#allocation108_spill] sm:$0xff]  ;;  %v9171_v14 = vld [vmem:[#allocation175_spill] sm:$0xff]  ;;  %s9243_s13 = sld [smem:[#allocation238_spill]]  ;;  %p4246_p6 = pnand %p4245_p1, %p9247_p13 }
 0x3c2   : > { %v724_v12 = vmul.f32 %v9161_v20, %v715_v57  ;;  %v725_v0 = vmul.f32 %v9162_v34, %v714_v17  ;;  %v708_v23 = vadd.f32 %v706_v27, %v683_v21  ;;  %v1665_v37 = vadd.f32 %v1663_v6, %v1640_v49  ;;  %v9169_v27 = vld [vmem:[#allocation114_spill] sm:$0xff]  ;;  %v9172_v49 = vld [vmem:[#allocation27_spill] sm:$0xff] }
 0x3c3   : > { %v1687_v22 = vmul.f32 %v9168_v53, %v1681_v54  ;;  %v1688_v56 = vmul.f32 %v9168_v53, %v1682_v13  ;;  %v1706_v32 = vmul.f32 %v9121_v39, %v1696_v63  ;;  %v1697_v38 = vsel %vm1695_vm3, %v9164_v31, %v9165_v16  ;;  %vm9174_vm3 = vmmov %vm9146_vm0  ;;  %v9176_v6 = vld [vmem:[#allocation159_spill] sm:$0xff]  ;;  %p4247_p10 = pneg %p4246_p6 }
 0x3c4   : > { %v730_v28 = vmul.f32 %v9166_v33, %v724_v12  ;;  %v731_v30 = vmul.f32 %v9166_v33, %v725_v0  ;;  %v1842_v58 = vpop.permute.xlu1 %1841  ;;  %v2014_v54 = vsel %vm9140_vm9, %v9169_v27, %v7073_v29  ;;  %v2015_v39 = vsel %vm9170_vm10, %v7073_v29, %v9169_v27  ;;  %v9173_v12 = vld [vmem:[#allocation207_spill] sm:$0xff] }
 0x3c5   : > { %829 = vrot.lane.b32.xlu1 %v7391_v48, %s4383_s0  ;;  %v1689_v59 = vadd.f32 %v1687_v22, %v1664_v8  ;;  %v1721_v13 = vsel %vm1720_vm4, %v9172_v49, %v9171_v14  ;;  %v1722_v17 = vsel %vm1720_vm4, %v9171_v14, %v9172_v49  ;;  %v1999_v29 = vsel %vm9174_vm3, %v9173_v12, %v7046_v3  ;;  %v9186_v14 = vld [vmem:[#allocation208_spill] sm:$0xff]  ;;  %vm9187_vm4 = vmmov %vm9160_vm1 }
 0x3c6   : > { %v732_v52 = vadd.f32 %v730_v28, %v707_v43  ;;  %v733_v35 = vadd.f32 %v731_v30, %v708_v23  ;;  %v2000_v0 = vsel %vm9175_vm15, %v7046_v3, %v9173_v12  ;;  %v1712_v8 = vmul.f32 %v9176_v6, %v1706_v32  ;;  %v9177_v43 = vld [vmem:[#allocation189_spill] sm:$0xff]  ;;  %v9178_v23 = vld [vmem:[#allocation192_spill] sm:$0xff]  ;;  %v9179_v28 = vld [vmem:[#allocation198_spill] sm:$0xff] }
 0x3c7   : > { %v2016_v31 = vmul.f32 %v2015_v39, %v9147_v24  ;;  %v2017_v16 = vmul.f32 %v2014_v54, %v9148_v26  ;;  %v1731_v3 = vmul.f32 %v7094_v15, %v1721_v13  ;;  %v1732_v63 = vmul.f32 %v7098_v41, %v1722_v17  ;;  %v9180_v30 = vld [vmem:[#allocation227_spill] sm:$0xff]  ;;  %v9185_v39 = vld [vmem:[#allocation45_spill] sm:$0xff] }
 0x3c8   : > { %v1844_v57 = vpop.permute.xlu1 %1843  ;;  %v7522_v45 = vadd.f32 %v7216_v50, %v732_v52  ;;  %v7524_v21 = vadd.f32 %v749_v40, %v733_v35  ;;  %v1707_v40 = vmul.f32 %v9122_v47, %v1697_v38  ;;  %v1746_v33 = vsel %vm1745_vm5, %v9178_v23, %v9177_v43  ;;  %v9184_v38 = vld [vmem:[#allocation29_spill] sm:$0xff]  ;;  %v7593_v17 = vld [vmem:[%s4749_s18 + $0x18] sm:$0xff] }
 0x3c9   : > { %v7536_v10 = vsel %vm1845_vm2, %v1842_v58, %v1844_v57  ;;  %v7540_v50 = vsel %vm1845_vm2, %v1844_v57, %v1842_v58  ;;  %1968 = vrot.lane.b32.xlu1 %v7434_v44, %s4424_s14  ;;  %v1747_v47 = vsel %vm1745_vm5, %v9177_v43, %v9178_v23  ;;  %v2001_v44 = vmul.f32 %v2000_v0, %v9149_v36  ;;  %vm9188_vm5 = vmmov %vm9160_vm1 }
 0x3ca   : > { %v2002_v24 = vmul.f32 %v1999_v29, %v9150_v51  ;;  %v2032_v26 = vmul.f32 %v7365_v25, %v9151_v42  ;;  %v2033_v15 = vmul.f32 %v7361_v46, %v9152_v11  ;;  %v2064_v58 = vmul.f32 %v9180_v30, %v9179_v28  ;;  %v9181_v51 = vld [vmem:[#allocation36_spill] sm:$0xff]  ;;  %v9182_v42 = vld [vmem:[#allocation225_spill] sm:$0xff]  ;;  %v9193_v28 = vld [vmem:[#allocation182_spill] sm:$0xff] }
 0x3cb   : > { %v2065_v1 = vmul.f32 %v9180_v30, %v2059_v18  ;;  %v1690_v53 = vadd.f32 %v1688_v56, %v1665_v37  ;;  %v1713_v36 = vmul.f32 %v9176_v6, %v1707_v40  ;;  %v1714_v22 = vadd.f32 %v1712_v8, %v1689_v59  ;;  %v9183_v37 = vld [vmem:[#allocation191_spill] sm:$0xff]  ;;  %v9194_v30 = vld [vmem:[#allocation88_spill] sm:$0xff] }
 0x3cc   : > { %v2043_v41 = vpop.permute.xlu1 %2042  ;;  %v2022_v32 = vmul.f32 %v9181_v51, %v2016_v31  ;;  %v2023_v25 = vmul.f32 %v9181_v51, %v2017_v16  ;;  %v1737_v11 = vmul.f32 %v9182_v42, %v1731_v3  ;;  %v1738_v46 = vmul.f32 %v9182_v42, %v1732_v63  ;;  %v9189_v6 = vld [vmem:[#allocation171_spill] sm:$0xff]  ;;  %v9191_v16 = vld [vmem:[#allocation77_spill] sm:$0xff]  ;;  %v9196_v42 = vld [vmem:[#allocation96_spill] sm:$0xff] }
 0x3cd   : > { %2118 = vrot.lane.b32.xlu1 %v7458_v4, %s4383_s0  ;;  %v1756_v52 = vmul.f32 %v7151_v7, %v1746_v33  ;;  %v1757_v18 = vmul.f32 %v7163_v62, %v1747_v47  ;;  %v2008_v56 = vmul.f32 %v9183_v37, %v2001_v44  ;;  %v2009_v35 = vmul.f32 %v9183_v37, %v2002_v24  ;;  %v9190_v31 = vld [vmem:[#allocation203_spill] sm:$0xff]  ;;  %v9197_v37 = vld [vmem:[#allocation72_spill] sm:$0xff]  ;;  %s9242_s0 = sld [smem:[#allocation240_spill]] }
 0x3ce   : > { %v2038_v27 = vmul.f32 %v9184_v38, %v2032_v26  ;;  %v2039_v59 = vmul.f32 %v9184_v38, %v2033_v15  ;;  %v1771_v49 = vsel %vm1770_vm6, %v9186_v14, %v9185_v39  ;;  %v1772_v7 = vsel %vm1770_vm6, %v9185_v39, %v9186_v14  ;;  %v9192_v33 = vld [vmem:[#allocation67_spill] sm:$0xff] }
 0x3cf   : > { %v2024_v57 = vadd.f32 %v2022_v32, %v2008_v56  ;;  %v2025_v12 = vadd.f32 %v2023_v25, %v2009_v35  ;;  %v1715_v40 = vadd.f32 %v1713_v36, %v1690_v53  ;;  %v1762_v8 = vmul.f32 %v9189_v6, %v1756_v52  ;;  %v9195_v32 = vld [vmem:[#allocation53_spill] sm:$0xff]  ;;  %v9198_v56 = vld [vmem:[#allocation210_spill] sm:$0xff] }
 0x3d0   : > { %v2045_v54 = vpop.permute.xlu1 %2044  ;;  %v1796_v3 = vsel %vm1795_vm7, %v9191_v16, %v9190_v31  ;;  %v1797_v63 = vsel %vm1795_vm7, %v9190_v31, %v9191_v16  ;;  %v1739_v44 = vadd.f32 %v1737_v11, %v1714_v22  ;;  %v1781_v26 = vmul.f32 %v7227_v60, %v1771_v49  ;;  %v9199_v11 = vld [vmem:[#allocation209_spill] sm:$0xff]  ;;  %v9203_v16 = vld [vmem:[#allocation184_spill] sm:$0xff] }
 0x3d1   : > { %v2046_v62 = vsel %vm9187_vm4, %v2043_v41, %v2045_v54  ;;  %v2047_v13 = vsel %vm9188_vm5, %v2045_v54, %v2043_v41  ;;  %2897 = vrot.lane.b32.xlu1 %v7593_v17, %s4424_s14  ;;  %v2040_v43 = vadd.f32 %v2038_v27, %v2024_v57  ;;  %v2041_v23 = vadd.f32 %v2039_v59, %v2025_v12  ;;  %v9200_v27 = vld [vmem:[#allocation28_spill] sm:$0xff] }
 0x3d2   : > { %v2048_v29 = vmul.f32 %v2047_v13, %v9161_v20  ;;  %v2049_v0 = vmul.f32 %v2046_v62, %v9162_v34  ;;  %v1740_v24 = vadd.f32 %v1738_v46, %v1715_v40  ;;  %v1782_v15 = vmul.f32 %v7231_v55, %v1772_v7  ;;  %v9201_v57 = vld [vmem:[#allocation196_spill] sm:$0xff] }
 0x3d3   : > { %v1763_v41 = vmul.f32 %v9189_v6, %v1757_v18  ;;  %v1851_v53 = vrot.slane %v9194_v30, %v9193_v28  ;;  %v1806_v25 = vmul.f32 %v9195_v32, %v1796_v3  ;;  %v1807_v52 = vmul.f32 %v9196_v42, %v1797_v63  ;;  %v9202_v40 = vld [vmem:[#allocation136_spill] sm:$0xff] }
 0x3d4   : > { %v2054_v47 = vmul.f32 %v9192_v33, %v2048_v29  ;;  %v2055_v20 = vmul.f32 %v9192_v33, %v2049_v0  ;;  %v2816_v34 = vpop.permute.xlu1 %2815  ;;  %v1821_v22 = vsel %vm1820_vm8, %v9198_v56, %v9197_v37  ;;  %v1822_v60 = vsel %vm1820_vm8, %v9197_v37, %v9198_v56 }
 0x3d5   : > { %v1764_v55 = vadd.f32 %v1762_v8, %v1739_v44  ;;  %v1855_v46 = vrot.slane %v9199_v11, %v9193_v28  ;;  %v1787_v59 = vmul.f32 %v9200_v27, %v1781_v26  ;;  %v1788_v54 = vmul.f32 %v9200_v27, %v1782_v15  ;;  %v9206_v15 = vld [vmem:[#allocation23_spill] sm:$0xff] }
 0x3d6   : > { %v2056_v36 = vadd.f32 %v2054_v47, %v2040_v43  ;;  %v2057_v51 = vadd.f32 %v2055_v20, %v2041_v23  ;;  %v1831_v49 = vmul.f32 %v7397_v19, %v1821_v22  ;;  %v1832_v7 = vmul.f32 %v7401_v9, %v1822_v60  ;;  %v9204_v43 = vld [vmem:[#allocation212_spill] sm:$0xff] }
 0x3d7   : > { %v1813_v12 = vmul.f32 %v9201_v57, %v1807_v52  ;;  %vm1870_vm6 = vcmp.lt.s32.totalorder %v5527_v5, 81  ;;  %v1856_v29 = vmul.f32 %v1851_v53, %v7536_v10  ;;  %v1857_v0 = vmul.f32 %v1855_v46, %v7540_v50 }
 0x3d8   : > { %v2818_v18 = vpop.permute.xlu1 %2817  ;;  %v7627_v35 = vadd.f32 %v2064_v58, %v2056_v36  ;;  %v7629_v38 = vadd.f32 %v2065_v1, %v2057_v51  ;;  %v1765_v58 = vadd.f32 %v1763_v41, %v1740_v24  ;;  %v1812_v1 = vmul.f32 %v9201_v57, %v1806_v25  ;;  %v9207_v25 = vld [vmem:[#allocation230_spill] sm:$0xff] }
 0x3d9   : > { %v2819_v39 = vsel %vm1845_vm2, %v2816_v34, %v2818_v18  ;;  %v2820_v14 = vsel %vm1845_vm2, %v2818_v18, %v2816_v34  ;;  %v1789_v9 = vadd.f32 %v1787_v59, %v1764_v55  ;;  %v1876_v3 = vrot.slane %v9194_v30, %v9203_v16  ;;  %v9205_v34 = vld [vmem:[#allocation70_spill] sm:$0xff] }
 0x3da   : > { %v2821_v62 = vmul.f32 %v2819_v39, %v1851_v53  ;;  %v2822_v13 = vmul.f32 %v2820_v14, %v1855_v46  ;;  %v1790_v31 = vadd.f32 %v1788_v54, %v1765_v58  ;;  %v1880_v63 = vrot.slane %v9199_v11, %v9203_v16  ;;  %v9208_v54 = vld [vmem:[#allocation233_spill] sm:$0xff] }
 0x3db   : > { %v1837_v23 = vmul.f32 %v9204_v43, %v1831_v49  ;;  %v1838_v10 = vmul.f32 %v9204_v43, %v1832_v7  ;;  %v1814_v47 = vadd.f32 %v1812_v1, %v1789_v9  ;;  %v1862_v44 = vmul.f32 %v9205_v34, %v1856_v29  ;;  %v9211_v1 = vld [vmem:[#allocation33_spill] sm:$0xff]  ;;  %v9212_v29 = vld [vmem:[#allocation54_spill] sm:$0xff] }
 0x3dc   : > { %v2827_v6 = vmul.f32 %v9202_v40, %v2821_v62  ;;  %v2828_v8 = vmul.f32 %v9202_v40, %v2822_v13  ;;  %v7646_v19 = vpop.permute.xlu1 %795  ;;  %v1815_v20 = vadd.f32 %v1813_v12, %v1790_v31  ;;  %v1863_v24 = vmul.f32 %v9205_v34, %v1857_v0  ;;  %v9213_v40 = vld [vmem:[#allocation188_spill] sm:$0xff] }
 0x3dd   : > { %v1839_v53 = vadd.f32 %v1837_v23, %v1814_v47  ;;  %vm9209_vm7 = vcmp.lt.s32.totalorder %v5527_v5, 127  ;;  %vm1895_vm0 = vcmp.lt.s32.totalorder %v5527_v5, 80  ;;  %vm1920_vm2 = vcmp.lt.s32.totalorder %v5527_v5, 79 }
 0x3de   : > { %v2829_v50 = vadd.f32 %v2827_v6, %v7464_v61  ;;  %v2830_v33 = vadd.f32 %v2828_v8, %v7466_v2  ;;  %v1840_v36 = vadd.f32 %v1838_v10, %v1815_v20  ;;  %vm9210_vm8 = vmmov %vm9209_vm7  ;;  %v9215_v20 = vld [vmem:[#allocation35_spill] sm:$0xff]  ;;  %vm1945_vm9 = vcmp.lt.s32.totalorder %v5527_v5, 78 }
 0x3df   : > { %v1864_v2 = vadd.f32 %v1862_v44, %v1839_v53  ;;  %vm9216_vm14 = vmmov %vm9209_vm7  ;;  %vm3122_vm10 = vcmask 1041408   ;;  %vm3118_vm3 = vcmask 31744  }
 0x3e0   : > { %v1867_v26 = vpop.permute.xlu1 %1866  ;;  %v1865_v32 = vadd.f32 %v1863_v24, %v1840_v36  ;;  %vm9217_vm1 = vmmov %vm9209_vm7  ;;  %v9218_v36 = vld [vmem:[#allocation32_spill] sm:$0xff] }
 0x3e1   : > { %v1871_v41 = vsel %vm1870_vm6, %v1867_v26, %v9206_v15  ;;  %v1872_v28 = vsel %vm1870_vm6, %v9206_v15, %v1867_v26 }
 0x3e2   : > { %v1881_v61 = vmul.f32 %v1876_v3, %v1871_v41  ;;  %v1882_v51 = vmul.f32 %v1880_v63, %v1872_v28 }
 0x3e4   : > { %v1887_v42 = vmul.f32 %v9207_v25, %v1881_v61  ;;  %v1888_v52 = vmul.f32 %v9207_v25, %v1882_v51  ;;  %v7666_v37 = vpop.permute.xlu1 %1934 }
 0x3e6   : > { %v1889_v56 = vadd.f32 %v1887_v42, %v1864_v2  ;;  %v1890_v22 = vadd.f32 %v1888_v52, %v1865_v32 }
 0x3e8   : > { %v2832_v60 = vpop.permute.xlu1 %2831 }
 0x3ec   : > { %v2834_v55 = vpop.permute.xlu1 %2833 }
 0x3ed   : > { %v2835_v46 = vsel %vm1870_vm6, %v2832_v60, %v2834_v55  ;;  %v2836_v18 = vsel %vm1870_vm6, %v2834_v55, %v2832_v60  ;;  %v9219_v55 = vld [vmem:[#allocation24_spill] sm:$0xff] }
 0x3ee   : > { %v2837_v27 = vmul.f32 %v2835_v46, %v1876_v3  ;;  %v2838_v59 = vmul.f32 %v2836_v18, %v1880_v63  ;;  %v9214_v3 = vld [vmem:[#allocation190_spill] sm:$0xff] }
 0x3ef   : > { %v1901_v63 = vrot.slane %v9194_v30, %v9214_v3  ;;  %v1905_v43 = vrot.slane %v9199_v11, %v9214_v3 }
 0x3f0   : > { %v2843_v39 = vmul.f32 %v9208_v54, %v2837_v27  ;;  %v2844_v14 = vmul.f32 %v9208_v54, %v2838_v59  ;;  %v753_v49 = vpop.permute.xlu1 %752 }
 0x3f2   : > { %v2845_v7 = vadd.f32 %v2843_v39, %v2829_v50  ;;  %v2846_v62 = vadd.f32 %v2844_v14, %v2830_v33  ;;  %v9220_v14 = vld [vmem:[#allocation58_spill] sm:$0xff] }
 0x3f4   : > { %v755_v13 = vpop.permute.xlu1 %754 }
 0x3f5   : > { %v7676_v58 = vsel %vm9209_vm7, %v753_v49, %v755_v13  ;;  %v7680_v57 = vsel %vm9210_vm8, %v755_v13, %v753_v49  ;;  %v9221_v13 = vld [vmem:[#allocation41_spill] sm:$0xff] }
 0x3f6   : > { %v767_v12 = vmul.f32 %v9211_v1, %v7676_v58  ;;  %v768_v0 = vmul.f32 %v9212_v29, %v7680_v57 }
 0x3f8   : > { %v773_v6 = vmul.f32 %v9213_v40, %v767_v12  ;;  %v774_v8 = vmul.f32 %v9213_v40, %v768_v0  ;;  %v1892_v9 = vpop.permute.xlu1 %1891  ;;  %v7737_v12 = vpop.permute.xlu0 %845  ;;  %v9222_v40 = vld [vmem:[#allocation193_spill] sm:$0xff] }
 0x3fa   : > { %v775_v31 = vadd.f32 %v773_v6, %v7522_v45  ;;  %v776_v16 = vadd.f32 %v774_v8, %v7524_v21  ;;  %v1926_v6 = vrot.slane %v9194_v30, %v9222_v40  ;;  %v1930_v8 = vrot.slane %v9199_v11, %v9222_v40 }
 0x3fc   : > { %v1894_v23 = vpop.permute.xlu1 %1893 }
 0x3fd   : > { %v1896_v10 = vsel %vm1895_vm0, %v1892_v9, %v1894_v23  ;;  %v1897_v50 = vsel %vm1895_vm0, %v1894_v23, %v1892_v9 }
 0x3fe   : > { %v1906_v33 = vmul.f32 %v1901_v63, %v1896_v10  ;;  %v1907_v47 = vmul.f32 %v1905_v43, %v1897_v50 }
 0x400   : > { %v1912_v34 = vmul.f32 %v9215_v20, %v1906_v33  ;;  %v1913_v45 = vmul.f32 %v9215_v20, %v1907_v47  ;;  %v2069_v21 = vpop.permute.xlu1 %2068 }
 0x402   : > { %v1914_v44 = vadd.f32 %v1912_v34, %v1889_v56  ;;  %v1915_v24 = vadd.f32 %v1913_v45, %v1890_v22 }
 0x404   : > { %v2071_v26 = vpop.permute.xlu1 %2070 }
 0x405   : > { %v7703_v15 = vsel %vm9216_vm14, %v2069_v21, %v2071_v26  ;;  %v7707_v41 = vsel %vm9217_vm1, %v2071_v26, %v2069_v21 }
 0x406   : > { %v2074_v28 = vmul.f32 %v7703_v15, %v9211_v1  ;;  %v2075_v53 = vmul.f32 %v7707_v41, %v9212_v29  ;;  %v3272_v40 = vadd.f32 %v7458_v4, %v7707_v41 }
 0x408   : > { %v2080_v61 = vmul.f32 %v9218_v36, %v2074_v28  ;;  %v2081_v51 = vmul.f32 %v9218_v36, %v2075_v53  ;;  %v2848_v2 = vpop.permute.xlu1 %2847 }
 0x40a   : > { %v7716_v32 = vadd.f32 %v2080_v61, %v7627_v35  ;;  %v7719_v25 = vadd.f32 %v2081_v51, %v7629_v38  ;;  %v9223_v61 = vld [vmem:[#allocation71_spill] sm:$0xff] }
 0x40b   : > { %v3185_v51 = vadd.f32 %v9223_v61, %v7676_v58 }
 0x40c   : > { %v2850_v42 = vpop.permute.xlu1 %2849 }
 0x40d   : > { %v2851_v52 = vsel %vm1895_vm0, %v2848_v2, %v2850_v42  ;;  %v2852_v56 = vsel %vm1895_vm0, %v2850_v42, %v2848_v2  ;;  %v622_v42 = vld [vmem:[#allocation10] sm:$0x3] }
 0x40e   : > { %v2853_v22 = vmul.f32 %v2851_v52, %v1901_v63  ;;  %v2854_v60 = vmul.f32 %v2852_v56, %v1905_v43  ;;  %v7750_v63 = vpop.permute.xlu0 %2125 }
 0x410   : > { %v2859_v46 = vmul.f32 %v9219_v55, %v2853_v22  ;;  %v2860_v18 = vmul.f32 %v9219_v55, %v2854_v60  ;;  %v778_v27 = vpop.permute.xlu1 %777 }
 0x412   : > { %v7727_v59 = vadd.f32 %v2859_v46, %v2845_v7  ;;  %v7729_v35 = vadd.f32 %v2860_v18, %v2846_v62  ;;  %v7758_v47 = vpop.permute.xlu0 %1984 }
 0x414   : > { %v780_v38 = vpop.permute.xlu1 %779 }
 0x415   : > { %v782_v54 = vsel %vm781_vm11, %v778_v27, %v780_v38  ;;  %v783_v39 = vsel %vm781_vm11, %v780_v38, %v778_v27  ;;  %v9225_v27 = vld [vmem:[#allocation179_spill] sm:$0xff] }
 0x416   : > { %v792_v49 = vmul.f32 %v9220_v14, %v782_v54  ;;  %v793_v1 = vmul.f32 %v9221_v13, %v783_v39  ;;  %v7764_v45 = vpop.permute.xlu0 %2904  ;;  %v7788_v38 = vrot.slane %v622_v42, %v9225_v27  ;;  %v9226_v54 = vld [vmem:[#allocation165_spill] sm:$0xff] }
 0x417   : > { %v3199_v39 = vmul.f32 0.25, %v9226_v54 }
 0x418   : > { %v798_v29 = vmul.f32 %v7646_v19, %v792_v49  ;;  %v799_v7 = vmul.f32 %v7646_v19, %v793_v1  ;;  %v1917_v0 = vpop.permute.xlu1 %1916  ;;  %v9227_v49 = vld [vmem:[#allocation194_spill] sm:$0xff] }
 0x419   : > { %v7794_v1 = vrot.slane %v9194_v30, %v9227_v49  ;;  %v9228_v30 = vld [vmem:[#allocation65_spill] sm:$0xff] }
 0x41a   : > { %v7742_v62 = vadd.f32 %v798_v29, %v775_v31  ;;  %v7748_v9 = vadd.f32 %v799_v7, %v776_v16  ;;  %v1942_v26 = vpop.permute.xlu0 %1941  ;;  %v7798_v29 = vrot.slane %v9199_v11, %v9227_v49  ;;  %v7801_v7 = vld [vmem:[%s4749_s18] sm:$0xff] }
 0x41c   : > { %v1919_v3 = vpop.permute.xlu1 %1918 }
 0x41d   : > { %v1921_v43 = vsel %vm1920_vm2, %v1917_v0, %v1919_v3  ;;  %v1922_v19 = vsel %vm1920_vm2, %v1919_v3, %v1917_v0  ;;  %v3271_v0 = vadd.f32 %v7801_v7, %v7703_v15 }
 0x41e   : > { %v1931_v23 = vmul.f32 %v1926_v6, %v1921_v43  ;;  %v1932_v31 = vmul.f32 %v1930_v8, %v1922_v19  ;;  %v2101_v36 = vpop.permute.xlu0 %2100 }
 0x420   : > { %v1937_v10 = vmul.f32 %v7666_v37, %v1931_v23  ;;  %v1938_v50 = vmul.f32 %v7666_v37, %v1932_v31  ;;  %v2085_v33 = vpop.permute.xlu1 %2084  ;;  %v3186_v37 = vadd.f32 %v7391_v48, %v7680_v57  ;;  %v9224_v57 = vld [vmem:[#allocation178_spill] sm:$0xff] }
 0x421   : > { %v7781_v55 = vrot.slane %v622_v42, %v9224_v57 }
 0x422   : > { %v7760_v16 = vadd.f32 %v1937_v10, %v1914_v44  ;;  %v7762_v20 = vadd.f32 %v1938_v50, %v1915_v24  ;;  %v2880_v22 = vpop.permute.xlu0 %2879  ;;  %v9229_v10 = vld [vmem:[#allocation63_spill] sm:$0xff] }
 0x424   : > { %v2087_v34 = vpop.permute.xlu1 %2086 }
 0x425   : > { %v2088_v60 = vsel %vm781_vm11, %v2085_v33, %v2087_v34  ;;  %v2089_v58 = vsel %vm781_vm11, %v2087_v34, %v2085_v33  ;;  %vm2933_vm11 = vcmask 130048  }
 0x426   : > { %v2090_v3 = vmul.f32 %v2088_v60, %v9220_v14  ;;  %v2091_v43 = vmul.f32 %v2089_v58, %v9221_v13  ;;  %v828_v33 = vpop.permute.xlu0 %827  ;;  %v9230_v14 = vld [vmem:[#allocation162_spill] sm:$0xff] }
 0x427   : > { %v3200_v13 = vmul.f32 0.25, %v9230_v14  ;;  %v9235_v58 = vld [vmem:[#allocation50_spill] sm:$0xff] }
 0x428   : > { %v2864_v21 = vpop.permute.xlu1 %2863 }
 0x429   : > { %v7841_v54 = vmul.f32 %v7788_v38, %v3200_v13 }
 0x42a   : > { %v1967_v27 = vpop.permute.xlu0 %1966 }
 0x42c   : > { %v2866_v28 = vpop.permute.xlu1 %2865 }
 0x42d   : > { %v2867_v46 = vsel %vm1920_vm2, %v2864_v21, %v2866_v28  ;;  %v2868_v18 = vsel %vm1920_vm2, %v2866_v28, %v2864_v21 }
 0x42e   : > { %v2869_v19 = vmul.f32 %v2867_v46, %v1926_v6  ;;  %v2870_v23 = vmul.f32 %v2868_v18, %v1930_v8  ;;  %v9231_v6 = vld [vmem:[#allocation176_spill] sm:$0xff]  ;;  %v7835_v46 = vmul.f32 %v7781_v55, %v3199_v39 }
 0x42f   : > { %v3285_v8 = vmul.f32 0.25, %v9231_v6  ;;  %v9237_v6 = vld [vmem:[#allocation199_spill] sm:$0xff] }
 0x430   : > { %v803_v53 = vpop.permute.xlu1 %802 }
 0x431   : > { %v7838_v18 = vmul.f32 %v3285_v8, %v7781_v55 }
 0x434   : > { %v805_v2 = vpop.permute.xlu1 %804 }
 0x435   : > { %v807_v44 = vsel %vm806_vm13, %v803_v53, %v805_v2  ;;  %v808_v24 = vsel %vm806_vm13, %v805_v2, %v803_v53  ;;  %v9232_v53 = vld [vmem:[#allocation174_spill] sm:$0xff] }
 0x436   : > { %v7774_v52 = vadd.f32 %v3185_v51, %v807_v44  ;;  %v3190_v56 = vadd.f32 %v3186_v37, %v808_v24  ;;  %v817_v31 = vmul.f32 %v9228_v30, %v807_v44  ;;  %v818_v50 = vmul.f32 %v9229_v10, %v808_v24  ;;  %v9233_v51 = vld [vmem:[#allocation43_spill] sm:$0xff]  ;;  %v9234_v2 = vld [vmem:[#allocation42_spill] sm:$0xff] }
 0x437   : > { %v3286_v61 = vmul.f32 0.25, %v9232_v53  ;;  %v2096_v37 = vmul.f32 %v9233_v51, %v2090_v3  ;;  %v2875_v44 = vmul.f32 %v9234_v2, %v2869_v19  ;;  %v2876_v24 = vmul.f32 %v9234_v2, %v2870_v23  ;;  %v9236_v3 = vld [vmem:[#allocation60_spill] sm:$0xff] }
 0x438   : > { %v1944_v48 = vpop.permute.xlu1 %1943  ;;  %v824_v57 = vmul.f32 %v9235_v58, %v818_v50 }
 0x439   : > { %v1946_v34 = vsel %vm1945_vm9, %v1942_v26, %v1944_v48  ;;  %v1947_v15 = vsel %vm1945_vm9, %v1944_v48, %v1942_v26  ;;  %v2097_v26 = vmul.f32 %v9233_v51, %v2091_v43  ;;  %v823_v48 = vmul.f32 %v9235_v58, %v817_v31 }
 0x43a   : > { %v1957_v42 = vmul.f32 %v7798_v29, %v1947_v15  ;;  %v7844_v49 = vadd.f32 %v2096_v37, %v7716_v32  ;;  %v7854_v39 = vadd.f32 %v2875_v44, %v7727_v59  ;;  %v7859_v31 = vadd.f32 %v2876_v24, %v7729_v35  ;;  %v9239_v24 = vld [vmem:[#allocation46_spill] sm:$0xff] }
 0x43b   : > { %v826_v50 = vadd.f32 %v824_v57, %v7748_v9  ;;  %v3778_v9 = vld [vmem:[#allocation9 + $0x60] ss:$0 sm:$0xff] }
 0x43c   : > { %v2103_v11 = vpop.permute.xlu1 %2102  ;;  %v1963_v19 = vmul.f32 %v9236_v3, %v1957_v42 }
 0x43d   : > { %v2104_v4 = vsel %vm806_vm13, %v2101_v36, %v2103_v11  ;;  %v2105_v41 = vsel %vm806_vm13, %v2103_v11, %v2101_v36  ;;  %v1956_v36 = vmul.f32 %v7794_v1, %v1946_v34  ;;  %vm1970_vm13 = vcmp.lt.s32.totalorder %v5527_v5, 77  ;;  %v4077_v5 = vld [vmem:[%s8086_s6] sm:$0xff]  }
 0x43e   : > { %v7821_v21 = vadd.f32 %v3271_v0, %v2104_v4  ;;  %v7823_v28 = vadd.f32 %v3272_v40, %v2105_v41  ;;  %v7848_v0 = vadd.f32 %v2097_v26, %v7719_v25  ;;  %v7851_v40 = vmul.f32 %v3286_v61, %v7788_v38  ;;  %v3779_v61 = vld [vmem:[#allocation9 + $0x68] ss:$0 sm:$0xff]  ;;  %v2117_v26 = vpop.permute.xlu0 %2116 }
 0x43f   : > { %v1962_v43 = vmul.f32 %v9236_v3, %v1956_v36  ;;  %v825_v11 = vadd.f32 %v823_v48, %v7742_v62  ;;  %v2106_v14 = vmul.f32 %v2104_v4, %v9228_v30  ;;  %v2107_v13 = vmul.f32 %v2105_v41, %v9229_v10 }
 0x440   : > { %v2882_v60 = vpop.permute.xlu1 %2881  ;;  %v1965_v2 = vadd.f32 %v1963_v19, %v7762_v20 }
 0x441   : > { %v2883_v59 = vsel %vm1945_vm9, %v2880_v22, %v2882_v60  ;;  %v2884_v34 = vsel %vm1945_vm9, %v2882_v60, %v2880_v22  ;;  %v1964_v22 = vadd.f32 %v1962_v43, %v7760_v16  ;;  %v2112_v16 = vmul.f32 %v9239_v24, %v2106_v14 }
 0x444   : > { %v830_v23 = vpop.permute.xlu1 %829 }
 0x445   : > { %v832_v32 = vsel %vm831_vm12, %v828_v33, %v830_v23  ;;  %v833_v25 = vsel %vm831_vm12, %v830_v23, %v828_v33  ;;  %v9238_v33 = vld [vmem:[#allocation69_spill] sm:$0xff] }
 0x446   : > { %v3193_v15 = vadd.f32 %v7774_v52, %v832_v32  ;;  %v3194_v35 = vadd.f32 %v3190_v56, %v833_v25  ;;  %v842_v8 = vmul.f32 %v9237_v6, %v832_v32  ;;  %v843_v53 = vmul.f32 %v9238_v33, %v833_v25 }
 0x447   : > { %v2885_v52 = vmul.f32 %v2883_v59, %v7794_v1  ;;  %v2886_v56 = vmul.f32 %v2884_v34, %v7798_v29  ;;  %v2113_v1 = vmul.f32 %v9239_v24, %v2107_v13  ;;  %v2896_v59 = vpop.permute.xlu0 %2895 }
 0x448   : > { %v3197_v62 = vmul.f32 0.25, %v3193_v15  ;;  %v3198_v51 = vmul.f32 0.25, %v3194_v35  ;;  %v1969_v37 = vpop.permute.xlu1 %1968  ;;  %v848_v29 = vmul.f32 %v7737_v12, %v842_v8  ;;  %v849_v36 = vmul.f32 %v7737_v12, %v843_v53 }
 0x449   : > { %v1971_v30 = vsel %vm1970_vm13, %v1967_v27, %v1969_v37  ;;  %v1972_v10 = vsel %vm1970_vm13, %v1969_v37, %v1967_v27  ;;  %v9240_v27 = vld [vmem:[#allocation90_spill] sm:$0xff] }
 0x44a   : > { %v7885_v4 = vmul.f32 %v7781_v55, %v3197_v62  ;;  %v7888_v41 = vmul.f32 %v7788_v38, %v3198_v51  ;;  %v1981_v44 = vmul.f32 %v3778_v9, %v1971_v30  ;;  %v1982_v20 = vmul.f32 %v3779_v61, %v1972_v10 }
 0x44b   : > { %v2891_v3 = vmul.f32 %v9240_v27, %v2885_v52  ;;  %v2892_v43 = vmul.f32 %v9240_v27, %v2886_v56  ;;  %v851_v34 = vadd.f32 %v849_v36, %v826_v50  ;;  %v850_v35 = vadd.f32 %v848_v29, %v825_v11 }
 0x44c   : > { %v3216_v42 = vpack.c.bf16 %v7835_v46, %v7885_v4  ;;  %v1987_v60 = vmul.f32 %v7758_v47, %v1981_v44  ;;  %v2119_v58 = vpop.permute.xlu1 %2118  ;;  %v1988_v48 = vmul.f32 %v7758_v47, %v1982_v20  ;;  %v3217_v57 = vpack.c.bf16 %v7841_v54, %v7888_v41  ;;  %v4078_v44 = vld [vmem:[%s8087_s7] sm:$0xff]   ;;  %v4080_v54 = vld [vmem:[%s8086_s6 + $0x8] sm:$0xff]  }
 0x44d   : > { %v2120_v19 = vsel %vm831_vm12, %v2117_v26, %v2119_v58  ;;  %v2121_v12 = vsel %vm831_vm12, %v2119_v58, %v2117_v26  ;;  %v2893_v52 = vadd.f32 %v2891_v3, %v7854_v39  ;;  %v9241_v39 = vmov 0  }
 0x44e   : > { %v2122_v23 = vmul.f32 %v2120_v19, %v9237_v6  ;;  %v2123_v32 = vmul.f32 %v2121_v12, %v9238_v33  ;;  %v3279_v47 = vadd.f32 %v7821_v21, %v2120_v19  ;;  %v3280_v25 = vadd.f32 %v7823_v28, %v2121_v12 }
 0x44f   : > { %v1990_v15 = vadd.f32 %v1988_v48, %v1965_v2  ;;  %v1989_v14 = vadd.f32 %v1987_v60, %v1964_v22  ;;  %v2115_v2 = vadd.f32 %v2113_v1, %v7848_v0  ;;  %v2114_v22 = vadd.f32 %v2112_v16, %v7844_v49 }
 0x450   : > { %v2128_v13 = vmul.f32 %v7750_v63, %v2122_v23  ;;  %v3283_v8 = vmul.f32 0.25, %v3279_v47  ;;  %v3284_v53 = vmul.f32 0.25, %v3280_v25  ;;  %v2898_v62 = vpop.permute.xlu1 %2897  ;;  %v2129_v51 = vmul.f32 %v7750_v63, %v2123_v32 }
 0x451   : > { %v2899_v6 = vsel %vm1970_vm13, %v2896_v59, %v2898_v62  ;;  %v2900_v21 = vsel %vm1970_vm13, %v2898_v62, %v2896_v59  ;;  %v2922_v33 = vpack.c.bf16 %v1990_v15, %v851_v34  ;;  %v2921_v28 = vpack.c.bf16 %v1989_v14, %v850_v35  ;;  %v3064_v59 = vld [vmem:[%s8091_s11] sm:$0x3] }
 0x452   : > { %v7917_v50 = vmul.f32 %v3283_v8, %v7781_v55  ;;  %v7920_v11 = vmul.f32 %v3284_v53, %v7788_v38  ;;  %v2901_v37 = vmul.f32 %v3778_v9, %v2899_v6  ;;  %v2902_v26 = vmul.f32 %v3779_v61, %v2900_v21  ;;  %v4079_v34 = vld [vmem:[%s8088_s8] sm:$0xff]  }
 0x453   : > { %2940 = vmatprep.subr.bf16.mxu0 %v2922_v33  ;;  %v2894_v63 = vadd.f32 %v2892_v43, %v7859_v31  ;;  %v2131_v31 = vadd.f32 %v2129_v51, %v2115_v2  ;;  %v2130_v56 = vadd.f32 %v2128_v13, %v2114_v22  ;;  %v4427_v19 = vmov 0.0   ;;  %v4081_v14 = vld [vmem:[%s8092_s12] sm:$0xff]  }
 0x454   : > { %v3291_v55 = vpack.c.bf16 %v7838_v18, %v7917_v50  ;;  %v2907_v38 = vmul.f32 %v7764_v45, %v2901_v37  ;;  %2941 = vmatpush1.bf16.msra.mxu0 %v2921_v28  ;;  %v2908_v9 = vmul.f32 %v7764_v45, %v2902_v26  ;;  %v3292_v0 = vpack.c.bf16 %v7851_v40, %v7920_v11  ;;  %v4082_v6 = vld [vmem:[%s8089_s9] sm:$0xff]  }
 0x455   : > { %3816 = vmatprep.subr.bf16.mxu0 %v4427_v19  ;;  %vm4428_vm12 = vmmov 0  }
 0x456   : > { %v2910_v61 = vadd.f32 %v2908_v9, %v2894_v63  ;;  %v2909_v30 = vadd.f32 %v2907_v38, %v2893_v52 }
 0x457   : > { %3782 = vmatmul.mubr.msk.bf16.vlgmr.msra.gmra.mrb[0].mxu0 %vm2933_vm11, %v4077_v5 }
 0x458   : > { %v3000_v49 = vpack.c.bf16 %v2910_v61, %v2131_v31  ;;  %v2999_v10 = vpack.c.bf16 %v2909_v30, %v2130_v56  ;;  %2982 = vmatprep.mubr.bf16.mxu0 %v9241_v39 }
 0x45a   : > { %3009 = vmatprep.subr.bf16.mxu1 %v3000_v49 }
 0x45b   : > { %3010 = vmatpush1.bf16.msra.mxu1 %v2999_v10 }
 0x45c   : > { %3810 = vmatprep.subr.bf16.mxu1 %v4427_v19 }
 0x45e   : > { %3785 = vmatmul.mubr.msk.bf16.vlgmr.msra.gmra.mrb[0].mxu1 %vm2933_vm11, %v4078_v44  ;;  %v3480_v44 = vld [vmem:[%s9242_s0] sm:$0xff] }
 0x45f   : > { %3812 = vmatprep.mubr.msk.bf16.mxu1 %vm4428_vm12, %v4427_v19  ;;  %3783 = vmatmul.mubr.msk.bf16.gmra.mrb[4].mxu0 %vm2933_vm11, %v4080_v54 }
 0x460   : > { %3818 = vmatprep.mubr.msk.bf16.mxu0 %vm4428_vm12, %v4427_v19 }
 0x52a   : > { %v2974_v45 = vpop.f32.mrb[0].mxu0 }
 0x52b   : > { %v2976_v40 = vpop.f32.mrb[1].mxu0 }
 0x52c   : > { %v2978_v20 = vpop.f32.mrb[2].mxu0 }
 0x52d   : > { %v2980_v24 = vpop.f32.mrb[3].mxu0 }
 0x531   : > { %v3043_v16 = vpop.f32.mrb[0].mxu1 }
 0x532   : > { %v3052_v1 = vmul.f32 %v3043_v16, %v2974_v45  ;;  %v3045_v29 = vpop.f32.mrb[1].mxu1  ;;  %v7978_v21 = vpop.f32.mrb[4].mxu0  ;;  %v3481_v45 = vld [vmem:[%s9242_s0 + $0x8] sm:$0xff] }
 0x533   : > { %v3053_v36 = vmul.f32 %v3045_v29, %v2976_v40  ;;  %v3047_v60 = vpop.f32.mrb[2].mxu1  ;;  %v7980_v33 = vpop.f32.mrb[5].mxu0 }
 0x534   : > { %v3054_v58 = vmul.f32 %v3047_v60, %v2978_v20  ;;  %v3049_v48 = vpop.f32.mrb[3].mxu1  ;;  %v7982_v28 = vpop.f32.mrb[6].mxu0 }
 0x535   : > { %v3056_v27 = vadd.f32 %v3053_v36, %v3052_v1  ;;  %v3055_v3 = vmul.f32 %v3049_v48, %v2980_v24  ;;  %v7984_v11 = vpop.f32.mrb[7].mxu0 }
 0x537   : > { %v3059_v43 = vadd.f32 %v3055_v3, %v3054_v58  ;;  %3057 = vadd.xlane.f32.xlu0 %v3056_v27 }
 0x539   : > { %3060 = vadd.xlane.f32.xlu1 %v3059_v43 }
 0x5c4   : > { %v3058_v12 = vpop.xlane.xlu0 %3057 }
 0x5c5   : > { %v3062_v32 = vmul.f32 0.00390625, %v3058_v12 }
 0x5c6   : > { %v3061_v23 = vpop.xlane.xlu1 %3060 }
 0x5c7   : > { %v3063_v47 = vmul.f32 0.00390625, %v3061_v23 }
 0x5c9   : > { %v3065_v25 = vpack.c.bf16 %v3063_v47, %v3062_v32 }
 0x5cb   : > { %3811 = vmatpush3.bf16.msra.mxu1 %v3065_v25 }
 0x5cc   : > { %3226 = vmatprep.subr.bf16.mxu1 %v3217_v57 }
 0x5ce   : > { %3813 = vmatmul.mubr.msk.bf16.vlgmr.msra.gmra.mrb[4].mxu1 %vm2933_vm11, %v3064_v59 }
 0x5cf   : > { %3227 = vmatpush1.bf16.msra.mxu1 %v3216_v42  ;;  %3258 = vmatprep.mubr.bf16.mxu1 %v9241_v39 }
 0x5d6   : > { %3790 = vmatmul.mubr.msk.bf16.vlgmr.msra.gmra.mrb[8].mxu1 %vm2933_vm11, %v4079_v34 }
 0x5d7   : > { %3388 = vmatprep.mubr.bf16.mxu1 %v9241_v39 }
 0x6a1   : > { %v3103_v46 = vpop.f32.mrb[4].mxu1 }
 0x6a2   : > { %v3109_v4 = vmax.f32 %v3103_v46, 0.0  ;;  %v3814_v41 = vpop.f32.mrb[5].mxu1 }
 0x6a3   : > { %v3106_v42 = vpop.f32.mrb[6].mxu1  ;;  %v4126_v41 = vld [vmem:[%s4749_s18 + $0x8] sm:$0xff] }
 0x6a4   : > { %v3112_v57 = vpack.c.bf16 %v3109_v4, %v3109_v4  ;;  %v3815_v15 = vpop.f32.mrb[7].mxu1  ;;  %v3347_v42 = vpack.c.bf16 %v7593_v17, %v4126_v41 }
 0x6a6   : > { %v3124_v35 = vsel %vm3122_vm10, %v3112_v57, 0  ;;  %v4127_v57 = vld [vmem:[%s4749_s18 + $0x10] sm:$0xff]  ;;  %3356 = vmatprep.subr.bf16.mxu1 %v3347_v42  ;;  %s4248_s18 = sshll.u32 %s4429_s23, 4  ;;  %s4249_s18 = int_to_ptr.vmem [resolvable:$false] %s4248_s18 }
 0x6a7   : > { %3817 = vmatpush3.bf16.msra.mxu0 %v3124_v35  ;;  %v3346_v15 = vpack.c.bf16 %v4127_v57, %v7801_v7  ;;  %v4083_v35 = vld [vmem:[%s9243_s13] sm:$0xff]   ;;  %s9246_s13 = sld [smem:[#allocation242_spill]]  ;;  %s4250_s21 = scalar_lea.vmem %s4249_s18, 1024 }
 0x6a8   : > { %3301 = vmatprep.subr.bf16.mxu0 %v3292_v0  ;;  %p4251_p4 = scmp.lt.s32.totalorder %s8030_s5, %s4249_s18  ;;  %p4252_p5 = scmp.lt.s32.totalorder %s4250_s21, %s4244_s25 }
 0x6a9   : > { %v7966_v13 = vpop.f32.mrb[8].mxu1  ;;  %3357 = vmatpush1.bf16.msra.mxu1 %v3346_v15 }
 0x6aa   : > { %3819 = vmatmul.mubr.msk.bf16.vlgmr.msra.gmra.mrb[8].mxu0 %vm3118_vm3, %v4081_v14  ;;  %v3399_v8 = vmul.f32 %v7966_v13, %v7966_v13  ;;  %v3262_v53 = vpop.f32.mrb[9].mxu1  ;;  %p4253_p3 = por %p4252_p5, %p4251_p4 }
 0x6ab   : > { %3302 = vmatpush1.bf16.msra.mxu0 %v3291_v55  ;;  %3333 = vmatprep.mubr.bf16.mxu0 %v9241_v39  ;;  %v3400_v62 = vmul.f32 %v3262_v53, %v3262_v53  ;;  %v3264_v18 = vpop.f32.mrb[10].mxu1 }
 0x6ac   : > { %v3401_v50 = vmul.f32 %v3264_v18, %v3264_v18  ;;  %v3266_v37 = vpop.f32.mrb[11].mxu1  ;;  %3794 = vmatmul.mubr.msk.bf16.vlgmr.msra.gmra.mrb[12].mxu1 %vm2933_vm11, %v4083_v35  ;;  %p4254_p7 = pnand %p4253_p3, %p4247_p10 }
 0x6ad   : > { %v3403_v51 = vadd.f32 %v3400_v62, %v3399_v8  ;;  %v3402_v26 = vmul.f32 %v3266_v37, %v3266_v37  ;;  %3558 = vmatprep.mubr.bf16.mxu1 %v9241_v39  ;;  %v3494_v8 = vld [vmem:[%s9244_s29] sm:$0xff]  ;;  %s8035_s14 = scalar_lea.hbm %s9246_s13, %s3805_s30 }
 0x6af   : > { %3404 = vadd.xlane.f32.xlu1 %v3403_v51  ;;  %v3406_v2 = vadd.f32 %v3402_v26, %v3401_v50  ;;  %v3495_v51 = vld [vmem:[%s9244_s29 + $0x8] sm:$0xff] }
 0x6b2   : > { %3792 = vmatmul.mubr.msk.bf16.vlgmr.msra.gmra.mrb[12].mxu0 %vm2933_vm11, %v4082_v6 }
 0x6c0   : > { %3484 = vperm.xlu1 %4075, %v3480_v44  }
 0x73c   : > { %v3405_v24 = vpop.xlane.xlu1 %3404 }
 0x73d   : > { %v3409_v1 = vmax.f32 %v3405_v24, 1e-24 }
 0x740   : > { %v3485_v14 = vpop.permute.xlu1 %3484 }
 0x77d   : > { %v7986_v63 = vpop.f32.mrb[8].mxu0 }
 0x77e   : > { %v3820_v5 = vpop.f32.mrb[9].mxu0 }
 0x77f   : > { %v7988_v22 = vpop.f32.mrb[10].mxu0 }
 0x780   : > { %v3821_v52 = vpop.f32.mrb[11].mxu0 }
 0x785   : > { %v3335_v55 = vpop.f32.mrb[12].mxu0 }
 0x786   : > { %v3417_v38 = vmul.f32 %v3335_v55, %v3335_v55  ;;  %v3337_v9 = vpop.f32.mrb[13].mxu0 }
 0x787   : > { %v3418_v0 = vmul.f32 %v3337_v9, %v3337_v9  ;;  %v3339_v31 = vpop.f32.mrb[14].mxu0 }
 0x788   : > { %v3419_v61 = vmul.f32 %v3339_v31, %v3339_v31  ;;  %v3341_v56 = vpop.f32.mrb[15].mxu0 }
 0x789   : > { %v3421_v30 = vadd.f32 %v3418_v0, %v3417_v38  ;;  %v3420_v49 = vmul.f32 %v3341_v56, %v3341_v56 }
 0x78b   : > { %v3424_v10 = vadd.f32 %v3420_v49, %v3419_v61  ;;  %3422 = vadd.xlane.f32.xlu0 %v3421_v30  ;;  %v3390_v49 = vpop.f32.mrb[12].mxu1 }
 0x78f   : > { %3425 = vadd.xlane.f32.xlu0 %v3424_v10  ;;  %v3392_v10 = vpop.f32.mrb[13].mxu1 }
 0x790   : > { %v3394_v44 = vpop.f32.mrb[14].mxu1 }
 0x793   : > { %3407 = vadd.xlane.f32.xlu0 %v3406_v2 }
 0x7a9   : > { %3489 = vperm.xlu0 %4076, %v3481_v45   ;;  %v3396_v45 = vpop.f32.mrb[15].mxu1 }
 0x818   : > { %v3423_v40 = vpop.xlane.xlu0 %3422 }
 0x819   : > { %v3427_v20 = vmax.f32 %v3423_v40, 1e-24  ;;  %v3522_v40 = vpack.c.bf16 %v3396_v45, %v3392_v10 }
 0x81b   : > { %4085 = vrsqrt.f32 %v3427_v20  ;;  %v3521_v20 = vpack.c.bf16 %v3394_v44, %v3390_v49  ;;  %3526 = vmatprep.subr.bf16.mxu1 %v3522_v40 }
 0x81c   : > { %v3426_v16 = vpop.xlane.xlu0 %3425 }
 0x81d   : > { %v3428_v29 = vmax.f32 %v3426_v16, 1e-24  ;;  %3527 = vmatpush1.bf16.msra.mxu1 %v3521_v20 }
 0x81f   : > { %4087 = vrsqrt.f32 %v3428_v29 }
 0x820   : > { %v3408_v36 = vpop.xlane.xlu0 %3407  ;;  %4089 = vrsqrt.f32 %v3409_v1 }
 0x821   : > { %v3410_v60 = vmax.f32 %v3408_v36, 1e-24 }
 0x823   : > { %4091 = vrsqrt.f32 %v3410_v60 }
 0x824   : > { %4093 = vtanh.f32 %v7988_v22 }
 0x825   : > { %v4086_v58 = vpop.eup %4085 }
 0x826   : > { %v3432_v27 = vmul.f32 %v4086_v58, %v3337_v9  ;;  %v3431_v43 = vmul.f32 %v4086_v58, %v3335_v55 }
 0x828   : > { %v3490_v17 = vpop.permute.xlu0 %3489 }
 0x829   : > { %v4088_v48 = vpop.eup %4087 }
 0x82a   : > { %v3434_v3 = vmul.f32 %v4088_v48, %v3341_v56  ;;  %v3433_v19 = vmul.f32 %v4088_v48, %v3339_v31  ;;  %v4090_v12 = vpop.eup %4089 }
 0x82b   : > { %v3414_v25 = vmul.f32 %v4090_v12, %v3262_v53  ;;  %v3413_v34 = vmul.f32 %v4090_v12, %v7966_v13 }
 0x82c   : > { %v3438_v23 = vpack.c.bf16 %v3434_v3, %v3432_v27  ;;  %v3437_v32 = vpack.c.bf16 %v3433_v19, %v3431_v43 }
 0x82d   : > { %v4092_v47 = vpop.eup %4091 }
 0x82e   : > { %3439 = vmatprep.subr.bf16.mxu0 %v3438_v23  ;;  %v3416_v59 = vmul.f32 %v4092_v47, %v3266_v37  ;;  %v3415_v54 = vmul.f32 %v4092_v47, %v3264_v18  ;;  %v4094_v2 = vpop.eup %4093 }
 0x82f   : > { %3440 = vmatpush1.bf16.xpose.msra.mxu0 %v3437_v32 }
 0x830   : > { %v3436_v46 = vpack.c.bf16 %v3416_v59, %v3414_v25  ;;  %v3435_v4 = vpack.c.bf16 %v3415_v54, %v3413_v34 }
 0x832   : > { %3471 = vmatprep.mubr.bf16.mxu0 %v3436_v46 }
 0x836   : > { %3472 = vmatmul.mubr.bf16.vlgmr.msra.gmra.mrb[16].mxu0 %v3435_v4 }
 0x837   : > { %3617 = vmatprep.mubr.bf16.mxu0 %v9241_v39 }
 0x909   : > { %v3473_v13 = vpop.f32.mrb[16].mxu0 }
 0x90a   : > { %v3492_v53 = vmul.f32 %v3485_v14, %v3473_v13  ;;  %v3475_v62 = vpop.f32.mrb[17].mxu0 }
 0x90b   : > { %v3476_v7 = vpop.f32.mrb[18].mxu0 }
 0x90c   : > { %v3496_v6 = vadd.f32 %v3494_v8, %v3492_v53  ;;  %v3493_v18 = vmul.f32 %v3490_v17, %v3476_v7  ;;  %v3478_v50 = vpop.f32.mrb[19].mxu0 }
 0x90e   : > { %v3497_v37 = vadd.f32 %v3495_v51, %v3493_v18  ;;  %v3498_v39 = vsel %vm2933_vm11, %v3496_v6, -inf }
 0x90f   : > { %3499 = vmax.xlane.f32.xlu1 %v3498_v39 }
 0x910   : > { %v3501_v26 = vsel %vm2933_vm11, %v3497_v37, -inf }
 0x911   : > { %3502 = vmax.xlane.f32.xlu0 %v3501_v26 }
 0x927   : > { %3176 = vperm.xlu0 %4076, %v4094_v2  }
 0x99c   : > { %v3500_v5 = vpop.xlane.xlu1 %3499 }
 0x99d   : > { %v3504_v52 = vsub.f32 %v3496_v6, %v3500_v5 }
 0x99e   : > { %v3503_v55 = vpop.xlane.xlu0 %3502 }
 0x99f   : > { %v3506_v38 = vmul.f32 1.442695, %v3504_v52  ;;  %v3505_v9 = vsub.f32 %v3497_v37, %v3503_v55 }
 0x9a1   : > { %4095 = vpow2.f32 %v3506_v38  ;;  %v3508_v0 = vmul.f32 1.442695, %v3505_v9 }
 0x9a3   : > { %4097 = vpow2.f32 %v3508_v0 }
 0x9a4   : > { %4099 = vtanh.f32 %v7986_v63 }
 0x9a6   : > { %v3177_v48 = vpop.permute.xlu0 %3176 }
 0x9a7   : > { %v3181_v19 = vmul.f32 %v3177_v48, %v7982_v28  ;;  %v3182_v32 = vmul.f32 %v3177_v48, %v7984_v11 }
 0x9ab   : > { %v4096_v31 = vpop.eup %4095 }
 0x9ac   : > { %v3510_v61 = vsel %vm2933_vm11, %v4096_v31, 0.0 }
 0x9ad   : > { %v4098_v56 = vpop.eup %4097  ;;  %3511 = vadd.xlane.f32.xlu1 %v3510_v61 }
 0x9ae   : > { %v3513_v30 = vsel %vm2933_vm11, %v4098_v56, 0.0  ;;  %v4100_v22 = vpop.eup %4099 }
 0x9b1   : > { %3514 = vadd.xlane.f32.xlu1 %v3513_v30 }
 0x9c2   : > { %3171 = vperm.xlu1 %4075, %v4100_v22  }
 0xa3a   : > { %v3512_v24 = vpop.xlane.xlu1 %3511 }
 0xa3b   : > { %4101 = vrcp.f32 %v3512_v24 }
 0xa3e   : > { %v3515_v16 = vpop.xlane.xlu1 %3514 }
 0xa3f   : > { %4103 = vrcp.f32 %v3515_v16 }
 0xa42   : > { %v3172_v63 = vpop.permute.xlu1 %3171 }
 0xa43   : > { %v3179_v27 = vmul.f32 %v3172_v63, %v7978_v21  ;;  %v3180_v3 = vmul.f32 %v3172_v63, %v7980_v33  ;;  %v4084_v21 = vld [vmem:[%s9245_s26] sm:$0xff]  }
 0xa45   : > { %v4102_v1 = vpop.eup %4101 }
 0xa46   : > { %v3518_v36 = vmul.f32 %v4102_v1, %v4096_v31 }
 0xa49   : > { %v4104_v29 = vpop.eup %4103 }
 0xa4a   : > { %v3519_v60 = vmul.f32 %v4104_v29, %v4098_v56 }
 0xa4c   : > { %v3520_v58 = vpack.c.bf16 %v3519_v60, %v3518_v36 }
 0xa4e   : > { %3795 = vmatmul.mubr.msk.bf16.vlgmr.msra.gmra.mrb[16].mxu1 %vm2933_vm11, %v3520_v58 }
 0xb21   : > { %v3560_v43 = vpop.f32.mrb[16].mxu1 }
 0xb22   : > { %v3571_v12 = vadd.f32 %v3560_v43, %v3179_v27  ;;  %v3562_v23 = vpop.f32.mrb[17].mxu1 }
 0xb23   : > { %v3572_v47 = vadd.f32 %v3562_v23, %v3180_v3  ;;  %v3564_v25 = vpop.f32.mrb[18].mxu1 }
 0xb24   : > { %v3573_v59 = vadd.f32 %v3564_v25, %v3181_v19  ;;  %v3566_v34 = vpop.f32.mrb[19].mxu1 }
 0xb25   : > { %v3574_v54 = vadd.f32 %v3566_v34, %v3182_v32 }
 0xb26   : > { %v3575_v46 = vpack.c.bf16 %v3573_v59, %v3571_v12 }
 0xb27   : > { %v3576_v4 = vpack.c.bf16 %v3574_v54, %v3572_v47 }
 0xb29   : > { %3585 = vmatprep.subr.bf16.mxu0 %v3576_v4 }
 0xb2a   : > { %3586 = vmatpush1.bf16.msra.mxu0 %v3575_v46 }
 0xb2d   : > { %3797 = vmatmul.mubr.msk.bf16.vlgmr.msra.gmra.mrb[20].mxu0 %vm2933_vm11, %v4084_v21 }
 0xc00   : > { %v3619_v33 = vpop.f32.mrb[20].mxu0 }
 0xc01   : > { %3628 = vst [vmem:[%s606_s27] sm:$0xff] %v3619_v33  ;;  %v3621_v28 = vpop.f32.mrb[21].mxu0 }
 0xc02   : > { %3629 = vst [vmem:[%s606_s27 + $0x8] sm:$0xff] %v3621_v28  ;;  %v3623_v11 = vpop.f32.mrb[22].mxu0 }
 0xc03   : > { %3630 = vst [vmem:[%s606_s27 + $0x10] sm:$0xff] %v3623_v11  ;;  %v3625_v41 = vpop.f32.mrb[23].mxu0 }
 0xc04   : > { %3631 = vst [vmem:[%s606_s27 + $0x18] sm:$0xff] %v3625_v41 }
 0xc05   : > { %4257 = shalt.err (!%p4254_p7)
}
 0xc06   : > { %s4258_s17 = scalar_lea.hbm %s8035_s14, 512  ;;  %s4262_s27 = scalar_lea.hbm %s9246_s13, 1024 }
 0xc07   : > { %p4259_p9 = scmp.ne.s32.totalorder %s8035_s14, %s4258_s17  ;;  %p4263_p11 = scmp.lt.u32.totalorder %s8035_s14, %s9246_s13 }
 0xc08   : > { %p4264_p2 = scmp.lt.u32.totalorder %s4262_s27, %s4258_s17  ;;  %p4266_p1 = scmp.lt.u32.totalorder %s4258_s17, %s8035_s14 }
 0xc09   : > { %p4260_p0 = pnand %p4259_p9, %p9247_p13 }
 0xc0a   : > { %p4265_p12 = por %p4264_p2, %p4263_p11 }
 0xc0b   : > { %p4261_p8 = pneg %p4260_p0 }
 0xc0c   : > { %p4267_p6 = por %p4266_p1, %p4265_p12 }
 0xc0e   : > { %p4268_p10 = pnand %p4267_p6, %p4261_p8 }
 0xc10   : > { %4271 = shalt.err (!%p4268_p10)
}
 0xc11   : > { %s4430_s16 = smov 256  }
 0xc12   : > { %3834 = dma.vmem_to_hbm [thread:$0]  (%p9247_p13), %s8030_s5, 512, %s8035_s14, %s3633_s19, %s4430_s16, %s4430_s16, %s4375_s10  }
 0xc13 PF: > { %s9248_s25 = sld [smem:[#allocation18_spill]]  ;;  %s9249_s23 = sld [smem:[#allocation20_spill]] }
 0xc14   : > { %p9251_p5 = scmp.ge.s32.totalorder %s4322_s24, 2 }
 0xc19   : > { %s3661_s18 = sand.u32 1, %s9248_s25   ;;  %p9250_p4 = scmp.ne.s32.totalorder %s9249_s23, 0 }
 0xc1a   : > { %s3662_s21 = scalar_lea.sflag [#allocation6], %s3661_s18 }
 0xc1b   : > { %p3851_p3 = pnand %p9251_p5, %p9250_p4 }
 0xc1d   : > { %4305 = dma.done.wait (!%p3851_p3), %s3662_s21, 512  }
 0xc1e   : > { %4307 = vsyncadd (!%p3851_p3), %s3662_s21, 4294966784  ;;  %s9252_s24 = sld [smem:[#allocation21_spill]]  ;;  %s9253_s28 = sld [smem:[#allocation19_spill]] }
 0xc1f   : > { %s9254_s23 = sld [smem:[#allocation22_spill]]  ;;  %s9255_s21 = smov %s4314_s22 }
 0xc24   : > { %p33_p7 = scmp.ge.s32.totalorder %s9252_s24, 4   ;;  %s9256_s22 = smov %s9253_s28 }
 0xc26   :  { %35 = sbr.rel (!%p33_p7) target bundleno = 17 (0x11), region = 150 }
 0xc2d   :  { %3667 = vsyncpa [#allocation5], 1 }
 0xc2e   :  { %3669 = vsyncpa [#allocation5 + $0x1], 1 }
 0xc2f   :  { %3670 = vsyncpa [#allocation8], 1 }
 0xc30   :  { %3672 = vsyncpa [#allocation8 + $0x1], 1 }
 0xc31   :  { %3673 = vsyncpa [#allocation11], 1 }
 0xc32   :  { %3674 = vsyncpa [#allocation6], 1 }
 0xc33   :  { %3676 = vsyncpa [#allocation6 + $0x1], 1 }

</bundles_post_ra>
